<compile_context>
chip_gen: v5e
topology: v5e:2x2
jax: 0.10.0
libtpu: 0.0.40
codegen_flags: <defaults>
</compile_context>

<pallas_src>
import jax
import jax.numpy as jnp
import numpy as np
from jax.experimental import pallas as pl
from jax.experimental.pallas import tpu as pltpu


_CONV_STRIDES = (3, 2, 1, 1)
_NUM_CONVS = len(_CONV_STRIDES)
_LRELU_SLOPE = 0.01
_BN_EPS = 1e-5


# ----------------------------- Pallas kernel --------------------------------

def _conv_block_body(act, rsel_ref, tap_ref, bias_ref):
    """Conv2d + BatchNorm(eval) + Dropout(identity) + LeakyReLU for one image.

    act:      (H, W*Cin) f32 value, lane index = w*Cin + ci
    rsel_ref: (kh, oh, H) bf16   -- 0/1 row-tap selection matrices
    tap_ref:  (kh, W*Cin, ow*Cout) bf16 -- width taps + Cin mix, BN scale folded
    bias_ref: (1, ow*Cout) f32   -- conv bias + BN shift, tiled over ow
    returns:  (oh, ow*Cout) f32 value, lane index = x*Cout + co
    """
    kh = rsel_ref.shape[0]
    act_bf = act.astype(jnp.bfloat16)
    acc = bias_ref[...]                                   # (1, ow*Cout) f32
    for i in range(kh):                                   # static unroll
        rows = jnp.dot(rsel_ref[i], act_bf,
                       preferred_element_type=jnp.float32).astype(jnp.bfloat16)
        acc = acc + jnp.dot(rows, tap_ref[i],
                            preferred_element_type=jnp.float32)
    return jnp.where(acc > 0.0, acc, _LRELU_SLOPE * acc)


def _fused_forward_kernel(x_ref, *refs):
    """Whole DuelingDQN forward for one image (grid iterates over batch)."""
    conv_refs = refs[:3 * _NUM_CONVS]
    w1_ref, b1_ref, w2_ref, b2_ref = refs[3 * _NUM_CONVS:3 * _NUM_CONVS + 4]
    o_ref = refs[-1]

    act = x_ref[0]                                        # (84, 84*4) f32
    for li in range(_NUM_CONVS):
        rsel_ref, tap_ref, bias_ref = conv_refs[3 * li:3 * li + 3]
        act = _conv_block_body(act, rsel_ref, tap_ref, bias_ref)

    # Fused dueling head; W1 rows are pre-permuted to the (y, x*Cout+co)
    # layout, so the (7, 112) conv output feeds it without any flatten.
    feat = act.astype(jnp.bfloat16)                       # (7, 112)
    h = b1_ref[...]                                       # (1, 128) f32
    for y in range(feat.shape[0]):                        # static unroll (7)
        h = h + jnp.dot(feat[y:y + 1, :], w1_ref[y],
                        preferred_element_type=jnp.float32)
    h = jnp.where(h > 0.0, h, _LRELU_SLOPE * h)
    q = jnp.dot(h.astype(jnp.bfloat16), w2_ref[...],
                preferred_element_type=jnp.float32) + b2_ref[...]   # (1, A+1)

    num_actions = o_ref.shape[-1]
    adv = q[:, :num_actions]
    val = q[:, num_actions:num_actions + 1]
    o_ref[0] = val + (adv - jnp.mean(adv, axis=1, keepdims=True))


# --------------------------- parameter folding -------------------------------

def _prep_conv_layer(conv_params, H, W, stride):
    """Fold conv weight + BN into per-row-tap matmul operands."""
    w, b, gamma, beta, rmean, rvar = conv_params          # w: (Cout, Cin, kh, kw)
    Cout, Cin, kh, kw = w.shape
    oh = (H - kh) // stride + 1
    ow = (W - kw) // stride + 1

    scale = gamma / jnp.sqrt(rvar + _BN_EPS)              # fold BN into weights
    bias_c = beta + (b - rmean) * scale
    whw = jnp.transpose(w, (2, 3, 1, 0)) * scale[None, None, None, :]  # (kh,kw,Cin,Cout)

    # Width-tap selection: S[j, w, x] = 1 iff w == x*stride + j   (constant).
    sel_w = np.zeros((kw, W, ow), np.float32)
    for j in range(kw):
        sel_w[j, np.arange(ow) * stride + j, np.arange(ow)] = 1.0
    taps = jnp.einsum("jwx,ijcd->iwcxd", jnp.asarray(sel_w), whw)
    taps = taps.reshape(kh, W * Cin, ow * Cout).astype(jnp.bfloat16)

    # Row-tap selection: R[i, y, h] = 1 iff h == y*stride + i      (constant).
    sel_h = np.zeros((kh, oh, H), np.float32)
    for i in range(kh):
        sel_h[i, np.arange(oh), np.arange(oh) * stride + i] = 1.0
    rsel = jnp.asarray(sel_h).astype(jnp.bfloat16)

    bias_row = jnp.tile(bias_c, ow).reshape(1, ow * Cout).astype(jnp.float32)
    return (rsel, taps, bias_row), (oh, ow, Cout)


def _prep_head(head_params, oh, ow, Cout):
    """Concatenate advantage|value branches and pre-permute layer-1 rows."""
    wa1, ba1, wa2, ba2, wv1, bv1, wv2, bv2 = head_params
    d_h = wa1.shape[1]                                    # 64
    num_actions = wa2.shape[1]

    # Layer 1: (784, 128); permute rows from PyTorch (C,H,W)-flatten order to
    # the kernel's (y, x*Cout + co) activation layout.
    w1 = jnp.concatenate([wa1, wv1], axis=1)              # (784, 128)
    w1 = w1.reshape(Cout, oh, ow, 2 * d_h).transpose(1, 2, 0, 3)
    w1 = w1.reshape(oh, ow * Cout, 2 * d_h).astype(jnp.bfloat16)   # (7,112,128)
    b1 = jnp.concatenate([ba1, bv1], axis=1).astype(jnp.float32)   # (1, 128)

    # Layer 2: block-diagonal (128, A+1); last column is the value branch.
    w2 = jnp.zeros((2 * d_h, num_actions + 1), jnp.float32)
    w2 = w2.at[:d_h, :num_actions].set(wa2).at[d_h:, num_actions].set(wv2[:, 0])
    w2 = w2.astype(jnp.bfloat16)
    b2 = jnp.concatenate([ba2, bv2], axis=1).astype(jnp.float32)   # (1, A+1)
    return w1, b1, w2, b2, num_actions


# ------------------------------- wrapper -------------------------------------

def _resident_spec(shape):
    """Full-array block, constant index map -> stays VMEM-resident over grid."""
    return pl.BlockSpec(shape, lambda b, _n=len(shape): (0,) * _n)


def dueling_dqn_forward(x_nchw, params):
    """x_nchw: (B, 4, 84, 84) float32 -> (B, num_actions) float32."""
    B, Cin, H, W = x_nchw.shape
    x2d = jnp.transpose(x_nchw, (0, 2, 3, 1)).reshape(B, H, W * Cin)  # (B,84,336)

    operands = [x2d]
    in_specs = [pl.BlockSpec((1, H, W * Cin), lambda b: (b, 0, 0))]

    h_cur, w_cur = H, W
    cout = Cin
    for conv_p, stride in zip(params["convs"], _CONV_STRIDES):
        (rsel, taps, bias_row), (h_cur, w_cur, cout) = _prep_conv_layer(
            conv_p, h_cur, w_cur, stride)
        operands += [rsel, taps, bias_row]
        in_specs += [_resident_spec(rsel.shape), _resident_spec(taps.shape),
                     _resident_spec(bias_row.shape)]

    w1, b1, w2, b2, num_actions = _prep_head(params["head"], h_cur, w_cur, cout)
    operands += [w1, b1, w2, b2]
    in_specs += [_resident_spec(w1.shape), _resident_spec(b1.shape),
                 _resident_spec(w2.shape), _resident_spec(b2.shape)]

    out = pl.pallas_call(
        _fused_forward_kernel,
        out_shape=jax.ShapeDtypeStruct((B, 1, num_actions), jnp.float32),
        grid=(B,),
        in_specs=in_specs,
        out_specs=pl.BlockSpec((1, 1, num_actions), lambda b: (b, 0, 0)),
        compiler_params=pltpu.CompilerParams(
            dimension_semantics=("parallel",)),          # megacore on v7x
    )(*operands)
    return out.reshape(B, num_actions)


# --------------------------- parameter init ----------------------------------

def init_params(key, num_actions):
    conv_shapes = [
        (16, 4, 7, 7),   # Conv2d(4, 16, k=7, s=3)
        (16, 16, 5, 5),  # Conv2d(16, 16, k=5, s=2)
        (16, 16, 3, 3),  # Conv2d(16, 16, k=3, s=1)
        (16, 16, 3, 3),  # Conv2d(16, 16, k=3, s=1)
    ]
    keys = jax.random.split(key, 16)
    ki = iter(keys)
    convs = []
    for shp in conv_shapes:
        cout = shp[0]
        w = 0.05 * jax.random.normal(next(ki), shp, dtype=jnp.float32)
        b = 0.01 * jax.random.normal(next(ki), (cout,), dtype=jnp.float32)
        gamma = jnp.ones((cout,), jnp.float32) + 0.05 * jax.random.normal(
            next(ki), (cout,), dtype=jnp.float32)
        beta = 0.01 * jnp.ones((cout,), jnp.float32)
        rmean = 0.01 * jnp.ones((cout,), jnp.float32)
        rvar = jnp.ones((cout,), jnp.float32)
        convs.append((w, b, gamma, beta, rmean, rvar))

    d_in, d_h = 16 * 7 * 7, 64
    k1, k2, k3, k4 = jax.random.split(keys[-1], 4)
    wa1 = 0.05 * jax.random.normal(k1, (d_in, d_h), dtype=jnp.float32)
    ba1 = jnp.zeros((1, d_h), jnp.float32)
    wa2 = 0.05 * jax.random.normal(k2, (d_h, num_actions), dtype=jnp.float32)
    ba2 = jnp.zeros((1, num_actions), jnp.float32)
    wv1 = 0.05 * jax.random.normal(k3, (d_in, d_h), dtype=jnp.float32)
    bv1 = jnp.zeros((1, d_h), jnp.float32)
    wv2 = 0.05 * jax.random.normal(k4, (d_h, 1), dtype=jnp.float32)
    bv2 = jnp.zeros((1, 1), jnp.float32)
    head = (wa1, ba1, wa2, ba2, wv1, bv1, wv2, bv2)
    return {"convs": convs, "head": head}


# --------------------------------- main ---------------------------------------

if __name__ == "__main__":
    num_actions = 6
    batch = 2
    key = jax.random.PRNGKey(0)
    kx, kp = jax.random.split(key)
    # Linear(16*7*7, ...) in the module forces the 84x84 Atari input size.
    x = jax.random.normal(kx, (batch, 4, 84, 84), dtype=jnp.float32)
    params = init_params(kp, num_actions)

    q_values = jax.jit(dueling_dqn_forward)(x, params)
    q_values = jax.block_until_ready(q_values)
    assert q_values.shape == (batch, num_actions)
    assert q_values.dtype == jnp.float32
    print("KERNEL_OK")
</pallas_src>

<mosaic_0001>
module attributes {stable_mosaic.version = 11 : i64} {
  func.func @_fused_forward_kernel(%arg0: i32, %arg1: memref<1x84x336xf32, #tpu.memory_space<vmem>>, %arg2: memref<7x26x84xbf16, #tpu.memory_space<vmem>>, %arg3: memref<7x336x416xbf16, #tpu.memory_space<vmem>>, %arg4: memref<1x416xf32, #tpu.memory_space<vmem>>, %arg5: memref<5x11x26xbf16, #tpu.memory_space<vmem>>, %arg6: memref<5x416x176xbf16, #tpu.memory_space<vmem>>, %arg7: memref<1x176xf32, #tpu.memory_space<vmem>>, %arg8: memref<3x9x11xbf16, #tpu.memory_space<vmem>>, %arg9: memref<3x176x144xbf16, #tpu.memory_space<vmem>>, %arg10: memref<1x144xf32, #tpu.memory_space<vmem>>, %arg11: memref<3x7x9xbf16, #tpu.memory_space<vmem>>, %arg12: memref<3x144x112xbf16, #tpu.memory_space<vmem>>, %arg13: memref<1x112xf32, #tpu.memory_space<vmem>>, %arg14: memref<7x112x128xbf16, #tpu.memory_space<vmem>>, %arg15: memref<1x128xf32, #tpu.memory_space<vmem>>, %arg16: memref<128x7xbf16, #tpu.memory_space<vmem>>, %arg17: memref<1x7xf32, #tpu.memory_space<vmem>>, %arg18: memref<1x1x6xf32, #tpu.memory_space<vmem>>) attributes {dimension_semantics = [#tpu.dimension_semantics<parallel>], iteration_bounds = array<i64: 2>, scalar_prefetch = 0 : i64, scratch_operands = 0 : i64, tpu.core_type = #tpu.core_type<tc>, window_params = [{transform_indices = @transform_0, window_bounds = array<i64: 1, 84, 336>}, {pipeline_mode = #tpu.pipeline_mode<synchronous>, transform_indices = @transform_1, window_bounds = array<i64: 7, 26, 84>}, {pipeline_mode = #tpu.pipeline_mode<synchronous>, transform_indices = @transform_2, window_bounds = array<i64: 7, 336, 416>}, {pipeline_mode = #tpu.pipeline_mode<synchronous>, transform_indices = @transform_3, window_bounds = array<i64: 1, 416>}, {pipeline_mode = #tpu.pipeline_mode<synchronous>, transform_indices = @transform_4, window_bounds = array<i64: 5, 11, 26>}, {pipeline_mode = #tpu.pipeline_mode<synchronous>, transform_indices = @transform_5, window_bounds = array<i64: 5, 416, 176>}, {pipeline_mode = #tpu.pipeline_mode<synchronous>, transform_indices = @transform_6, window_bounds = array<i64: 1, 176>}, {pipeline_mode = #tpu.pipeline_mode<synchronous>, transform_indices = @transform_7, window_bounds = array<i64: 3, 9, 11>}, {pipeline_mode = #tpu.pipeline_mode<synchronous>, transform_indices = @transform_8, window_bounds = array<i64: 3, 176, 144>}, {pipeline_mode = #tpu.pipeline_mode<synchronous>, transform_indices = @transform_9, window_bounds = array<i64: 1, 144>}, {pipeline_mode = #tpu.pipeline_mode<synchronous>, transform_indices = @transform_10, window_bounds = array<i64: 3, 7, 9>}, {pipeline_mode = #tpu.pipeline_mode<synchronous>, transform_indices = @transform_11, window_bounds = array<i64: 3, 144, 112>}, {pipeline_mode = #tpu.pipeline_mode<synchronous>, transform_indices = @transform_12, window_bounds = array<i64: 1, 112>}, {pipeline_mode = #tpu.pipeline_mode<synchronous>, transform_indices = @transform_13, window_bounds = array<i64: 7, 112, 128>}, {pipeline_mode = #tpu.pipeline_mode<synchronous>, transform_indices = @transform_14, window_bounds = array<i64: 1, 128>}, {pipeline_mode = #tpu.pipeline_mode<synchronous>, transform_indices = @transform_15, window_bounds = array<i64: 128, 7>}, {pipeline_mode = #tpu.pipeline_mode<synchronous>, transform_indices = @transform_16, window_bounds = array<i64: 1, 7>}, {transform_indices = @transform_17, window_bounds = array<i64: 1, 1, 6>}]} {
    %c0 = arith.constant 0 : index
    %c0_0 = arith.constant 0 : index
    %c0_1 = arith.constant 0 : index
    %0 = vector.load %arg1[%c0, %c0_0, %c0_1] : memref<1x84x336xf32, #tpu.memory_space<vmem>>, vector<1x84x336xf32>
    %1 = vector.shape_cast %0 : vector<1x84x336xf32> to vector<84x336xf32>
    %2 = arith.truncf %1 : vector<84x336xf32> to vector<84x336xbf16>
    %c0_2 = arith.constant 0 : index
    %c0_3 = arith.constant 0 : index
    %3 = vector.load %arg4[%c0_2, %c0_3] : memref<1x416xf32, #tpu.memory_space<vmem>>, vector<1x416xf32>
    %c0_4 = arith.constant 0 : index
    %c0_5 = arith.constant 0 : index
    %c0_6 = arith.constant 0 : index
    %4 = vector.load %arg2[%c0_4, %c0_5, %c0_6] : memref<7x26x84xbf16, #tpu.memory_space<vmem>>, vector<1x26x84xbf16>
    %5 = vector.shape_cast %4 : vector<1x26x84xbf16> to vector<26x84xbf16>
    %cst = arith.constant dense<0.000000e+00> : vector<26x336xf32>
    %6 = tpu.matmul %5, %2, %cst {dimension_numbers = #tpu.dot_dimension_numbers<[1], [0], [0], [1], [0, 0, 1, 1], [], []>} : vector<26x84xbf16>, vector<84x336xbf16>, vector<26x336xf32> -> vector<26x336xf32>
    %7 = arith.truncf %6 : vector<26x336xf32> to vector<26x336xbf16>
    %c0_7 = arith.constant 0 : index
    %c0_8 = arith.constant 0 : index
    %c0_9 = arith.constant 0 : index
    %8 = vector.load %arg3[%c0_7, %c0_8, %c0_9] : memref<7x336x416xbf16, #tpu.memory_space<vmem>>, vector<1x336x416xbf16>
    %9 = vector.shape_cast %8 : vector<1x336x416xbf16> to vector<336x416xbf16>
    %cst_10 = arith.constant dense<0.000000e+00> : vector<26x416xf32>
    %10 = tpu.matmul %7, %9, %cst_10 {dimension_numbers = #tpu.dot_dimension_numbers<[1], [0], [0], [1], [0, 0, 1, 1], [], []>} : vector<26x336xbf16>, vector<336x416xbf16>, vector<26x416xf32> -> vector<26x416xf32>
    %11 = vector.broadcast %3 : vector<1x416xf32> to vector<26x416xf32>
    %12 = arith.addf %11, %10 : vector<26x416xf32>
    %c1 = arith.constant 1 : index
    %c0_11 = arith.constant 0 : index
    %c0_12 = arith.constant 0 : index
    %13 = vector.load %arg2[%c1, %c0_11, %c0_12] : memref<7x26x84xbf16, #tpu.memory_space<vmem>>, vector<1x26x84xbf16>
    %14 = vector.shape_cast %13 : vector<1x26x84xbf16> to vector<26x84xbf16>
    %cst_13 = arith.constant dense<0.000000e+00> : vector<26x336xf32>
    %15 = tpu.matmul %14, %2, %cst_13 {dimension_numbers = #tpu.dot_dimension_numbers<[1], [0], [0], [1], [0, 0, 1, 1], [], []>} : vector<26x84xbf16>, vector<84x336xbf16>, vector<26x336xf32> -> vector<26x336xf32>
    %16 = arith.truncf %15 : vector<26x336xf32> to vector<26x336xbf16>
    %c1_14 = arith.constant 1 : index
    %c0_15 = arith.constant 0 : index
    %c0_16 = arith.constant 0 : index
    %17 = vector.load %arg3[%c1_14, %c0_15, %c0_16] : memref<7x336x416xbf16, #tpu.memory_space<vmem>>, vector<1x336x416xbf16>
    %18 = vector.shape_cast %17 : vector<1x336x416xbf16> to vector<336x416xbf16>
    %cst_17 = arith.constant dense<0.000000e+00> : vector<26x416xf32>
    %19 = tpu.matmul %16, %18, %cst_17 {dimension_numbers = #tpu.dot_dimension_numbers<[1], [0], [0], [1], [0, 0, 1, 1], [], []>} : vector<26x336xbf16>, vector<336x416xbf16>, vector<26x416xf32> -> vector<26x416xf32>
    %20 = arith.addf %12, %19 : vector<26x416xf32>
    %c2 = arith.constant 2 : index
    %c0_18 = arith.constant 0 : index
    %c0_19 = arith.constant 0 : index
    %21 = vector.load %arg2[%c2, %c0_18, %c0_19] : memref<7x26x84xbf16, #tpu.memory_space<vmem>>, vector<1x26x84xbf16>
    %22 = vector.shape_cast %21 : vector<1x26x84xbf16> to vector<26x84xbf16>
    %cst_20 = arith.constant dense<0.000000e+00> : vector<26x336xf32>
    %23 = tpu.matmul %22, %2, %cst_20 {dimension_numbers = #tpu.dot_dimension_numbers<[1], [0], [0], [1], [0, 0, 1, 1], [], []>} : vector<26x84xbf16>, vector<84x336xbf16>, vector<26x336xf32> -> vector<26x336xf32>
    %24 = arith.truncf %23 : vector<26x336xf32> to vector<26x336xbf16>
    %c2_21 = arith.constant 2 : index
    %c0_22 = arith.constant 0 : index
    %c0_23 = arith.constant 0 : index
    %25 = vector.load %arg3[%c2_21, %c0_22, %c0_23] : memref<7x336x416xbf16, #tpu.memory_space<vmem>>, vector<1x336x416xbf16>
    %26 = vector.shape_cast %25 : vector<1x336x416xbf16> to vector<336x416xbf16>
    %cst_24 = arith.constant dense<0.000000e+00> : vector<26x416xf32>
    %27 = tpu.matmul %24, %26, %cst_24 {dimension_numbers = #tpu.dot_dimension_numbers<[1], [0], [0], [1], [0, 0, 1, 1], [], []>} : vector<26x336xbf16>, vector<336x416xbf16>, vector<26x416xf32> -> vector<26x416xf32>
    %28 = arith.addf %20, %27 : vector<26x416xf32>
    %c3 = arith.constant 3 : index
    %c0_25 = arith.constant 0 : index
    %c0_26 = arith.constant 0 : index
    %29 = vector.load %arg2[%c3, %c0_25, %c0_26] : memref<7x26x84xbf16, #tpu.memory_space<vmem>>, vector<1x26x84xbf16>
    %30 = vector.shape_cast %29 : vector<1x26x84xbf16> to vector<26x84xbf16>
    %cst_27 = arith.constant dense<0.000000e+00> : vector<26x336xf32>
    %31 = tpu.matmul %30, %2, %cst_27 {dimension_numbers = #tpu.dot_dimension_numbers<[1], [0], [0], [1], [0, 0, 1, 1], [], []>} : vector<26x84xbf16>, vector<84x336xbf16>, vector<26x336xf32> -> vector<26x336xf32>
    %32 = arith.truncf %31 : vector<26x336xf32> to vector<26x336xbf16>
    %c3_28 = arith.constant 3 : index
    %c0_29 = arith.constant 0 : index
    %c0_30 = arith.constant 0 : index
    %33 = vector.load %arg3[%c3_28, %c0_29, %c0_30] : memref<7x336x416xbf16, #tpu.memory_space<vmem>>, vector<1x336x416xbf16>
    %34 = vector.shape_cast %33 : vector<1x336x416xbf16> to vector<336x416xbf16>
    %cst_31 = arith.constant dense<0.000000e+00> : vector<26x416xf32>
    %35 = tpu.matmul %32, %34, %cst_31 {dimension_numbers = #tpu.dot_dimension_numbers<[1], [0], [0], [1], [0, 0, 1, 1], [], []>} : vector<26x336xbf16>, vector<336x416xbf16>, vector<26x416xf32> -> vector<26x416xf32>
    %36 = arith.addf %28, %35 : vector<26x416xf32>
    %c4 = arith.constant 4 : index
    %c0_32 = arith.constant 0 : index
    %c0_33 = arith.constant 0 : index
    %37 = vector.load %arg2[%c4, %c0_32, %c0_33] : memref<7x26x84xbf16, #tpu.memory_space<vmem>>, vector<1x26x84xbf16>
    %38 = vector.shape_cast %37 : vector<1x26x84xbf16> to vector<26x84xbf16>
    %cst_34 = arith.constant dense<0.000000e+00> : vector<26x336xf32>
    %39 = tpu.matmul %38, %2, %cst_34 {dimension_numbers = #tpu.dot_dimension_numbers<[1], [0], [0], [1], [0, 0, 1, 1], [], []>} : vector<26x84xbf16>, vector<84x336xbf16>, vector<26x336xf32> -> vector<26x336xf32>
    %40 = arith.truncf %39 : vector<26x336xf32> to vector<26x336xbf16>
    %c4_35 = arith.constant 4 : index
    %c0_36 = arith.constant 0 : index
    %c0_37 = arith.constant 0 : index
    %41 = vector.load %arg3[%c4_35, %c0_36, %c0_37] : memref<7x336x416xbf16, #tpu.memory_space<vmem>>, vector<1x336x416xbf16>
    %42 = vector.shape_cast %41 : vector<1x336x416xbf16> to vector<336x416xbf16>
    %cst_38 = arith.constant dense<0.000000e+00> : vector<26x416xf32>
    %43 = tpu.matmul %40, %42, %cst_38 {dimension_numbers = #tpu.dot_dimension_numbers<[1], [0], [0], [1], [0, 0, 1, 1], [], []>} : vector<26x336xbf16>, vector<336x416xbf16>, vector<26x416xf32> -> vector<26x416xf32>
    %44 = arith.addf %36, %43 : vector<26x416xf32>
    %c5 = arith.constant 5 : index
    %c0_39 = arith.constant 0 : index
    %c0_40 = arith.constant 0 : index
    %45 = vector.load %arg2[%c5, %c0_39, %c0_40] : memref<7x26x84xbf16, #tpu.memory_space<vmem>>, vector<1x26x84xbf16>
    %46 = vector.shape_cast %45 : vector<1x26x84xbf16> to vector<26x84xbf16>
    %cst_41 = arith.constant dense<0.000000e+00> : vector<26x336xf32>
    %47 = tpu.matmul %46, %2, %cst_41 {dimension_numbers = #tpu.dot_dimension_numbers<[1], [0], [0], [1], [0, 0, 1, 1], [], []>} : vector<26x84xbf16>, vector<84x336xbf16>, vector<26x336xf32> -> vector<26x336xf32>
    %48 = arith.truncf %47 : vector<26x336xf32> to vector<26x336xbf16>
    %c5_42 = arith.constant 5 : index
    %c0_43 = arith.constant 0 : index
    %c0_44 = arith.constant 0 : index
    %49 = vector.load %arg3[%c5_42, %c0_43, %c0_44] : memref<7x336x416xbf16, #tpu.memory_space<vmem>>, vector<1x336x416xbf16>
    %50 = vector.shape_cast %49 : vector<1x336x416xbf16> to vector<336x416xbf16>
    %cst_45 = arith.constant dense<0.000000e+00> : vector<26x416xf32>
    %51 = tpu.matmul %48, %50, %cst_45 {dimension_numbers = #tpu.dot_dimension_numbers<[1], [0], [0], [1], [0, 0, 1, 1], [], []>} : vector<26x336xbf16>, vector<336x416xbf16>, vector<26x416xf32> -> vector<26x416xf32>
    %52 = arith.addf %44, %51 : vector<26x416xf32>
    %c6 = arith.constant 6 : index
    %c0_46 = arith.constant 0 : index
    %c0_47 = arith.constant 0 : index
    %53 = vector.load %arg2[%c6, %c0_46, %c0_47] : memref<7x26x84xbf16, #tpu.memory_space<vmem>>, vector<1x26x84xbf16>
    %54 = vector.shape_cast %53 : vector<1x26x84xbf16> to vector<26x84xbf16>
    %cst_48 = arith.constant dense<0.000000e+00> : vector<26x336xf32>
    %55 = tpu.matmul %54, %2, %cst_48 {dimension_numbers = #tpu.dot_dimension_numbers<[1], [0], [0], [1], [0, 0, 1, 1], [], []>} : vector<26x84xbf16>, vector<84x336xbf16>, vector<26x336xf32> -> vector<26x336xf32>
    %56 = arith.truncf %55 : vector<26x336xf32> to vector<26x336xbf16>
    %c6_49 = arith.constant 6 : index
    %c0_50 = arith.constant 0 : index
    %c0_51 = arith.constant 0 : index
    %57 = vector.load %arg3[%c6_49, %c0_50, %c0_51] : memref<7x336x416xbf16, #tpu.memory_space<vmem>>, vector<1x336x416xbf16>
    %58 = vector.shape_cast %57 : vector<1x336x416xbf16> to vector<336x416xbf16>
    %cst_52 = arith.constant dense<0.000000e+00> : vector<26x416xf32>
    %59 = tpu.matmul %56, %58, %cst_52 {dimension_numbers = #tpu.dot_dimension_numbers<[1], [0], [0], [1], [0, 0, 1, 1], [], []>} : vector<26x336xbf16>, vector<336x416xbf16>, vector<26x416xf32> -> vector<26x416xf32>
    %60 = arith.addf %52, %59 : vector<26x416xf32>
    %cst_53 = arith.constant 0.000000e+00 : f32
    %61 = vector.broadcast %cst_53 : f32 to vector<26x416xf32>
    %62 = arith.cmpf ogt, %60, %61 : vector<26x416xf32>
    %cst_54 = arith.constant 0.00999999977 : f32
    %63 = vector.broadcast %cst_54 : f32 to vector<26x416xf32>
    %64 = arith.mulf %63, %60 : vector<26x416xf32>
    %65 = arith.select %62, %60, %64 : vector<26x416xi1>, vector<26x416xf32>
    %66 = arith.truncf %65 : vector<26x416xf32> to vector<26x416xbf16>
    %c0_55 = arith.constant 0 : index
    %c0_56 = arith.constant 0 : index
    %67 = vector.load %arg7[%c0_55, %c0_56] : memref<1x176xf32, #tpu.memory_space<vmem>>, vector<1x176xf32>
    %c0_57 = arith.constant 0 : index
    %c0_58 = arith.constant 0 : index
    %c0_59 = arith.constant 0 : index
    %68 = vector.load %arg5[%c0_57, %c0_58, %c0_59] : memref<5x11x26xbf16, #tpu.memory_space<vmem>>, vector<1x11x26xbf16>
    %69 = vector.shape_cast %68 : vector<1x11x26xbf16> to vector<11x26xbf16>
    %cst_60 = arith.constant dense<0.000000e+00> : vector<11x416xf32>
    %70 = tpu.matmul %69, %66, %cst_60 {dimension_numbers = #tpu.dot_dimension_numbers<[1], [0], [0], [1], [0, 0, 1, 1], [], []>} : vector<11x26xbf16>, vector<26x416xbf16>, vector<11x416xf32> -> vector<11x416xf32>
    %71 = arith.truncf %70 : vector<11x416xf32> to vector<11x416xbf16>
    %c0_61 = arith.constant 0 : index
    %c0_62 = arith.constant 0 : index
    %c0_63 = arith.constant 0 : index
    %72 = vector.load %arg6[%c0_61, %c0_62, %c0_63] : memref<5x416x176xbf16, #tpu.memory_space<vmem>>, vector<1x416x176xbf16>
    %73 = vector.shape_cast %72 : vector<1x416x176xbf16> to vector<416x176xbf16>
    %cst_64 = arith.constant dense<0.000000e+00> : vector<11x176xf32>
    %74 = tpu.matmul %71, %73, %cst_64 {dimension_numbers = #tpu.dot_dimension_numbers<[1], [0], [0], [1], [0, 0, 1, 1], [], []>} : vector<11x416xbf16>, vector<416x176xbf16>, vector<11x176xf32> -> vector<11x176xf32>
    %75 = vector.broadcast %67 : vector<1x176xf32> to vector<11x176xf32>
    %76 = arith.addf %75, %74 : vector<11x176xf32>
    %c1_65 = arith.constant 1 : index
    %c0_66 = arith.constant 0 : index
    %c0_67 = arith.constant 0 : index
    %77 = vector.load %arg5[%c1_65, %c0_66, %c0_67] : memref<5x11x26xbf16, #tpu.memory_space<vmem>>, vector<1x11x26xbf16>
    %78 = vector.shape_cast %77 : vector<1x11x26xbf16> to vector<11x26xbf16>
    %cst_68 = arith.constant dense<0.000000e+00> : vector<11x416xf32>
    %79 = tpu.matmul %78, %66, %cst_68 {dimension_numbers = #tpu.dot_dimension_numbers<[1], [0], [0], [1], [0, 0, 1, 1], [], []>} : vector<11x26xbf16>, vector<26x416xbf16>, vector<11x416xf32> -> vector<11x416xf32>
    %80 = arith.truncf %79 : vector<11x416xf32> to vector<11x416xbf16>
    %c1_69 = arith.constant 1 : index
    %c0_70 = arith.constant 0 : index
    %c0_71 = arith.constant 0 : index
    %81 = vector.load %arg6[%c1_69, %c0_70, %c0_71] : memref<5x416x176xbf16, #tpu.memory_space<vmem>>, vector<1x416x176xbf16>
    %82 = vector.shape_cast %81 : vector<1x416x176xbf16> to vector<416x176xbf16>
    %cst_72 = arith.constant dense<0.000000e+00> : vector<11x176xf32>
    %83 = tpu.matmul %80, %82, %cst_72 {dimension_numbers = #tpu.dot_dimension_numbers<[1], [0], [0], [1], [0, 0, 1, 1], [], []>} : vector<11x416xbf16>, vector<416x176xbf16>, vector<11x176xf32> -> vector<11x176xf32>
    %84 = arith.addf %76, %83 : vector<11x176xf32>
    %c2_73 = arith.constant 2 : index
    %c0_74 = arith.constant 0 : index
    %c0_75 = arith.constant 0 : index
    %85 = vector.load %arg5[%c2_73, %c0_74, %c0_75] : memref<5x11x26xbf16, #tpu.memory_space<vmem>>, vector<1x11x26xbf16>
    %86 = vector.shape_cast %85 : vector<1x11x26xbf16> to vector<11x26xbf16>
    %cst_76 = arith.constant dense<0.000000e+00> : vector<11x416xf32>
    %87 = tpu.matmul %86, %66, %cst_76 {dimension_numbers = #tpu.dot_dimension_numbers<[1], [0], [0], [1], [0, 0, 1, 1], [], []>} : vector<11x26xbf16>, vector<26x416xbf16>, vector<11x416xf32> -> vector<11x416xf32>
    %88 = arith.truncf %87 : vector<11x416xf32> to vector<11x416xbf16>
    %c2_77 = arith.constant 2 : index
    %c0_78 = arith.constant 0 : index
    %c0_79 = arith.constant 0 : index
    %89 = vector.load %arg6[%c2_77, %c0_78, %c0_79] : memref<5x416x176xbf16, #tpu.memory_space<vmem>>, vector<1x416x176xbf16>
    %90 = vector.shape_cast %89 : vector<1x416x176xbf16> to vector<416x176xbf16>
    %cst_80 = arith.constant dense<0.000000e+00> : vector<11x176xf32>
    %91 = tpu.matmul %88, %90, %cst_80 {dimension_numbers = #tpu.dot_dimension_numbers<[1], [0], [0], [1], [0, 0, 1, 1], [], []>} : vector<11x416xbf16>, vector<416x176xbf16>, vector<11x176xf32> -> vector<11x176xf32>
    %92 = arith.addf %84, %91 : vector<11x176xf32>
    %c3_81 = arith.constant 3 : index
    %c0_82 = arith.constant 0 : index
    %c0_83 = arith.constant 0 : index
    %93 = vector.load %arg5[%c3_81, %c0_82, %c0_83] : memref<5x11x26xbf16, #tpu.memory_space<vmem>>, vector<1x11x26xbf16>
    %94 = vector.shape_cast %93 : vector<1x11x26xbf16> to vector<11x26xbf16>
    %cst_84 = arith.constant dense<0.000000e+00> : vector<11x416xf32>
    %95 = tpu.matmul %94, %66, %cst_84 {dimension_numbers = #tpu.dot_dimension_numbers<[1], [0], [0], [1], [0, 0, 1, 1], [], []>} : vector<11x26xbf16>, vector<26x416xbf16>, vector<11x416xf32> -> vector<11x416xf32>
    %96 = arith.truncf %95 : vector<11x416xf32> to vector<11x416xbf16>
    %c3_85 = arith.constant 3 : index
    %c0_86 = arith.constant 0 : index
    %c0_87 = arith.constant 0 : index
    %97 = vector.load %arg6[%c3_85, %c0_86, %c0_87] : memref<5x416x176xbf16, #tpu.memory_space<vmem>>, vector<1x416x176xbf16>
    %98 = vector.shape_cast %97 : vector<1x416x176xbf16> to vector<416x176xbf16>
    %cst_88 = arith.constant dense<0.000000e+00> : vector<11x176xf32>
    %99 = tpu.matmul %96, %98, %cst_88 {dimension_numbers = #tpu.dot_dimension_numbers<[1], [0], [0], [1], [0, 0, 1, 1], [], []>} : vector<11x416xbf16>, vector<416x176xbf16>, vector<11x176xf32> -> vector<11x176xf32>
    %100 = arith.addf %92, %99 : vector<11x176xf32>
    %c4_89 = arith.constant 4 : index
    %c0_90 = arith.constant 0 : index
    %c0_91 = arith.constant 0 : index
    %101 = vector.load %arg5[%c4_89, %c0_90, %c0_91] : memref<5x11x26xbf16, #tpu.memory_space<vmem>>, vector<1x11x26xbf16>
    %102 = vector.shape_cast %101 : vector<1x11x26xbf16> to vector<11x26xbf16>
    %cst_92 = arith.constant dense<0.000000e+00> : vector<11x416xf32>
    %103 = tpu.matmul %102, %66, %cst_92 {dimension_numbers = #tpu.dot_dimension_numbers<[1], [0], [0], [1], [0, 0, 1, 1], [], []>} : vector<11x26xbf16>, vector<26x416xbf16>, vector<11x416xf32> -> vector<11x416xf32>
    %104 = arith.truncf %103 : vector<11x416xf32> to vector<11x416xbf16>
    %c4_93 = arith.constant 4 : index
    %c0_94 = arith.constant 0 : index
    %c0_95 = arith.constant 0 : index
    %105 = vector.load %arg6[%c4_93, %c0_94, %c0_95] : memref<5x416x176xbf16, #tpu.memory_space<vmem>>, vector<1x416x176xbf16>
    %106 = vector.shape_cast %105 : vector<1x416x176xbf16> to vector<416x176xbf16>
    %cst_96 = arith.constant dense<0.000000e+00> : vector<11x176xf32>
    %107 = tpu.matmul %104, %106, %cst_96 {dimension_numbers = #tpu.dot_dimension_numbers<[1], [0], [0], [1], [0, 0, 1, 1], [], []>} : vector<11x416xbf16>, vector<416x176xbf16>, vector<11x176xf32> -> vector<11x176xf32>
    %108 = arith.addf %100, %107 : vector<11x176xf32>
    %cst_97 = arith.constant 0.000000e+00 : f32
    %109 = vector.broadcast %cst_97 : f32 to vector<11x176xf32>
    %110 = arith.cmpf ogt, %108, %109 : vector<11x176xf32>
    %cst_98 = arith.constant 0.00999999977 : f32
    %111 = vector.broadcast %cst_98 : f32 to vector<11x176xf32>
    %112 = arith.mulf %111, %108 : vector<11x176xf32>
    %113 = arith.select %110, %108, %112 : vector<11x176xi1>, vector<11x176xf32>
    %114 = arith.truncf %113 : vector<11x176xf32> to vector<11x176xbf16>
    %c0_99 = arith.constant 0 : index
    %c0_100 = arith.constant 0 : index
    %115 = vector.load %arg10[%c0_99, %c0_100] : memref<1x144xf32, #tpu.memory_space<vmem>>, vector<1x144xf32>
    %c0_101 = arith.constant 0 : index
    %c0_102 = arith.constant 0 : index
    %c0_103 = arith.constant 0 : index
    %116 = vector.load %arg8[%c0_101, %c0_102, %c0_103] : memref<3x9x11xbf16, #tpu.memory_space<vmem>>, vector<1x9x11xbf16>
    %117 = vector.shape_cast %116 : vector<1x9x11xbf16> to vector<9x11xbf16>
    %cst_104 = arith.constant dense<0.000000e+00> : vector<9x176xf32>
    %118 = tpu.matmul %117, %114, %cst_104 {dimension_numbers = #tpu.dot_dimension_numbers<[1], [0], [0], [1], [0, 0, 1, 1], [], []>} : vector<9x11xbf16>, vector<11x176xbf16>, vector<9x176xf32> -> vector<9x176xf32>
    %119 = arith.truncf %118 : vector<9x176xf32> to vector<9x176xbf16>
    %c0_105 = arith.constant 0 : index
    %c0_106 = arith.constant 0 : index
    %c0_107 = arith.constant 0 : index
    %120 = vector.load %arg9[%c0_105, %c0_106, %c0_107] : memref<3x176x144xbf16, #tpu.memory_space<vmem>>, vector<1x176x144xbf16>
    %121 = vector.shape_cast %120 : vector<1x176x144xbf16> to vector<176x144xbf16>
    %cst_108 = arith.constant dense<0.000000e+00> : vector<9x144xf32>
    %122 = tpu.matmul %119, %121, %cst_108 {dimension_numbers = #tpu.dot_dimension_numbers<[1], [0], [0], [1], [0, 0, 1, 1], [], []>} : vector<9x176xbf16>, vector<176x144xbf16>, vector<9x144xf32> -> vector<9x144xf32>
    %123 = vector.broadcast %115 : vector<1x144xf32> to vector<9x144xf32>
    %124 = arith.addf %123, %122 : vector<9x144xf32>
    %c1_109 = arith.constant 1 : index
    %c0_110 = arith.constant 0 : index
    %c0_111 = arith.constant 0 : index
    %125 = vector.load %arg8[%c1_109, %c0_110, %c0_111] : memref<3x9x11xbf16, #tpu.memory_space<vmem>>, vector<1x9x11xbf16>
    %126 = vector.shape_cast %125 : vector<1x9x11xbf16> to vector<9x11xbf16>
    %cst_112 = arith.constant dense<0.000000e+00> : vector<9x176xf32>
    %127 = tpu.matmul %126, %114, %cst_112 {dimension_numbers = #tpu.dot_dimension_numbers<[1], [0], [0], [1], [0, 0, 1, 1], [], []>} : vector<9x11xbf16>, vector<11x176xbf16>, vector<9x176xf32> -> vector<9x176xf32>
    %128 = arith.truncf %127 : vector<9x176xf32> to vector<9x176xbf16>
    %c1_113 = arith.constant 1 : index
    %c0_114 = arith.constant 0 : index
    %c0_115 = arith.constant 0 : index
    %129 = vector.load %arg9[%c1_113, %c0_114, %c0_115] : memref<3x176x144xbf16, #tpu.memory_space<vmem>>, vector<1x176x144xbf16>
    %130 = vector.shape_cast %129 : vector<1x176x144xbf16> to vector<176x144xbf16>
    %cst_116 = arith.constant dense<0.000000e+00> : vector<9x144xf32>
    %131 = tpu.matmul %128, %130, %cst_116 {dimension_numbers = #tpu.dot_dimension_numbers<[1], [0], [0], [1], [0, 0, 1, 1], [], []>} : vector<9x176xbf16>, vector<176x144xbf16>, vector<9x144xf32> -> vector<9x144xf32>
    %132 = arith.addf %124, %131 : vector<9x144xf32>
    %c2_117 = arith.constant 2 : index
    %c0_118 = arith.constant 0 : index
    %c0_119 = arith.constant 0 : index
    %133 = vector.load %arg8[%c2_117, %c0_118, %c0_119] : memref<3x9x11xbf16, #tpu.memory_space<vmem>>, vector<1x9x11xbf16>
    %134 = vector.shape_cast %133 : vector<1x9x11xbf16> to vector<9x11xbf16>
    %cst_120 = arith.constant dense<0.000000e+00> : vector<9x176xf32>
    %135 = tpu.matmul %134, %114, %cst_120 {dimension_numbers = #tpu.dot_dimension_numbers<[1], [0], [0], [1], [0, 0, 1, 1], [], []>} : vector<9x11xbf16>, vector<11x176xbf16>, vector<9x176xf32> -> vector<9x176xf32>
    %136 = arith.truncf %135 : vector<9x176xf32> to vector<9x176xbf16>
    %c2_121 = arith.constant 2 : index
    %c0_122 = arith.constant 0 : index
    %c0_123 = arith.constant 0 : index
    %137 = vector.load %arg9[%c2_121, %c0_122, %c0_123] : memref<3x176x144xbf16, #tpu.memory_space<vmem>>, vector<1x176x144xbf16>
    %138 = vector.shape_cast %137 : vector<1x176x144xbf16> to vector<176x144xbf16>
    %cst_124 = arith.constant dense<0.000000e+00> : vector<9x144xf32>
    %139 = tpu.matmul %136, %138, %cst_124 {dimension_numbers = #tpu.dot_dimension_numbers<[1], [0], [0], [1], [0, 0, 1, 1], [], []>} : vector<9x176xbf16>, vector<176x144xbf16>, vector<9x144xf32> -> vector<9x144xf32>
    %140 = arith.addf %132, %139 : vector<9x144xf32>
    %cst_125 = arith.constant 0.000000e+00 : f32
    %141 = vector.broadcast %cst_125 : f32 to vector<9x144xf32>
    %142 = arith.cmpf ogt, %140, %141 : vector<9x144xf32>
    %cst_126 = arith.constant 0.00999999977 : f32
    %143 = vector.broadcast %cst_126 : f32 to vector<9x144xf32>
    %144 = arith.mulf %143, %140 : vector<9x144xf32>
    %145 = arith.select %142, %140, %144 : vector<9x144xi1>, vector<9x144xf32>
    %146 = arith.truncf %145 : vector<9x144xf32> to vector<9x144xbf16>
    %c0_127 = arith.constant 0 : index
    %c0_128 = arith.constant 0 : index
    %147 = vector.load %arg13[%c0_127, %c0_128] : memref<1x112xf32, #tpu.memory_space<vmem>>, vector<1x112xf32>
    %c0_129 = arith.constant 0 : index
    %c0_130 = arith.constant 0 : index
    %c0_131 = arith.constant 0 : index
    %148 = vector.load %arg11[%c0_129, %c0_130, %c0_131] : memref<3x7x9xbf16, #tpu.memory_space<vmem>>, vector<1x7x9xbf16>
    %149 = vector.shape_cast %148 : vector<1x7x9xbf16> to vector<7x9xbf16>
    %cst_132 = arith.constant dense<0.000000e+00> : vector<7x144xf32>
    %150 = tpu.matmul %149, %146, %cst_132 {dimension_numbers = #tpu.dot_dimension_numbers<[1], [0], [0], [1], [0, 0, 1, 1], [], []>} : vector<7x9xbf16>, vector<9x144xbf16>, vector<7x144xf32> -> vector<7x144xf32>
    %151 = arith.truncf %150 : vector<7x144xf32> to vector<7x144xbf16>
    %c0_133 = arith.constant 0 : index
    %c0_134 = arith.constant 0 : index
    %c0_135 = arith.constant 0 : index
    %152 = vector.load %arg12[%c0_133, %c0_134, %c0_135] : memref<3x144x112xbf16, #tpu.memory_space<vmem>>, vector<1x144x112xbf16>
    %153 = vector.shape_cast %152 : vector<1x144x112xbf16> to vector<144x112xbf16>
    %cst_136 = arith.constant dense<0.000000e+00> : vector<7x112xf32>
    %154 = tpu.matmul %151, %153, %cst_136 {dimension_numbers = #tpu.dot_dimension_numbers<[1], [0], [0], [1], [0, 0, 1, 1], [], []>} : vector<7x144xbf16>, vector<144x112xbf16>, vector<7x112xf32> -> vector<7x112xf32>
    %155 = vector.broadcast %147 : vector<1x112xf32> to vector<7x112xf32>
    %156 = arith.addf %155, %154 : vector<7x112xf32>
    %c1_137 = arith.constant 1 : index
    %c0_138 = arith.constant 0 : index
    %c0_139 = arith.constant 0 : index
    %157 = vector.load %arg11[%c1_137, %c0_138, %c0_139] : memref<3x7x9xbf16, #tpu.memory_space<vmem>>, vector<1x7x9xbf16>
    %158 = vector.shape_cast %157 : vector<1x7x9xbf16> to vector<7x9xbf16>
    %cst_140 = arith.constant dense<0.000000e+00> : vector<7x144xf32>
    %159 = tpu.matmul %158, %146, %cst_140 {dimension_numbers = #tpu.dot_dimension_numbers<[1], [0], [0], [1], [0, 0, 1, 1], [], []>} : vector<7x9xbf16>, vector<9x144xbf16>, vector<7x144xf32> -> vector<7x144xf32>
    %160 = arith.truncf %159 : vector<7x144xf32> to vector<7x144xbf16>
    %c1_141 = arith.constant 1 : index
    %c0_142 = arith.constant 0 : index
    %c0_143 = arith.constant 0 : index
    %161 = vector.load %arg12[%c1_141, %c0_142, %c0_143] : memref<3x144x112xbf16, #tpu.memory_space<vmem>>, vector<1x144x112xbf16>
    %162 = vector.shape_cast %161 : vector<1x144x112xbf16> to vector<144x112xbf16>
    %cst_144 = arith.constant dense<0.000000e+00> : vector<7x112xf32>
    %163 = tpu.matmul %160, %162, %cst_144 {dimension_numbers = #tpu.dot_dimension_numbers<[1], [0], [0], [1], [0, 0, 1, 1], [], []>} : vector<7x144xbf16>, vector<144x112xbf16>, vector<7x112xf32> -> vector<7x112xf32>
    %164 = arith.addf %156, %163 : vector<7x112xf32>
    %c2_145 = arith.constant 2 : index
    %c0_146 = arith.constant 0 : index
    %c0_147 = arith.constant 0 : index
    %165 = vector.load %arg11[%c2_145, %c0_146, %c0_147] : memref<3x7x9xbf16, #tpu.memory_space<vmem>>, vector<1x7x9xbf16>
    %166 = vector.shape_cast %165 : vector<1x7x9xbf16> to vector<7x9xbf16>
    %cst_148 = arith.constant dense<0.000000e+00> : vector<7x144xf32>
    %167 = tpu.matmul %166, %146, %cst_148 {dimension_numbers = #tpu.dot_dimension_numbers<[1], [0], [0], [1], [0, 0, 1, 1], [], []>} : vector<7x9xbf16>, vector<9x144xbf16>, vector<7x144xf32> -> vector<7x144xf32>
    %168 = arith.truncf %167 : vector<7x144xf32> to vector<7x144xbf16>
    %c2_149 = arith.constant 2 : index
    %c0_150 = arith.constant 0 : index
    %c0_151 = arith.constant 0 : index
    %169 = vector.load %arg12[%c2_149, %c0_150, %c0_151] : memref<3x144x112xbf16, #tpu.memory_space<vmem>>, vector<1x144x112xbf16>
    %170 = vector.shape_cast %169 : vector<1x144x112xbf16> to vector<144x112xbf16>
    %cst_152 = arith.constant dense<0.000000e+00> : vector<7x112xf32>
    %171 = tpu.matmul %168, %170, %cst_152 {dimension_numbers = #tpu.dot_dimension_numbers<[1], [0], [0], [1], [0, 0, 1, 1], [], []>} : vector<7x144xbf16>, vector<144x112xbf16>, vector<7x112xf32> -> vector<7x112xf32>
    %172 = arith.addf %164, %171 : vector<7x112xf32>
    %cst_153 = arith.constant 0.000000e+00 : f32
    %173 = vector.broadcast %cst_153 : f32 to vector<7x112xf32>
    %174 = arith.cmpf ogt, %172, %173 : vector<7x112xf32>
    %cst_154 = arith.constant 0.00999999977 : f32
    %175 = vector.broadcast %cst_154 : f32 to vector<7x112xf32>
    %176 = arith.mulf %175, %172 : vector<7x112xf32>
    %177 = arith.select %174, %172, %176 : vector<7x112xi1>, vector<7x112xf32>
    %178 = arith.truncf %177 : vector<7x112xf32> to vector<7x112xbf16>
    %c0_155 = arith.constant 0 : index
    %c0_156 = arith.constant 0 : index
    %179 = vector.load %arg15[%c0_155, %c0_156] : memref<1x128xf32, #tpu.memory_space<vmem>>, vector<1x128xf32>
    %180 = vector.extract_strided_slice %178 {offsets = [0, 0], sizes = [1, 112], strides = [1, 1]} : vector<7x112xbf16> to vector<1x112xbf16>
    %c0_157 = arith.constant 0 : index
    %c0_158 = arith.constant 0 : index
    %c0_159 = arith.constant 0 : index
    %181 = vector.load %arg14[%c0_157, %c0_158, %c0_159] : memref<7x112x128xbf16, #tpu.memory_space<vmem>>, vector<1x112x128xbf16>
    %182 = vector.shape_cast %181 : vector<1x112x128xbf16> to vector<112x128xbf16>
    %cst_160 = arith.constant dense<0.000000e+00> : vector<1x128xf32>
    %183 = tpu.matmul %180, %182, %cst_160 {dimension_numbers = #tpu.dot_dimension_numbers<[1], [0], [0], [1], [0, 0, 1, 1], [], []>} : vector<1x112xbf16>, vector<112x128xbf16>, vector<1x128xf32> -> vector<1x128xf32>
    %184 = arith.addf %179, %183 : vector<1x128xf32>
    %185 = vector.extract_strided_slice %178 {offsets = [1, 0], sizes = [1, 112], strides = [1, 1]} : vector<7x112xbf16> to vector<1x112xbf16>
    %c1_161 = arith.constant 1 : index
    %c0_162 = arith.constant 0 : index
    %c0_163 = arith.constant 0 : index
    %186 = vector.load %arg14[%c1_161, %c0_162, %c0_163] : memref<7x112x128xbf16, #tpu.memory_space<vmem>>, vector<1x112x128xbf16>
    %187 = vector.shape_cast %186 : vector<1x112x128xbf16> to vector<112x128xbf16>
    %cst_164 = arith.constant dense<0.000000e+00> : vector<1x128xf32>
    %188 = tpu.matmul %185, %187, %cst_164 {dimension_numbers = #tpu.dot_dimension_numbers<[1], [0], [0], [1], [0, 0, 1, 1], [], []>} : vector<1x112xbf16>, vector<112x128xbf16>, vector<1x128xf32> -> vector<1x128xf32>
    %189 = arith.addf %184, %188 : vector<1x128xf32>
    %190 = vector.extract_strided_slice %178 {offsets = [2, 0], sizes = [1, 112], strides = [1, 1]} : vector<7x112xbf16> to vector<1x112xbf16>
    %c2_165 = arith.constant 2 : index
    %c0_166 = arith.constant 0 : index
    %c0_167 = arith.constant 0 : index
    %191 = vector.load %arg14[%c2_165, %c0_166, %c0_167] : memref<7x112x128xbf16, #tpu.memory_space<vmem>>, vector<1x112x128xbf16>
    %192 = vector.shape_cast %191 : vector<1x112x128xbf16> to vector<112x128xbf16>
    %cst_168 = arith.constant dense<0.000000e+00> : vector<1x128xf32>
    %193 = tpu.matmul %190, %192, %cst_168 {dimension_numbers = #tpu.dot_dimension_numbers<[1], [0], [0], [1], [0, 0, 1, 1], [], []>} : vector<1x112xbf16>, vector<112x128xbf16>, vector<1x128xf32> -> vector<1x128xf32>
    %194 = arith.addf %189, %193 : vector<1x128xf32>
    %195 = vector.extract_strided_slice %178 {offsets = [3, 0], sizes = [1, 112], strides = [1, 1]} : vector<7x112xbf16> to vector<1x112xbf16>
    %c3_169 = arith.constant 3 : index
    %c0_170 = arith.constant 0 : index
    %c0_171 = arith.constant 0 : index
    %196 = vector.load %arg14[%c3_169, %c0_170, %c0_171] : memref<7x112x128xbf16, #tpu.memory_space<vmem>>, vector<1x112x128xbf16>
    %197 = vector.shape_cast %196 : vector<1x112x128xbf16> to vector<112x128xbf16>
    %cst_172 = arith.constant dense<0.000000e+00> : vector<1x128xf32>
    %198 = tpu.matmul %195, %197, %cst_172 {dimension_numbers = #tpu.dot_dimension_numbers<[1], [0], [0], [1], [0, 0, 1, 1], [], []>} : vector<1x112xbf16>, vector<112x128xbf16>, vector<1x128xf32> -> vector<1x128xf32>
    %199 = arith.addf %194, %198 : vector<1x128xf32>
    %200 = vector.extract_strided_slice %178 {offsets = [4, 0], sizes = [1, 112], strides = [1, 1]} : vector<7x112xbf16> to vector<1x112xbf16>
    %c4_173 = arith.constant 4 : index
    %c0_174 = arith.constant 0 : index
    %c0_175 = arith.constant 0 : index
    %201 = vector.load %arg14[%c4_173, %c0_174, %c0_175] : memref<7x112x128xbf16, #tpu.memory_space<vmem>>, vector<1x112x128xbf16>
    %202 = vector.shape_cast %201 : vector<1x112x128xbf16> to vector<112x128xbf16>
    %cst_176 = arith.constant dense<0.000000e+00> : vector<1x128xf32>
    %203 = tpu.matmul %200, %202, %cst_176 {dimension_numbers = #tpu.dot_dimension_numbers<[1], [0], [0], [1], [0, 0, 1, 1], [], []>} : vector<1x112xbf16>, vector<112x128xbf16>, vector<1x128xf32> -> vector<1x128xf32>
    %204 = arith.addf %199, %203 : vector<1x128xf32>
    %205 = vector.extract_strided_slice %178 {offsets = [5, 0], sizes = [1, 112], strides = [1, 1]} : vector<7x112xbf16> to vector<1x112xbf16>
    %c5_177 = arith.constant 5 : index
    %c0_178 = arith.constant 0 : index
    %c0_179 = arith.constant 0 : index
    %206 = vector.load %arg14[%c5_177, %c0_178, %c0_179] : memref<7x112x128xbf16, #tpu.memory_space<vmem>>, vector<1x112x128xbf16>
    %207 = vector.shape_cast %206 : vector<1x112x128xbf16> to vector<112x128xbf16>
    %cst_180 = arith.constant dense<0.000000e+00> : vector<1x128xf32>
    %208 = tpu.matmul %205, %207, %cst_180 {dimension_numbers = #tpu.dot_dimension_numbers<[1], [0], [0], [1], [0, 0, 1, 1], [], []>} : vector<1x112xbf16>, vector<112x128xbf16>, vector<1x128xf32> -> vector<1x128xf32>
    %209 = arith.addf %204, %208 : vector<1x128xf32>
    %210 = vector.extract_strided_slice %178 {offsets = [6, 0], sizes = [1, 112], strides = [1, 1]} : vector<7x112xbf16> to vector<1x112xbf16>
    %c6_181 = arith.constant 6 : index
    %c0_182 = arith.constant 0 : index
    %c0_183 = arith.constant 0 : index
    %211 = vector.load %arg14[%c6_181, %c0_182, %c0_183] : memref<7x112x128xbf16, #tpu.memory_space<vmem>>, vector<1x112x128xbf16>
    %212 = vector.shape_cast %211 : vector<1x112x128xbf16> to vector<112x128xbf16>
    %cst_184 = arith.constant dense<0.000000e+00> : vector<1x128xf32>
    %213 = tpu.matmul %210, %212, %cst_184 {dimension_numbers = #tpu.dot_dimension_numbers<[1], [0], [0], [1], [0, 0, 1, 1], [], []>} : vector<1x112xbf16>, vector<112x128xbf16>, vector<1x128xf32> -> vector<1x128xf32>
    %214 = arith.addf %209, %213 : vector<1x128xf32>
    %cst_185 = arith.constant 0.000000e+00 : f32
    %215 = vector.broadcast %cst_185 : f32 to vector<1x128xf32>
    %216 = arith.cmpf ogt, %214, %215 : vector<1x128xf32>
    %cst_186 = arith.constant 0.00999999977 : f32
    %217 = vector.broadcast %cst_186 : f32 to vector<1x128xf32>
    %218 = arith.mulf %217, %214 : vector<1x128xf32>
    %219 = arith.select %216, %214, %218 : vector<1x128xi1>, vector<1x128xf32>
    %220 = arith.truncf %219 : vector<1x128xf32> to vector<1x128xbf16>
    %c0_187 = arith.constant 0 : index
    %c0_188 = arith.constant 0 : index
    %221 = vector.load %arg16[%c0_187, %c0_188] : memref<128x7xbf16, #tpu.memory_space<vmem>>, vector<128x7xbf16>
    %cst_189 = arith.constant dense<0.000000e+00> : vector<1x7xf32>
    %222 = tpu.matmul %220, %221, %cst_189 {dimension_numbers = #tpu.dot_dimension_numbers<[1], [0], [0], [1], [0, 0, 1, 1], [], []>} : vector<1x128xbf16>, vector<128x7xbf16>, vector<1x7xf32> -> vector<1x7xf32>
    %c0_190 = arith.constant 0 : index
    %c0_191 = arith.constant 0 : index
    %223 = vector.load %arg17[%c0_190, %c0_191] : memref<1x7xf32, #tpu.memory_space<vmem>>, vector<1x7xf32>
    %224 = arith.addf %222, %223 : vector<1x7xf32>
    %225 = vector.extract_strided_slice %224 {offsets = [0, 0], sizes = [1, 6], strides = [1, 1]} : vector<1x7xf32> to vector<1x6xf32>
    %226 = vector.extract_strided_slice %224 {offsets = [0, 6], sizes = [1, 1], strides = [1, 1]} : vector<1x7xf32> to vector<1x1xf32>
    %cst_192 = arith.constant dense<0.000000e+00> : vector<1xf32>
    %227 = vector.multi_reduction <add>, %225, %cst_192 [1] : vector<1x6xf32> to vector<1xf32>
    %228 = vector.shape_cast %227 : vector<1xf32> to vector<1x1xf32>
    %cst_193 = arith.constant 6.000000e+00 : f32
    %229 = vector.broadcast %cst_193 : f32 to vector<1x1xf32>
    %230 = arith.divf %228, %229 : vector<1x1xf32>
    %231 = vector.broadcast %230 : vector<1x1xf32> to vector<1x6xf32>
    %232 = arith.subf %225, %231 : vector<1x6xf32>
    %233 = vector.broadcast %226 : vector<1x1xf32> to vector<1x6xf32>
    %234 = arith.addf %233, %232 : vector<1x6xf32>
    %c0_194 = arith.constant 0 : index
    %c0_195 = arith.constant 0 : index
    %c0_196 = arith.constant 0 : index
    %235 = vector.load %arg18[%c0_194, %c0_195, %c0_196] : memref<1x1x6xf32, #tpu.memory_space<vmem>>, vector<1x1x6xf32>
    %236 = vector.shape_cast %235 : vector<1x1x6xf32> to vector<1x6xf32>
    %237 = vector.shape_cast %234 : vector<1x6xf32> to vector<1x1x6xf32>
    tpu.vector_store %arg18[%c0_194, %c0_195, %c0_196], %237 {strides = array<i32>} : memref<1x1x6xf32, #tpu.memory_space<vmem>>, vector<1x1x6xf32>,
    return
  }
  func.func @transform_0(%arg0: i32) -> (i32, i32, i32) {
    %c0_i32 = arith.constant 0 : i32
    %c0_i32_0 = arith.constant 0 : i32
    %c0_i32_1 = arith.constant 0 : i32
    return %arg0, %c0_i32, %c0_i32_0 : i32, i32, i32
  }
  func.func @transform_1(%arg0: i32) -> (i32, i32, i32) {
    %c0_i32 = arith.constant 0 : i32
    %c0_i32_0 = arith.constant 0 : i32
    %c0_i32_1 = arith.constant 0 : i32
    %c0_i32_2 = arith.constant 0 : i32
    return %c0_i32, %c0_i32_0, %c0_i32_1 : i32, i32, i32
  }
  func.func @transform_2(%arg0: i32) -> (i32, i32, i32) {
    %c0_i32 = arith.constant 0 : i32
    %c0_i32_0 = arith.constant 0 : i32
    %c0_i32_1 = arith.constant 0 : i32
    %c0_i32_2 = arith.constant 0 : i32
    return %c0_i32, %c0_i32_0, %c0_i32_1 : i32, i32, i32
  }
  func.func @transform_3(%arg0: i32) -> (i32, i32) {
    %c0_i32 = arith.constant 0 : i32
    %c0_i32_0 = arith.constant 0 : i32
    %c0_i32_1 = arith.constant 0 : i32
    return %c0_i32, %c0_i32_0 : i32, i32
  }
  func.func @transform_4(%arg0: i32) -> (i32, i32, i32) {
    %c0_i32 = arith.constant 0 : i32
    %c0_i32_0 = arith.constant 0 : i32
    %c0_i32_1 = arith.constant 0 : i32
    %c0_i32_2 = arith.constant 0 : i32
    return %c0_i32, %c0_i32_0, %c0_i32_1 : i32, i32, i32
  }
  func.func @transform_5(%arg0: i32) -> (i32, i32, i32) {
    %c0_i32 = arith.constant 0 : i32
    %c0_i32_0 = arith.constant 0 : i32
    %c0_i32_1 = arith.constant 0 : i32
    %c0_i32_2 = arith.constant 0 : i32
    return %c0_i32, %c0_i32_0, %c0_i32_1 : i32, i32, i32
  }
  func.func @transform_6(%arg0: i32) -> (i32, i32) {
    %c0_i32 = arith.constant 0 : i32
    %c0_i32_0 = arith.constant 0 : i32
    %c0_i32_1 = arith.constant 0 : i32
    return %c0_i32, %c0_i32_0 : i32, i32
  }
  func.func @transform_7(%arg0: i32) -> (i32, i32, i32) {
    %c0_i32 = arith.constant 0 : i32
    %c0_i32_0 = arith.constant 0 : i32
    %c0_i32_1 = arith.constant 0 : i32
    %c0_i32_2 = arith.constant 0 : i32
    return %c0_i32, %c0_i32_0, %c0_i32_1 : i32, i32, i32
  }
  func.func @transform_8(%arg0: i32) -> (i32, i32, i32) {
    %c0_i32 = arith.constant 0 : i32
    %c0_i32_0 = arith.constant 0 : i32
    %c0_i32_1 = arith.constant 0 : i32
    %c0_i32_2 = arith.constant 0 : i32
    return %c0_i32, %c0_i32_0, %c0_i32_1 : i32, i32, i32
  }
  func.func @transform_9(%arg0: i32) -> (i32, i32) {
    %c0_i32 = arith.constant 0 : i32
    %c0_i32_0 = arith.constant 0 : i32
    %c0_i32_1 = arith.constant 0 : i32
    return %c0_i32, %c0_i32_0 : i32, i32
  }
  func.func @transform_10(%arg0: i32) -> (i32, i32, i32) {
    %c0_i32 = arith.constant 0 : i32
    %c0_i32_0 = arith.constant 0 : i32
    %c0_i32_1 = arith.constant 0 : i32
    %c0_i32_2 = arith.constant 0 : i32
    return %c0_i32, %c0_i32_0, %c0_i32_1 : i32, i32, i32
  }
  func.func @transform_11(%arg0: i32) -> (i32, i32, i32) {
    %c0_i32 = arith.constant 0 : i32
    %c0_i32_0 = arith.constant 0 : i32
    %c0_i32_1 = arith.constant 0 : i32
    %c0_i32_2 = arith.constant 0 : i32
    return %c0_i32, %c0_i32_0, %c0_i32_1 : i32, i32, i32
  }
  func.func @transform_12(%arg0: i32) -> (i32, i32) {
    %c0_i32 = arith.constant 0 : i32
    %c0_i32_0 = arith.constant 0 : i32
    %c0_i32_1 = arith.constant 0 : i32
    return %c0_i32, %c0_i32_0 : i32, i32
  }
  func.func @transform_13(%arg0: i32) -> (i32, i32, i32) {
    %c0_i32 = arith.constant 0 : i32
    %c0_i32_0 = arith.constant 0 : i32
    %c0_i32_1 = arith.constant 0 : i32
    %c0_i32_2 = arith.constant 0 : i32
    return %c0_i32, %c0_i32_0, %c0_i32_1 : i32, i32, i32
  }
  func.func @transform_14(%arg0: i32) -> (i32, i32) {
    %c0_i32 = arith.constant 0 : i32
    %c0_i32_0 = arith.constant 0 : i32
    %c0_i32_1 = arith.constant 0 : i32
    return %c0_i32, %c0_i32_0 : i32, i32
  }
  func.func @transform_15(%arg0: i32) -> (i32, i32) {
    %c0_i32 = arith.constant 0 : i32
    %c0_i32_0 = arith.constant 0 : i32
    %c0_i32_1 = arith.constant 0 : i32
    return %c0_i32, %c0_i32_0 : i32, i32
  }
  func.func @transform_16(%arg0: i32) -> (i32, i32) {
    %c0_i32 = arith.constant 0 : i32
    %c0_i32_0 = arith.constant 0 : i32
    %c0_i32_1 = arith.constant 0 : i32
    return %c0_i32, %c0_i32_0 : i32, i32
  }
  func.func @transform_17(%arg0: i32) -> (i32, i32, i32) {
    %c0_i32 = arith.constant 0 : i32
    %c0_i32_0 = arith.constant 0 : i32
    %c0_i32_1 = arith.constant 0 : i32
    return %arg0, %c0_i32, %c0_i32_0 : i32, i32, i32
  }
}

</mosaic_0001>

<bundles_post_ra>
// kernel: tile.23
= control target key start
LH: loop header
LB: loop body
LE: loop exit
PB: predicated region body
PF: predicated region fallthrough
CT: control target
= control target key end

     0   :  { %s40_s0 = inlined_call_operand.vmem [shape: f32[16], index: 0, kind: input, shape index: {}]   ;;  %s41_s1 = inlined_call_operand.vmem [shape: f32[26,16], index: 1, kind: output, shape index: {}]  }
   0x1   :  { %v4_v0 = vld [vmem:[%s40_s0] ss:$0 sm:$0xff] }
   0x2   :  { %5 = vst [vmem:[%s41_s1] sm:$0xff] %v4_v0 }
   0x3   :  { %12 = vst [vmem:[%s41_s1 + $0x8] sm:$0xff] %v4_v0 }
   0x4   :  { %13 = vst [vmem:[%s41_s1 + $0x10] sm:$0xff] %v4_v0 }
   0x5   :  { %14 = vst [vmem:[%s41_s1 + $0x18] sm:$0xff] %v4_v0 }

// kernel: tile.24
= control target key start
LH: loop header
LB: loop body
LE: loop exit
PB: predicated region body
PF: predicated region fallthrough
CT: control target
= control target key end

     0   :  { %s88_s8 = smov 112   ;;  %s89_s11 = smov 80   ;;  %vm3_vm0 = vcmask 130048   ;;  %vm9_vm1 = vcmask 1048448   ;;  %vm15_vm2 = vcmask 917248   ;;  %vm21_vm3 = vcmask 786048   ;;  %s141_s0 = inlined_call_operand.vmem [shape: f32[26,16], index: 0, kind: input, shape index: {}]   ;;  %s142_s1 = inlined_call_operand.vmem [shape: f32[1,416], index: 1, kind: output, shape index: {}]  }
   0x1   :  { %v71_v0 = vld [vmem:[%s141_s0 + $0x7] ss:$8 sm:$0x7]   ;;  %v73_v1 = vld [vmem:[%s141_s0 + $0x5] ss:$8 sm:$0x7]  }
   0x2   :  { %7 = vrot.lane.b32.xlu0 %v71_v0, %s88_s8  ;;  %19 = vrot.lane.b32.xlu1 %v73_v1, %s89_s11  ;;  %v75_v2 = vld [vmem:[%s141_s0 + $0x3] ss:$8 sm:$0x7]   ;;  %s90_s14 = smov 48   ;;  %s91_s19 = smov 96   ;;  %vm27_vm4 = vcmask 654848  }
   0x3   :  { %31 = vrot.lane.b32.xlu2 %v75_v2, %s90_s14  ;;  %v72_v3 = vld [vmem:[%s141_s0 + $0x6] ss:$8 sm:$0x7]   ;;  %v74_v4 = vld [vmem:[%s141_s0 + $0x4] ss:$8 sm:$0x7]  }
   0x4   :  { %s92_s20 = smov 64   ;;  %v76_v5 = vld [vmem:[%s141_s0 + $0x2] ss:$8 sm:$0x7]   ;;  %s93_s23 = smov 32   ;;  %vm33_vm5 = vcmask 523648  }
   0x5   :  { %v77_v6 = vld [vmem:[%s141_s0 + $0x1] ss:$8 sm:$0xf]   ;;  %s94_s26 = smov 16   ;;  %vm39_vm6 = vcmask 392448   ;;  %vm45_vm7 = vcmask 261248  }
   0x6   :  { %v2_v7 = vld [vmem:[%s141_s0] ss:$8 sm:$0xf]  }
   0x7   :  { %4 = vst.msk [vmem:[#allocation0] ss:$8 sm:$0xf] %vm3_vm0, %v2_v7  }
   0xa   :  { %13 = vrot.lane.b32.xlu0 %v72_v3, %s91_s19  ;;  %25 = vrot.lane.b32.xlu1 %v74_v4, %s92_s20 }
   0xb   :  { %37 = vrot.lane.b32.xlu2 %v76_v5, %s93_s23 }
  0x12   :  { %43 = vrot.lane.b32.xlu0 %v77_v6, %s94_s26 }
  0x5d   :  { %v32_v8 = vpop.permute.xlu2 %31  }
  0x65   :  { %v38_v9 = vpop.permute.xlu2 %37  }
  0x74   :  { %v8_v10 = vpop.permute.xlu0 %7   ;;  %v20_v11 = vpop.permute.xlu1 %19  }
  0x75   :  { %10 = vst.msk [vmem:[#allocation0] ss:$8 sm:$0x7] %vm9_vm1, %v8_v10  }
  0x7c   :  { %v14_v12 = vpop.permute.xlu0 %13   ;;  %v26_v13 = vpop.permute.xlu1 %25  }
  0x7d   :  { %16 = vst.msk [vmem:[#allocation0] ss:$8 sm:$0x7] %vm15_vm2, %v14_v12  }
  0x7e   :  { %22 = vst.msk [vmem:[#allocation0] ss:$8 sm:$0x7] %vm21_vm3, %v20_v11  }
  0x7f   :  { %28 = vst.msk [vmem:[#allocation0] ss:$8 sm:$0x7] %vm27_vm4, %v26_v13  }
  0x80   :  { %34 = vst.msk [vmem:[#allocation0] ss:$8 sm:$0x7] %vm33_vm5, %v32_v8  }
  0x81   :  { %40 = vst.msk [vmem:[#allocation0] ss:$8 sm:$0x7] %vm39_vm6, %v38_v9  }
  0x84   :  { %v44_v14 = vpop.permute.xlu0 %43  }
  0x85   :  { %46 = vst.msk [vmem:[#allocation0] ss:$8 sm:$0xf] %vm45_vm7, %v44_v14  }
  0x8c   :  { %v49_v15 = vld [vmem:[#allocation0] sm:$0x1]  ;;  %v54_v16 = vld [vmem:[#allocation0 + $0x8] sm:$0x1]  ;;  %v60_v17 = vld [vmem:[#allocation0 + $0x10] sm:$0x1] }
  0x8d   :  { %52 = vst [vmem:[%s142_s1] sm:$0x1] %v49_v15  ;;  %v66_v18 = vld [vmem:[#allocation0 + $0x18] sm:$0x1] }
  0x8e   :  { %78 = vst [vmem:[%s142_s1 + $0x1] sm:$0x1] %v54_v16 }
  0x8f   :  { %79 = vst [vmem:[%s142_s1 + $0x2] sm:$0x1] %v60_v17 }
  0x90   :  { %80 = vst [vmem:[%s142_s1 + $0x3] sm:$0x1] %v66_v18 }

// kernel: tile.28
= control target key start
LH: loop header
LB: loop body
LE: loop exit
PB: predicated region body
PF: predicated region fallthrough
CT: control target
= control target key end

     0   :  { %s28_s0 = inlined_call_operand.vmem [shape: f32[16], index: 0, kind: input, shape index: {}]   ;;  %s29_s1 = inlined_call_operand.vmem [shape: f32[11,16], index: 1, kind: output, shape index: {}]  }
   0x1   :  { %v4_v0 = vld [vmem:[%s28_s0] ss:$0 sm:$0xff] }
   0x2   :  { %5 = vst [vmem:[%s29_s1] sm:$0xff] %v4_v0 }
   0x3   :  { %8 = vst [vmem:[%s29_s1 + $0x8] sm:$0xff] %v4_v0 }

// kernel: tile.29
= control target key start
LH: loop header
LB: loop body
LE: loop exit
PB: predicated region body
PF: predicated region fallthrough
CT: control target
= control target key end

     0   :  { %s77_s10 = smov 112   ;;  %s78_s11 = smov 80   ;;  %vm4_vm0 = vcmask 130048   ;;  %vm10_vm1 = vcmask 1048448   ;;  %vm16_vm2 = vcmask 917248   ;;  %vm22_vm3 = vcmask 786048   ;;  %s124_s0 = inlined_call_operand.vmem [shape: f32[11,16], index: 0, kind: input, shape index: {}]   ;;  %s125_s1 = inlined_call_operand.vmem [shape: f32[1,176], index: 1, kind: output, shape index: {}]  }
   0x1   :  { %v62_v0 = vld [vmem:[%s124_s0 + $0x7] sm:$0x1]   ;;  %v64_v1 = vld [vmem:[%s124_s0 + $0x5] sm:$0x1]   ;;  %v66_v2 = vld [vmem:[%s124_s0 + $0x3] sm:$0x1]  }
   0x2   :  { %8 = vrot.lane.b32.xlu0 %v62_v0, %s77_s10  ;;  %20 = vrot.lane.b32.xlu1 %v64_v1, %s78_s11  ;;  %s79_s14 = smov 48   ;;  %v63_v3 = vld [vmem:[%s124_s0 + $0x6] sm:$0x1]   ;;  %v65_v4 = vld [vmem:[%s124_s0 + $0x4] sm:$0x1]   ;;  %s37_s19 = smov 3 }
   0x3   :  { %32 = vrot.lane.b32.xlu2 %v66_v2, %s79_s14  ;;  %s80_s20 = smov 96   ;;  %s81_s21 = smov 64   ;;  %v67_v5 = vld [vmem:[%s124_s0 + $0x2] ss:$8 sm:%s37_s19]   ;;  %vm28_vm4 = vcmask 654848   ;;  %vm34_vm5 = vcmask 523648  }
   0x4   :  { %s44_s24 = smov 3  ;;  %s82_s25 = smov 32   ;;  %vm41_vm6 = vcmask 392448   ;;  %vm48_vm7 = vcmask 261248  }
   0x5   :  { %v68_v6 = vld [vmem:[%s124_s0 + $0x1] ss:$8 sm:%s44_s24]   ;;  %s83_s28 = smov 16   ;;  %s2_s29 = smov 3 }
   0x6   :  { %v3_v7 = vld [vmem:[%s124_s0] ss:$8 sm:%s2_s29]  }
   0x7   :  { %5 = vst.msk [vmem:[#allocation0] ss:$8 sm:$0x3] %vm4_vm0, %v3_v7  }
   0xa   :  { %14 = vrot.lane.b32.xlu0 %v63_v3, %s80_s20  ;;  %26 = vrot.lane.b32.xlu1 %v65_v4, %s81_s21 }
   0xb   :  { %39 = vrot.lane.b32.xlu2 %v67_v5, %s82_s25 }
  0x12   :  { %46 = vrot.lane.b32.xlu0 %v68_v6, %s83_s28 }
  0x5d   :  { %v33_v8 = vpop.permute.xlu2 %32  }
  0x65   :  { %v40_v9 = vpop.permute.xlu2 %39  }
  0x74   :  { %v9_v10 = vpop.permute.xlu0 %8   ;;  %v21_v11 = vpop.permute.xlu1 %20  }
  0x75   :  { %11 = vst.msk [vmem:[#allocation0] sm:$0x1] %vm10_vm1, %v9_v10  }
  0x7c   :  { %v15_v12 = vpop.permute.xlu0 %14   ;;  %v27_v13 = vpop.permute.xlu1 %26  }
  0x7d   :  { %17 = vst.msk [vmem:[#allocation0] sm:$0x1] %vm16_vm2, %v15_v12  }
  0x7e   :  { %23 = vst.msk [vmem:[#allocation0] sm:$0x1] %vm22_vm3, %v21_v11  }
  0x7f   :  { %29 = vst.msk [vmem:[#allocation0] sm:$0x1] %vm28_vm4, %v27_v13  }
  0x80   :  { %35 = vst.msk [vmem:[#allocation0] sm:$0x1] %vm34_vm5, %v33_v8  }
  0x81   :  { %42 = vst.msk [vmem:[#allocation0] ss:$8 sm:$0x3] %vm41_vm6, %v40_v9  }
  0x84   :  { %v47_v14 = vpop.permute.xlu0 %46  }
  0x85   :  { %49 = vst.msk [vmem:[#allocation0] ss:$8 sm:$0x3] %vm48_vm7, %v47_v14  }
  0x8c   :  { %v52_v15 = vld [vmem:[#allocation0] sm:$0x1]  ;;  %v57_v16 = vld [vmem:[#allocation0 + $0x8] sm:$0x1] }
  0x8d   :  { %55 = vst [vmem:[%s125_s1] sm:$0x1] %v52_v15 }
  0x8e   :  { %69 = vst [vmem:[%s125_s1 + $0x1] sm:$0x1] %v57_v16 }

// kernel: tile.33
= control target key start
LH: loop header
LB: loop body
LE: loop exit
PB: predicated region body
PF: predicated region fallthrough
CT: control target
= control target key end

     0   :  { %s28_s0 = inlined_call_operand.vmem [shape: f32[16], index: 0, kind: input, shape index: {}]   ;;  %s29_s1 = inlined_call_operand.vmem [shape: f32[9,16], index: 1, kind: output, shape index: {}]  }
   0x1   :  { %v4_v0 = vld [vmem:[%s28_s0] ss:$0 sm:$0xff] }
   0x2   :  { %5 = vst [vmem:[%s29_s1] sm:$0xff] %v4_v0 }
   0x3   :  { %8 = vst [vmem:[%s29_s1 + $0x8] sm:$0xff] %v4_v0 }

// kernel: tile.34
= control target key start
LH: loop header
LB: loop body
LE: loop exit
PB: predicated region body
PF: predicated region fallthrough
CT: control target
= control target key end

     0   :  { %s75_s10 = smov 112   ;;  %s76_s11 = smov 80   ;;  %vm4_vm0 = vcmask 130048   ;;  %vm10_vm1 = vcmask 1048448   ;;  %vm16_vm2 = vcmask 917248   ;;  %vm22_vm3 = vcmask 786048   ;;  %s122_s0 = inlined_call_operand.vmem [shape: f32[9,16], index: 0, kind: input, shape index: {}]   ;;  %s123_s1 = inlined_call_operand.vmem [shape: f32[1,144], index: 1, kind: output, shape index: {}]  }
   0x1   :  { %v60_v0 = vld [vmem:[%s122_s0 + $0x7] sm:$0x1]   ;;  %v62_v1 = vld [vmem:[%s122_s0 + $0x5] sm:$0x1]   ;;  %v64_v2 = vld [vmem:[%s122_s0 + $0x3] sm:$0x1]  }
   0x2   :  { %8 = vrot.lane.b32.xlu0 %v60_v0, %s75_s10  ;;  %20 = vrot.lane.b32.xlu1 %v62_v1, %s76_s11  ;;  %s77_s14 = smov 48   ;;  %v61_v3 = vld [vmem:[%s122_s0 + $0x6] sm:$0x1]   ;;  %v63_v4 = vld [vmem:[%s122_s0 + $0x4] sm:$0x1]   ;;  %s78_s21 = smov 96  }
   0x3   :  { %32 = vrot.lane.b32.xlu2 %v64_v2, %s77_s14  ;;  %v65_v5 = vld [vmem:[%s122_s0 + $0x2] sm:$0x1]   ;;  %s79_s22 = smov 64   ;;  %s80_s23 = smov 32   ;;  %v66_v6 = vld [vmem:[%s122_s0 + $0x1] sm:$0x1]  }
   0x4   :  { %s81_s26 = smov 16   ;;  %s2_s27 = smov 3  ;;  %vm28_vm4 = vcmask 654848   ;;  %vm34_vm5 = vcmask 523648   ;;  %vm40_vm6 = vcmask 392448   ;;  %vm46_vm7 = vcmask 261248  }
   0x5   :  { %v3_v7 = vld [vmem:[%s122_s0] ss:$8 sm:%s2_s27]  }
   0x6   :  { %5 = vst.msk [vmem:[#allocation0] ss:$8 sm:$0x3] %vm4_vm0, %v3_v7  }
   0xa   :  { %14 = vrot.lane.b32.xlu0 %v61_v3, %s78_s21  ;;  %26 = vrot.lane.b32.xlu1 %v63_v4, %s79_s22 }
   0xb   :  { %38 = vrot.lane.b32.xlu2 %v65_v5, %s80_s23 }
   0xd   :  { %v55_v8 = vld [vmem:[#allocation0 + $0x8] sm:$0x1] }
   0xe   :  { %67 = vst [vmem:[%s123_s1 + $0x1] sm:$0x1] %v55_v8 }
  0x12   :  { %44 = vrot.lane.b32.xlu0 %v66_v6, %s81_s26 }
  0x5d   :  { %v33_v9 = vpop.permute.xlu2 %32  }
  0x65   :  { %v39_v10 = vpop.permute.xlu2 %38  }
  0x74   :  { %v9_v11 = vpop.permute.xlu0 %8   ;;  %v21_v12 = vpop.permute.xlu1 %20  }
  0x75   :  { %11 = vst.msk [vmem:[#allocation0] sm:$0x1] %vm10_vm1, %v9_v11  }
  0x7c   :  { %v15_v13 = vpop.permute.xlu0 %14   ;;  %v27_v14 = vpop.permute.xlu1 %26  }
  0x7d   :  { %17 = vst.msk [vmem:[#allocation0] sm:$0x1] %vm16_vm2, %v15_v13  }
  0x7e   :  { %23 = vst.msk [vmem:[#allocation0] sm:$0x1] %vm22_vm3, %v21_v12  }
  0x7f   :  { %29 = vst.msk [vmem:[#allocation0] sm:$0x1] %vm28_vm4, %v27_v14  }
  0x80   :  { %35 = vst.msk [vmem:[#allocation0] sm:$0x1] %vm34_vm5, %v33_v9  }
  0x81   :  { %41 = vst.msk [vmem:[#allocation0] sm:$0x1] %vm40_vm6, %v39_v10  }
  0x84   :  { %v45_v15 = vpop.permute.xlu0 %44  }
  0x85   :  { %47 = vst.msk [vmem:[#allocation0] sm:$0x1] %vm46_vm7, %v45_v15  }
  0x8c   :  { %v50_v16 = vld [vmem:[#allocation0] sm:$0x1] }
  0x8d   :  { %53 = vst [vmem:[%s123_s1] sm:$0x1] %v50_v16 }

// kernel: tile.38
= control target key start
LH: loop header
LB: loop body
LE: loop exit
PB: predicated region body
PF: predicated region fallthrough
CT: control target
= control target key end

     0   :  { %s22_s0 = inlined_call_operand.vmem [shape: f32[16], index: 0, kind: input, shape index: {}]   ;;  %s23_s1 = inlined_call_operand.vmem [shape: f32[7,16], index: 1, kind: output, shape index: {}]  }
   0x1   :  { %v4_v0 = vld [vmem:[%s22_s0] ss:$0 sm:$0xff] }
   0x2   :  { %5 = vst [vmem:[%s23_s1] sm:$0xff] %v4_v0 }

// kernel: tile.39
= control target key start
LH: loop header
LB: loop body
LE: loop exit
PB: predicated region body
PF: predicated region fallthrough
CT: control target
= control target key end

     0   :  { %s59_s10 = smov 96   ;;  %s60_s11 = smov 64   ;;  %vm3_vm0 = vcmask 130048   ;;  %vm9_vm1 = vcmask 917248   ;;  %vm15_vm2 = vcmask 786048   ;;  %vm21_vm3 = vcmask 654848   ;;  %s99_s0 = inlined_call_operand.vmem [shape: f32[7,16], index: 0, kind: input, shape index: {}]   ;;  %s100_s1 = inlined_call_operand.vmem [shape: f32[1,112], index: 1, kind: output, shape index: {}]  }
   0x1   :  { %v47_v0 = vld [vmem:[%s99_s0 + $0x6] sm:$0x1]   ;;  %v49_v1 = vld [vmem:[%s99_s0 + $0x4] sm:$0x1]   ;;  %v51_v2 = vld [vmem:[%s99_s0 + $0x2] sm:$0x1]  }
   0x2   :  { %7 = vrot.lane.b32.xlu0 %v47_v0, %s59_s10  ;;  %19 = vrot.lane.b32.xlu1 %v49_v1, %s60_s11  ;;  %s61_s14 = smov 32   ;;  %v48_v3 = vld [vmem:[%s99_s0 + $0x5] sm:$0x1]   ;;  %v50_v4 = vld [vmem:[%s99_s0 + $0x3] sm:$0x1]   ;;  %s62_s21 = smov 80  }
   0x3   :  { %31 = vrot.lane.b32.xlu2 %v51_v2, %s61_s14  ;;  %v52_v5 = vld [vmem:[%s99_s0 + $0x1] sm:$0x1]   ;;  %s63_s22 = smov 48   ;;  %s64_s23 = smov 16   ;;  %v2_v6 = vld [vmem:[%s99_s0] sm:$0x1]  }
   0x4   :  { %4 = vst.msk [vmem:[#allocation0] sm:$0x1] %vm3_vm0, %v2_v6   ;;  %vm27_vm4 = vcmask 523648   ;;  %vm33_vm5 = vcmask 392448   ;;  %vm39_vm6 = vcmask 261248  }
   0xa   :  { %13 = vrot.lane.b32.xlu0 %v48_v3, %s62_s21  ;;  %25 = vrot.lane.b32.xlu1 %v50_v4, %s63_s22 }
   0xb   :  { %37 = vrot.lane.b32.xlu2 %v52_v5, %s64_s23 }
  0x5d   :  { %v32_v7 = vpop.permute.xlu2 %31  }
  0x65   :  { %v38_v8 = vpop.permute.xlu2 %37  }
  0x74   :  { %v8_v9 = vpop.permute.xlu0 %7   ;;  %v20_v10 = vpop.permute.xlu1 %19  }
  0x75   :  { %10 = vst.msk [vmem:[#allocation0] sm:$0x1] %vm9_vm1, %v8_v9  }
  0x7c   :  { %v14_v11 = vpop.permute.xlu0 %13   ;;  %v26_v12 = vpop.permute.xlu1 %25  }
  0x7d   :  { %16 = vst.msk [vmem:[#allocation0] sm:$0x1] %vm15_vm2, %v14_v11  }
  0x7e   :  { %22 = vst.msk [vmem:[#allocation0] sm:$0x1] %vm21_vm3, %v20_v10  }
  0x7f   :  { %28 = vst.msk [vmem:[#allocation0] sm:$0x1] %vm27_vm4, %v26_v12  }
  0x80   :  { %34 = vst.msk [vmem:[#allocation0] sm:$0x1] %vm33_vm5, %v32_v7  }
  0x81   :  { %40 = vst.msk [vmem:[#allocation0] sm:$0x1] %vm39_vm6, %v38_v8  }
  0x88   :  { %v43_v13 = vld [vmem:[#allocation0] sm:$0x1] }
  0x89   :  { %46 = vst [vmem:[%s100_s1] sm:$0x1] %v43_v13 }

// kernel: dueling_dqn_forward.1
= control target key start
LH: loop header
LB: loop body
LE: loop exit
PB: predicated region body
PF: predicated region fallthrough
CT: control target
= control target key end

     0   :  { %s24906_s0 = inlined_call_operand.vmem [shape: f32[2,84,336], index: 0, kind: input, shape index: {}]   ;;  %s24907_s1 = inlined_call_operand.vmem [shape: bf16[7,26,84], index: 1, kind: input, shape index: {}]   ;;  %s24908_s2 = inlined_call_operand.vmem [shape: bf16[7,336,416], index: 2, kind: input, shape index: {}]   ;;  %s24909_s3 = inlined_call_operand.vmem [shape: f32[1,416], index: 3, kind: input, shape index: {}]   ;;  %s24910_s4 = inlined_call_operand.vmem [shape: bf16[5,11,26], index: 4, kind: input, shape index: {}]   ;;  %s24911_s5 = inlined_call_operand.vmem [shape: bf16[5,416,176], index: 5, kind: input, shape index: {}]   ;;  %s24912_s6 = inlined_call_operand.vmem [shape: f32[1,176], index: 6, kind: input, shape index: {}]   ;;  %s24913_s7 = inlined_call_operand.vmem [shape: bf16[3,9,11], index: 7, kind: input, shape index: {}]   ;;  %s24914_s8 = inlined_call_operand.vmem [shape: bf16[3,176,144], index: 8, kind: input, shape index: {}]   ;;  %s24915_s9 = inlined_call_operand.vmem [shape: f32[1,144], index: 9, kind: input, shape index: {}]   ;;  %s24916_s10 = inlined_call_operand.vmem [shape: bf16[3,7,9], index: 10, kind: input, shape index: {}]   ;;  %s24917_s11 = inlined_call_operand.vmem [shape: bf16[3,144,112], index: 11, kind: input, shape index: {}]   ;;  %s24918_s12 = inlined_call_operand.vmem [shape: f32[1,112], index: 12, kind: input, shape index: {}]   ;;  %s24919_s13 = inlined_call_operand.vmem [shape: bf16[7,112,128], index: 13, kind: input, shape index: {}]   ;;  %s24920_s14 = inlined_call_operand.vmem [shape: f32[1,128], index: 14, kind: input, shape index: {}]   ;;  %s24921_s15 = inlined_call_operand.vmem [shape: bf16[128,7], index: 15, kind: input, shape index: {}]   ;;  %s24922_s16 = inlined_call_operand.vmem [shape: f32[1,7], index: 16, kind: input, shape index: {}]   ;;  %s24923_s17 = inlined_call_operand.hbm [shape: f32[2,1,6], index: 17, kind: output, shape index: {}]  }
   0x1   :  { %24939 = sst [smem:[#allocation131_spill]] %s24906_s0 }
   0x2   :  { %24940 = sst [smem:[#allocation132_spill]] %s24907_s1 }
   0x3   :  { %24941 = sst [smem:[#allocation133_spill]] %s24908_s2 }
   0x4   :  { %24942 = sst [smem:[#allocation134_spill]] %s24909_s3 }
   0x5   :  { %22 = vsyncpa [#allocation3], 0 }
   0x6   :  { %24 = vsyncpa [#allocation3 + $0x1], 0  ;;  %s17349_s24 = smov 0   ;;  %s17351_s25 = smov 0  }
   0x7   :  { %s17353_s26 = smov 0   ;;  %s17355_s27 = smov 0  }
   0x8 LB: > { %24943 = sst [smem:[#allocation5_spill]] %s17242_s24  ;;  %s17370_s28 = sadd.s32 4294967295, %s17254_s27   ;;  %s17254_s27 = sphi %s17355_s27, %s25198_s27   ;;  %s17250_s26 = sphi %s17353_s26, %s25200_s26   ;;  %s17246_s25 = sphi %s17351_s25, %s25202_s25   ;;  %s17242_s24 = sphi %s17349_s24, %s25201_s24  }
   0x9   : > { %24944 = sst [smem:[#allocation6_spill]] %s17250_s26  ;;  %s10960_s29 = sadd.s32 4294967294, %s17254_s27  }
   0xa   : > { %24945 = sst [smem:[#allocation7_spill]] %s17254_s27  ;;  %s17374_s0 = sadd.s32 1, %s17254_s27  }
   0xb   : > { %24946 = sst [smem:[#allocation8_spill]] %s17374_s0  ;;  %s399_s30 = sadd.s32 1, %s17250_s26 }
   0xc   : > { %s396_s18 = ssub.s32 %s17254_s27, %s17374_s0  ;;  %p409_p0 = scmp.ne.s32.totalorder %s17250_s26, %s17246_s25 }
   0xd   : > { %p397_p1 = scmp.eq.s32.totalorder %s396_s18, 0  ;;  %p410_p2 = scmp.eq.s32.totalorder %s17370_s28, 1 }
   0xe   : > { %p415_p3 = scmp.ne.s32.totalorder %s17246_s25, %s17242_s24  ;;  %p416_p4 = scmp.eq.s32.totalorder %s10960_s29, 1 }
   0xf   : > { %s17385_s19 = scalar_select %p397_p1, %s17250_s26, %s399_s30  }
  0x10   : > { %p17387_p5 = por %p410_p2, %p409_p0  ;;  %p17391_p6 = por %p416_p4, %p415_p3 }
  0x11   : > { %24947 = sst [smem:[#allocation9_spill]] %s17385_s19  ;;  %p10963_p7 = scmp.ge.s32.totalorder %s17254_s27, 1 }
  0x12   : > { %s24948_s1 = scalar_select %p17387_p5, 1, 0 }
  0x13   : > { %s24950_s20 = scalar_select %p17391_p6, 1, 0 }
  0x14   : > { %24949 = sst [smem:[#allocation10_spill]] %s24948_s1  ;;  %p490_p8 = scmp.lt.s32.totalorder %s17254_s27, 3 }
  0x15   : > { %24951 = sst [smem:[#allocation11_spill]] %s24950_s20 }
  0x16   : > { %p491_p9 = pnand %p10963_p7, %p490_p8 }
  0x18   : > { %494 = sbr.rel (%p491_p9) target bundleno = 4301 (0x10cd), region = 88 }
  0x1d   : > { %p541_p10 = scmp.lt.s32.totalorder %s17370_s28, 1  ;;  %s24952_s30 = sld [smem:[#allocation131_spill]]  ;;  %vm620_vm0 = vcmask 1041408   ;;  %vm613_vm1 = vcmask 687104   ;;  %vm1197_vm2 = vcmask 654336   ;;  %vm6559_vm6 = vcmask 1044480  }
  0x1e   : > { %s24953_s2 = sld [smem:[#allocation133_spill]]  ;;  %vm6555_vm8 = vcmask 211968   ;;  %s539_s27 = sand.u32 1, %s17246_s25  }
  0x1f   : > { %s542_s21 = scalar_select %p541_p10, %s17370_s28, 1 }
  0x20   : > { %s24965_s3 = sld [smem:[#allocation134_spill]]  ;;  %s540_s26 = scalar_lea.vmem [#allocation2], %s539_s27 }
  0x21   : > { %s17145_s22 = smul.u32 264, %s542_s21  ;;  %s24954_s21 = sld [smem:[#allocation132_spill]] }
  0x22   : > { %s10903_s0 = sshll.u32 %s540_s26, 4  ;;  %s17212_s23 = scalar_lea.hbm %s24923_s17, 2  ;;  %s10904_s0 = int_to_ptr.vmem [resolvable:$true] %s10903_s0 }
  0x23   : > { %s17402_s18 = scalar_lea.vmem %s24952_s30, %s17145_s22  ;;  %s10901_s30 = scalar_lea.hbm %s24923_s17, %s17370_s28 }
  0x24   : > { %v577_v0 = vld [vmem:[%s17402_s18 + $0xf0] sm:$0xf]  ;;  %v578_v1 = vld [vmem:[%s17402_s18 + $0xf8] sm:$0xf]  ;;  %v579_v2 = vld [vmem:[%s17402_s18 + $0x100] sm:$0xf] }
  0x25   : > { %v595_v3 = vpack.c.bf16 %v577_v0, %v577_v0  ;;  %v596_v4 = vpack.c.bf16 %v578_v1, %v578_v1  ;;  %v597_v5 = vpack.c.bf16 %v579_v2, %v579_v2  ;;  %v571_v6 = vld [vmem:[%s17402_s18 + $0xc0] sm:$0xff]  ;;  %v574_v7 = vld [vmem:[%s17402_s18 + $0xd8] sm:$0xff]  ;;  %v572_v8 = vld [vmem:[%s17402_s18 + $0xc8] sm:$0xff]  ;;  %s10893_s22 = scalar_lea.sflag [#allocation3], %s539_s27 }
  0x26   : > { %v575_v9 = vld [vmem:[%s17402_s18 + $0xe0] sm:$0xff]  ;;  %v573_v10 = vld [vmem:[%s17402_s18 + $0xd0] sm:$0xff]  ;;  %v576_v11 = vld [vmem:[%s17402_s18 + $0xe8] sm:$0xff]  ;;  %v17421_v15 = vpack.c.bf16 %v574_v7, %v571_v6 }
  0x27   : > { %v17413_v12 = vsel %vm620_vm0, %v595_v3, 0  ;;  %v17415_v13 = vsel %vm620_vm0, %v596_v4, 0  ;;  %v17417_v14 = vsel %vm620_vm0, %v597_v5, 0  ;;  %v17423_v16 = vpack.c.bf16 %v575_v9, %v572_v8  ;;  %v565_v17 = vld [vmem:[%s17402_s18 + $0x90] sm:$0xff]  ;;  %v568_v19 = vld [vmem:[%s17402_s18 + $0xa8] sm:$0xff]  ;;  %v566_v20 = vld [vmem:[%s17402_s18 + $0x98] sm:$0xff] }
  0x28   : > { %632 = vmatpush.bf16.msra.mxu0 %v17413_v12  ;;  %651 = vmatpush.bf16.msra.mxu1 %v17415_v13  ;;  %v17427_v18 = vpack.c.bf16 %v576_v11, %v573_v10  ;;  %v569_v21 = vld [vmem:[%s17402_s18 + $0xb0] sm:$0xff]  ;;  %v567_v22 = vld [vmem:[%s17402_s18 + $0xa0] sm:$0xff]  ;;  %v570_v23 = vld [vmem:[%s17402_s18 + $0xb8] sm:$0xff]  ;;  %v17436_v24 = vpack.c.bf16 %v568_v19, %v565_v17 }
  0x29   : > { %670 = vmatpush.bf16.msra.mxu2 %v17417_v14  ;;  %v17438_v25 = vpack.c.bf16 %v569_v21, %v566_v20  ;;  %v559_v26 = vld [vmem:[%s17402_s18 + $0x60] sm:$0xff]  ;;  %v17442_v27 = vpack.c.bf16 %v570_v23, %v567_v22  ;;  %v562_v28 = vld [vmem:[%s17402_s18 + $0x78] sm:$0xff]  ;;  %v560_v29 = vld [vmem:[%s17402_s18 + $0x68] sm:$0xff] }
  0x2a   : > { %v563_v30 = vld [vmem:[%s17402_s18 + $0x80] sm:$0xff]  ;;  %v561_v31 = vld [vmem:[%s17402_s18 + $0x70] sm:$0xff]  ;;  %v564_v32 = vld [vmem:[%s17402_s18 + $0x88] sm:$0xff]  ;;  %v17452_v34 = vpack.c.bf16 %v562_v28, %v559_v26 }
  0x2b   : > { %v553_v33 = vld [vmem:[%s17402_s18 + $0x30] sm:$0xff]  ;;  %v17454_v35 = vpack.c.bf16 %v563_v30, %v560_v29  ;;  %v556_v36 = vld [vmem:[%s17402_s18 + $0x48] sm:$0xff]  ;;  %v11093_v37 = vld [vmem:[%s24953_s2 + $0xe0] sm:$0xf]  ;;  %v17464_v39 = vpack.c.bf16 %v564_v32, %v561_v31 }
  0x2c   : > { %633 = vmatpush.bf16.msra.mxu0 %v17421_v15  ;;  %652 = vmatpush.bf16.msra.mxu1 %v17423_v16  ;;  %v16149_v38 = vld [vmem:[%s24953_s2 + $0xec] sm:$0xf0]  ;;  %v554_v40 = vld [vmem:[%s17402_s18 + $0x38] sm:$0xff]  ;;  %v555_v42 = vld [vmem:[%s17402_s18 + $0x40] sm:$0xff]  ;;  %v17479_v49 = vpack.c.bf16 %v556_v36, %v553_v33 }
  0x2d   : > { %671 = vmatpush.bf16.msra.mxu2 %v17427_v18  ;;  %v557_v41 = vld [vmem:[%s17402_s18 + $0x50] sm:$0xff]  ;;  %v11094_v43 = vor.u32 %v16149_v38, %v11093_v37  ;;  %v558_v44 = vld [vmem:[%s17402_s18 + $0x58] sm:$0xff]  ;;  %v11077_v45 = vld [vmem:[%s24953_s2 + $0xc0] sm:$0xf] }
  0x2e   : > { %v16145_v46 = vld [vmem:[%s24953_s2 + $0xcc] sm:$0xf0]  ;;  %v547_v47 = vld [vmem:[%s17402_s18] sm:$0xff]  ;;  %v17481_v50 = vpack.c.bf16 %v557_v41, %v554_v40  ;;  %v550_v51 = vld [vmem:[%s17402_s18 + $0x18] sm:$0xff]  ;;  %v17491_v54 = vpack.c.bf16 %v558_v44, %v555_v42 }
  0x2f   : > { %1204 = vmatpush.bf16.msra.mxu3 %v11094_v43  ;;  %v11078_v48 = vor.u32 %v16145_v46, %v11077_v45  ;;  %v11061_v52 = vld [vmem:[%s24953_s2 + $0xa0] sm:$0xf]  ;;  %v16141_v53 = vld [vmem:[%s24953_s2 + $0xac] sm:$0xf0]  ;;  %v548_v55 = vld [vmem:[%s17402_s18 + $0x8] sm:$0xff]  ;;  %v17511_v0 = vpack.c.bf16 %v550_v51, %v547_v47 }
  0x30   : > { %634 = vmatpush.bf16.msra.mxu0 %v17436_v24  ;;  %653 = vmatpush.bf16.msra.mxu1 %v17438_v25  ;;  %v551_v56 = vld [vmem:[%s17402_s18 + $0x20] sm:$0xff]  ;;  %v549_v57 = vld [vmem:[%s17402_s18 + $0x10] sm:$0xff]  ;;  %v552_v58 = vld [vmem:[%s17402_s18 + $0x28] sm:$0xff]  ;;  %v11062_v63 = vor.u32 %v16141_v53, %v11061_v52  ;;  %s10905_s18 = sshll.u32 %s10901_s30, 4  ;;  %s10906_s18 = int_to_ptr.hbm [resolvable:$true] %s10905_s18 }
  0x31   : > { %672 = vmatpush.bf16.msra.mxu2 %v17442_v27  ;;  %v11221_v59 = vld [vmem:[%s24953_s2 + $0x1e0] sm:$0xf]  ;;  %v16181_v60 = vld [vmem:[%s24953_s2 + $0x1ec] sm:$0xf0]  ;;  %v16147_v61 = vld [vmem:[%s24953_s2 + $0xe4] sm:$0xf]  ;;  %v17513_v1 = vpack.c.bf16 %v551_v56, %v548_v55  ;;  %v17516_v2 = vpack.c.bf16 %v552_v58, %v549_v57 }
  0x32   : > { %v11095_v62 = vld [vmem:[%s24953_s2 + $0xf0] sm:$0xf0]  ;;  %v11222_v3 = vor.u32 %v16181_v60, %v11221_v59  ;;  %v11205_v4 = vld [vmem:[%s24953_s2 + $0x1c0] sm:$0xf]  ;;  %v16137_v6 = vld [vmem:[%s24953_s2 + $0x8c] sm:$0xf0] }
  0x33   : > { %1205 = vmatpush.bf16.msra.mxu3 %v11078_v48  ;;  %v11045_v5 = vld [vmem:[%s24953_s2 + $0x80] sm:$0xf]  ;;  %v11098_v7 = vor.u32 %v16147_v61, %v11095_v62  ;;  %v16177_v8 = vld [vmem:[%s24953_s2 + $0x1cc] sm:$0xf0]  ;;  %v16143_v17 = vld [vmem:[%s24953_s2 + $0xc4] sm:$0xf] }
  0x34   : > { %635 = vmatpush.bf16.msra.mxu0 %v17452_v34  ;;  %654 = vmatpush.bf16.msra.mxu1 %v17454_v35  ;;  %v11301_v9 = vld [vmem:[%s24953_s2 + $0x280] sm:$0xf]  ;;  %v16201_v10 = vld [vmem:[%s24953_s2 + $0x28c] sm:$0xf0]  ;;  %v11079_v19 = vld [vmem:[%s24953_s2 + $0xd0] sm:$0xf0]  ;;  %v11046_v21 = vor.u32 %v16137_v6, %v11045_v5  ;;  %v11206_v22 = vor.u32 %v16177_v8, %v11205_v4 }
  0x35   : > { %673 = vmatpush.bf16.msra.mxu2 %v17464_v39  ;;  %v16117_v11 = vld [vmem:[%s24954_s21] sm:$0xff]  ;;  %v11302_v20 = vor.u32 %v16201_v10, %v11301_v9  ;;  %v16133_v26 = vld [vmem:[%s24953_s2 + $0x6c] sm:$0xf0]  ;;  %v11082_v28 = vor.u32 %v16143_v17, %v11079_v19  ;;  %v11063_v32 = vld [vmem:[%s24953_s2 + $0xb0] sm:$0xf0]  ;;  %s17206_s19 = sshra.s32 %s10906_s18, 4  ;;  %s17207_s19 = int_to_ptr.hbm [resolvable:$true] %s17206_s19 }
  0x36   : > { %v11029_v23 = vld [vmem:[%s24953_s2 + $0x60] sm:$0xf]  ;;  %v16173_v30 = vld [vmem:[%s24953_s2 + $0x1ac] sm:$0xf0]  ;;  %v16139_v31 = vld [vmem:[%s24953_s2 + $0xa4] sm:$0xf]  ;;  %p17213_p0 = scmp.lt.s32.totalorder %s17207_s19, %s24923_s17 }
  0x37   : > { %1206 = vmatpush.bf16.msra.mxu3 %v11062_v63  ;;  %v11189_v29 = vld [vmem:[%s24953_s2 + $0x1a0] sm:$0xf]  ;;  %v11030_v33 = vor.u32 %v16133_v26, %v11029_v23  ;;  %v11066_v37 = vor.u32 %v16139_v31, %v11063_v32  ;;  %v16169_v40 = vld [vmem:[%s24953_s2 + $0x18c] sm:$0xf0]  ;;  %v16135_v41 = vld [vmem:[%s24953_s2 + $0x84] sm:$0xf] }
  0x38   : > { %636 = vmatpush.bf16.msra.mxu0 %v17479_v49  ;;  %655 = vmatpush.bf16.msra.mxu1 %v17481_v50  ;;  %v11190_v36 = vor.u32 %v16173_v30, %v11189_v29  ;;  %v11173_v38 = vld [vmem:[%s24953_s2 + $0x180] sm:$0xf]  ;;  %v11047_v42 = vld [vmem:[%s24953_s2 + $0x90] sm:$0xf0]  ;;  %v16165_v46 = vld [vmem:[%s24953_s2 + $0x16c] sm:$0xf0] }
  0x39   : > { %674 = vmatpush.bf16.msra.mxu2 %v17491_v54  ;;  %v11174_v43 = vor.u32 %v16169_v40, %v11173_v38  ;;  %v11050_v44 = vor.u32 %v16135_v41, %v11047_v42  ;;  %v11157_v45 = vld [vmem:[%s24953_s2 + $0x160] sm:$0xf]  ;;  %v16131_v47 = vld [vmem:[%s24953_s2 + $0x64] sm:$0xf]  ;;  %v11031_v48 = vld [vmem:[%s24953_s2 + $0x70] sm:$0xf0] }
  0x3a   : > { %v10971_v51 = vld [vmem:[%s24954_s21 + $0x8] sm:$0xf]  ;;  %v16118_v52 = vld [vmem:[%s24954_s21 + $0x8] sm:$0x10]  ;;  %v11158_v53 = vor.u32 %v16165_v46, %v11157_v45  ;;  %v11034_v55 = vor.u32 %v16131_v47, %v11031_v48  ;;  %v11013_v57 = vld [vmem:[%s24953_s2 + $0x40] sm:$0xf] }
  0x3b   : > { %1207 = vmatpush.bf16.msra.mxu3 %v11046_v21  ;;  %v10972_v56 = vor.u32 %v16118_v52, %v10971_v51  ;;  %v16129_v58 = vld [vmem:[%s24953_s2 + $0x4c] sm:$0xf0]  ;;  %v11141_v59 = vld [vmem:[%s24953_s2 + $0x140] sm:$0xf]  ;;  %v16127_v62 = vld [vmem:[%s24953_s2 + $0x44] sm:$0xf] }
  0x3c   : > { %637 = vmatpush.bf16.msra.mxu0 %v17511_v0  ;;  %656 = vmatpush.bf16.msra.mxu1 %v17513_v1  ;;  %v11014_v60 = vor.u32 %v16129_v58, %v11013_v57  ;;  %v16161_v61 = vld [vmem:[%s24953_s2 + $0x14c] sm:$0xf0]  ;;  %v11015_v63 = vld [vmem:[%s24953_s2 + $0x50] sm:$0xf0]  ;;  %v11285_v5 = vld [vmem:[%s24953_s2 + $0x260] sm:$0xf] }
  0x3d   : > { %675 = vmatpush.bf16.msra.mxu2 %v17516_v2  ;;  %v11018_v4 = vor.u32 %v16127_v62, %v11015_v63  ;;  %v16197_v6 = vld [vmem:[%s24953_s2 + $0x26c] sm:$0xf0]  ;;  %v11125_v10 = vld [vmem:[%s24953_s2 + $0x120] sm:$0xf]  ;;  %v10999_v21 = vld [vmem:[%s24953_s2 + $0x30] sm:$0xf0] }
  0x3e   : > { %v11286_v8 = vor.u32 %v16197_v6, %v11285_v5  ;;  %v16125_v9 = vld [vmem:[%s24953_s2 + $0x2c] sm:$0xf0]  ;;  %v11269_v23 = vld [vmem:[%s24953_s2 + $0x240] sm:$0xf]  ;;  %v11223_v45 = vld [vmem:[%s24953_s2 + $0x1f0] sm:$0xf0] }
  0x3f   : > { %10973 = vmatmul.msk.bf16.vlgmr.msra.gmra.mxu0 %vm613_vm1, %v16117_v11  ;;  %10975 = vmatmul.msk.bf16.vlgmr.msra.gmra.mxu1 %vm613_vm1, %v16117_v11  ;;  %v16193_v26 = vld [vmem:[%s24953_s2 + $0x24c] sm:$0xf0]  ;;  %v10981_v29 = vld [vmem:[%s24953_s2] sm:$0xf]  ;;  %v11229_v46 = vld [vmem:[%s24953_s2 + $0x1e8] sm:$0xf] }
  0x40   : > { %1223 = vmatpush.bf16.msrb.mxu0 %v11222_v3  ;;  %1245 = vmatpush.bf16.msrb.mxu1 %v11302_v20  ;;  %v11142_v3 = vor.u32 %v16161_v61, %v11141_v59  ;;  %v16123_v20 = vld [vmem:[%s24953_s2 + $0x24] sm:$0xf]  ;;  %v16121_v30 = vld [vmem:[%s24953_s2 + $0xc] sm:$0xf0]  ;;  %v11109_v31 = vld [vmem:[%s24953_s2 + $0x100] sm:$0xf] }
  0x41   : > { %1261 = vmatpush.bf16.msrb.mxu2 %v11098_v7  ;;  %1208 = vmatpush.bf16.msra.mxu3 %v11030_v33  ;;  %v10997_v7 = vld [vmem:[%s24953_s2 + $0x20] sm:$0xf]  ;;  %v10982_v32 = vor.u32 %v16121_v30, %v10981_v29  ;;  %v16153_v33 = vld [vmem:[%s24953_s2 + $0x10c] sm:$0xf0]  ;;  %v16182_v48 = vld [vmem:[%s24953_s2 + $0x1f4] sm:$0xf0] }
  0x42   : > { %10977 = vmatmul.msk.bf16.vlgmr.msra.gmra.mxu2 %vm613_vm1, %v16117_v11  ;;  %v16157_v11 = vld [vmem:[%s24953_s2 + $0x12c] sm:$0xf0]  ;;  %v10998_v17 = vor.u32 %v16125_v9, %v10997_v7  ;;  %v11110_v38 = vor.u32 %v16153_v33, %v11109_v31  ;;  %v11253_v41 = vld [vmem:[%s24953_s2 + $0x220] sm:$0xf]  ;;  %v11230_v51 = vor.u32 %v16182_v48, %v11229_v46  ;;  %v11207_v57 = vld [vmem:[%s24953_s2 + $0x1d0] sm:$0xf0] }
  0x43   : > { %v11126_v19 = vor.u32 %v16157_v11, %v11125_v10  ;;  %v16189_v42 = vld [vmem:[%s24953_s2 + $0x22c] sm:$0xf0]  ;;  %v11237_v52 = vld [vmem:[%s24953_s2 + $0x200] sm:$0xf]  ;;  %v11213_v58 = vld [vmem:[%s24953_s2 + $0x1c8] sm:$0xf] }
  0x44   : > { %1224 = vmatpush.bf16.msrb.mxu0 %v11206_v22  ;;  %1246 = vmatpush.bf16.msrb.mxu1 %v11286_v8  ;;  %v11002_v22 = vor.u32 %v16123_v20, %v10999_v21  ;;  %v11101_v62 = vld [vmem:[%s24953_s2 + $0xe8] sm:$0xf]  ;;  %v16150_v63 = vld [vmem:[%s24953_s2 + $0xf4] sm:$0xf0]  ;;  %v11191_v5 = vld [vmem:[%s24953_s2 + $0x1b0] sm:$0xf0] }
  0x45   : > { %1262 = vmatpush.bf16.msrb.mxu2 %v11082_v28  ;;  %1209 = vmatpush.bf16.msra.mxu3 %v11014_v60  ;;  %v11270_v28 = vor.u32 %v16193_v26, %v11269_v23  ;;  %v16178_v60 = vld [vmem:[%s24953_s2 + $0x1d4] sm:$0xf0]  ;;  %v11197_v6 = vld [vmem:[%s24953_s2 + $0x1a8] sm:$0xf]  ;;  %v11175_v20 = vld [vmem:[%s24953_s2 + $0x190] sm:$0xf0] }
  0x46   : > { %v11214_v61 = vor.u32 %v16178_v60, %v11213_v58  ;;  %v16174_v8 = vld [vmem:[%s24953_s2 + $0x1b4] sm:$0xf0]  ;;  %v11085_v10 = vld [vmem:[%s24953_s2 + $0xc8] sm:$0xf]  ;;  %v16199_v21 = vld [vmem:[%s24953_s2 + $0x284] sm:$0xf] }
  0x47   : > { %v11198_v9 = vor.u32 %v16174_v8, %v11197_v6  ;;  %v16146_v11 = vld [vmem:[%s24953_s2 + $0xd4] sm:$0xf0]  ;;  %v11303_v23 = vld [vmem:[%s24953_s2 + $0x290] sm:$0xf0]  ;;  %v11181_v26 = vld [vmem:[%s24953_s2 + $0x188] sm:$0xf] }
  0x48   : > { %1225 = vmatpush.bf16.msrb.mxu0 %v11190_v36  ;;  %1247 = vmatpush.bf16.msrb.mxu1 %v11270_v28  ;;  %v16119_v36 = vld [vmem:[%s24953_s2 + $0x4] sm:$0xf]  ;;  %v16170_v28 = vld [vmem:[%s24953_s2 + $0x194] sm:$0xf0]  ;;  %v11306_v29 = vor.u32 %v16199_v21, %v11303_v23  ;;  %v11069_v31 = vld [vmem:[%s24953_s2 + $0xa8] sm:$0xf] }
  0x49   : > { %1263 = vmatpush.bf16.msrb.mxu2 %v11066_v37  ;;  %1210 = vmatpush.bf16.msra.mxu3 %v10998_v17  ;;  %v10983_v37 = vld [vmem:[%s24953_s2 + $0x10] sm:$0xf0]  ;;  %v11086_v17 = vor.u32 %v16146_v11, %v11085_v10  ;;  %v11182_v30 = vor.u32 %v16170_v28, %v11181_v26  ;;  %v11053_v46 = vld [vmem:[%s24953_s2 + $0x88] sm:$0xf]  ;;  %v16162_v58 = vld [vmem:[%s24953_s2 + $0x154] sm:$0xf0] }
  0x4a   : > { %v10986_v40 = vor.u32 %v16119_v36, %v10983_v37  ;;  %v16163_v36 = vld [vmem:[%s24953_s2 + $0x164] sm:$0xf]  ;;  %v11159_v37 = vld [vmem:[%s24953_s2 + $0x170] sm:$0xf0]  ;;  %v11133_v10 = vld [vmem:[%s24953_s2 + $0x128] sm:$0xf] }
  0x4b   : > { %v11127_v6 = vld [vmem:[%s24953_s2 + $0x130] sm:$0xf0]  ;;  %v16158_v11 = vld [vmem:[%s24953_s2 + $0x134] sm:$0xf0]  ;;  %v16183_v28 = vld [vmem:[%s24953_s2 + $0x204] sm:$0xf] }
  0x4c   : > { %1226 = vmatpush.bf16.msrb.mxu0 %v11174_v43  ;;  %v11254_v43 = vor.u32 %v16189_v42, %v11253_v41  ;;  %v11287_v41 = vld [vmem:[%s24953_s2 + $0x270] sm:$0xf0]  ;;  %v11165_v42 = vld [vmem:[%s24953_s2 + $0x168] sm:$0xf]  ;;  %v16130_v21 = vld [vmem:[%s24953_s2 + $0x54] sm:$0xf0] }
  0x4d   : > { %1264 = vmatpush.bf16.msrb.mxu2 %v11050_v44  ;;  %1211 = vmatpush.bf16.msra.mxu3 %v10982_v32  ;;  %v16179_v44 = vld [vmem:[%s24953_s2 + $0x1e4] sm:$0xf]  ;;  %v16142_v32 = vld [vmem:[%s24953_s2 + $0xb4] sm:$0xf0]  ;;  %v11111_v26 = vld [vmem:[%s24953_s2 + $0x110] sm:$0xf0] }
  0x4e   : > { %1248 = vmatpush.bf16.msrb.mxu1 %v11254_v43  ;;  %v11226_v47 = vor.u32 %v16179_v44, %v11223_v45  ;;  %v11070_v33 = vor.u32 %v16142_v32, %v11069_v31  ;;  %v16166_v43 = vld [vmem:[%s24953_s2 + $0x174] sm:$0xf0]  ;;  %v11117_v32 = vld [vmem:[%s24953_s2 + $0x108] sm:$0xf]  ;;  %s17208_s24 = scalar_lea.hbm %s17207_s19, 1 }
  0x4f   : > { %10974 = vmatmul.msk.bf16.gmra.mxu0 %vm613_vm1, %v10972_v56  ;;  %10976 = vmatmul.msk.bf16.gmra.mxu1 %vm613_vm1, %v10972_v56  ;;  %v11166_v45 = vor.u32 %v16166_v43, %v11165_v42  ;;  %p17209_p11 = scmp.ne.s32.totalorder %s17207_s19, %s17208_s24  ;;  %p17214_p1 = scmp.lt.s32.totalorder %s17212_s23, %s17208_s24 }
  0x50   : > { %1227 = vmatpush.bf16.msrb.mxu0 %v11158_v53  ;;  %v16185_v53 = vld [vmem:[%s24953_s2 + $0x20c] sm:$0xf0] }
  0x51   : > { %1265 = vmatpush.bf16.msrb.mxu2 %v11034_v55  ;;  %1280 = vmatpush.bf16.msrb.mxu3 %v11226_v47  ;;  %v11238_v55 = vor.u32 %v16185_v53, %v11237_v52  ;;  %v16138_v47 = vld [vmem:[%s24953_s2 + $0x94] sm:$0xf0]  ;;  %v11143_v52 = vld [vmem:[%s24953_s2 + $0x150] sm:$0xf0]  ;;  %v16191_v53 = vld [vmem:[%s24953_s2 + $0x244] sm:$0xf]  ;;  %p17210_p12 = pnand %p17209_p11, %p17387_p5  ;;  %p17215_p2 = por %p17214_p1, %p17213_p0 }
  0x52   : > { %10978 = vmatmul.msk.bf16.gmra.mxu2 %vm613_vm1, %v10972_v56  ;;  %v16175_v56 = vld [vmem:[%s24953_s2 + $0x1c4] sm:$0xf]  ;;  %v11054_v48 = vor.u32 %v16138_v47, %v11053_v46  ;;  %v16148_v46 = vld [vmem:[%s24953_s2 + $0xec] sm:$0xf]  ;;  %v11103_v47 = vld [vmem:[%s24953_s2 + $0xf8] sm:$0xf0] }
  0x53   : > { %1249 = vmatpush.bf16.msrb.mxu1 %v11238_v55  ;;  %v11210_v59 = vor.u32 %v16175_v56, %v11207_v57  ;;  %v11271_v56 = vld [vmem:[%s24953_s2 + $0x250] sm:$0xf0]  ;;  %v11149_v57 = vld [vmem:[%s24953_s2 + $0x148] sm:$0xf]  ;;  %p17211_p13 = pneg %p17210_p12 }
  0x54   : > { %1228 = vmatpush.bf16.msrb.mxu0 %v11142_v3  ;;  %v11102_v3 = vor.u32 %v16150_v63, %v11101_v62  ;;  %v11150_v62 = vor.u32 %v16162_v58, %v11149_v57  ;;  %v11037_v63 = vld [vmem:[%s24953_s2 + $0x68] sm:$0xf] }
  0x55   : > { %1266 = vmatpush.bf16.msrb.mxu2 %v11018_v4  ;;  %1281 = vmatpush.bf16.msrb.mxu3 %v11210_v59  ;;  %v16171_v4 = vld [vmem:[%s24953_s2 + $0x1a4] sm:$0xf]  ;;  %p17216_p3 = pnand %p17215_p2, %p17211_p13 }
  0x56   : > { %v11194_v7 = vor.u32 %v16171_v4, %v11191_v5  ;;  %v16155_v5 = vld [vmem:[%s24953_s2 + $0x124] sm:$0xf] }
  0x57   : > { %1318 = vmatpush.bf16.msra.mxu1 %v11102_v3  ;;  %v16134_v3 = vld [vmem:[%s24953_s2 + $0x74] sm:$0xf0]  ;;  %v11130_v8 = vor.u32 %v16155_v5, %v11127_v6  ;;  %v11071_v5 = vld [vmem:[%s24953_s2 + $0xb8] sm:$0xf0]  ;;  %v16176_v6 = vld [vmem:[%s24953_s2 + $0x1cc] sm:$0xf] }
  0x58   : > { %1229 = vmatpush.bf16.msrb.mxu0 %v11126_v19  ;;  %v16167_v19 = vld [vmem:[%s24953_s2 + $0x184] sm:$0xf]  ;;  %v11038_v4 = vor.u32 %v16134_v3, %v11037_v63  ;;  %v11231_v63 = vld [vmem:[%s24953_s2 + $0x1f8] sm:$0xf0] }
  0x59   : > { %1267 = vmatpush.bf16.msrb.mxu2 %v11002_v22  ;;  %1282 = vmatpush.bf16.msrb.mxu3 %v11194_v7  ;;  %v11178_v22 = vor.u32 %v16167_v19, %v11175_v20  ;;  %v16187_v7 = vld [vmem:[%s24953_s2 + $0x224] sm:$0xf]  ;;  %v11134_v19 = vor.u32 %v16158_v11, %v11133_v10  ;;  %v11021_v20 = vld [vmem:[%s24953_s2 + $0x48] sm:$0xf]  ;;  %v16202_v10 = vld [vmem:[%s24953_s2 + $0x294] sm:$0xf0] }
  0x5a   : > { %v11022_v23 = vor.u32 %v16130_v21, %v11021_v20  ;;  %v11055_v20 = vld [vmem:[%s24953_s2 + $0x98] sm:$0xf0]  ;;  %v16200_v21 = vld [vmem:[%s24953_s2 + $0x28c] sm:$0xf] }
  0x5b   : > { %1319 = vmatpush.bf16.msra.mxu1 %v11086_v17 }
  0x5c   : > { %1230 = vmatpush.bf16.msrb.mxu0 %v11110_v38  ;;  %v16195_v38 = vld [vmem:[%s24953_s2 + $0x264] sm:$0xf] }
  0x5d   : > { %1268 = vmatpush.bf16.msrb.mxu2 %v10986_v40  ;;  %1283 = vmatpush.bf16.msrb.mxu3 %v11178_v22  ;;  %v11162_v40 = vor.u32 %v16163_v36, %v11159_v37  ;;  %v11290_v44 = vor.u32 %v16195_v38, %v11287_v41  ;;  %v16151_v22 = vld [vmem:[%s24953_s2 + $0x104] sm:$0xf]  ;;  %v11005_v36 = vld [vmem:[%s24953_s2 + $0x28] sm:$0xf] }
  0x5f   : > { %1320 = vmatpush.bf16.msra.mxu1 %v11070_v33  ;;  %v16154_v33 = vld [vmem:[%s24953_s2 + $0x114] sm:$0xf0] }
  0x60   : > { %1302 = vmatpush.bf16.msra.mxu0 %v11306_v29  ;;  %v11239_v29 = vld [vmem:[%s24953_s2 + $0x210] sm:$0xf0]  ;;  %v11118_v38 = vor.u32 %v16154_v33, %v11117_v32 }
  0x61   : > { %1337 = vmatpush.bf16.msra.mxu2 %v11230_v51  ;;  %1284 = vmatpush.bf16.msrb.mxu3 %v11162_v40  ;;  %v16159_v51 = vld [vmem:[%s24953_s2 + $0x144] sm:$0xf]  ;;  %v11242_v31 = vor.u32 %v16183_v28, %v11239_v29  ;;  %v16126_v40 = vld [vmem:[%s24953_s2 + $0x34] sm:$0xf0]  ;;  %v11199_v28 = vld [vmem:[%s24953_s2 + $0x1b8] sm:$0xf0] }
  0x62   : > { %v11146_v55 = vor.u32 %v16159_v51, %v11143_v52  ;;  %v11006_v43 = vor.u32 %v16126_v40, %v11005_v36  ;;  %v10989_v51 = vld [vmem:[%s24953_s2 + $0x8] sm:$0xf]  ;;  %v16122_v52 = vld [vmem:[%s24953_s2 + $0x14] sm:$0xf0] }
  0x63   : > { %1321 = vmatpush.bf16.msra.mxu1 %v11054_v48  ;;  %v11106_v48 = vor.u32 %v16148_v46, %v11103_v47  ;;  %v16198_v40 = vld [vmem:[%s24953_s2 + $0x274] sm:$0xf0]  ;;  %v16196_v46 = vld [vmem:[%s24953_s2 + $0x26c] sm:$0xf]  ;;  %v11295_v47 = vld [vmem:[%s24953_s2 + $0x278] sm:$0xf0] }
  0x64   : > { %1303 = vmatpush.bf16.msra.mxu0 %v11290_v44 }
  0x65   : > { %1338 = vmatpush.bf16.msra.mxu2 %v11214_v61  ;;  %v11274_v61 = vor.u32 %v16191_v53, %v11271_v56  ;;  %1285 = vmatpush.bf16.msrb.mxu3 %v11146_v55  ;;  %v16144_v53 = vld [vmem:[%s24953_s2 + $0xcc] sm:$0xf]  ;;  %v10990_v55 = vor.u32 %v16122_v52, %v10989_v51  ;;  %v11087_v56 = vld [vmem:[%s24953_s2 + $0xd8] sm:$0xf0]  ;;  %v11298_v51 = vor.u32 %v16196_v46, %v11295_v47 }
  0x66   : > { %v11090_v57 = vor.u32 %v16144_v53, %v11087_v56  ;;  %v16168_v52 = vld [vmem:[%s24953_s2 + $0x18c] sm:$0xf]  ;;  %v11183_v53 = vld [vmem:[%s24953_s2 + $0x198] sm:$0xf0] }
  0x67   : > { %1322 = vmatpush.bf16.msra.mxu1 %v11038_v4  ;;  %v16140_v4 = vld [vmem:[%s24953_s2 + $0xac] sm:$0xf]  ;;  %v11186_v56 = vor.u32 %v16168_v52, %v11183_v53  ;;  %v11135_v47 = vld [vmem:[%s24953_s2 + $0x138] sm:$0xf0] }
  0x68   : > { %1304 = vmatpush.bf16.msra.mxu0 %v11274_v61  ;;  %v16156_v46 = vld [vmem:[%s24953_s2 + $0x12c] sm:$0xf]  ;;  %v11119_v53 = vld [vmem:[%s24953_s2 + $0x118] sm:$0xf0] }
  0x69   : > { %1339 = vmatpush.bf16.msra.mxu2 %v11198_v9  ;;  %v11255_v9 = vld [vmem:[%s24953_s2 + $0x230] sm:$0xf0]  ;;  %1286 = vmatpush.bf16.msrb.mxu3 %v11130_v8  ;;  %v11215_v8 = vld [vmem:[%s24953_s2 + $0x1d8] sm:$0xf0]  ;;  %v16152_v52 = vld [vmem:[%s24953_s2 + $0x10c] sm:$0xf] }
  0x6a   : > { %v11258_v17 = vor.u32 %v16187_v7, %v11255_v9  ;;  %v11074_v7 = vor.u32 %v16140_v4, %v11071_v5  ;;  %v11309_v9 = vld [vmem:[%s24953_s2 + $0x288] sm:$0xf]  ;;  %v11218_v11 = vor.u32 %v16176_v6, %v11215_v8  ;;  %v11167_v8 = vld [vmem:[%s24953_s2 + $0x178] sm:$0xf0] }
  0x6b   : > { %1323 = vmatpush.bf16.msra.mxu1 %v11022_v23  ;;  %v11311_v23 = vld [vmem:[%s24953_s2 + $0x298] sm:$0xf0] }
  0x6c   : > { %1305 = vmatpush.bf16.msra.mxu0 %v11258_v17  ;;  %v11310_v17 = vor.u32 %v16202_v10, %v11309_v9  ;;  %v11314_v29 = vor.u32 %v16200_v21, %v11311_v23  ;;  %v11261_v10 = vld [vmem:[%s24953_s2 + $0x228] sm:$0xf]  ;;  %v16188_v21 = vld [vmem:[%s24953_s2 + $0x22c] sm:$0xf] }
  0x6d   : > { %1340 = vmatpush.bf16.msra.mxu2 %v11182_v30  ;;  %v11114_v30 = vor.u32 %v16151_v22, %v11111_v26  ;;  %v16172_v26 = vld [vmem:[%s24953_s2 + $0x1ac] sm:$0xf] }
  0x6e   : > { %v11202_v33 = vor.u32 %v16172_v26, %v11199_v28  ;;  %v16160_v28 = vld [vmem:[%s24953_s2 + $0x14c] sm:$0xf] }
  0x6f   : > { %1287 = vmatpush.bf16.msrb.mxu3 %v11114_v30  ;;  %1324 = vmatpush.bf16.msra.mxu1 %v11006_v43  ;;  %v11039_v43 = vld [vmem:[%s24953_s2 + $0x78] sm:$0xf0] }
  0x70   : > { %1306 = vmatpush.bf16.msra.mxu0 %v11242_v31 }
  0x71   : > { %1341 = vmatpush.bf16.msra.mxu2 %v11166_v45 }
  0x73   : > { %1325 = vmatpush.bf16.msra.mxu1 %v10990_v55  ;;  %v11277_v55 = vld [vmem:[%s24953_s2 + $0x248] sm:$0xf] }
  0x75   : > { %1342 = vmatpush.bf16.msra.mxu2 %v11150_v62  ;;  %v16180_v62 = vld [vmem:[%s24953_s2 + $0x1ec] sm:$0xf] }
  0x76   : > { %v11234_v3 = vor.u32 %v16180_v62, %v11231_v63  ;;  %v16192_v63 = vld [vmem:[%s24953_s2 + $0x24c] sm:$0xf] }
  0x79   : > { %1343 = vmatpush.bf16.msra.mxu2 %v11134_v19  ;;  %v16136_v19 = vld [vmem:[%s24953_s2 + $0x8c] sm:$0xf] }
  0x7a   : > { %v11058_v22 = vor.u32 %v16136_v19, %v11055_v20  ;;  %v11007_v20 = vld [vmem:[%s24953_s2 + $0x38] sm:$0xf0] }
  0x7d   : > { %1344 = vmatpush.bf16.msra.mxu2 %v11118_v38  ;;  %v11293_v38 = vld [vmem:[%s24953_s2 + $0x268] sm:$0xf] }
  0xbc   : > { %v639_v59 = vpop.f32.mrf.mxu0  ;;  %v658_v60 = vpop.f32.mrf.mxu1 }
  0xc4   : > { %v641_v41 = vpop.f32.mrf.mxu0  ;;  %v660_v42 = vpop.f32.mrf.mxu1 }
  0xc5   : > { %v677_v37 = vpop.f32.mrf.mxu2  ;;  %v17848_v44 = vpack.c.bf16 %v641_v41, %v639_v59  ;;  %v17850_v45 = vpack.c.bf16 %v660_v42, %v658_v60  ;;  %v16132_v41 = vld [vmem:[%s24953_s2 + $0x6c] sm:$0xf]  ;;  %v11294_v42 = vor.u32 %v16198_v40, %v11293_v38  ;;  %v10991_v38 = vld [vmem:[%s24953_s2 + $0x18] sm:$0xf0] }
  0xc7   : > { %1212 = vmatmul.bf16.vlgmr.msra.gmra.mxu3 %v17848_v44  ;;  %1231 = vmatmul.bf16.vlgmr.msrb.gmra.mxu0 %v17850_v45 }
  0xc8   : > { %1269 = vmatmul.bf16.vlgmr.msrb.gmra.mxu2 %v17848_v44  ;;  %1375 = vmatpush.bf16.msrb.mxu0 %v11106_v48  ;;  %v11042_v48 = vor.u32 %v16132_v41, %v11039_v43  ;;  %v11247_v43 = vld [vmem:[%s24953_s2 + $0x218] sm:$0xf0] }
  0xc9   : > { %1359 = vmatpush.bf16.msra.mxu3 %v11310_v17  ;;  %1416 = vmatpush.bf16.msrb.mxu2 %v11314_v29  ;;  %v16124_v17 = vld [vmem:[%s24953_s2 + $0x2c] sm:$0xf]  ;;  %v11151_v29 = vld [vmem:[%s24953_s2 + $0x158] sm:$0xf0] }
  0xca   : > { %v11010_v23 = vor.u32 %v16124_v17, %v11007_v20 }
  0xcc   : > { %v644_v60 = vpop.f32.mrf.mxu0  ;;  %v663_v61 = vpop.f32.mrf.mxu1  ;;  %1376 = vmatpush.bf16.msrb.mxu0 %v11090_v57  ;;  %v16194_v57 = vld [vmem:[%s24953_s2 + $0x254] sm:$0xf0] }
  0xcd   : > { %v679_v58 = vpop.f32.mrf.mxu2  ;;  %1360 = vmatpush.bf16.msra.mxu3 %v11294_v42  ;;  %1417 = vmatpush.bf16.msrb.mxu2 %v11298_v51  ;;  %v16184_v42 = vld [vmem:[%s24953_s2 + $0x20c] sm:$0xf] }
  0xce   : > { %v17873_v59 = vpack.c.bf16 %v679_v58, %v677_v37  ;;  %v16128_v58 = vld [vmem:[%s24953_s2 + $0x4c] sm:$0xf]  ;;  %v11250_v51 = vor.u32 %v16184_v42, %v11247_v43  ;;  %v16263_v42 = vld [vmem:[%s24953_s2 + $0x46c] sm:$0xf0] }
  0xd0   : > { %11315 = vmatmul.msk.bf16.vlgmr.msrb.gmra.mxu1 %vm1197_vm2, %v17873_v59  ;;  %1377 = vmatpush.bf16.msrb.mxu0 %v11074_v7  ;;  %v16164_v7 = vld [vmem:[%s24953_s2 + $0x16c] sm:$0xf] }
  0xd1   : > { %1394 = vmatpush.bf16.msrb.mxu1 %v11234_v3  ;;  %v11279_v3 = vld [vmem:[%s24953_s2 + $0x258] sm:$0xf0]  ;;  %v11170_v9 = vor.u32 %v16164_v7, %v11167_v8 }
  0xd2   : > { %v11282_v5 = vor.u32 %v16192_v63, %v11279_v3 }
  0xd4   : > { %v646_v31 = vpop.f32.mrf.mxu0  ;;  %v665_v32 = vpop.f32.mrf.mxu1  ;;  %1378 = vmatpush.bf16.msrb.mxu0 %v11058_v22  ;;  %1418 = vmatpush.bf16.msrb.mxu2 %v11282_v5  ;;  %v11263_v22 = vld [vmem:[%s24953_s2 + $0x238] sm:$0xf0] }
  0xd5   : > { %v682_v30 = vpop.f32.mrf.mxu2  ;;  %1395 = vmatpush.bf16.msrb.mxu1 %v11218_v11  ;;  %v17919_v36 = vpack.c.bf16 %v646_v31, %v644_v60  ;;  %v17921_v37 = vpack.c.bf16 %v665_v32, %v663_v61  ;;  %v11023_v60 = vld [vmem:[%s24953_s2 + $0x58] sm:$0xf0]  ;;  %v11278_v61 = vor.u32 %v16194_v57, %v11277_v55  ;;  %v16190_v11 = vld [vmem:[%s24953_s2 + $0x234] sm:$0xf0]  ;;  %v11266_v26 = vor.u32 %v16188_v21, %v11263_v22 }
  0xd6   : > { %v11026_v62 = vor.u32 %v16128_v58, %v11023_v60  ;;  %v11262_v19 = vor.u32 %v16190_v11, %v11261_v10  ;;  %v11154_v31 = vor.u32 %v16160_v28, %v11151_v29  ;;  %v16186_v32 = vld [vmem:[%s24953_s2 + $0x214] sm:$0xf0]  ;;  %v11122_v55 = vor.u32 %v16152_v52, %v11119_v53  ;;  %v16235_v52 = vld [vmem:[%s24953_s2 + $0x38c] sm:$0xf0]  ;;  %v16233_v53 = vld [vmem:[%s24953_s2 + $0x384] sm:$0xf] }
  0xd7   : > { %1217 = vmatmul.bf16.gmra.mxu3 %v17919_v36  ;;  %1236 = vmatmul.bf16.gmra.mxu0 %v17921_v37 }
  0xd8   : > { %1274 = vmatmul.bf16.gmra.mxu2 %v17919_v36  ;;  %1379 = vmatpush.bf16.msrb.mxu0 %v11042_v48  ;;  %v11138_v48 = vor.u32 %v16156_v46, %v11135_v47 }
  0xd9   : > { %1396 = vmatpush.bf16.msrb.mxu1 %v11202_v33  ;;  %1361 = vmatpush.bf16.msra.mxu3 %v11278_v61  ;;  %v16120_v33 = vld [vmem:[%s24953_s2 + $0xc] sm:$0xf] }
  0xda   : > { %v10994_v41 = vor.u32 %v16120_v33, %v10991_v38  ;;  %1419 = vmatpush.bf16.msrb.mxu2 %v11266_v26  ;;  %v16267_v33 = vld [vmem:[%s24953_s2 + $0x48c] sm:$0xf0] }
  0xdc   : > { %1380 = vmatpush.bf16.msrb.mxu0 %v11026_v62 }
  0xdd   : > { %v684_v4 = vpop.f32.mrf.mxu2  ;;  %1397 = vmatpush.bf16.msrb.mxu1 %v11186_v56  ;;  %1362 = vmatpush.bf16.msra.mxu3 %v11262_v19  ;;  %v16203_v56 = vld [vmem:[%s24954_s21 + $0x10] sm:$0xff] }
  0xde   : > { %v17968_v6 = vpack.c.bf16 %v684_v4, %v682_v30  ;;  %v11245_v30 = vld [vmem:[%s24953_s2 + $0x208] sm:$0xf]  ;;  %1420 = vmatpush.bf16.msrb.mxu2 %v11250_v51  ;;  %v11539_v51 = vld [vmem:[%s24953_s2 + $0x380] sm:$0xf] }
  0xdf   : > { %v11246_v40 = vor.u32 %v16186_v32, %v11245_v30  ;;  %v11667_v32 = vld [vmem:[%s24953_s2 + $0x480] sm:$0xf] }
  0xe0   : > { %11316 = vmatmul.msk.bf16.gmra.mxu1 %vm1197_vm2, %v17968_v6  ;;  %1381 = vmatpush.bf16.msrb.mxu0 %v11010_v23  ;;  %v11668_v38 = vor.u32 %v16267_v33, %v11667_v32 }
  0xe1   : > { %1398 = vmatpush.bf16.msrb.mxu1 %v11170_v9  ;;  %1363 = vmatpush.bf16.msra.mxu3 %v11246_v40 }
  0xe4   : > { %1382 = vmatpush.bf16.msrb.mxu0 %v10994_v41  ;;  %v11651_v41 = vld [vmem:[%s24953_s2 + $0x460] sm:$0xf] }
  0xe5   : > { %1399 = vmatpush.bf16.msrb.mxu1 %v11154_v31  ;;  %v11652_v47 = vor.u32 %v16263_v42, %v11651_v41  ;;  %v16227_v41 = vld [vmem:[%s24953_s2 + $0x34c] sm:$0xf0] }
  0xe7   : > { %1288 = vmatmul.bf16.vlgmr.msrb.gmra.mxu3 %v17850_v45  ;;  %11317 = vmatmul.msk.bf16.vlgmr.msra.gmra.mxu0 %vm1197_vm2, %v17873_v59 }
  0xe8   : > { %1345 = vmatmul.bf16.vlgmr.msra.gmra.mxu2 %v17850_v45  ;;  %1480 = vmatpush.bf16.msrb.mxu3 %v17413_v12 }
  0xe9   : > { %1400 = vmatpush.bf16.msrb.mxu1 %v11138_v48  ;;  %1499 = vmatpush.bf16.msra.mxu0 %v17415_v13 }
  0xec   : > { %1481 = vmatpush.bf16.msrb.mxu3 %v17421_v15 }
  0xed   : > { %1401 = vmatpush.bf16.msrb.mxu1 %v11122_v55  ;;  %1500 = vmatpush.bf16.msra.mxu0 %v17423_v16  ;;  %v11540_v55 = vor.u32 %v16235_v52, %v11539_v51  ;;  %v11509_v51 = vld [vmem:[%s24953_s2 + $0x350] sm:$0xf0] }
  0xef   : > { %2052 = vmatpush.bf16.msra.mxu2 %v11540_v55  ;;  %v16251_v55 = vld [vmem:[%s24953_s2 + $0x40c] sm:$0xf0] }
  0xf0   : > { %1326 = vmatmul.bf16.vlgmr.msra.gmra.mxu1 %v17848_v44  ;;  %1482 = vmatpush.bf16.msrb.mxu3 %v17436_v24 }
  0xf1   : > { %1518 = vmatpush.bf16.msra.mxu1 %v17417_v14  ;;  %1501 = vmatpush.bf16.msra.mxu0 %v17438_v25 }
  0xf4   : > { %1483 = vmatpush.bf16.msrb.mxu3 %v17452_v34 }
  0xf5   : > { %1519 = vmatpush.bf16.msra.mxu1 %v17427_v18  ;;  %1502 = vmatpush.bf16.msra.mxu0 %v17454_v35 }
  0xf7   : > { %1293 = vmatmul.bf16.gmra.mxu3 %v17921_v37  ;;  %11318 = vmatmul.msk.bf16.gmra.mxu0 %vm1197_vm2, %v17968_v6 }
  0xf8   : > { %1350 = vmatmul.bf16.gmra.mxu2 %v17921_v37  ;;  %1484 = vmatpush.bf16.msrb.mxu3 %v17479_v49 }
  0xf9   : > { %1520 = vmatpush.bf16.msra.mxu1 %v17442_v27  ;;  %1503 = vmatpush.bf16.msra.mxu0 %v17481_v50 }
  0xfc   : > { %1485 = vmatpush.bf16.msrb.mxu3 %v17511_v0 }
  0xfd   : > { %1521 = vmatpush.bf16.msra.mxu1 %v17464_v39  ;;  %1504 = vmatpush.bf16.msra.mxu0 %v17513_v1 }
 0x100   : > { %1331 = vmatmul.bf16.gmra.mxu1 %v17919_v36 }
 0x101   : > { %1522 = vmatpush.bf16.msra.mxu1 %v17491_v54 }
 0x105   : > { %1523 = vmatpush.bf16.msra.mxu1 %v17516_v2 }
 0x107   : > { %11319 = vmatmul.msk.bf16.vlgmr.msra.gmra.mxu3 %vm1197_vm2, %v17873_v59  ;;  %1383 = vmatmul.bf16.vlgmr.msrb.gmra.mxu0 %v17848_v44  ;;  %v11333_v44 = vld [vmem:[%s24954_s21 + $0x18] sm:$0xf] }
 0x108   : > { %11321 = vmatmul.msk.bf16.vlgmr.msrb.gmra.mxu2 %vm1197_vm2, %v17873_v59  ;;  %2071 = vmatpush.bf16.msra.mxu3 %v11668_v38  ;;  %v11507_v38 = vld [vmem:[%s24953_s2 + $0x340] sm:$0xf] }
 0x10c   : > { %2072 = vmatpush.bf16.msra.mxu3 %v11652_v47  ;;  %v11508_v47 = vor.u32 %v16227_v41, %v11507_v38  ;;  %v11731_v38 = vld [vmem:[%s24953_s2 + $0x500] sm:$0xf] }
 0x110   : > { %1402 = vmatmul.bf16.vlgmr.msrb.gmra.mxu1 %v17850_v45  ;;  %v16204_v45 = vld [vmem:[%s24954_s21 + $0x18] sm:$0x10] }
 0x111   : > { %v11334_v59 = vor.u32 %v16204_v45, %v11333_v44  ;;  %v11635_v45 = vld [vmem:[%s24953_s2 + $0x440] sm:$0xf] }
 0x117   : > { %11320 = vmatmul.msk.bf16.gmra.mxu3 %vm1197_vm2, %v17968_v6  ;;  %1388 = vmatmul.bf16.gmra.mxu0 %v17919_v36 }
 0x118   : > { %11322 = vmatmul.msk.bf16.gmra.mxu2 %vm1197_vm2, %v17968_v6 }
 0x120   : > { %1407 = vmatmul.bf16.gmra.mxu1 %v17921_v37 }
 0x127   : > { %11335 = vmatmul.msk.bf16.vlgmr.msrb.gmra.mxu3 %vm613_vm1, %v16203_v56  ;;  %11337 = vmatmul.msk.bf16.vlgmr.msra.gmra.mxu0 %vm613_vm1, %v16203_v56 }
 0x130   : > { %11339 = vmatmul.msk.bf16.vlgmr.msra.gmra.mxu1 %vm613_vm1, %v16203_v56  ;;  %v11541_v56 = vld [vmem:[%s24953_s2 + $0x390] sm:$0xf0] }
 0x131   : > { %v11544_v44 = vor.u32 %v16233_v53, %v11541_v56  ;;  %v11603_v53 = vld [vmem:[%s24953_s2 + $0x400] sm:$0xf] }
 0x132   : > { %v11604_v56 = vor.u32 %v16251_v55, %v11603_v53  ;;  %v11571_v55 = vld [vmem:[%s24953_s2 + $0x3c0] sm:$0xf] }
 0x133   : > { %2109 = vmatpush.bf16.msrb.mxu1 %v11544_v44  ;;  %v16223_v44 = vld [vmem:[%s24953_s2 + $0x32c] sm:$0xf0] }
 0x137   : > { %11336 = vmatmul.msk.bf16.gmra.mxu3 %vm613_vm1, %v11334_v59  ;;  %11338 = vmatmul.msk.bf16.gmra.mxu0 %vm613_vm1, %v11334_v59 }
 0x140   : > { %11340 = vmatmul.msk.bf16.gmra.mxu1 %vm613_vm1, %v11334_v59  ;;  %v16259_v59 = vld [vmem:[%s24953_s2 + $0x44c] sm:$0xf0] }
 0x144   : > { %v1232_v36 = vpop.f32.mrf.mxu0 }
 0x14a   : > { %v1213_v37 = vpop.f32.mrf.mxu3 }
 0x14b   : > { %v1233_v57 = vadd.f32 %v1232_v36, %v1213_v37  ;;  %v1270_v60 = vpop.f32.mrf.mxu2  ;;  %v11636_v36 = vor.u32 %v16259_v59, %v11635_v45  ;;  %v11523_v37 = vld [vmem:[%s24953_s2 + $0x360] sm:$0xf] }
 0x14c   : > { %v18087_v61 = vpop.f32.mrf.mxu0  ;;  %v11747_v45 = vld [vmem:[%s24953_s2 + $0x520] sm:$0xf] }
 0x14d   : > { %v1251_v58 = vpop.f32.mrf.mxu1  ;;  %2073 = vmatpush.bf16.msra.mxu3 %v11636_v36  ;;  %v16287_v36 = vld [vmem:[%s24953_s2 + $0x52c] sm:$0xf0] }
 0x14e   : > { %v18089_v62 = vadd.f32 %v1251_v58, %v1233_v57  ;;  %v16231_v57 = vld [vmem:[%s24953_s2 + $0x36c] sm:$0xf0]  ;;  %v16229_v58 = vld [vmem:[%s24953_s2 + $0x364] sm:$0xf] }
 0x152   : > { %v18091_v63 = vpop.f32.mrf.mxu3 }
 0x153   : > { %v18095_v4 = vpop.f32.mrf.mxu2 }
 0x154   : > { %24955 = vst [vmem:[#allocation12_spill] sm:$0xff] %v18095_v4  ;;  %v1237_v5 = vpop.f32.mrf.mxu0 }
 0x155   : > { %v18093_v3 = vpop.f32.mrf.mxu1 }
 0x15a   : > { %v1218_v6 = vpop.f32.mrf.mxu3 }
 0x15b   : > { %v1238_v7 = vadd.f32 %v1237_v5, %v1218_v6  ;;  %v1275_v9 = vpop.f32.mrf.mxu2  ;;  %v11525_v5 = vld [vmem:[%s24953_s2 + $0x370] sm:$0xf0] }
 0x15c   : > { %v18097_v10 = vpop.f32.mrf.mxu0 }
 0x15d   : > { %v1256_v8 = vpop.f32.mrf.mxu1 }
 0x15e   : > { %v18099_v11 = vadd.f32 %v1256_v8, %v1238_v7  ;;  %v11528_v7 = vor.u32 %v16229_v58, %v11525_v5  ;;  %v11619_v8 = vld [vmem:[%s24953_s2 + $0x420] sm:$0xf] }
 0x160   : > { %2110 = vmatpush.bf16.msrb.mxu1 %v11528_v7  ;;  %v16247_v7 = vld [vmem:[%s24953_s2 + $0x3ec] sm:$0xf0] }
 0x162   : > { %v18101_v17 = vpop.f32.mrf.mxu3 }
 0x163   : > { %v18105_v20 = vpop.f32.mrf.mxu2 }
 0x164   : > { %24956 = vst [vmem:[#allocation13_spill] sm:$0xff] %v18105_v20  ;;  %v1308_v21 = vpop.f32.mrf.mxu0  ;;  %v16399_v20 = vld [vmem:[%s24953_s2 + $0x88c] sm:$0xf0] }
 0x165   : > { %v18103_v19 = vpop.f32.mrf.mxu1 }
 0x16a   : > { %v1289_v22 = vpop.f32.mrf.mxu3 }
 0x16b   : > { %v1290_v23 = vadd.f32 %v1289_v22, %v1270_v60  ;;  %v1346_v28 = vpop.f32.mrf.mxu2  ;;  %v11524_v60 = vor.u32 %v16231_v57, %v11523_v37  ;;  %v16221_v37 = vld [vmem:[%s24953_s2 + $0x324] sm:$0xf]  ;;  %v11493_v57 = vld [vmem:[%s24953_s2 + $0x330] sm:$0xf0] }
 0x16c   : > { %v18109_v30 = vpop.f32.mrf.mxu0  ;;  %v11496_v5 = vor.u32 %v16221_v37, %v11493_v57  ;;  %v16279_v37 = vld [vmem:[%s24953_s2 + $0x4ec] sm:$0xf0]  ;;  %v16213_v57 = vld [vmem:[%s24953_s2 + $0x2e4] sm:$0xf] }
 0x16d   : > { %v1327_v26 = vpop.f32.mrf.mxu1  ;;  %24957 = vst [vmem:[#allocation14_spill] sm:$0xff] %v18109_v30  ;;  %v18111_v31 = vadd.f32 %v1308_v21, %v1290_v23  ;;  %v16255_v21 = vld [vmem:[%s24953_s2 + $0x42c] sm:$0xf0]  ;;  %2053 = vmatpush.bf16.msra.mxu2 %v11524_v60  ;;  %v11748_v60 = vor.u32 %v16287_v36, %v11747_v45 }
 0x16e   : > { %v18107_v29 = vadd.f32 %v1346_v28, %v1327_v26  ;;  %v11620_v28 = vor.u32 %v16255_v21, %v11619_v8  ;;  %v16215_v45 = vld [vmem:[%s24953_s2 + $0x2ec] sm:$0xf0] }
 0x16f   : > { %2093 = vmatpush.bf16.msrb.mxu0 %v11748_v60  ;;  %v11461_v60 = vld [vmem:[%s24953_s2 + $0x2f0] sm:$0xf0] }
 0x170   : > { %2074 = vmatpush.bf16.msra.mxu3 %v11620_v28  ;;  %v16219_v28 = vld [vmem:[%s24953_s2 + $0x30c] sm:$0xf0] }
 0x171   : > { %2054 = vmatpush.bf16.msra.mxu2 %v11508_v47  ;;  %v16217_v47 = vld [vmem:[%s24953_s2 + $0x304] sm:$0xf] }
 0x172   : > { %v18119_v40 = vpop.f32.mrf.mxu3 }
 0x173   : > { %24958 = vst [vmem:[#allocation15_spill] sm:$0xff] %v18119_v40  ;;  %v18129_v46 = vpop.f32.mrf.mxu2  ;;  %v12335_v40 = vld [vmem:[%s24953_s2 + $0x800] sm:$0xf] }
 0x174   : > { %24960 = vst [vmem:[#allocation17_spill] sm:$0xff] %v18129_v46  ;;  %v1313_v48 = vpop.f32.mrf.mxu0  ;;  %2075 = vmatpush.bf16.msra.mxu3 %v11604_v56  ;;  %v16243_v56 = vld [vmem:[%s24953_s2 + $0x3cc] sm:$0xf0] }
 0x175   : > { %v18127_v43 = vpop.f32.mrf.mxu1 }
 0x176   : > { %24959 = vst [vmem:[#allocation16_spill] sm:$0xff] %v18127_v43 }
 0x17a   : > { %v1294_v6 = vpop.f32.mrf.mxu3 }
 0x17b   : > { %v1295_v22 = vadd.f32 %v1294_v6, %v1275_v9  ;;  %v1351_v26 = vpop.f32.mrf.mxu2  ;;  %v16225_v9 = vld [vmem:[%s24953_s2 + $0x344] sm:$0xf]  ;;  %v11587_v6 = vld [vmem:[%s24953_s2 + $0x3e0] sm:$0xf] }
 0x17c   : > { %v18169_v33 = vpop.f32.mrf.mxu0  ;;  %v11512_v52 = vor.u32 %v16225_v9, %v11509_v51  ;;  %v16283_v9 = vld [vmem:[%s24953_s2 + $0x50c] sm:$0xf0]  ;;  %v11477_v51 = vld [vmem:[%s24953_s2 + $0x310] sm:$0xf0] }
 0x17d   : > { %v1332_v23 = vpop.f32.mrf.mxu1  ;;  %24961 = vst [vmem:[#allocation18_spill] sm:$0xff] %v18169_v33  ;;  %v18180_v42 = vadd.f32 %v1313_v48, %v1295_v22  ;;  %v11491_v48 = vld [vmem:[%s24953_s2 + $0x320] sm:$0xf]  ;;  %v11588_v22 = vor.u32 %v16247_v7, %v11587_v6  ;;  %v11480_v53 = vor.u32 %v16217_v47, %v11477_v51  ;;  %v16345_v33 = vld [vmem:[%s24953_s2 + $0x6ec] sm:$0xf0] }
 0x17e   : > { %v18167_v32 = vadd.f32 %v1351_v26, %v1332_v23  ;;  %2111 = vmatpush.bf16.msrb.mxu1 %v11512_v52  ;;  %v11492_v59 = vor.u32 %v16223_v44, %v11491_v48  ;;  %v11475_v26 = vld [vmem:[%s24953_s2 + $0x300] sm:$0xf]  ;;  %v11732_v52 = vor.u32 %v16283_v9, %v11731_v38  ;;  %v11572_v48 = vor.u32 %v16243_v56, %v11571_v55 }
 0x17f   : > { %2076 = vmatpush.bf16.msra.mxu3 %v11588_v22  ;;  %v11476_v41 = vor.u32 %v16219_v28, %v11475_v26  ;;  %v11459_v44 = vld [vmem:[%s24953_s2 + $0x2e0] sm:$0xf]  ;;  %v11464_v22 = vor.u32 %v16213_v57, %v11461_v60  ;;  %v16239_v28 = vld [vmem:[%s24953_s2 + $0x3ac] sm:$0xf0] }
 0x180   : > { %2055 = vmatpush.bf16.msra.mxu2 %v11492_v59  ;;  %2094 = vmatpush.bf16.msrb.mxu0 %v11732_v52  ;;  %v11715_v59 = vld [vmem:[%s24953_s2 + $0x4e0] sm:$0xf]  ;;  %v11460_v36 = vor.u32 %v16215_v45, %v11459_v44  ;;  %v16209_v44 = vld [vmem:[%s24953_s2 + $0x2c4] sm:$0xf]  ;;  %v11445_v45 = vld [vmem:[%s24953_s2 + $0x2d0] sm:$0xf0] }
 0x181   : > { %v11716_v7 = vor.u32 %v16279_v37, %v11715_v59  ;;  %v11555_v26 = vld [vmem:[%s24953_s2 + $0x3a0] sm:$0xf]  ;;  %v11448_v37 = vor.u32 %v16209_v44, %v11445_v45  ;;  %v11547_v44 = vld [vmem:[%s24953_s2 + $0x388] sm:$0xf] }
 0x182   : > { %v18209_v58 = vpop.f32.mrf.mxu3  ;;  %2112 = vmatpush.bf16.msrb.mxu1 %v11496_v5  ;;  %v18266_v5 = vld [vmem:[%s24965_s3] sm:$0xf]  ;;  %v11556_v51 = vor.u32 %v16239_v28, %v11555_v26  ;;  %v16271_v26 = vld [vmem:[%s24953_s2 + $0x4ac] sm:$0xf0]  ;;  %v16205_v28 = vld [vmem:[%s24953_s2 + $0x2a4] sm:$0xf] }
 0x183   : > { %24962 = vst [vmem:[#allocation19_spill] sm:$0xff] %v18209_v58  ;;  %v18219_v21 = vpop.f32.mrf.mxu2  ;;  %2077 = vmatpush.bf16.msra.mxu3 %v11572_v48  ;;  %v18278_v47 = vperm.slane %v18266_v5, 3  ;;  %v11443_v55 = vld [vmem:[%s24953_s2 + $0x2c0] sm:$0xf] }
 0x184   : > { %24964 = vst [vmem:[#allocation21_spill] sm:$0xff] %v18219_v21  ;;  %v1384_v23 = vpop.f32.mrf.mxu0  ;;  %2056 = vmatpush.bf16.msra.mxu2 %v11476_v41  ;;  %2095 = vmatpush.bf16.msrb.mxu0 %v11716_v7  ;;  %v11699_v56 = vld [vmem:[%s24953_s2 + $0x4c0] sm:$0xf] }
 0x185   : > { %v18217_v8 = vpop.f32.mrf.mxu1  ;;  %24966 = vst [vmem:[#allocation22_spill] sm:$0xff] %v18278_v47  ;;  %v11427_v60 = vld [vmem:[%s24953_s2 + $0x2a0] sm:$0xf] }
 0x186   : > { %24963 = vst [vmem:[#allocation20_spill] sm:$0xff] %v18217_v8  ;;  %2113 = vmatpush.bf16.msrb.mxu1 %v11480_v53  ;;  %v11683_v7 = vld [vmem:[%s24953_s2 + $0x4a0] sm:$0xf] }
 0x187   : > { %2078 = vmatpush.bf16.msra.mxu3 %v11556_v51  ;;  %v11684_v51 = vor.u32 %v16271_v26, %v11683_v7  ;;  %v16261_v7 = vld [vmem:[%s24953_s2 + $0x464] sm:$0xf]  ;;  %v11531_v26 = vld [vmem:[%s24953_s2 + $0x368] sm:$0xf] }
 0x188   : > { %2057 = vmatpush.bf16.msra.mxu2 %v11460_v36 }
 0x18a   : > { %v1365_v6 = vpop.f32.mrf.mxu3  ;;  %2114 = vmatpush.bf16.msrb.mxu1 %v11464_v22 }
 0x18b   : > { %v18275_v38 = vadd.f32 %v1365_v6, %v18107_v29  ;;  %v1422_v9 = vpop.f32.mrf.mxu2  ;;  %v16211_v29 = vld [vmem:[%s24953_s2 + $0x2cc] sm:$0xf0] }
 0x18c   : > { %v18280_v53 = vpop.f32.mrf.mxu0  ;;  %v11444_v48 = vor.u32 %v16211_v29, %v11443_v55  ;;  %v16207_v6 = vld [vmem:[%s24953_s2 + $0x2ac] sm:$0xf0] }
 0x18d   : > { %v1403_v41 = vpop.f32.mrf.mxu1  ;;  %24967 = vst [vmem:[#allocation23_spill] sm:$0xff] %v18280_v53  ;;  %v11428_v22 = vor.u32 %v16207_v6, %v11427_v60  ;;  %v16244_v53 = vld [vmem:[%s24953_s2 + $0x3d4] sm:$0xf0] }
 0x18e   : > { %v1404_v52 = vadd.f32 %v1403_v41, %v1384_v23  ;;  %v16275_v23 = vld [vmem:[%s24953_s2 + $0x4cc] sm:$0xf0]  ;;  %2058 = vmatpush.bf16.msra.mxu2 %v11444_v48  ;;  %2115 = vmatpush.bf16.msrb.mxu1 %v11448_v37  ;;  %v11429_v41 = vld [vmem:[%s24953_s2 + $0x2b0] sm:$0xf0]  ;;  %v16265_v48 = vld [vmem:[%s24953_s2 + $0x484] sm:$0xf] }
 0x18f   : > { %v11700_v36 = vor.u32 %v16275_v23, %v11699_v56  ;;  %v11669_v23 = vld [vmem:[%s24953_s2 + $0x490] sm:$0xf0]  ;;  %v16268_v37 = vld [vmem:[%s24953_s2 + $0x494] sm:$0xf0] }
 0x190   : > { %v1423_v59 = vadd.f32 %v1422_v9, %v1404_v52  ;;  %v11432_v52 = vor.u32 %v16205_v28, %v11429_v41  ;;  %v11672_v45 = vor.u32 %v16265_v48, %v11669_v23  ;;  %v16232_v41 = vld [vmem:[%s24953_s2 + $0x374] sm:$0xf0] }
 0x191   : > { %2096 = vmatpush.bf16.msrb.mxu0 %v11700_v36  ;;  %v11675_v36 = vld [vmem:[%s24953_s2 + $0x488] sm:$0xf]  ;;  %v11532_v23 = vor.u32 %v16232_v41, %v11531_v26  ;;  %v11637_v26 = vld [vmem:[%s24953_s2 + $0x450] sm:$0xf0] }
 0x192   : > { %v18301_v57 = vadd.f32 %v18278_v47, %v1423_v59  ;;  %v18321_v9 = vpop.f32.mrf.mxu3  ;;  %2059 = vmatpush.bf16.msra.mxu2 %v11428_v22  ;;  %2116 = vmatpush.bf16.msrb.mxu1 %v11432_v52  ;;  %v16236_v59 = vld [vmem:[%s24953_s2 + $0x394] sm:$0xf0]  ;;  %v11676_v6 = vor.u32 %v16268_v37, %v11675_v36  ;;  %v11653_v22 = vld [vmem:[%s24953_s2 + $0x470] sm:$0xf0] }
 0x193   : > { %24968 = vst [vmem:[#allocation24_spill] sm:$0xff] %v18321_v9  ;;  %v18325_v29 = vpop.f32.mrf.mxu2  ;;  %v11548_v60 = vor.u32 %v16236_v59, %v11547_v44  ;;  %v11656_v28 = vor.u32 %v16261_v7, %v11653_v22  ;;  %v16264_v52 = vld [vmem:[%s24953_s2 + $0x474] sm:$0xf0]  ;;  %v11749_v59 = vld [vmem:[%s24953_s2 + $0x530] sm:$0xf0] }
 0x194   : > { %24970 = vst [vmem:[#allocation26_spill] sm:$0xff] %v18325_v29  ;;  %v1389_v56 = vpop.f32.mrf.mxu0  ;;  %v16257_v22 = vld [vmem:[%s24953_s2 + $0x444] sm:$0xf]  ;;  %v16234_v9 = vld [vmem:[%s24953_s2 + $0x38c] sm:$0xf] }
 0x195   : > { %v18323_v55 = vpop.f32.mrf.mxu1  ;;  %2097 = vmatpush.bf16.msrb.mxu0 %v11684_v51  ;;  %v11659_v51 = vld [vmem:[%s24953_s2 + $0x468] sm:$0xf] }
 0x196   : > { %24969 = vst [vmem:[#allocation25_spill] sm:$0xff] %v18323_v55  ;;  %2128 = vmatpush.bf16.msrb.mxu2 %v11672_v45  ;;  %2185 = vmatpush.bf16.msra.mxu1 %v11676_v6  ;;  %v11660_v44 = vor.u32 %v16264_v52, %v11659_v51  ;;  %v16285_v45 = vld [vmem:[%s24953_s2 + $0x524] sm:$0xf]  ;;  %v11643_v51 = vld [vmem:[%s24953_s2 + $0x448] sm:$0xf] }
 0x197   : > { %v16260_v52 = vld [vmem:[%s24953_s2 + $0x454] sm:$0xf0] }
 0x199   : > { %2166 = vmatpush.bf16.msra.mxu0 %v11548_v60  ;;  %v11752_v60 = vor.u32 %v16285_v45, %v11749_v59  ;;  %v16281_v45 = vld [vmem:[%s24953_s2 + $0x504] sm:$0xf]  ;;  %v11733_v59 = vld [vmem:[%s24953_s2 + $0x510] sm:$0xf0] }
 0x19a   : > { %v1370_v48 = vpop.f32.mrf.mxu3  ;;  %2129 = vmatpush.bf16.msrb.mxu2 %v11656_v28  ;;  %2186 = vmatpush.bf16.msra.mxu1 %v11660_v44  ;;  %v11640_v28 = vor.u32 %v16257_v22, %v11637_v26  ;;  %v11644_v44 = vor.u32 %v16260_v52, %v11643_v51  ;;  %v11621_v22 = vld [vmem:[%s24953_s2 + $0x430] sm:$0xf0]  ;;  %v11499_v26 = vld [vmem:[%s24953_s2 + $0x328] sm:$0xf] }
 0x19b   : > { %v18370_v36 = vadd.f32 %v1370_v48, %v18167_v32  ;;  %v11515_v32 = vld [vmem:[%s24953_s2 + $0x348] sm:$0xf]  ;;  %v1427_v41 = vpop.f32.mrf.mxu2  ;;  %2150 = vmatpush.bf16.msrb.mxu3 %v11752_v60 }
 0x19c   : > { %v18372_v7 = vpop.f32.mrf.mxu0 }
 0x19d   : > { %v1408_v37 = vpop.f32.mrf.mxu1  ;;  %24971 = vst [vmem:[#allocation27_spill] sm:$0xff] %v18372_v7  ;;  %2167 = vmatpush.bf16.msra.mxu0 %v11532_v23 }
 0x19e   : > { %v1409_v6 = vadd.f32 %v1408_v37, %v1389_v56  ;;  %v16228_v56 = vld [vmem:[%s24953_s2 + $0x354] sm:$0xf0]  ;;  %2130 = vmatpush.bf16.msrb.mxu2 %v11640_v28  ;;  %v11736_v37 = vor.u32 %v16281_v45, %v11733_v59  ;;  %2187 = vmatpush.bf16.msra.mxu1 %v11644_v44  ;;  %v11627_v28 = vld [vmem:[%s24953_s2 + $0x428] sm:$0xf]  ;;  %v11717_v44 = vld [vmem:[%s24953_s2 + $0x4f0] sm:$0xf0] }
 0x19f   : > { %v11516_v23 = vor.u32 %v16228_v56, %v11515_v32  ;;  %v16256_v56 = vld [vmem:[%s24953_s2 + $0x434] sm:$0xf0] }
 0x1a0   : > { %v1428_v48 = vadd.f32 %v1427_v41, %v1409_v6  ;;  %v16253_v6 = vld [vmem:[%s24953_s2 + $0x424] sm:$0xf]  ;;  %2151 = vmatpush.bf16.msrb.mxu3 %v11736_v37  ;;  %v16224_v41 = vld [vmem:[%s24953_s2 + $0x334] sm:$0xf0] }
 0x1a1   : > { %2168 = vmatpush.bf16.msra.mxu0 %v11516_v23  ;;  %v11624_v32 = vor.u32 %v16253_v6, %v11621_v22  ;;  %v11500_v52 = vor.u32 %v16224_v41, %v11499_v26  ;;  %v16277_v23 = vld [vmem:[%s24953_s2 + $0x4e4] sm:$0xf]  ;;  %v11605_v22 = vld [vmem:[%s24953_s2 + $0x410] sm:$0xf0]  ;;  %v11483_v26 = vld [vmem:[%s24953_s2 + $0x308] sm:$0xf] }
 0x1a2   : > { %v18399_v60 = vadd.f32 %v18278_v47, %v1428_v48  ;;  %v18419_v51 = vpop.f32.mrf.mxu3  ;;  %v11628_v48 = vor.u32 %v16256_v56, %v11627_v28  ;;  %v11720_v59 = vor.u32 %v16277_v23, %v11717_v44  ;;  %v16249_v6 = vld [vmem:[%s24953_s2 + $0x404] sm:$0xf]  ;;  %v11611_v28 = vld [vmem:[%s24953_s2 + $0x408] sm:$0xf]  ;;  %v16252_v56 = vld [vmem:[%s24953_s2 + $0x414] sm:$0xf0] }
 0x1a3   : > { %24972 = vst [vmem:[#allocation28_spill] sm:$0xff] %v18419_v51  ;;  %2131 = vmatpush.bf16.msrb.mxu2 %v11624_v32  ;;  %v11608_v41 = vor.u32 %v16249_v6, %v11605_v22  ;;  %v16220_v32 = vld [vmem:[%s24953_s2 + $0x314] sm:$0xf0]  ;;  %v16273_v23 = vld [vmem:[%s24953_s2 + $0x4c4] sm:$0xf] }
 0x1a4   : > { %v1506_v37 = vpop.f32.mrf.mxu0  ;;  %2188 = vmatpush.bf16.msra.mxu1 %v11628_v48  ;;  %2152 = vmatpush.bf16.msrb.mxu3 %v11720_v59  ;;  %v11612_v48 = vor.u32 %v16252_v56, %v11611_v28  ;;  %v11701_v44 = vld [vmem:[%s24953_s2 + $0x4d0] sm:$0xf0]  ;;  %v16245_v59 = vld [vmem:[%s24953_s2 + $0x3e4] sm:$0xf] }
 0x1a5   : > { %v18427_v45 = vpop.f32.mrf.mxu1  ;;  %2169 = vmatpush.bf16.msra.mxu0 %v11500_v52  ;;  %v11484_v52 = vor.u32 %v16220_v32, %v11483_v26  ;;  %v11704_v6 = vor.u32 %v16273_v23, %v11701_v44  ;;  %v11589_v22 = vld [vmem:[%s24953_s2 + $0x3f0] sm:$0xf0]  ;;  %v11467_v26 = vld [vmem:[%s24953_s2 + $0x2e8] sm:$0xf]  ;;  %v16216_v32 = vld [vmem:[%s24953_s2 + $0x2f4] sm:$0xf0] }
 0x1a6   : > { %24973 = vst [vmem:[#allocation29_spill] sm:$0xff] %v18427_v45  ;;  %v11592_v28 = vor.u32 %v16245_v59, %v11589_v22  ;;  %v11468_v56 = vor.u32 %v16216_v32, %v11467_v26  ;;  %v16248_v23 = vld [vmem:[%s24953_s2 + $0x3f4] sm:$0xf0]  ;;  %v16269_v44 = vld [vmem:[%s24953_s2 + $0x4a4] sm:$0xf] }
 0x1a7   : > { %2132 = vmatpush.bf16.msrb.mxu2 %v11608_v41  ;;  %v11595_v41 = vld [vmem:[%s24953_s2 + $0x3e8] sm:$0xf]  ;;  %v11573_v59 = vld [vmem:[%s24953_s2 + $0x3d0] sm:$0xf0] }
 0x1a8   : > { %2189 = vmatpush.bf16.msra.mxu1 %v11612_v48  ;;  %2153 = vmatpush.bf16.msrb.mxu3 %v11704_v6  ;;  %v11596_v29 = vor.u32 %v16248_v23, %v11595_v41  ;;  %v16241_v48 = vld [vmem:[%s24953_s2 + $0x3c4] sm:$0xf]  ;;  %v11451_v32 = vld [vmem:[%s24953_s2 + $0x2c8] sm:$0xf]  ;;  %v16212_v6 = vld [vmem:[%s24953_s2 + $0x2d4] sm:$0xf0] }
 0x1a9   : > { %2170 = vmatpush.bf16.msra.mxu0 %v11484_v52  ;;  %v11685_v52 = vld [vmem:[%s24953_s2 + $0x4b0] sm:$0xf0]  ;;  %v11579_v41 = vld [vmem:[%s24953_s2 + $0x3c8] sm:$0xf]  ;;  %v11576_v55 = vor.u32 %v16241_v48, %v11573_v59  ;;  %v16240_v59 = vld [vmem:[%s24953_s2 + $0x3b4] sm:$0xf0] }
 0x1aa   : > { %v1487_v22 = vpop.f32.mrf.mxu3  ;;  %v11688_v26 = vor.u32 %v16269_v44, %v11685_v52  ;;  %v11452_v52 = vor.u32 %v16212_v6, %v11451_v32  ;;  %v11580_v47 = vor.u32 %v16244_v53, %v11579_v41  ;;  %v11557_v53 = vld [vmem:[%s24953_s2 + $0x3b0] sm:$0xf0]  ;;  %v11533_v6 = vld [vmem:[%s24953_s2 + $0x378] sm:$0xf0] }
 0x1ab   : > { %2133 = vmatpush.bf16.msrb.mxu2 %v11592_v28  ;;  %v11549_v28 = vld [vmem:[%s24953_s2 + $0x398] sm:$0xf0] }
 0x1ac   : > { %v1508_v44 = vpop.f32.mrf.mxu0  ;;  %2190 = vmatpush.bf16.msra.mxu1 %v11596_v29  ;;  %2154 = vmatpush.bf16.msrb.mxu3 %v11688_v26  ;;  %v11552_v48 = vor.u32 %v16234_v9, %v11549_v28  ;;  %v16237_v29 = vld [vmem:[%s24953_s2 + $0x3a4] sm:$0xf]  ;;  %v11563_v9 = vld [vmem:[%s24953_s2 + $0x3a8] sm:$0xf] }
 0x1ad   : > { %v1525_v23 = vpop.f32.mrf.mxu1  ;;  %2171 = vmatpush.bf16.msra.mxu0 %v11468_v56  ;;  %v18495_v51 = vpack.c.bf16 %v1508_v44, %v1506_v37  ;;  %v11435_v37 = vld [vmem:[%s24953_s2 + $0x2a8] sm:$0xf]  ;;  %v11560_v56 = vor.u32 %v16237_v29, %v11557_v53  ;;  %v11564_v32 = vor.u32 %v16240_v59, %v11563_v9  ;;  %v11661_v59 = vld [vmem:[%s24953_s2 + $0x478] sm:$0xf0] }
 0x1af   : > { %2079 = vmatmul.bf16.vlgmr.msra.gmra.mxu3 %v18495_v51  ;;  %2134 = vmatpush.bf16.msrb.mxu2 %v11576_v55  ;;  %v16208_v55 = vld [vmem:[%s24953_s2 + $0x2b4] sm:$0xf0] }
 0x1b0   : > { %2191 = vmatpush.bf16.msra.mxu1 %v11580_v47  ;;  %2223 = vmatpush.bf16.msra.mxu3 %v11552_v48  ;;  %v11436_v26 = vor.u32 %v16208_v55, %v11435_v37  ;;  %v16230_v47 = vld [vmem:[%s24953_s2 + $0x36c] sm:$0xf]  ;;  %v11677_v37 = vld [vmem:[%s24953_s2 + $0x498] sm:$0xf0] }
 0x1b1   : > { %2172 = vmatpush.bf16.msra.mxu0 %v11452_v52  ;;  %v11536_v44 = vor.u32 %v16230_v47, %v11533_v6  ;;  %v16266_v48 = vld [vmem:[%s24953_s2 + $0x48c] sm:$0xf] }
 0x1b2   : > { %v1489_v41 = vpop.f32.mrf.mxu3  ;;  %v16262_v55 = vld [vmem:[%s24953_s2 + $0x46c] sm:$0xf] }
 0x1b3   : > { %v18528_v52 = vpack.c.bf16 %v1489_v41, %v1487_v22  ;;  %2135 = vmatpush.bf16.msrb.mxu2 %v11560_v56  ;;  %v11680_v22 = vor.u32 %v16266_v48, %v11677_v37  ;;  %v11517_v56 = vld [vmem:[%s24953_s2 + $0x358] sm:$0xf0]  ;;  %v11664_v47 = vor.u32 %v16262_v55, %v11661_v59  ;;  %v16258_v6 = vld [vmem:[%s24953_s2 + $0x44c] sm:$0xf]  ;;  %v11755_v59 = vld [vmem:[%s24953_s2 + $0x528] sm:$0xf] }
 0x1b4   : > { %v1511_v53 = vpop.f32.mrf.mxu0  ;;  %2192 = vmatpush.bf16.msra.mxu1 %v11564_v32  ;;  %2224 = vmatpush.bf16.msra.mxu3 %v11536_v44  ;;  %v11501_v32 = vld [vmem:[%s24953_s2 + $0x338] sm:$0xf0] }
 0x1b5   : > { %v1527_v28 = vpop.f32.mrf.mxu1  ;;  %2173 = vmatpush.bf16.msra.mxu0 %v11436_v26  ;;  %2060 = vmatmul.bf16.vlgmr.msra.gmra.mxu2 %v18528_v52  ;;  %v16222_v26 = vld [vmem:[%s24953_s2 + $0x32c] sm:$0xf]  ;;  %v11645_v41 = vld [vmem:[%s24953_s2 + $0x458] sm:$0xf0] }
 0x1b6   : > { %v18530_v29 = vpack.c.bf16 %v1527_v28, %v1525_v23  ;;  %2117 = vmatmul.bf16.vlgmr.msrb.gmra.mxu1 %v18528_v52  ;;  %v16226_v23 = vld [vmem:[%s24953_s2 + $0x34c] sm:$0xf]  ;;  %v11504_v28 = vor.u32 %v16222_v26, %v11501_v32  ;;  %v11648_v37 = vor.u32 %v16258_v6, %v11645_v41  ;;  %v11485_v55 = vld [vmem:[%s24953_s2 + $0x318] sm:$0xf0] }
 0x1b7   : > { %v11520_v9 = vor.u32 %v16226_v23, %v11517_v56  ;;  %v16218_v56 = vld [vmem:[%s24953_s2 + $0x30c] sm:$0xf]  ;;  %v11757_v41 = vld [vmem:[%s24953_s2 + $0x538] sm:$0xf0] }
 0x1b8   : > { %11761 = vmatmul.msk.bf16.vlgmr.msrb.gmra.mxu0 %vm1197_vm2, %v18530_v29  ;;  %v16254_v26 = vld [vmem:[%s24953_s2 + $0x42c] sm:$0xf] }
 0x1b9   : > { %2242 = vmatpush.bf16.msrb.mxu0 %v11680_v22  ;;  %2225 = vmatpush.bf16.msra.mxu3 %v11520_v9  ;;  %v11488_v9 = vor.u32 %v16218_v56, %v11485_v55  ;;  %v16286_v6 = vld [vmem:[%s24953_s2 + $0x52c] sm:$0xf]  ;;  %v11469_v56 = vld [vmem:[%s24953_s2 + $0x2f8] sm:$0xf0] }
 0x1ba   : > { %v1492_v44 = vpop.f32.mrf.mxu3 }
 0x1bc   : > { %v1513_v22 = vpop.f32.mrf.mxu0 }
 0x1bd   : > { %v1530_v48 = vpop.f32.mrf.mxu1  ;;  %2243 = vmatpush.bf16.msrb.mxu0 %v11664_v47  ;;  %v18566_v23 = vpack.c.bf16 %v1513_v22, %v1511_v53  ;;  %2226 = vmatpush.bf16.msra.mxu3 %v11504_v28  ;;  %v16288_v53 = vld [vmem:[%s24953_s2 + $0x534] sm:$0xf0]  ;;  %v11629_v47 = vld [vmem:[%s24953_s2 + $0x438] sm:$0xf0]  ;;  %v16214_v22 = vld [vmem:[%s24953_s2 + $0x2ec] sm:$0xf] }
 0x1be   : > { %v11756_v32 = vor.u32 %v16288_v53, %v11755_v59  ;;  %v11632_v28 = vor.u32 %v16254_v26, %v11629_v47  ;;  %v11472_v59 = vor.u32 %v16214_v22, %v11469_v56  ;;  %v11739_v26 = vld [vmem:[%s24953_s2 + $0x508] sm:$0xf]  ;;  %v16284_v47 = vld [vmem:[%s24953_s2 + $0x514] sm:$0xf0] }
 0x1bf   : > { %2084 = vmatmul.bf16.gmra.mxu3 %v18566_v23  ;;  %v11723_v22 = vld [vmem:[%s24953_s2 + $0x4e8] sm:$0xf] }
 0x1c0   : > { %2207 = vmatpush.bf16.msra.mxu2 %v11756_v32  ;;  %v11741_v32 = vld [vmem:[%s24953_s2 + $0x518] sm:$0xf0] }
 0x1c1   : > { %2244 = vmatpush.bf16.msrb.mxu0 %v11648_v37  ;;  %v11760_v37 = vor.u32 %v16286_v6, %v11757_v41  ;;  %2227 = vmatpush.bf16.msra.mxu3 %v11488_v9  ;;  %v16250_v9 = vld [vmem:[%s24953_s2 + $0x40c] sm:$0xf] }
 0x1c2   : > { %v1494_v55 = vpop.f32.mrf.mxu3 }
 0x1c3   : > { %v18599_v53 = vpack.c.bf16 %v1494_v55, %v1492_v44  ;;  %2264 = vmatpush.bf16.msrb.mxu1 %v11760_v37  ;;  %v11740_v44 = vor.u32 %v16284_v47, %v11739_v26  ;;  %v11453_v37 = vld [vmem:[%s24953_s2 + $0x2d8] sm:$0xf0]  ;;  %v16280_v55 = vld [vmem:[%s24953_s2 + $0x4f4] sm:$0xf0] }
 0x1c4   : > { %v11597_v26 = vld [vmem:[%s24953_s2 + $0x3f8] sm:$0xf0]  ;;  %v11724_v47 = vor.u32 %v16280_v55, %v11723_v22  ;;  %v16242_v22 = vld [vmem:[%s24953_s2 + $0x3cc] sm:$0xf] }
 0x1c5   : > { %v1532_v45 = vpop.f32.mrf.mxu1  ;;  %2245 = vmatpush.bf16.msrb.mxu0 %v11632_v28  ;;  %2065 = vmatmul.bf16.gmra.mxu2 %v18599_v53  ;;  %v16210_v28 = vld [vmem:[%s24953_s2 + $0x2cc] sm:$0xf]  ;;  %v11581_v55 = vld [vmem:[%s24953_s2 + $0x3d8] sm:$0xf0] }
 0x1c6   : > { %v18601_v7 = vpack.c.bf16 %v1532_v45, %v1530_v48  ;;  %2122 = vmatmul.bf16.gmra.mxu1 %v18599_v53  ;;  %v11613_v45 = vld [vmem:[%s24953_s2 + $0x418] sm:$0xf0]  ;;  %v16282_v48 = vld [vmem:[%s24953_s2 + $0x50c] sm:$0xf]  ;;  %2228 = vmatpush.bf16.msra.mxu3 %v11472_v59  ;;  %v11456_v56 = vor.u32 %v16210_v28, %v11453_v37  ;;  %v16276_v28 = vld [vmem:[%s24953_s2 + $0x4d4] sm:$0xf0] }
 0x1c7   : > { %v11616_v6 = vor.u32 %v16250_v9, %v11613_v45  ;;  %v11744_v41 = vor.u32 %v16282_v48, %v11741_v32  ;;  %2208 = vmatpush.bf16.msra.mxu2 %v11740_v44  ;;  %v16246_v59 = vld [vmem:[%s24953_s2 + $0x3ec] sm:$0xf]  ;;  %v11725_v45 = vld [vmem:[%s24953_s2 + $0x4f8] sm:$0xf0] }
 0x1c8   : > { %11762 = vmatmul.msk.bf16.gmra.mxu0 %vm1197_vm2, %v18601_v7  ;;  %v11600_v9 = vor.u32 %v16246_v59, %v11597_v26  ;;  %v16278_v44 = vld [vmem:[%s24953_s2 + $0x4ec] sm:$0xf] }
 0x1c9   : > { %2246 = vmatpush.bf16.msrb.mxu0 %v11616_v6  ;;  %2265 = vmatpush.bf16.msrb.mxu1 %v11744_v41  ;;  %v16206_v48 = vld [vmem:[%s24953_s2 + $0x2ac] sm:$0xf]  ;;  %v11728_v32 = vor.u32 %v16278_v44, %v11725_v45  ;;  %v11437_v6 = vld [vmem:[%s24953_s2 + $0x2b8] sm:$0xf0]  ;;  %v11707_v41 = vld [vmem:[%s24953_s2 + $0x4c8] sm:$0xf] }
 0x1ca   : > { %2229 = vmatpush.bf16.msra.mxu3 %v11456_v56  ;;  %v11440_v37 = vor.u32 %v16206_v48, %v11437_v6  ;;  %v16274_v59 = vld [vmem:[%s24953_s2 + $0x4cc] sm:$0xf]  ;;  %v11708_v26 = vor.u32 %v16276_v28, %v11707_v41  ;;  %v11709_v44 = vld [vmem:[%s24953_s2 + $0x4d8] sm:$0xf0]  ;;  %v11584_v56 = vor.u32 %v16242_v22, %v11581_v55  ;;  %v11691_v48 = vld [vmem:[%s24953_s2 + $0x4a8] sm:$0xf] }
 0x1cb   : > { %2209 = vmatpush.bf16.msra.mxu2 %v11724_v47  ;;  %v11712_v45 = vor.u32 %v16274_v59, %v11709_v44  ;;  %v16272_v47 = vld [vmem:[%s24953_s2 + $0x4b4] sm:$0xf0]  ;;  %v11565_v6 = vld [vmem:[%s24953_s2 + $0x3b8] sm:$0xf0]  ;;  %v16270_v41 = vld [vmem:[%s24953_s2 + $0x4ac] sm:$0xf] }
 0x1cc   : > { %v11693_v28 = vld [vmem:[%s24953_s2 + $0x4b8] sm:$0xf0] }
 0x1cd   : > { %2247 = vmatpush.bf16.msrb.mxu0 %v11600_v9  ;;  %2266 = vmatpush.bf16.msrb.mxu1 %v11728_v32  ;;  %v16238_v9 = vld [vmem:[%s24953_s2 + $0x3ac] sm:$0xf]  ;;  %v11692_v32 = vor.u32 %v16272_v47, %v11691_v48  ;;  %v11696_v22 = vor.u32 %v16270_v41, %v11693_v28 }
 0x1ce   : > { %2230 = vmatpush.bf16.msra.mxu3 %v11440_v37  ;;  %v11568_v37 = vor.u32 %v16238_v9, %v11565_v6 }
 0x1cf   : > { %11763 = vmatmul.msk.bf16.vlgmr.msrb.gmra.mxu3 %vm1197_vm2, %v18530_v29  ;;  %2210 = vmatpush.bf16.msra.mxu2 %v11708_v26  ;;  %v18749_v26 = vperm.slane %v18266_v5, 0 }
 0x1d1   : > { %2248 = vmatpush.bf16.msrb.mxu0 %v11584_v56  ;;  %2267 = vmatpush.bf16.msrb.mxu1 %v11712_v45  ;;  %v1441_v47 = vadd.f32 %v18749_v26, %v18089_v62 }
 0x1d2   : > { %2338 = vmatpush.bf16.msrb.mxu3 %v17415_v13 }
 0x1d3   : > { %2211 = vmatpush.bf16.msra.mxu2 %v11692_v32 }
 0x1d5   : > { %2249 = vmatpush.bf16.msrb.mxu0 %v11568_v37  ;;  %2268 = vmatpush.bf16.msrb.mxu1 %v11696_v22 }
 0x1d6   : > { %2136 = vmatmul.bf16.vlgmr.msrb.gmra.mxu2 %v18495_v51  ;;  %2193 = vmatmul.bf16.vlgmr.msra.gmra.mxu1 %v18495_v51 }
 0x1d7   : > { %2339 = vmatpush.bf16.msrb.mxu3 %v17423_v16  ;;  %2319 = vmatpush.bf16.msrb.mxu2 %v17413_v12 }
 0x1d8   : > { %2174 = vmatmul.bf16.vlgmr.msra.gmra.mxu0 %v18528_v52 }
 0x1d9   : > { %2357 = vmatpush.bf16.msra.mxu0 %v17417_v14 }
 0x1db   : > { %2340 = vmatpush.bf16.msrb.mxu3 %v17438_v25  ;;  %2320 = vmatpush.bf16.msrb.mxu2 %v17421_v15 }
 0x1dd   : > { %2358 = vmatpush.bf16.msra.mxu0 %v17427_v18 }
 0x1df   : > { %2341 = vmatpush.bf16.msrb.mxu3 %v17454_v35  ;;  %2321 = vmatpush.bf16.msrb.mxu2 %v17436_v24 }
 0x1e0   : > { %11764 = vmatmul.msk.bf16.gmra.mxu3 %vm1197_vm2, %v18601_v7 }
 0x1e1   : > { %2359 = vmatpush.bf16.msra.mxu0 %v17442_v27 }
 0x1e3   : > { %2342 = vmatpush.bf16.msrb.mxu3 %v17481_v50  ;;  %2322 = vmatpush.bf16.msrb.mxu2 %v17452_v34 }
 0x1e5   : > { %2360 = vmatpush.bf16.msra.mxu0 %v17464_v39 }
 0x1e6   : > { %2141 = vmatmul.bf16.gmra.mxu2 %v18566_v23  ;;  %2198 = vmatmul.bf16.gmra.mxu1 %v18566_v23 }
 0x1e7   : > { %2343 = vmatpush.bf16.msrb.mxu3 %v17513_v1  ;;  %2323 = vmatpush.bf16.msrb.mxu2 %v17479_v49 }
 0x1e8   : > { %2179 = vmatmul.bf16.gmra.mxu0 %v18599_v53 }
 0x1e9   : > { %2361 = vmatpush.bf16.msra.mxu0 %v17491_v54 }
 0x1eb   : > { %2324 = vmatpush.bf16.msrb.mxu2 %v17511_v0 }
 0x1ed   : > { %2362 = vmatpush.bf16.msra.mxu0 %v17516_v2 }
 0x1f0   : > { %2231 = vmatmul.bf16.vlgmr.msra.gmra.mxu3 %v18528_v52  ;;  %v16289_v52 = vld [vmem:[%s24954_s21 + $0x20] sm:$0xff] }
 0x1f6   : > { %11765 = vmatmul.msk.bf16.vlgmr.msra.gmra.mxu2 %vm1197_vm2, %v18530_v29  ;;  %11767 = vmatmul.msk.bf16.vlgmr.msrb.gmra.mxu1 %vm1197_vm2, %v18530_v29 }
 0x1f8   : > { %2250 = vmatmul.bf16.vlgmr.msrb.gmra.mxu0 %v18495_v51  ;;  %v11779_v51 = vld [vmem:[%s24954_s21 + $0x28] sm:$0xf] }
 0x200   : > { %2236 = vmatmul.bf16.gmra.mxu3 %v18599_v53 }
 0x206   : > { %11766 = vmatmul.msk.bf16.gmra.mxu2 %vm1197_vm2, %v18601_v7  ;;  %11768 = vmatmul.msk.bf16.gmra.mxu1 %vm1197_vm2, %v18601_v7  ;;  %v16290_v7 = vld [vmem:[%s24954_s21 + $0x28] sm:$0x10] }
 0x207   : > { %v11780_v29 = vor.u32 %v16290_v7, %v11779_v51 }
 0x208   : > { %2255 = vmatmul.bf16.gmra.mxu0 %v18566_v23  ;;  %v18746_v23 = vpop.f32.mrf.mxu2 }
 0x209   : > { %24974 = vst [vmem:[#allocation30_spill] sm:$0xff] %v18746_v23 }
 0x210   : > { %11783 = vmatmul.msk.bf16.vlgmr.msrb.gmra.mxu3 %vm613_vm1, %v16289_v52 }
 0x216   : > { %11781 = vmatmul.msk.bf16.vlgmr.msrb.gmra.mxu2 %vm613_vm1, %v16289_v52 }
 0x218   : > { %11785 = vmatmul.msk.bf16.vlgmr.msra.gmra.mxu0 %vm613_vm1, %v16289_v52 }
 0x220   : > { %11784 = vmatmul.msk.bf16.gmra.mxu3 %vm613_vm1, %v11780_v29 }
 0x226   : > { %11782 = vmatmul.msk.bf16.gmra.mxu2 %vm613_vm1, %v11780_v29 }
 0x228   : > { %11786 = vmatmul.msk.bf16.gmra.mxu0 %vm613_vm1, %v11780_v29 }
 0x232   : > { %v2080_v53 = vpop.f32.mrf.mxu3 }
 0x233   : > { %v2118_v55 = vpop.f32.mrf.mxu1 }
 0x235   : > { %v2099_v59 = vpop.f32.mrf.mxu0 }
 0x238   : > { %v2061_v44 = vpop.f32.mrf.mxu2 }
 0x239   : > { %v2081_v56 = vadd.f32 %v2080_v53, %v2061_v44  ;;  %v1449_v53 = vadd.f32 %v18749_v26, %v18099_v11 }
 0x23a   : > { %v18751_v45 = vpop.f32.mrf.mxu3 }
 0x23b   : > { %v18753_v48 = vpop.f32.mrf.mxu1  ;;  %v2100_v9 = vadd.f32 %v2099_v59, %v2081_v56 }
 0x23c   : > { %24975 = vst [vmem:[#allocation31_spill] sm:$0xff] %v18753_v48 }
 0x23d   : > { %v18757_v32 = vpop.f32.mrf.mxu0  ;;  %v18759_v6 = vadd.f32 %v2100_v9, %v1441_v47 }
 0x240   : > { %v18761_v41 = vpop.f32.mrf.mxu2 }
 0x242   : > { %v2085_v28 = vpop.f32.mrf.mxu3 }
 0x243   : > { %v2123_v37 = vpop.f32.mrf.mxu1 }
 0x245   : > { %v2104_v22 = vpop.f32.mrf.mxu0 }
 0x248   : > { %v2066_v52 = vpop.f32.mrf.mxu2 }
 0x249   : > { %v2086_v51 = vadd.f32 %v2085_v28, %v2066_v52  ;;  %v18778_v28 = vperm.slane %v18266_v5, 1 }
 0x24a   : > { %v18763_v7 = vpop.f32.mrf.mxu3 }
 0x24b   : > { %v18765_v29 = vpop.f32.mrf.mxu1  ;;  %v2105_v62 = vadd.f32 %v2104_v22, %v2086_v51  ;;  %24978 = vst [vmem:[#allocation34_spill] sm:$0xff] %v18778_v28  ;;  %v1442_v22 = vadd.f32 %v18778_v28, %v18111_v31  ;;  %v12097_v31 = vld [vmem:[%s24953_s2 + $0x700] sm:$0xf] }
 0x24c   : > { %24976 = vst [vmem:[#allocation32_spill] sm:$0xff] %v18765_v29  ;;  %v11953_v29 = vld [vmem:[%s24953_s2 + $0x5e0] sm:$0xf] }
 0x24d   : > { %v18769_v59 = vpop.f32.mrf.mxu0  ;;  %v18771_v44 = vadd.f32 %v2105_v62, %v1449_v53  ;;  %v16353_v62 = vld [vmem:[%s24953_s2 + $0x72c] sm:$0xf0] }
 0x24e   : > { %24977 = vst [vmem:[#allocation33_spill] sm:$0xff] %v18769_v59 }
 0x250   : > { %v18773_v56 = vpop.f32.mrf.mxu2 }
 0x252   : > { %v2156_v47 = vpop.f32.mrf.mxu3 }
 0x253   : > { %v2194_v9 = vpop.f32.mrf.mxu1 }
 0x255   : > { %v2175_v23 = vpop.f32.mrf.mxu0 }
 0x256   : > { %v18775_v21 = vadd.f32 %v2194_v9, %v2175_v23  ;;  %v12113_v23 = vld [vmem:[%s24953_s2 + $0x720] sm:$0xf] }
 0x257   : > { %v12114_v9 = vor.u32 %v16353_v62, %v12113_v23  ;;  %v11985_v23 = vld [vmem:[%s24953_s2 + $0x620] sm:$0xf] }
 0x259   : > { %v2137_v52 = vpop.f32.mrf.mxu2  ;;  %2910 = vmatpush.bf16.msra.mxu2 %v12114_v9 }
 0x25a   : > { %v2138_v8 = vadd.f32 %v2137_v52, %v2118_v55  ;;  %v18780_v46 = vpop.f32.mrf.mxu3 }
 0x25b   : > { %24979 = vst [vmem:[#allocation35_spill] sm:$0xff] %v18780_v46  ;;  %v18782_v11 = vpop.f32.mrf.mxu1  ;;  %v12081_v46 = vld [vmem:[%s24953_s2 + $0x6e0] sm:$0xf] }
 0x25c   : > { %24980 = vst [vmem:[#allocation36_spill] sm:$0xff] %v18782_v11  ;;  %v2157_v51 = vadd.f32 %v2156_v47, %v2138_v8  ;;  %v16349_v8 = vld [vmem:[%s24953_s2 + $0x70c] sm:$0xf0]  ;;  %v12082_v30 = vor.u32 %v16345_v33, %v12081_v46  ;;  %v12065_v33 = vld [vmem:[%s24953_s2 + $0x6c0] sm:$0xf] }
 0x25d   : > { %v18786_v53 = vpop.f32.mrf.mxu0  ;;  %v12098_v47 = vor.u32 %v16349_v8, %v12097_v31  ;;  %v11987_v31 = vld [vmem:[%s24953_s2 + $0x630] sm:$0xf0] }
 0x25e   : > { %24981 = vst [vmem:[#allocation37_spill] sm:$0xff] %v18786_v53  ;;  %v18794_v55 = vadd.f32 %v2157_v51, %v1442_v22  ;;  %v16321_v22 = vld [vmem:[%s24953_s2 + $0x62c] sm:$0xf0]  ;;  %v16319_v51 = vld [vmem:[%s24953_s2 + $0x624] sm:$0xf] }
 0x25f   : > { %2911 = vmatpush.bf16.msra.mxu2 %v12098_v47  ;;  %v11986_v9 = vor.u32 %v16321_v22, %v11985_v23  ;;  %v11990_v43 = vor.u32 %v16319_v51, %v11987_v31  ;;  %v11969_v47 = vld [vmem:[%s24953_s2 + $0x600] sm:$0xf]  ;;  %v16315_v23 = vld [vmem:[%s24953_s2 + $0x604] sm:$0xf]  ;;  %v11971_v51 = vld [vmem:[%s24953_s2 + $0x610] sm:$0xf0] }
 0x261   : > { %v18796_v52 = vpop.f32.mrf.mxu2  ;;  %2891 = vmatpush.bf16.msra.mxu1 %v11986_v9  ;;  %2948 = vmatpush.bf16.msrb.mxu0 %v11990_v43  ;;  %v11974_v43 = vor.u32 %v16315_v23, %v11971_v51  ;;  %v12193_v9 = vld [vmem:[%s24953_s2 + $0x7c0] sm:$0xf] }
 0x262   : > { %24982 = vst [vmem:[#allocation38_spill] sm:$0xff] %v18796_v52 }
 0x263   : > { %v2161_v11 = vpop.f32.mrf.mxu3  ;;  %v2199_v53 = vpop.f32.mrf.mxu1  ;;  %2912 = vmatpush.bf16.msra.mxu2 %v12082_v30 }
 0x265   : > { %v2180_v62 = vpop.f32.mrf.mxu0  ;;  %2949 = vmatpush.bf16.msrb.mxu0 %v11974_v43 }
 0x266   : > { %v18816_v8 = vadd.f32 %v2199_v53, %v2180_v62  ;;  %v16317_v53 = vld [vmem:[%s24953_s2 + $0x60c] sm:$0xf0] }
 0x267   : > { %v11970_v22 = vor.u32 %v16317_v53, %v11969_v47  ;;  %v16341_v62 = vld [vmem:[%s24953_s2 + $0x6cc] sm:$0xf0] }
 0x268   : > { %v12066_v31 = vor.u32 %v16341_v62, %v12065_v33  ;;  %v16373_v47 = vld [vmem:[%s24953_s2 + $0x7cc] sm:$0xf0] }
 0x269   : > { %v2142_v46 = vpop.f32.mrf.mxu2  ;;  %2892 = vmatpush.bf16.msra.mxu1 %v11970_v22  ;;  %v12194_v51 = vor.u32 %v16373_v47, %v12193_v9  ;;  %v16311_v22 = vld [vmem:[%s24953_s2 + $0x5e4] sm:$0xf]  ;;  %v11955_v9 = vld [vmem:[%s24953_s2 + $0x5f0] sm:$0xf0] }
 0x26a   : > { %v2143_v30 = vadd.f32 %v2142_v46, %v2123_v37  ;;  %v16313_v37 = vld [vmem:[%s24953_s2 + $0x5ec] sm:$0xf0]  ;;  %v1450_v46 = vadd.f32 %v18778_v28, %v18180_v42  ;;  %2913 = vmatpush.bf16.msra.mxu2 %v12066_v31  ;;  %v11958_v47 = vor.u32 %v16311_v22, %v11955_v9  ;;  %v12177_v42 = vld [vmem:[%s24953_s2 + $0x7a0] sm:$0xf]  ;;  %v11939_v22 = vld [vmem:[%s24953_s2 + $0x5d0] sm:$0xf0] }
 0x26b   : > { %v18848_v53 = vpop.f32.mrf.mxu3  ;;  %v18850_v23 = vpop.f32.mrf.mxu1  ;;  %v11954_v43 = vor.u32 %v16313_v37, %v11953_v29  ;;  %2932 = vmatpush.bf16.msra.mxu3 %v12194_v51  ;;  %v11937_v51 = vld [vmem:[%s24953_s2 + $0x5c0] sm:$0xf]  ;;  %v16309_v37 = vld [vmem:[%s24953_s2 + $0x5cc] sm:$0xf0] }
 0x26c   : > { %24983 = vst [vmem:[#allocation39_spill] sm:$0xff] %v18848_v53  ;;  %v2162_v33 = vadd.f32 %v2161_v11, %v2143_v30  ;;  %v16337_v53 = vld [vmem:[%s24953_s2 + $0x6ac] sm:$0xf0]  ;;  %2950 = vmatpush.bf16.msrb.mxu0 %v11958_v47  ;;  %v12161_v47 = vld [vmem:[%s24953_s2 + $0x780] sm:$0xf] }
 0x26d   : > { %24984 = vst [vmem:[#allocation40_spill] sm:$0xff] %v18850_v23  ;;  %v18863_v62 = vpop.f32.mrf.mxu0  ;;  %v12049_v23 = vld [vmem:[%s24953_s2 + $0x6a0] sm:$0xf]  ;;  %2893 = vmatpush.bf16.msra.mxu1 %v11954_v43  ;;  %v16369_v11 = vld [vmem:[%s24953_s2 + $0x7ac] sm:$0xf0] }
 0x26e   : > { %24985 = vst [vmem:[#allocation41_spill] sm:$0xff] %v18863_v62  ;;  %v12050_v29 = vor.u32 %v16337_v53, %v12049_v23  ;;  %v18880_v30 = vadd.f32 %v2162_v33, %v1450_v46  ;;  %v12178_v31 = vor.u32 %v16369_v11, %v12177_v42  ;;  %v16307_v53 = vld [vmem:[%s24953_s2 + $0x5c4] sm:$0xf]  ;;  %v11938_v23 = vor.u32 %v16309_v37, %v11937_v51  ;;  %v12033_v43 = vld [vmem:[%s24953_s2 + $0x680] sm:$0xf] }
 0x26f   : > { %v11942_v33 = vor.u32 %v16307_v53, %v11939_v22  ;;  %v16333_v9 = vld [vmem:[%s24953_s2 + $0x68c] sm:$0xf0]  ;;  %v11921_v37 = vld [vmem:[%s24953_s2 + $0x5a0] sm:$0xf] }
 0x270   : > { %2914 = vmatpush.bf16.msra.mxu2 %v12050_v29  ;;  %2933 = vmatpush.bf16.msra.mxu3 %v12178_v31  ;;  %v12034_v42 = vor.u32 %v16333_v9, %v12033_v43  ;;  %v16365_v29 = vld [vmem:[%s24953_s2 + $0x78c] sm:$0xf0]  ;;  %v12017_v9 = vld [vmem:[%s24953_s2 + $0x660] sm:$0xf] }
 0x271   : > { %v18894_v46 = vpop.f32.mrf.mxu2  ;;  %2894 = vmatpush.bf16.msra.mxu1 %v11938_v23  ;;  %2951 = vmatpush.bf16.msrb.mxu0 %v11942_v33  ;;  %v12162_v51 = vor.u32 %v16365_v29, %v12161_v47  ;;  %v16305_v53 = vld [vmem:[%s24953_s2 + $0x5ac] sm:$0xf0]  ;;  %v16303_v23 = vld [vmem:[%s24953_s2 + $0x5a4] sm:$0xf]  ;;  %v11923_v33 = vld [vmem:[%s24953_s2 + $0x5b0] sm:$0xf0] }
 0x272   : > { %24986 = vst [vmem:[#allocation42_spill] sm:$0xff] %v18894_v46  ;;  %v11922_v43 = vor.u32 %v16305_v53, %v11921_v37  ;;  %v16329_v47 = vld [vmem:[%s24953_s2 + $0x66c] sm:$0xf0]  ;;  %v11926_v62 = vor.u32 %v16303_v23, %v11923_v33  ;;  %v18933_v53 = vperm.slane %v18266_v5, 2  ;;  %v16299_v23 = vld [vmem:[%s24953_s2 + $0x584] sm:$0xf] }
 0x273   : > { %v2232_v11 = vpop.f32.mrf.mxu3  ;;  %v2270_v31 = vpop.f32.mrf.mxu1  ;;  %v12018_v28 = vor.u32 %v16329_v47, %v12017_v9  ;;  %v16361_v37 = vld [vmem:[%s24953_s2 + $0x76c] sm:$0xf0]  ;;  %v11907_v5 = vld [vmem:[%s24953_s2 + $0x590] sm:$0xf0]  ;;  %v12001_v33 = vld [vmem:[%s24953_s2 + $0x640] sm:$0xf] }
 0x274   : > { %2915 = vmatpush.bf16.msra.mxu2 %v12034_v42  ;;  %2934 = vmatpush.bf16.msra.mxu3 %v12162_v51  ;;  %v12145_v42 = vld [vmem:[%s24953_s2 + $0x760] sm:$0xf]  ;;  %24987 = vst [vmem:[#allocation43_spill] sm:$0xff] %v18933_v53  ;;  %v16301_v51 = vld [vmem:[%s24953_s2 + $0x58c] sm:$0xf0]  ;;  %v1443_v47 = vadd.f32 %v18933_v53, %v18275_v38 }
 0x275   : > { %v2251_v22 = vpop.f32.mrf.mxu0  ;;  %2895 = vmatpush.bf16.msra.mxu1 %v11922_v43  ;;  %v12146_v46 = vor.u32 %v16361_v37, %v12145_v42  ;;  %2952 = vmatpush.bf16.msrb.mxu0 %v11926_v62  ;;  %v11910_v43 = vor.u32 %v16299_v23, %v11907_v5  ;;  %v16325_v9 = vld [vmem:[%s24953_s2 + $0x64c] sm:$0xf0]  ;;  %v11889_v37 = vld [vmem:[%s24953_s2 + $0x560] sm:$0xf]  ;;  %v11891_v5 = vld [vmem:[%s24953_s2 + $0x570] sm:$0xf0] }
 0x276   : > { %v2252_v29 = vadd.f32 %v2251_v22, %v2232_v11  ;;  %v11905_v11 = vld [vmem:[%s24953_s2 + $0x580] sm:$0xf]  ;;  %v16297_v38 = vld [vmem:[%s24953_s2 + $0x56c] sm:$0xf0] }
 0x277   : > { %v11906_v22 = vor.u32 %v16301_v51, %v11905_v11 }
 0x278   : > { %v2271_v52 = vadd.f32 %v2270_v31, %v2252_v29  ;;  %2916 = vmatpush.bf16.msra.mxu2 %v12018_v28  ;;  %2935 = vmatpush.bf16.msra.mxu3 %v12146_v46  ;;  %v12129_v28 = vld [vmem:[%s24953_s2 + $0x740] sm:$0xf]  ;;  %v16357_v46 = vld [vmem:[%s24953_s2 + $0x74c] sm:$0xf0] }
 0x279   : > { %v2213_v31 = vpop.f32.mrf.mxu2  ;;  %2896 = vmatpush.bf16.msra.mxu1 %v11906_v22  ;;  %2953 = vmatpush.bf16.msrb.mxu0 %v11910_v43  ;;  %v12130_v42 = vor.u32 %v16357_v46, %v12129_v28  ;;  %v11890_v22 = vor.u32 %v16297_v38, %v11889_v37  ;;  %v11993_v43 = vld [vmem:[%s24953_s2 + $0x628] sm:$0xf]  ;;  %v11873_v28 = vld [vmem:[%s24953_s2 + $0x540] sm:$0xf]  ;;  %v11875_v46 = vld [vmem:[%s24953_s2 + $0x550] sm:$0xf0] }
 0x27a   : > { %v18948_v62 = vadd.f32 %v2271_v52, %v18301_v57  ;;  %v2214_v57 = vadd.f32 %v2213_v31, %v18775_v21  ;;  %v12002_v52 = vor.u32 %v16325_v9, %v12001_v33  ;;  %v16295_v21 = vld [vmem:[%s24953_s2 + $0x564] sm:$0xf]  ;;  %v16322_v33 = vld [vmem:[%s24953_s2 + $0x634] sm:$0xf0]  ;;  %v11977_v38 = vld [vmem:[%s24953_s2 + $0x608] sm:$0xf] }
 0x27b   : > { %v18965_v29 = vpop.f32.mrf.mxu3  ;;  %v18980_v23 = vpop.f32.mrf.mxu1  ;;  %v11894_v31 = vor.u32 %v16295_v21, %v11891_v5  ;;  %v11994_v9 = vor.u32 %v16322_v33, %v11993_v43  ;;  %v16318_v21 = vld [vmem:[%s24953_s2 + $0x614] sm:$0xf0]  ;;  %v12115_v43 = vld [vmem:[%s24953_s2 + $0x730] sm:$0xf0]  ;;  %v12121_v33 = vld [vmem:[%s24953_s2 + $0x728] sm:$0xf] }
 0x27c   : > { %24988 = vst [vmem:[#allocation44_spill] sm:$0xff] %v18965_v29  ;;  %v18976_v11 = vadd.f32 %v2214_v57, %v1443_v47  ;;  %2917 = vmatpush.bf16.msra.mxu2 %v12002_v52  ;;  %2936 = vmatpush.bf16.msra.mxu3 %v12130_v42  ;;  %v16293_v47 = vld [vmem:[%s24953_s2 + $0x54c] sm:$0xf0]  ;;  %v16291_v57 = vld [vmem:[%s24953_s2 + $0x544] sm:$0xf] }
 0x27d   : > { %v18978_v51 = vpop.f32.mrf.mxu0  ;;  %24990 = vst [vmem:[#allocation46_spill] sm:$0xff] %v18980_v23  ;;  %2897 = vmatpush.bf16.msra.mxu1 %v11890_v22  ;;  %2954 = vmatpush.bf16.msrb.mxu0 %v11894_v31  ;;  %v11874_v52 = vor.u32 %v16293_v47, %v11873_v28  ;;  %v11878_v37 = vor.u32 %v16291_v57, %v11875_v46  ;;  %v16351_v31 = vld [vmem:[%s24953_s2 + $0x724] sm:$0xf]  ;;  %v16354_v47 = vld [vmem:[%s24953_s2 + $0x734] sm:$0xf0] }
 0x27e   : > { %24989 = vst [vmem:[#allocation45_spill] sm:$0xff] %v18978_v51  ;;  %v11978_v22 = vor.u32 %v16318_v21, %v11977_v38  ;;  %v12118_v28 = vor.u32 %v16351_v31, %v12115_v43  ;;  %v11961_v57 = vld [vmem:[%s24953_s2 + $0x5e8] sm:$0xf]  ;;  %v12099_v31 = vld [vmem:[%s24953_s2 + $0x710] sm:$0xf0] }
 0x27f   : > { %v12105_v43 = vld [vmem:[%s24953_s2 + $0x708] sm:$0xf] }
 0x280   : > { %3005 = vmatpush.bf16.msrb.mxu3 %v11994_v9 }
 0x281   : > { %v19003_v42 = vpop.f32.mrf.mxu2  ;;  %2898 = vmatpush.bf16.msra.mxu1 %v11874_v52  ;;  %2955 = vmatpush.bf16.msrb.mxu0 %v11878_v37  ;;  %v16314_v52 = vld [vmem:[%s24953_s2 + $0x5f4] sm:$0xf0]  ;;  %v12122_v37 = vor.u32 %v16354_v47, %v12121_v33 }
 0x282   : > { %24991 = vst [vmem:[#allocation47_spill] sm:$0xff] %v19003_v42  ;;  %v11962_v38 = vor.u32 %v16314_v52, %v11961_v57  ;;  %v16350_v33 = vld [vmem:[%s24953_s2 + $0x714] sm:$0xf0]  ;;  %v16371_v57 = vld [vmem:[%s24953_s2 + $0x7c4] sm:$0xf] }
 0x283   : > { %v2237_v5 = vpop.f32.mrf.mxu3  ;;  %v2275_v21 = vpop.f32.mrf.mxu1  ;;  %v12106_v47 = vor.u32 %v16350_v33, %v12105_v43  ;;  %v12195_v52 = vld [vmem:[%s24953_s2 + $0x7d0] sm:$0xf0] }
 0x284   : > { %3006 = vmatpush.bf16.msrb.mxu3 %v11978_v22  ;;  %v16347_v22 = vld [vmem:[%s24953_s2 + $0x704] sm:$0xf] }
 0x285   : > { %v2256_v9 = vpop.f32.mrf.mxu0  ;;  %2967 = vmatpush.bf16.msrb.mxu1 %v12118_v28  ;;  %3024 = vmatpush.bf16.msra.mxu0 %v12122_v37  ;;  %v1451_v37 = vadd.f32 %v18933_v53, %v18370_v36  ;;  %v12083_v36 = vld [vmem:[%s24953_s2 + $0x6f0] sm:$0xf0] }
 0x286   : > { %v2257_v46 = vadd.f32 %v2256_v9, %v2237_v5  ;;  %v12102_v5 = vor.u32 %v16347_v22, %v12099_v31  ;;  %v16343_v31 = vld [vmem:[%s24953_s2 + $0x6e4] sm:$0xf] }
 0x287   : > { %v12086_v33 = vor.u32 %v16343_v31, %v12083_v36  ;;  %v12073_v31 = vld [vmem:[%s24953_s2 + $0x6c8] sm:$0xf] }
 0x288   : > { %v2276_v23 = vadd.f32 %v2275_v21, %v2257_v46  ;;  %3007 = vmatpush.bf16.msrb.mxu3 %v11962_v38  ;;  %v11945_v46 = vld [vmem:[%s24953_s2 + $0x5c8] sm:$0xf]  ;;  %v16310_v38 = vld [vmem:[%s24953_s2 + $0x5d4] sm:$0xf0] }
 0x289   : > { %v2218_v28 = vpop.f32.mrf.mxu2  ;;  %2968 = vmatpush.bf16.msrb.mxu1 %v12102_v5  ;;  %3025 = vmatpush.bf16.msra.mxu0 %v12106_v47  ;;  %v11946_v22 = vor.u32 %v16310_v38, %v11945_v46  ;;  %v11929_v46 = vld [vmem:[%s24953_s2 + $0x5a8] sm:$0xf]  ;;  %v16339_v38 = vld [vmem:[%s24953_s2 + $0x6c4] sm:$0xf] }
 0x28a   : > { %v19042_v9 = vadd.f32 %v2276_v23, %v18399_v60  ;;  %v2219_v60 = vadd.f32 %v2218_v28, %v18816_v8  ;;  %v12198_v23 = vor.u32 %v16371_v57, %v12195_v52  ;;  %v12089_v8 = vld [vmem:[%s24953_s2 + $0x6e8] sm:$0xf]  ;;  %v16346_v28 = vld [vmem:[%s24953_s2 + $0x6f4] sm:$0xf0]  ;;  %v16367_v57 = vld [vmem:[%s24953_s2 + $0x7a4] sm:$0xf] }
 0x28b   : > { %v19059_v21 = vpop.f32.mrf.mxu3  ;;  %v12090_v47 = vor.u32 %v16346_v28, %v12089_v8  ;;  %v12179_v52 = vld [vmem:[%s24953_s2 + $0x7b0] sm:$0xf0]  ;;  %v16342_v8 = vld [vmem:[%s24953_s2 + $0x6d4] sm:$0xf0] }
 0x28c   : > { %24992 = vst [vmem:[#allocation48_spill] sm:$0xff] %v19059_v21  ;;  %v19070_v43 = vadd.f32 %v2219_v60, %v1451_v37  ;;  %2989 = vmatpush.bf16.msrb.mxu2 %v12198_v23  ;;  %3008 = vmatpush.bf16.msrb.mxu3 %v11946_v22  ;;  %v12182_v37 = vor.u32 %v16367_v57, %v12179_v52  ;;  %v16306_v60 = vld [vmem:[%s24953_s2 + $0x5b4] sm:$0xf0]  ;;  %v12067_v22 = vld [vmem:[%s24953_s2 + $0x6d0] sm:$0xf0] }
 0x28d   : > { %v19072_v5 = vpop.f32.mrf.mxu0  ;;  %2969 = vmatpush.bf16.msrb.mxu1 %v12086_v33  ;;  %3026 = vmatpush.bf16.msra.mxu0 %v12090_v47  ;;  %v11930_v23 = vor.u32 %v16306_v60, %v11929_v46  ;;  %v12070_v36 = vor.u32 %v16339_v38, %v12067_v22  ;;  %v12074_v28 = vor.u32 %v16342_v8, %v12073_v31  ;;  %v16363_v47 = vld [vmem:[%s24953_s2 + $0x784] sm:$0xf]  ;;  %v12163_v57 = vld [vmem:[%s24953_s2 + $0x790] sm:$0xf0]  ;;  %v11913_v52 = vld [vmem:[%s24953_s2 + $0x588] sm:$0xf] }
 0x28e   : > { %24993 = vst [vmem:[#allocation49_spill] sm:$0xff] %v19072_v5  ;;  %v12166_v46 = vor.u32 %v16363_v47, %v12163_v57  ;;  %v16335_v38 = vld [vmem:[%s24953_s2 + $0x6a4] sm:$0xf]  ;;  %v12051_v22 = vld [vmem:[%s24953_s2 + $0x6b0] sm:$0xf0] }
 0x28f   : > { %v12057_v31 = vld [vmem:[%s24953_s2 + $0x6a8] sm:$0xf]  ;;  %v12054_v8 = vor.u32 %v16335_v38, %v12051_v22  ;;  %v16359_v47 = vld [vmem:[%s24953_s2 + $0x764] sm:$0xf]  ;;  %v12147_v57 = vld [vmem:[%s24953_s2 + $0x770] sm:$0xf0] }
 0x290   : > { %2990 = vmatpush.bf16.msrb.mxu2 %v12182_v37  ;;  %3009 = vmatpush.bf16.msrb.mxu3 %v11930_v23  ;;  %v16302_v37 = vld [vmem:[%s24953_s2 + $0x594] sm:$0xf0]  ;;  %v16331_v22 = vld [vmem:[%s24953_s2 + $0x684] sm:$0xf] }
 0x291   : > { %v19101_v33 = vpop.f32.mrf.mxu2  ;;  %2970 = vmatpush.bf16.msrb.mxu1 %v12070_v36  ;;  %3027 = vmatpush.bf16.msra.mxu0 %v12074_v28  ;;  %v11914_v23 = vor.u32 %v16302_v37, %v11913_v52  ;;  %v16338_v28 = vld [vmem:[%s24953_s2 + $0x6b4] sm:$0xf0]  ;;  %v12150_v37 = vor.u32 %v16359_v47, %v12147_v57 }
 0x292   : > { %24994 = vst [vmem:[#allocation50_spill] sm:$0xff] %v19101_v33  ;;  %v12058_v52 = vor.u32 %v16338_v28, %v12057_v31  ;;  %v16298_v38 = vld [vmem:[%s24953_s2 + $0x574] sm:$0xf0]  ;;  %v12041_v31 = vld [vmem:[%s24953_s2 + $0x688] sm:$0xf] }
 0x293   : > { %v2345_v60 = vpop.f32.mrf.mxu3  ;;  %v16334_v28 = vld [vmem:[%s24953_s2 + $0x694] sm:$0xf0] }
 0x294   : > { %2991 = vmatpush.bf16.msrb.mxu2 %v12166_v46  ;;  %3010 = vmatpush.bf16.msrb.mxu3 %v11914_v23  ;;  %v11897_v46 = vld [vmem:[%s24953_s2 + $0x568] sm:$0xf]  ;;  %v12035_v23 = vld [vmem:[%s24953_s2 + $0x690] sm:$0xf0]  ;;  %v12042_v57 = vor.u32 %v16334_v28, %v12041_v31 }
 0x295   : > { %v2364_v36 = vpop.f32.mrf.mxu0  ;;  %2971 = vmatpush.bf16.msrb.mxu1 %v12054_v8  ;;  %v11898_v51 = vor.u32 %v16298_v38, %v11897_v46  ;;  %3028 = vmatpush.bf16.msra.mxu0 %v12058_v52  ;;  %v12038_v47 = vor.u32 %v16331_v22, %v12035_v23  ;;  %v16355_v8 = vld [vmem:[%s24953_s2 + $0x744] sm:$0xf]  ;;  %v12131_v46 = vld [vmem:[%s24953_s2 + $0x750] sm:$0xf0]  ;;  %v11881_v38 = vld [vmem:[%s24953_s2 + $0x548] sm:$0xf] }
 0x296   : > { %v12134_v29 = vor.u32 %v16355_v8, %v12131_v46  ;;  %v16294_v52 = vld [vmem:[%s24953_s2 + $0x554] sm:$0xf0]  ;;  %v16327_v22 = vld [vmem:[%s24953_s2 + $0x664] sm:$0xf]  ;;  %v12019_v23 = vld [vmem:[%s24953_s2 + $0x670] sm:$0xf0] }
 0x297   : > { %v11882_v28 = vor.u32 %v16294_v52, %v11881_v38  ;;  %v16330_v8 = vld [vmem:[%s24953_s2 + $0x674] sm:$0xf0]  ;;  %v12022_v46 = vor.u32 %v16327_v22, %v12019_v23  ;;  %v11995_v38 = vld [vmem:[%s24953_s2 + $0x638] sm:$0xf0] }
 0x298   : > { %2992 = vmatpush.bf16.msrb.mxu2 %v12150_v37  ;;  %3011 = vmatpush.bf16.msrb.mxu3 %v11898_v51  ;;  %v12025_v37 = vld [vmem:[%s24953_s2 + $0x668] sm:$0xf]  ;;  %v16320_v51 = vld [vmem:[%s24953_s2 + $0x62c] sm:$0xf]  ;;  %v16326_v22 = vld [vmem:[%s24953_s2 + $0x654] sm:$0xf0] }
 0x299   : > { %v2326_v31 = vpop.f32.mrf.mxu2  ;;  %2972 = vmatpush.bf16.msrb.mxu1 %v12038_v47  ;;  %3029 = vmatpush.bf16.msra.mxu0 %v12042_v57  ;;  %v12026_v33 = vor.u32 %v16330_v8, %v12025_v37  ;;  %v16352_v47 = vld [vmem:[%s24953_s2 + $0x72c] sm:$0xf]  ;;  %v12009_v57 = vld [vmem:[%s24953_s2 + $0x648] sm:$0xf]  ;;  %v11979_v23 = vld [vmem:[%s24953_s2 + $0x618] sm:$0xf0] }
 0x29a   : > { %v12010_v37 = vor.u32 %v16326_v22, %v12009_v57  ;;  %v12091_v57 = vld [vmem:[%s24953_s2 + $0x6f8] sm:$0xf0] }
 0x29b   : > { %v2347_v53 = vpop.f32.mrf.mxu3 }
 0x29c   : > { %v19175_v42 = vpack.c.bf16 %v2347_v53, %v2345_v60  ;;  %2993 = vmatpush.bf16.msrb.mxu2 %v12134_v29  ;;  %3012 = vmatpush.bf16.msrb.mxu3 %v11882_v28  ;;  %v11998_v53 = vor.u32 %v16320_v51, %v11995_v38  ;;  %v12123_v29 = vld [vmem:[%s24953_s2 + $0x738] sm:$0xf0]  ;;  %v16323_v60 = vld [vmem:[%s24953_s2 + $0x644] sm:$0xf] }
 0x29d   : > { %v2366_v5 = vpop.f32.mrf.mxu0  ;;  %2973 = vmatpush.bf16.msrb.mxu1 %v12022_v46  ;;  %3030 = vmatpush.bf16.msra.mxu0 %v12026_v33  ;;  %v16316_v33 = vld [vmem:[%s24953_s2 + $0x60c] sm:$0xf]  ;;  %v12107_v51 = vld [vmem:[%s24953_s2 + $0x718] sm:$0xf0] }
 0x29e   : > { %v19177_v21 = vpack.c.bf16 %v2366_v5, %v2364_v36  ;;  %2918 = vmatmul.bf16.vlgmr.msra.gmra.mxu2 %v19175_v42  ;;  %v12126_v5 = vor.u32 %v16352_v47, %v12123_v29  ;;  %v12003_v36 = vld [vmem:[%s24953_s2 + $0x650] sm:$0xf0]  ;;  %v11982_v8 = vor.u32 %v16316_v33, %v11979_v23  ;;  %v16348_v46 = vld [vmem:[%s24953_s2 + $0x70c] sm:$0xf]  ;;  %v11947_v33 = vld [vmem:[%s24953_s2 + $0x5d8] sm:$0xf0] }
 0x29f   : > { %v12006_v52 = vor.u32 %v16323_v60, %v12003_v36  ;;  %v12110_v47 = vor.u32 %v16348_v46, %v12107_v51  ;;  %v11963_v60 = vld [vmem:[%s24953_s2 + $0x5f8] sm:$0xf0]  ;;  %v16340_v23 = vld [vmem:[%s24953_s2 + $0x6cc] sm:$0xf] }
 0x2a0   : > { %12207 = vmatmul.msk.bf16.vlgmr.msra.gmra.mxu3 %vm1197_vm2, %v19177_v21  ;;  %3062 = vmatpush.bf16.msra.mxu2 %v11998_v53 }
 0x2a1   : > { %v2328_v28 = vpop.f32.mrf.mxu2  ;;  %3081 = vmatpush.bf16.msra.mxu3 %v12126_v5  ;;  %2974 = vmatpush.bf16.msrb.mxu1 %v12006_v52  ;;  %v16312_v5 = vld [vmem:[%s24953_s2 + $0x5ec] sm:$0xf] }
 0x2a2   : > { %v19218_v38 = vpack.c.bf16 %v2328_v28, %v2326_v31  ;;  %3031 = vmatpush.bf16.msra.mxu0 %v12010_v37  ;;  %v16344_v31 = vld [vmem:[%s24953_s2 + $0x6ec] sm:$0xf]  ;;  %v11966_v36 = vor.u32 %v16312_v5, %v11963_v60  ;;  %v12075_v28 = vld [vmem:[%s24953_s2 + $0x6d8] sm:$0xf0] }
 0x2a3   : > { %v2350_v53 = vpop.f32.mrf.mxu3  ;;  %v16308_v52 = vld [vmem:[%s24953_s2 + $0x5cc] sm:$0xf]  ;;  %v12094_v22 = vor.u32 %v16344_v31, %v12091_v57  ;;  %v12078_v46 = vor.u32 %v16340_v23, %v12075_v28  ;;  %v11931_v57 = vld [vmem:[%s24953_s2 + $0x5b8] sm:$0xf0] }
 0x2a4   : > { %2899 = vmatmul.bf16.vlgmr.msra.gmra.mxu1 %v19218_v38  ;;  %2956 = vmatmul.bf16.vlgmr.msrb.gmra.mxu0 %v19218_v38  ;;  %v16304_v31 = vld [vmem:[%s24953_s2 + $0x5ac] sm:$0xf] }
 0x2a5   : > { %v2369_v29 = vpop.f32.mrf.mxu0  ;;  %3063 = vmatpush.bf16.msra.mxu2 %v11982_v8  ;;  %3082 = vmatpush.bf16.msra.mxu3 %v12110_v47  ;;  %v11950_v8 = vor.u32 %v16308_v52, %v11947_v33  ;;  %v16374_v33 = vld [vmem:[%s24953_s2 + $0x7d4] sm:$0xf0]  ;;  %v16372_v23 = vld [vmem:[%s24953_s2 + $0x7cc] sm:$0xf] }
 0x2a9   : > { %v2331_v37 = vpop.f32.mrf.mxu2  ;;  %3064 = vmatpush.bf16.msra.mxu2 %v11966_v36  ;;  %3083 = vmatpush.bf16.msra.mxu3 %v12094_v22  ;;  %v16336_v36 = vld [vmem:[%s24953_s2 + $0x6ac] sm:$0xf]  ;;  %v12201_v22 = vld [vmem:[%s24953_s2 + $0x7c8] sm:$0xf] }
 0x2aa   : > { %v12202_v28 = vor.u32 %v16374_v33, %v12201_v22 }
 0x2ab   : > { %v2352_v51 = vpop.f32.mrf.mxu3 }
 0x2ac   : > { %v19246_v47 = vpack.c.bf16 %v2352_v51, %v2350_v53  ;;  %v11934_v53 = vor.u32 %v16304_v31, %v11931_v57  ;;  %v11915_v51 = vld [vmem:[%s24953_s2 + $0x598] sm:$0xf0]  ;;  %3046 = vmatpush.bf16.msra.mxu1 %v12202_v28 }
 0x2ad   : > { %v2371_v5 = vpop.f32.mrf.mxu0  ;;  %3065 = vmatpush.bf16.msra.mxu2 %v11950_v8  ;;  %3084 = vmatpush.bf16.msra.mxu3 %v12078_v46  ;;  %v12203_v8 = vld [vmem:[%s24953_s2 + $0x7d8] sm:$0xf0]  ;;  %v16300_v46 = vld [vmem:[%s24953_s2 + $0x58c] sm:$0xf] }
 0x2ae   : > { %v19248_v60 = vpack.c.bf16 %v2371_v5, %v2369_v29  ;;  %2923 = vmatmul.bf16.gmra.mxu2 %v19246_v47  ;;  %v12059_v29 = vld [vmem:[%s24953_s2 + $0x6b8] sm:$0xf0]  ;;  %v12206_v31 = vor.u32 %v16372_v23, %v12203_v8  ;;  %v11918_v57 = vor.u32 %v16300_v46, %v11915_v51  ;;  %v16368_v23 = vld [vmem:[%s24953_s2 + $0x7ac] sm:$0xf] }
 0x2af   : > { %v12062_v52 = vor.u32 %v16336_v36, %v12059_v29  ;;  %v16332_v36 = vld [vmem:[%s24953_s2 + $0x68c] sm:$0xf]  ;;  %v12043_v29 = vld [vmem:[%s24953_s2 + $0x698] sm:$0xf0] }
 0x2b0   : > { %12208 = vmatmul.msk.bf16.gmra.mxu3 %vm1197_vm2, %v19248_v60  ;;  %v12046_v33 = vor.u32 %v16332_v36, %v12043_v29  ;;  %3103 = vmatpush.bf16.msrb.mxu0 %v12206_v31  ;;  %v12187_v28 = vld [vmem:[%s24953_s2 + $0x7b8] sm:$0xf0]  ;;  %v16296_v8 = vld [vmem:[%s24953_s2 + $0x56c] sm:$0xf]  ;;  %v12169_v29 = vld [vmem:[%s24953_s2 + $0x788] sm:$0xf] }
 0x2b1   : > { %v2333_v5 = vpop.f32.mrf.mxu2  ;;  %3066 = vmatpush.bf16.msra.mxu2 %v11934_v53  ;;  %3085 = vmatpush.bf16.msra.mxu3 %v12062_v52  ;;  %v12185_v53 = vld [vmem:[%s24953_s2 + $0x7a8] sm:$0xf]  ;;  %v16370_v52 = vld [vmem:[%s24953_s2 + $0x7b4] sm:$0xf0]  ;;  %v11899_v46 = vld [vmem:[%s24953_s2 + $0x578] sm:$0xf0]  ;;  %v12190_v51 = vor.u32 %v16368_v23, %v12187_v28 }
 0x2b2   : > { %v19289_v22 = vpack.c.bf16 %v2333_v5, %v2331_v37  ;;  %v12186_v37 = vor.u32 %v16370_v52, %v12185_v53  ;;  %v11902_v5 = vor.u32 %v16296_v8, %v11899_v46  ;;  %v16328_v31 = vld [vmem:[%s24953_s2 + $0x66c] sm:$0xf]  ;;  %v12027_v36 = vld [vmem:[%s24953_s2 + $0x678] sm:$0xf0] }
 0x2b3   : > { %v12030_v53 = vor.u32 %v16328_v31, %v12027_v36  ;;  %v12171_v52 = vld [vmem:[%s24953_s2 + $0x798] sm:$0xf0]  ;;  %v16324_v46 = vld [vmem:[%s24953_s2 + $0x64c] sm:$0xf]  ;;  %v16362_v36 = vld [vmem:[%s24953_s2 + $0x774] sm:$0xf0] }
 0x2b4   : > { %2904 = vmatmul.bf16.gmra.mxu1 %v19289_v22  ;;  %2961 = vmatmul.bf16.gmra.mxu0 %v19289_v22  ;;  %v11883_v8 = vld [vmem:[%s24953_s2 + $0x558] sm:$0xf0] }
 0x2b5   : > { %3067 = vmatpush.bf16.msra.mxu2 %v11918_v57  ;;  %3086 = vmatpush.bf16.msra.mxu3 %v12046_v33  ;;  %v16366_v57 = vld [vmem:[%s24953_s2 + $0x794] sm:$0xf0]  ;;  %v16364_v33 = vld [vmem:[%s24953_s2 + $0x78c] sm:$0xf]  ;;  %v12011_v31 = vld [vmem:[%s24953_s2 + $0x658] sm:$0xf0] }
 0x2b6   : > { %3047 = vmatpush.bf16.msra.mxu1 %v12186_v37  ;;  %3104 = vmatpush.bf16.msrb.mxu0 %v12190_v51  ;;  %v12170_v23 = vor.u32 %v16366_v57, %v12169_v29  ;;  %v12174_v28 = vor.u32 %v16364_v33, %v12171_v52  ;;  %v16292_v37 = vld [vmem:[%s24953_s2 + $0x54c] sm:$0xf]  ;;  %v12153_v51 = vld [vmem:[%s24953_s2 + $0x768] sm:$0xf]  ;;  %v12014_v57 = vor.u32 %v16324_v46, %v12011_v31  ;;  %v12155_v52 = vld [vmem:[%s24953_s2 + $0x778] sm:$0xf0] }
 0x2b7   : > { %v11886_v29 = vor.u32 %v16292_v37, %v11883_v8  ;;  %v16360_v33 = vld [vmem:[%s24953_s2 + $0x76c] sm:$0xf]  ;;  %v12154_v48 = vor.u32 %v16362_v36, %v12153_v51 }
 0x2b8   : > { %v12158_v58 = vor.u32 %v16360_v33, %v12155_v52 }
 0x2b9   : > { %3068 = vmatpush.bf16.msra.mxu2 %v11902_v5  ;;  %3087 = vmatpush.bf16.msra.mxu3 %v12030_v53  ;;  %v12137_v5 = vld [vmem:[%s24953_s2 + $0x748] sm:$0xf]  ;;  %v16358_v53 = vld [vmem:[%s24953_s2 + $0x754] sm:$0xf0] }
 0x2ba   : > { %3048 = vmatpush.bf16.msra.mxu1 %v12170_v23  ;;  %3105 = vmatpush.bf16.msrb.mxu0 %v12174_v28  ;;  %v16356_v23 = vld [vmem:[%s24953_s2 + $0x74c] sm:$0xf]  ;;  %v12138_v28 = vor.u32 %v16358_v53, %v12137_v5 }
 0x2bd   : > { %3069 = vmatpush.bf16.msra.mxu2 %v11886_v29  ;;  %3088 = vmatpush.bf16.msra.mxu3 %v12014_v57 }
 0x2be   : > { %12209 = vmatmul.msk.bf16.vlgmr.msrb.gmra.mxu2 %vm1197_vm2, %v19177_v21  ;;  %3049 = vmatpush.bf16.msra.mxu1 %v12154_v48  ;;  %v12139_v48 = vld [vmem:[%s24953_s2 + $0x758] sm:$0xf0] }
 0x2bf   : > { %3106 = vmatpush.bf16.msrb.mxu0 %v12158_v58  ;;  %v12142_v58 = vor.u32 %v16356_v23, %v12139_v48 }
 0x2c0   : > { %3013 = vmatmul.bf16.vlgmr.msrb.gmra.mxu3 %v19218_v38 }
 0x2c1   : > { %3177 = vmatpush.bf16.msrb.mxu2 %v17415_v13  ;;  %3196 = vmatpush.bf16.msrb.mxu3 %v17417_v14 }
 0x2c2   : > { %3050 = vmatpush.bf16.msra.mxu1 %v12138_v28 }
 0x2c3   : > { %3107 = vmatpush.bf16.msrb.mxu0 %v12142_v58 }
 0x2c4   : > { %2975 = vmatmul.bf16.vlgmr.msrb.gmra.mxu1 %v19175_v42  ;;  %3032 = vmatmul.bf16.vlgmr.msra.gmra.mxu0 %v19175_v42 }
 0x2c5   : > { %3178 = vmatpush.bf16.msrb.mxu2 %v17423_v16  ;;  %3197 = vmatpush.bf16.msrb.mxu3 %v17427_v18 }
 0x2c6   : > { %3158 = vmatpush.bf16.msrb.mxu1 %v17413_v12 }
 0x2c9   : > { %3179 = vmatpush.bf16.msrb.mxu2 %v17438_v25  ;;  %3198 = vmatpush.bf16.msrb.mxu3 %v17442_v27 }
 0x2ca   : > { %3159 = vmatpush.bf16.msrb.mxu1 %v17421_v15 }
 0x2cd   : > { %3180 = vmatpush.bf16.msrb.mxu2 %v17454_v35  ;;  %3199 = vmatpush.bf16.msrb.mxu3 %v17464_v39 }
 0x2ce   : > { %12210 = vmatmul.msk.bf16.gmra.mxu2 %vm1197_vm2, %v19248_v60  ;;  %3160 = vmatpush.bf16.msrb.mxu1 %v17436_v24 }
 0x2d0   : > { %3018 = vmatmul.bf16.gmra.mxu3 %v19289_v22 }
 0x2d1   : > { %3181 = vmatpush.bf16.msrb.mxu2 %v17481_v50  ;;  %3200 = vmatpush.bf16.msrb.mxu3 %v17491_v54 }
 0x2d2   : > { %3161 = vmatpush.bf16.msrb.mxu1 %v17452_v34 }
 0x2d4   : > { %2980 = vmatmul.bf16.gmra.mxu1 %v19246_v47  ;;  %3037 = vmatmul.bf16.gmra.mxu0 %v19246_v47 }
 0x2d5   : > { %3182 = vmatpush.bf16.msrb.mxu2 %v17513_v1  ;;  %3201 = vmatpush.bf16.msrb.mxu3 %v17516_v2 }
 0x2d6   : > { %3162 = vmatpush.bf16.msrb.mxu1 %v17479_v49 }
 0x2da   : > { %3163 = vmatpush.bf16.msrb.mxu1 %v17511_v0 }
 0x2de   : > { %3070 = vmatmul.bf16.vlgmr.msra.gmra.mxu2 %v19218_v38  ;;  %v16376_v38 = vld [vmem:[%s24954_s21 + $0x38] sm:$0x10] }
 0x2e0   : > { %3089 = vmatmul.bf16.vlgmr.msra.gmra.mxu3 %v19175_v42  ;;  %v16375_v42 = vld [vmem:[%s24954_s21 + $0x30] sm:$0xff] }
 0x2e4   : > { %12211 = vmatmul.msk.bf16.vlgmr.msra.gmra.mxu1 %vm1197_vm2, %v19177_v21  ;;  %12213 = vmatmul.msk.bf16.vlgmr.msrb.gmra.mxu0 %vm1197_vm2, %v19177_v21  ;;  %v12225_v21 = vld [vmem:[%s24954_s21 + $0x38] sm:$0xf] }
 0x2ee   : > { %3075 = vmatmul.bf16.gmra.mxu2 %v19289_v22 }
 0x2f0   : > { %3094 = vmatmul.bf16.gmra.mxu3 %v19246_v47  ;;  %v12226_v47 = vor.u32 %v16376_v38, %v12225_v21 }
 0x2f4   : > { %12212 = vmatmul.msk.bf16.gmra.mxu1 %vm1197_vm2, %v19248_v60  ;;  %12214 = vmatmul.msk.bf16.gmra.mxu0 %vm1197_vm2, %v19248_v60  ;;  %v19420_v60 = vpop.f32.mrf.mxu1 }
 0x2f5   : > { %24995 = vst [vmem:[#allocation51_spill] sm:$0xff] %v19420_v60 }
 0x2fe   : > { %12229 = vmatmul.msk.bf16.vlgmr.msrb.gmra.mxu2 %vm613_vm1, %v16375_v42 }
 0x300   : > { %12231 = vmatmul.msk.bf16.vlgmr.msrb.gmra.mxu3 %vm613_vm1, %v16375_v42 }
 0x304   : > { %12227 = vmatmul.msk.bf16.vlgmr.msrb.gmra.mxu1 %vm613_vm1, %v16375_v42 }
 0x30e   : > { %12230 = vmatmul.msk.bf16.gmra.mxu2 %vm613_vm1, %v12226_v47 }
 0x310   : > { %12232 = vmatmul.msk.bf16.gmra.mxu3 %vm613_vm1, %v12226_v47 }
 0x314   : > { %12228 = vmatmul.msk.bf16.gmra.mxu1 %vm613_vm1, %v12226_v47 }
 0x321   : > { %v2900_v22 = vpop.f32.mrf.mxu1  ;;  %v2919_v37 = vpop.f32.mrf.mxu2 }
 0x322   : > { %v2920_v8 = vadd.f32 %v2919_v37, %v2900_v22  ;;  %v2957_v31 = vpop.f32.mrf.mxu0 }
 0x323   : > { %v2938_v46 = vpop.f32.mrf.mxu3 }
 0x324   : > { %v2939_v51 = vadd.f32 %v2938_v46, %v2920_v8 }
 0x326   : > { %v19423_v36 = vadd.f32 %v2939_v51, %v18759_v6 }
 0x329   : > { %v19425_v29 = vpop.f32.mrf.mxu1  ;;  %v19427_v57 = vpop.f32.mrf.mxu2 }
 0x32a   : > { %v19431_v52 = vpop.f32.mrf.mxu0 }
 0x32b   : > { %v19429_v33 = vpop.f32.mrf.mxu3  ;;  %24997 = vst [vmem:[#allocation53_spill] sm:$0xff] %v19431_v52 }
 0x32c   : > { %24996 = vst [vmem:[#allocation52_spill] sm:$0xff] %v19429_v33 }
 0x331   : > { %v2905_v5 = vpop.f32.mrf.mxu1  ;;  %v2924_v53 = vpop.f32.mrf.mxu2 }
 0x332   : > { %v2925_v23 = vadd.f32 %v2924_v53, %v2905_v5  ;;  %v2962_v48 = vpop.f32.mrf.mxu0 }
 0x333   : > { %v2943_v28 = vpop.f32.mrf.mxu3 }
 0x334   : > { %v2944_v58 = vadd.f32 %v2943_v28, %v2925_v23 }
 0x336   : > { %v19434_v42 = vadd.f32 %v2944_v58, %v18771_v44 }
 0x339   : > { %v19436_v21 = vpop.f32.mrf.mxu1  ;;  %v19438_v6 = vpop.f32.mrf.mxu2 }
 0x33a   : > { %v19442_v47 = vpop.f32.mrf.mxu0 }
 0x33b   : > { %v19440_v38 = vpop.f32.mrf.mxu3  ;;  %24999 = vst [vmem:[#allocation55_spill] sm:$0xff] %v19442_v47 }
 0x33c   : > { %24998 = vst [vmem:[#allocation54_spill] sm:$0xff] %v19440_v38 }
 0x341   : > { %v2976_v22 = vpop.f32.mrf.mxu1  ;;  %v2995_v37 = vpop.f32.mrf.mxu2 }
 0x342   : > { %v2977_v8 = vadd.f32 %v2976_v22, %v2957_v31  ;;  %v3033_v51 = vpop.f32.mrf.mxu0  ;;  %v12431_v31 = vld [vmem:[%s24953_s2 + $0x8c0] sm:$0xf]  ;;  %v16407_v22 = vld [vmem:[%s24953_s2 + $0x8cc] sm:$0xf0] }
 0x343   : > { %v3014_v46 = vpop.f32.mrf.mxu3 }
 0x344   : > { %v19444_v5 = vadd.f32 %v3033_v51, %v3014_v46  ;;  %v2996_v53 = vadd.f32 %v2995_v37, %v2977_v8  ;;  %v12432_v37 = vor.u32 %v16407_v22, %v12431_v31  ;;  %v16439_v8 = vld [vmem:[%s24953_s2 + $0x9cc] sm:$0xf0]  ;;  %v16405_v46 = vld [vmem:[%s24953_s2 + $0x8c4] sm:$0xf]  ;;  %v12433_v51 = vld [vmem:[%s24953_s2 + $0x8d0] sm:$0xf0] }
 0x345   : > { %v12415_v31 = vld [vmem:[%s24953_s2 + $0x8a0] sm:$0xf]  ;;  %v16403_v22 = vld [vmem:[%s24953_s2 + $0x8ac] sm:$0xf0] }
 0x346   : > { %v19447_v23 = vadd.f32 %v2996_v53, %v18794_v55  ;;  %v12559_v55 = vld [vmem:[%s24953_s2 + $0x9c0] sm:$0xf]  ;;  %3730 = vmatpush.bf16.msra.mxu0 %v12432_v37  ;;  %v12417_v37 = vld [vmem:[%s24953_s2 + $0x8b0] sm:$0xf0] }
 0x347   : > { %v12560_v53 = vor.u32 %v16439_v8, %v12559_v55  ;;  %v16435_v55 = vld [vmem:[%s24953_s2 + $0x9ac] sm:$0xf0] }
 0x349   : > { %v19449_v44 = vpop.f32.mrf.mxu1  ;;  %v19451_v28 = vpop.f32.mrf.mxu2  ;;  %3749 = vmatpush.bf16.msra.mxu1 %v12560_v53 }
 0x34a   : > { %25000 = vst [vmem:[#allocation56_spill] sm:$0xff] %v19449_v44  ;;  %v19455_v60 = vpop.f32.mrf.mxu0 }
 0x34b   : > { %25001 = vst [vmem:[#allocation57_spill] sm:$0xff] %v19451_v28  ;;  %v19453_v58 = vpop.f32.mrf.mxu3  ;;  %v12416_v28 = vor.u32 %v16403_v22, %v12415_v31  ;;  %v12399_v22 = vld [vmem:[%s24953_s2 + $0x880] sm:$0xf] }
 0x34c   : > { %25002 = vst [vmem:[#allocation58_spill] sm:$0xff] %v19453_v58  ;;  %v12543_v58 = vld [vmem:[%s24953_s2 + $0x9a0] sm:$0xf] }
 0x34d   : > { %25003 = vst [vmem:[#allocation59_spill] sm:$0xff] %v19455_v60  ;;  %v12436_v60 = vor.u32 %v16405_v46, %v12433_v51  ;;  %v12544_v51 = vor.u32 %v16435_v55, %v12543_v58  ;;  %3731 = vmatpush.bf16.msra.mxu0 %v12416_v28  ;;  %v12527_v58 = vld [vmem:[%s24953_s2 + $0x980] sm:$0xf]  ;;  %v12400_v55 = vor.u32 %v16399_v20, %v12399_v22  ;;  %v12401_v28 = vld [vmem:[%s24953_s2 + $0x890] sm:$0xf0] }
 0x34e   : > { %v12383_v20 = vld [vmem:[%s24953_s2 + $0x860] sm:$0xf]  ;;  %v16459_v22 = vld [vmem:[%s24953_s2 + $0xa6c] sm:$0xf0] }
 0x34f   : > { %3787 = vmatpush.bf16.msra.mxu3 %v12436_v60  ;;  %v16401_v60 = vld [vmem:[%s24953_s2 + $0x8a4] sm:$0xf]  ;;  %3750 = vmatpush.bf16.msra.mxu1 %v12544_v51 }
 0x350   : > { %v12420_v53 = vor.u32 %v16401_v60, %v12417_v37 }
 0x351   : > { %v2981_v8 = vpop.f32.mrf.mxu1  ;;  %v3000_v46 = vpop.f32.mrf.mxu2  ;;  %3732 = vmatpush.bf16.msra.mxu0 %v12400_v55 }
 0x352   : > { %v2982_v47 = vadd.f32 %v2981_v8, %v2962_v48  ;;  %v3038_v52 = vpop.f32.mrf.mxu0 }
 0x353   : > { %v3019_v44 = vpop.f32.mrf.mxu3  ;;  %3788 = vmatpush.bf16.msra.mxu3 %v12420_v53  ;;  %v12639_v53 = vld [vmem:[%s24953_s2 + $0xa60] sm:$0xf] }
 0x354   : > { %v19493_v31 = vadd.f32 %v3038_v52, %v3019_v44  ;;  %v3001_v48 = vadd.f32 %v3000_v46, %v2982_v47  ;;  %v16431_v52 = vld [vmem:[%s24953_s2 + $0x98c] sm:$0xf0]  ;;  %v16397_v44 = vld [vmem:[%s24953_s2 + $0x884] sm:$0xf]  ;;  %v12511_v46 = vld [vmem:[%s24953_s2 + $0x960] sm:$0xf] }
 0x355   : > { %v12528_v60 = vor.u32 %v16431_v52, %v12527_v58  ;;  %v12404_v37 = vor.u32 %v16397_v44, %v12401_v28  ;;  %v16395_v47 = vld [vmem:[%s24953_s2 + $0x86c] sm:$0xf0]  ;;  %v12640_v52 = vor.u32 %v16459_v22, %v12639_v53  ;;  %v16393_v44 = vld [vmem:[%s24953_s2 + $0x864] sm:$0xf]  ;;  %v12385_v28 = vld [vmem:[%s24953_s2 + $0x870] sm:$0xf0] }
 0x356   : > { %v19514_v8 = vadd.f32 %v3001_v48, %v18880_v30  ;;  %v12384_v51 = vor.u32 %v16395_v47, %v12383_v20  ;;  %v16427_v30 = vld [vmem:[%s24953_s2 + $0x96c] sm:$0xf0]  ;;  %v12388_v20 = vor.u32 %v16393_v44, %v12385_v28  ;;  %v12367_v47 = vld [vmem:[%s24953_s2 + $0x840] sm:$0xf]  ;;  %v16389_v28 = vld [vmem:[%s24953_s2 + $0x844] sm:$0xf] }
 0x357   : > { %3751 = vmatpush.bf16.msra.mxu1 %v12528_v60  ;;  %3789 = vmatpush.bf16.msra.mxu3 %v12404_v37  ;;  %v12512_v55 = vor.u32 %v16427_v30, %v12511_v46  ;;  %v16391_v46 = vld [vmem:[%s24953_s2 + $0x84c] sm:$0xf0]  ;;  %v12495_v30 = vld [vmem:[%s24953_s2 + $0x940] sm:$0xf] }
 0x358   : > { %3733 = vmatpush.bf16.msra.mxu0 %v12384_v51  ;;  %3771 = vmatpush.bf16.msra.mxu2 %v12640_v52  ;;  %v12368_v53 = vor.u32 %v16391_v46, %v12367_v47  ;;  %v16423_v51 = vld [vmem:[%s24953_s2 + $0x94c] sm:$0xf0]  ;;  %v12623_v22 = vld [vmem:[%s24953_s2 + $0xa40] sm:$0xf] }
 0x359   : > { %v19534_v58 = vpop.f32.mrf.mxu1  ;;  %v19536_v48 = vpop.f32.mrf.mxu2  ;;  %v12496_v52 = vor.u32 %v16423_v51, %v12495_v30  ;;  %v12351_v46 = vld [vmem:[%s24953_s2 + $0x820] sm:$0xf]  ;;  %v16387_v30 = vld [vmem:[%s24953_s2 + $0x82c] sm:$0xf0] }
 0x35a   : > { %25004 = vst [vmem:[#allocation60_spill] sm:$0xff] %v19534_v58  ;;  %v19546_v37 = vpop.f32.mrf.mxu0  ;;  %v12479_v51 = vld [vmem:[%s24953_s2 + $0x920] sm:$0xf] }
 0x35b   : > { %25005 = vst [vmem:[#allocation61_spill] sm:$0xff] %v19536_v48  ;;  %v19544_v60 = vpop.f32.mrf.mxu3  ;;  %3752 = vmatpush.bf16.msra.mxu1 %v12512_v55  ;;  %3790 = vmatpush.bf16.msra.mxu3 %v12388_v20  ;;  %v16455_v55 = vld [vmem:[%s24953_s2 + $0xa4c] sm:$0xf0]  ;;  %v12369_v20 = vld [vmem:[%s24953_s2 + $0x850] sm:$0xf0] }
 0x35c   : > { %25006 = vst [vmem:[#allocation62_spill] sm:$0xff] %v19544_v60  ;;  %v12624_v44 = vor.u32 %v16455_v55, %v12623_v22  ;;  %3734 = vmatpush.bf16.msra.mxu0 %v12368_v53  ;;  %v12372_v47 = vor.u32 %v16389_v28, %v12369_v20  ;;  %v12352_v22 = vor.u32 %v16387_v30, %v12351_v46  ;;  %v16419_v53 = vld [vmem:[%s24953_s2 + $0x92c] sm:$0xf0]  ;;  %v12607_v55 = vld [vmem:[%s24953_s2 + $0xa20] sm:$0xf] }
 0x35d   : > { %25007 = vst [vmem:[#allocation63_spill] sm:$0xff] %v19546_v37  ;;  %v12480_v20 = vor.u32 %v16419_v53, %v12479_v51  ;;  %v12353_v46 = vld [vmem:[%s24953_s2 + $0x830] sm:$0xf0]  ;;  %v16383_v51 = vld [vmem:[%s24953_s2 + $0x80c] sm:$0xf0] }
 0x35e   : > { %3772 = vmatpush.bf16.msra.mxu2 %v12624_v44  ;;  %v12463_v53 = vld [vmem:[%s24953_s2 + $0x900] sm:$0xf] }
 0x35f   : > { %3753 = vmatpush.bf16.msra.mxu1 %v12496_v52  ;;  %3791 = vmatpush.bf16.msra.mxu3 %v12372_v47  ;;  %v16451_v52 = vld [vmem:[%s24953_s2 + $0xa2c] sm:$0xf0]  ;;  %v16385_v47 = vld [vmem:[%s24953_s2 + $0x824] sm:$0xf] }
 0x360   : > { %v12608_v37 = vor.u32 %v16451_v52, %v12607_v55  ;;  %3735 = vmatpush.bf16.msra.mxu0 %v12352_v22  ;;  %v12356_v58 = vor.u32 %v16385_v47, %v12353_v46  ;;  %v16415_v22 = vld [vmem:[%s24953_s2 + $0x90c] sm:$0xf0]  ;;  %v12591_v52 = vld [vmem:[%s24953_s2 + $0xa00] sm:$0xf] }
 0x361   : > { %v3052_v44 = vpop.f32.mrf.mxu1  ;;  %v3071_v28 = vpop.f32.mrf.mxu2 }
 0x362   : > { %v3053_v30 = vadd.f32 %v3052_v44, %v19444_v5  ;;  %v3109_v48 = vpop.f32.mrf.mxu0  ;;  %3773 = vmatpush.bf16.msra.mxu2 %v12608_v37  ;;  %v12336_v5 = vor.u32 %v16383_v51, %v12335_v40  ;;  %v16447_v44 = vld [vmem:[%s24953_s2 + $0xa0c] sm:$0xf0]  ;;  %v16381_v40 = vld [vmem:[%s24953_s2 + $0x804] sm:$0xf]  ;;  %v12337_v37 = vld [vmem:[%s24953_s2 + $0x810] sm:$0xf0] }
 0x363   : > { %v3090_v60 = vpop.f32.mrf.mxu3  ;;  %3754 = vmatpush.bf16.msra.mxu1 %v12480_v20  ;;  %3792 = vmatpush.bf16.msra.mxu3 %v12356_v58  ;;  %v12340_v46 = vor.u32 %v16381_v40, %v12337_v37  ;;  %v16379_v58 = vld [vmem:[%s24953_s2 + $0x7ec] sm:$0xf0] }
 0x364   : > { %v3091_v55 = vadd.f32 %v3090_v60, %v3071_v28  ;;  %v19616_v47 = vadd.f32 %v3053_v30, %v18976_v11  ;;  %v12464_v60 = vor.u32 %v16415_v22, %v12463_v53  ;;  %v12592_v28 = vor.u32 %v16447_v44, %v12591_v52  ;;  %3736 = vmatpush.bf16.msra.mxu0 %v12336_v5  ;;  %v12319_v11 = vld [vmem:[%s24953_s2 + $0x7e0] sm:$0xf] }
 0x365   : > { %v12447_v30 = vld [vmem:[%s24953_s2 + $0x8e0] sm:$0xf] }
 0x366   : > { %v3110_v20 = vadd.f32 %v3109_v48, %v3091_v55  ;;  %3774 = vmatpush.bf16.msra.mxu2 %v12592_v28  ;;  %v12320_v48 = vor.u32 %v16379_v58, %v12319_v11  ;;  %v12575_v53 = vld [vmem:[%s24953_s2 + $0x9e0] sm:$0xf]  ;;  %v16443_v55 = vld [vmem:[%s24953_s2 + $0x9ec] sm:$0xf0]  ;;  %v12321_v28 = vld [vmem:[%s24953_s2 + $0x7f0] sm:$0xf0] }
 0x367   : > { %3755 = vmatpush.bf16.msra.mxu1 %v12464_v60  ;;  %3793 = vmatpush.bf16.msra.mxu3 %v12340_v46  ;;  %v12576_v44 = vor.u32 %v16443_v55, %v12575_v53  ;;  %v16377_v60 = vld [vmem:[%s24953_s2 + $0x7e4] sm:$0xf]  ;;  %v12561_v11 = vld [vmem:[%s24953_s2 + $0x9d0] sm:$0xf0]  ;;  %v12439_v58 = vld [vmem:[%s24953_s2 + $0x8c8] sm:$0xf] }
 0x368   : > { %v19625_v51 = vadd.f32 %v3110_v20, %v18948_v62  ;;  %v16411_v62 = vld [vmem:[%s24953_s2 + $0x8ec] sm:$0xf0]  ;;  %3737 = vmatpush.bf16.msra.mxu0 %v12320_v48  ;;  %v12324_v20 = vor.u32 %v16377_v60, %v12321_v28  ;;  %v16437_v46 = vld [vmem:[%s24953_s2 + $0x9c4] sm:$0xf]  ;;  %v16408_v48 = vld [vmem:[%s24953_s2 + $0x8d4] sm:$0xf0] }
 0x369   : > { %v19645_v5 = vpop.f32.mrf.mxu1  ;;  %v19647_v22 = vpop.f32.mrf.mxu2  ;;  %v12448_v52 = vor.u32 %v16411_v62, %v12447_v30  ;;  %v12564_v30 = vor.u32 %v16437_v46, %v12561_v11  ;;  %v12567_v62 = vld [vmem:[%s24953_s2 + $0x9c8] sm:$0xf]  ;;  %v16440_v53 = vld [vmem:[%s24953_s2 + $0x9d4] sm:$0xf0]  ;;  %v12440_v55 = vor.u32 %v16408_v48, %v12439_v58  ;;  %v12545_v60 = vld [vmem:[%s24953_s2 + $0x9b0] sm:$0xf0] }
 0x36a   : > { %25008 = vst [vmem:[#allocation64_spill] sm:$0xff] %v19645_v5  ;;  %v19657_v37 = vpop.f32.mrf.mxu0  ;;  %3775 = vmatpush.bf16.msra.mxu2 %v12576_v44  ;;  %v16433_v44 = vld [vmem:[%s24953_s2 + $0x9a4] sm:$0xf]  ;;  %v12423_v28 = vld [vmem:[%s24953_s2 + $0x8a8] sm:$0xf] }
 0x36b   : > { %25009 = vst [vmem:[#allocation65_spill] sm:$0xff] %v19647_v22  ;;  %v19655_v40 = vpop.f32.mrf.mxu3  ;;  %3756 = vmatpush.bf16.msra.mxu1 %v12448_v52  ;;  %3794 = vmatpush.bf16.msra.mxu3 %v12324_v20  ;;  %v12568_v52 = vor.u32 %v16440_v53, %v12567_v62  ;;  %v12548_v20 = vor.u32 %v16433_v44, %v12545_v60  ;;  %v16404_v46 = vld [vmem:[%s24953_s2 + $0x8b4] sm:$0xf0]  ;;  %v12551_v11 = vld [vmem:[%s24953_s2 + $0x9a8] sm:$0xf] }
 0x36c   : > { %25010 = vst [vmem:[#allocation66_spill] sm:$0xff] %v19655_v40  ;;  %3806 = vmatpush.bf16.msrb.mxu0 %v12564_v30  ;;  %v16436_v58 = vld [vmem:[%s24953_s2 + $0x9b4] sm:$0xf0]  ;;  %v12424_v62 = vor.u32 %v16404_v46, %v12423_v28  ;;  %v16429_v44 = vld [vmem:[%s24953_s2 + $0x984] sm:$0xf] }
 0x36d   : > { %25011 = vst [vmem:[#allocation67_spill] sm:$0xff] %v19657_v37  ;;  %v12552_v53 = vor.u32 %v16436_v58, %v12551_v11  ;;  %v12529_v60 = vld [vmem:[%s24953_s2 + $0x990] sm:$0xf0]  ;;  %v12407_v37 = vld [vmem:[%s24953_s2 + $0x888] sm:$0xf] }
 0x36e   : > { %3844 = vmatpush.bf16.msrb.mxu2 %v12440_v55  ;;  %v12532_v28 = vor.u32 %v16429_v44, %v12529_v60  ;;  %v16432_v46 = vld [vmem:[%s24953_s2 + $0x994] sm:$0xf0]  ;;  %v12513_v44 = vld [vmem:[%s24953_s2 + $0x970] sm:$0xf0] }
 0x36f   : > { %3863 = vmatpush.bf16.msrb.mxu3 %v12568_v52 }
 0x370   : > { %3807 = vmatpush.bf16.msrb.mxu0 %v12548_v20  ;;  %v12535_v20 = vld [vmem:[%s24953_s2 + $0x988] sm:$0xf] }
 0x371   : > { %v3057_v30 = vpop.f32.mrf.mxu1  ;;  %v3076_v48 = vpop.f32.mrf.mxu2 }
 0x372   : > { %v3058_v55 = vadd.f32 %v3057_v30, %v19493_v31  ;;  %3845 = vmatpush.bf16.msrb.mxu2 %v12424_v62  ;;  %v16400_v31 = vld [vmem:[%s24953_s2 + $0x894] sm:$0xf0]  ;;  %v3114_v58 = vpop.f32.mrf.mxu0 }
 0x373   : > { %v3095_v52 = vpop.f32.mrf.mxu3  ;;  %3864 = vmatpush.bf16.msrb.mxu3 %v12552_v53  ;;  %v12408_v30 = vor.u32 %v16400_v31, %v12407_v37 }
 0x374   : > { %v3096_v40 = vadd.f32 %v3095_v52, %v3076_v48  ;;  %v19715_v11 = vadd.f32 %v3058_v55, %v19070_v43  ;;  %v12536_v48 = vor.u32 %v16432_v46, %v12535_v20  ;;  %3808 = vmatpush.bf16.msrb.mxu0 %v12532_v28  ;;  %v16425_v52 = vld [vmem:[%s24953_s2 + $0x964] sm:$0xf]  ;;  %v16396_v55 = vld [vmem:[%s24953_s2 + $0x874] sm:$0xf0]  ;;  %v12519_v46 = vld [vmem:[%s24953_s2 + $0x968] sm:$0xf] }
 0x375   : > { %v16457_v43 = vld [vmem:[%s24953_s2 + $0xa64] sm:$0xf]  ;;  %v12516_v37 = vor.u32 %v16425_v52, %v12513_v44  ;;  %v12497_v52 = vld [vmem:[%s24953_s2 + $0x950] sm:$0xf0] }
 0x376   : > { %v3115_v62 = vadd.f32 %v3114_v58, %v3096_v40  ;;  %3846 = vmatpush.bf16.msrb.mxu2 %v12408_v30  ;;  %v12391_v40 = vld [vmem:[%s24953_s2 + $0x868] sm:$0xf]  ;;  %v16428_v58 = vld [vmem:[%s24953_s2 + $0x974] sm:$0xf0]  ;;  %v16453_v44 = vld [vmem:[%s24953_s2 + $0xa44] sm:$0xf] }
 0x377   : > { %3865 = vmatpush.bf16.msrb.mxu3 %v12536_v48  ;;  %v12392_v20 = vor.u32 %v16396_v55, %v12391_v40  ;;  %v12520_v48 = vor.u32 %v16428_v58, %v12519_v46  ;;  %v16392_v40 = vld [vmem:[%s24953_s2 + $0x854] sm:$0xf0]  ;;  %v16417_v58 = vld [vmem:[%s24953_s2 + $0x924] sm:$0xf] }
 0x378   : > { %v19718_v53 = vadd.f32 %v3115_v62, %v19042_v9  ;;  %v12641_v9 = vld [vmem:[%s24953_s2 + $0xa70] sm:$0xf0]  ;;  %3809 = vmatpush.bf16.msrb.mxu0 %v12516_v37  ;;  %v16421_v62 = vld [vmem:[%s24953_s2 + $0x944] sm:$0xf]  ;;  %v16424_v46 = vld [vmem:[%s24953_s2 + $0x954] sm:$0xf0] }
 0x379   : > { %v19738_v60 = vpop.f32.mrf.mxu1  ;;  %v19740_v28 = vpop.f32.mrf.mxu2  ;;  %v12644_v31 = vor.u32 %v16457_v43, %v12641_v9  ;;  %v12500_v43 = vor.u32 %v16421_v62, %v12497_v52  ;;  %v12625_v37 = vld [vmem:[%s24953_s2 + $0xa50] sm:$0xf0]  ;;  %v12375_v9 = vld [vmem:[%s24953_s2 + $0x848] sm:$0xf]  ;;  %v16449_v52 = vld [vmem:[%s24953_s2 + $0xa24] sm:$0xf] }
 0x37a   : > { %25012 = vst [vmem:[#allocation68_spill] sm:$0xff] %v19738_v60  ;;  %3847 = vmatpush.bf16.msrb.mxu2 %v12392_v20  ;;  %v12628_v55 = vor.u32 %v16453_v44, %v12625_v37  ;;  %v12503_v20 = vld [vmem:[%s24953_s2 + $0x948] sm:$0xf]  ;;  %v12481_v62 = vld [vmem:[%s24953_s2 + $0x930] sm:$0xf0] }
 0x37b   : > { %25013 = vst [vmem:[#allocation69_spill] sm:$0xff] %v19740_v28  ;;  %v19748_v30 = vpop.f32.mrf.mxu3  ;;  %3828 = vmatpush.bf16.msrb.mxu1 %v12644_v31  ;;  %3866 = vmatpush.bf16.msrb.mxu3 %v12520_v48  ;;  %v12376_v31 = vor.u32 %v16392_v40, %v12375_v9  ;;  %v12504_v48 = vor.u32 %v16424_v46, %v12503_v20  ;;  %v12609_v44 = vld [vmem:[%s24953_s2 + $0xa30] sm:$0xf0]  ;;  %v16388_v40 = vld [vmem:[%s24953_s2 + $0x834] sm:$0xf0] }
 0x37c   : > { %25014 = vst [vmem:[#allocation70_spill] sm:$0xff] %v19748_v30  ;;  %3810 = vmatpush.bf16.msrb.mxu0 %v12500_v43  ;;  %v12484_v37 = vor.u32 %v16417_v58, %v12481_v62  ;;  %v12612_v9 = vor.u32 %v16449_v52, %v12609_v44  ;;  %v12359_v43 = vld [vmem:[%s24953_s2 + $0x828] sm:$0xf]  ;;  %v12465_v58 = vld [vmem:[%s24953_s2 + $0x910] sm:$0xf0] }
 0x37d   : > { %v12487_v20 = vld [vmem:[%s24953_s2 + $0x928] sm:$0xf]  ;;  %v12360_v46 = vor.u32 %v16388_v40, %v12359_v43  ;;  %v12593_v43 = vld [vmem:[%s24953_s2 + $0xa10] sm:$0xf0]  ;;  %v16384_v28 = vld [vmem:[%s24953_s2 + $0x814] sm:$0xf0] }
 0x37e   : > { %3848 = vmatpush.bf16.msrb.mxu2 %v12376_v31  ;;  %v16413_v31 = vld [vmem:[%s24953_s2 + $0x904] sm:$0xf]  ;;  %v12343_v40 = vld [vmem:[%s24953_s2 + $0x808] sm:$0xf] }
 0x37f   : > { %3829 = vmatpush.bf16.msrb.mxu1 %v12628_v55  ;;  %3867 = vmatpush.bf16.msrb.mxu3 %v12504_v48  ;;  %v16420_v55 = vld [vmem:[%s24953_s2 + $0x934] sm:$0xf0]  ;;  %v16445_v48 = vld [vmem:[%s24953_s2 + $0xa04] sm:$0xf]  ;;  %v12468_v30 = vor.u32 %v16413_v31, %v12465_v58  ;;  %v12344_v5 = vor.u32 %v16384_v28, %v12343_v40  ;;  %v12449_v31 = vld [vmem:[%s24953_s2 + $0x8f0] sm:$0xf0] }
 0x380   : > { %v12488_v44 = vor.u32 %v16420_v55, %v12487_v20  ;;  %3811 = vmatpush.bf16.msrb.mxu0 %v12484_v37  ;;  %v12471_v20 = vld [vmem:[%s24953_s2 + $0x908] sm:$0xf]  ;;  %v16416_v55 = vld [vmem:[%s24953_s2 + $0x914] sm:$0xf0]  ;;  %v12596_v60 = vor.u32 %v16445_v48, %v12593_v43  ;;  %v16409_v37 = vld [vmem:[%s24953_s2 + $0x8e4] sm:$0xf] }
 0x381   : > { %v3165_v62 = vpop.f32.mrf.mxu1  ;;  %v3184_v52 = vpop.f32.mrf.mxu2  ;;  %v16441_v58 = vld [vmem:[%s24953_s2 + $0x9e4] sm:$0xf]  ;;  %v12472_v4 = vor.u32 %v16416_v55, %v12471_v20  ;;  %v12327_v28 = vld [vmem:[%s24953_s2 + $0x7e8] sm:$0xf]  ;;  %v12452_v48 = vor.u32 %v16409_v37, %v12449_v31  ;;  %v16412_v20 = vld [vmem:[%s24953_s2 + $0x8f4] sm:$0xf0] }
 0x382   : > { %3849 = vmatpush.bf16.msrb.mxu2 %v12360_v46  ;;  %v16380_v46 = vld [vmem:[%s24953_s2 + $0x7f4] sm:$0xf0]  ;;  %v16406_v37 = vld [vmem:[%s24953_s2 + $0x8cc] sm:$0xf] }
 0x383   : > { %v3203_v22 = vpop.f32.mrf.mxu3  ;;  %3830 = vmatpush.bf16.msrb.mxu1 %v12612_v9  ;;  %3868 = vmatpush.bf16.msrb.mxu3 %v12488_v44  ;;  %v12577_v9 = vld [vmem:[%s24953_s2 + $0x9f0] sm:$0xf0]  ;;  %v12328_v40 = vor.u32 %v16380_v46, %v12327_v28  ;;  %v12455_v44 = vld [vmem:[%s24953_s2 + $0x8e8] sm:$0xf]  ;;  %v16402_v31 = vld [vmem:[%s24953_s2 + $0x8ac] sm:$0xf] }
 0x384   : > { %3812 = vmatpush.bf16.msrb.mxu0 %v12468_v30  ;;  %v12580_v43 = vor.u32 %v16441_v58, %v12577_v9  ;;  %v12425_v58 = vld [vmem:[%s24953_s2 + $0x8b8] sm:$0xf0]  ;;  %v16434_v9 = vld [vmem:[%s24953_s2 + $0x9ac] sm:$0xf] }
 0x385   : > { %v12428_v28 = vor.u32 %v16402_v31, %v12425_v58  ;;  %v12553_v46 = vld [vmem:[%s24953_s2 + $0x9b8] sm:$0xf0]  ;;  %v16394_v58 = vld [vmem:[%s24953_s2 + $0x86c] sm:$0xf] }
 0x386   : > { %3850 = vmatpush.bf16.msrb.mxu2 %v12344_v5  ;;  %v12456_v5 = vor.u32 %v16412_v20, %v12455_v44  ;;  %v12647_v44 = vld [vmem:[%s24953_s2 + $0xa68] sm:$0xf]  ;;  %v16430_v20 = vld [vmem:[%s24953_s2 + $0x98c] sm:$0xf] }
 0x387   : > { %3831 = vmatpush.bf16.msrb.mxu1 %v12596_v60  ;;  %3869 = vmatpush.bf16.msrb.mxu3 %v12472_v4  ;;  %v12441_v4 = vld [vmem:[%s24953_s2 + $0x8d8] sm:$0xf0] }
 0x388   : > { %3813 = vmatpush.bf16.msrb.mxu0 %v12452_v48  ;;  %v12556_v48 = vor.u32 %v16434_v9, %v12553_v46  ;;  %v12393_v9 = vld [vmem:[%s24953_s2 + $0x878] sm:$0xf0] }
 0x389   : > { %v3167_v55 = vpop.f32.mrf.mxu1  ;;  %v3186_v38 = vpop.f32.mrf.mxu2 }
 0x38a   : > { %v19846_v33 = vpack.c.bf16 %v3167_v55, %v3165_v62  ;;  %v19848_v59 = vpack.c.bf16 %v3186_v38, %v3184_v52  ;;  %3851 = vmatpush.bf16.msrb.mxu2 %v12328_v40  ;;  %v16438_v38 = vld [vmem:[%s24953_s2 + $0x9cc] sm:$0xf]  ;;  %v12569_v62 = vld [vmem:[%s24953_s2 + $0x9d8] sm:$0xf0] }
 0x38b   : > { %v3205_v30 = vpop.f32.mrf.mxu3  ;;  %3832 = vmatpush.bf16.msrb.mxu1 %v12580_v43  ;;  %v12572_v52 = vor.u32 %v16438_v38, %v12569_v62  ;;  %3870 = vmatpush.bf16.msrb.mxu3 %v12456_v5  ;;  %v16398_v43 = vld [vmem:[%s24953_s2 + $0x88c] sm:$0xf]  ;;  %v12409_v40 = vld [vmem:[%s24953_s2 + $0x898] sm:$0xf0] }
 0x38c   : > { %v19850_v60 = vpack.c.bf16 %v3205_v30, %v3203_v22  ;;  %3738 = vmatmul.bf16.vlgmr.msra.gmra.mxu0 %v19846_v33  ;;  %3757 = vmatmul.bf16.vlgmr.msra.gmra.mxu1 %v19848_v59  ;;  %v12444_v22 = vor.u32 %v16406_v37, %v12441_v4  ;;  %v12537_v55 = vld [vmem:[%s24953_s2 + $0x998] sm:$0xf0]  ;;  %v16460_v30 = vld [vmem:[%s24953_s2 + $0xa74] sm:$0xf0]  ;;  %v16458_v38 = vld [vmem:[%s24953_s2 + $0xa6c] sm:$0xf]  ;;  %v12412_v62 = vor.u32 %v16398_v43, %v12409_v40 }
 0x38d   : > { %3795 = vmatmul.bf16.vlgmr.msra.gmra.mxu3 %v19846_v33  ;;  %v12648_v4 = vor.u32 %v16460_v30, %v12647_v44  ;;  %v12540_v31 = vor.u32 %v16430_v20, %v12537_v55  ;;  %v12521_v43 = vld [vmem:[%s24953_s2 + $0x978] sm:$0xf0] }
 0x38e   : > { %12653 = vmatmul.msk.bf16.vlgmr.msra.gmra.mxu2 %vm1197_vm2, %v19850_v60 }
 0x38f   : > { %3901 = vmatpush.bf16.msra.mxu1 %v12444_v22  ;;  %3920 = vmatpush.bf16.msra.mxu2 %v12572_v52  ;;  %v12649_v52 = vld [vmem:[%s24953_s2 + $0xa78] sm:$0xf0] }
 0x390   : > { %3885 = vmatpush.bf16.msra.mxu0 %v12648_v4  ;;  %v12652_v46 = vor.u32 %v16458_v38, %v12649_v52  ;;  %v12631_v52 = vld [vmem:[%s24953_s2 + $0xa48] sm:$0xf] }
 0x391   : > { %v3170_v5 = vpop.f32.mrf.mxu1  ;;  %v3189_v37 = vpop.f32.mrf.mxu2 }
 0x392   : > { %3942 = vmatpush.bf16.msra.mxu3 %v12652_v46 }
 0x393   : > { %v3208_v22 = vpop.f32.mrf.mxu3  ;;  %3902 = vmatpush.bf16.msra.mxu1 %v12428_v28  ;;  %3921 = vmatpush.bf16.msra.mxu2 %v12556_v48  ;;  %v16426_v28 = vld [vmem:[%s24953_s2 + $0x96c] sm:$0xf]  ;;  %v12396_v48 = vor.u32 %v16394_v58, %v12393_v9  ;;  %v12505_v58 = vld [vmem:[%s24953_s2 + $0x958] sm:$0xf0] }
 0x394   : > { %v12524_v40 = vor.u32 %v16426_v28, %v12521_v43  ;;  %v16454_v28 = vld [vmem:[%s24953_s2 + $0xa4c] sm:$0xf]  ;;  %v12633_v43 = vld [vmem:[%s24953_s2 + $0xa58] sm:$0xf0] }
 0x397   : > { %3903 = vmatpush.bf16.msra.mxu1 %v12412_v62  ;;  %3922 = vmatpush.bf16.msra.mxu2 %v12540_v31  ;;  %v16456_v62 = vld [vmem:[%s24953_s2 + $0xa54] sm:$0xf0]  ;;  %v16422_v31 = vld [vmem:[%s24953_s2 + $0x94c] sm:$0xf] }
 0x398   : > { %v12508_v46 = vor.u32 %v16422_v31, %v12505_v58  ;;  %v12617_v58 = vld [vmem:[%s24953_s2 + $0xa38] sm:$0xf0] }
 0x399   : > { %v3172_v44 = vpop.f32.mrf.mxu1  ;;  %v3191_v20 = vpop.f32.mrf.mxu2 }
 0x39a   : > { %v19917_v55 = vpack.c.bf16 %v3172_v44, %v3170_v5  ;;  %v19919_v30 = vpack.c.bf16 %v3191_v20, %v3189_v37  ;;  %v16390_v5 = vld [vmem:[%s24953_s2 + $0x84c] sm:$0xf]  ;;  %v12632_v37 = vor.u32 %v16456_v62, %v12631_v52  ;;  %v16452_v44 = vld [vmem:[%s24953_s2 + $0xa34] sm:$0xf0] }
 0x39b   : > { %v3210_v4 = vpop.f32.mrf.mxu3  ;;  %3904 = vmatpush.bf16.msra.mxu1 %v12396_v48  ;;  %3923 = vmatpush.bf16.msra.mxu2 %v12524_v40  ;;  %v12615_v48 = vld [vmem:[%s24953_s2 + $0xa28] sm:$0xf]  ;;  %v12636_v40 = vor.u32 %v16454_v28, %v12633_v43  ;;  %v16386_v20 = vld [vmem:[%s24953_s2 + $0x82c] sm:$0xf] }
 0x39c   : > { %v19921_v38 = vpack.c.bf16 %v3210_v4, %v3208_v22  ;;  %3743 = vmatmul.bf16.gmra.mxu0 %v19917_v55  ;;  %3762 = vmatmul.bf16.gmra.mxu1 %v19919_v30  ;;  %v12377_v22 = vld [vmem:[%s24953_s2 + $0x858] sm:$0xf0]  ;;  %v12616_v52 = vor.u32 %v16452_v44, %v12615_v48  ;;  %v16382_v43 = vld [vmem:[%s24953_s2 + $0x80c] sm:$0xf] }
 0x39d   : > { %3800 = vmatmul.bf16.gmra.mxu3 %v19917_v55  ;;  %v12380_v9 = vor.u32 %v16390_v5, %v12377_v22  ;;  %3886 = vmatpush.bf16.msra.mxu0 %v12632_v37  ;;  %v12361_v4 = vld [vmem:[%s24953_s2 + $0x838] sm:$0xf0]  ;;  %v16418_v5 = vld [vmem:[%s24953_s2 + $0x92c] sm:$0xf] }
 0x39e   : > { %12654 = vmatmul.msk.bf16.gmra.mxu2 %vm1197_vm2, %v19921_v38  ;;  %v12364_v62 = vor.u32 %v16386_v20, %v12361_v4  ;;  %v12489_v37 = vld [vmem:[%s24953_s2 + $0x938] sm:$0xf0]  ;;  %v16450_v22 = vld [vmem:[%s24953_s2 + $0xa2c] sm:$0xf]  ;;  %3943 = vmatpush.bf16.msra.mxu3 %v12636_v40 }
 0x39f   : > { %3905 = vmatpush.bf16.msra.mxu1 %v12380_v9  ;;  %3924 = vmatpush.bf16.msra.mxu2 %v12508_v46  ;;  %v12492_v31 = vor.u32 %v16418_v5, %v12489_v37  ;;  %v12599_v9 = vld [vmem:[%s24953_s2 + $0xa08] sm:$0xf]  ;;  %v16448_v46 = vld [vmem:[%s24953_s2 + $0xa14] sm:$0xf0]  ;;  %v12620_v28 = vor.u32 %v16450_v22, %v12617_v58  ;;  %v12345_v48 = vld [vmem:[%s24953_s2 + $0x818] sm:$0xf0] }
 0x3a0   : > { %v16414_v40 = vld [vmem:[%s24953_s2 + $0x90c] sm:$0xf]  ;;  %v12600_v44 = vor.u32 %v16448_v46, %v12599_v9  ;;  %v12473_v20 = vld [vmem:[%s24953_s2 + $0x918] sm:$0xf0]  ;;  %v12348_v37 = vor.u32 %v16382_v43, %v12345_v48  ;;  %v16444_v58 = vld [vmem:[%s24953_s2 + $0x9f4] sm:$0xf0] }
 0x3a1   : > { %3887 = vmatpush.bf16.msra.mxu0 %v12616_v52  ;;  %v16446_v4 = vld [vmem:[%s24953_s2 + $0xa0c] sm:$0xf]  ;;  %v12601_v5 = vld [vmem:[%s24953_s2 + $0xa18] sm:$0xf0]  ;;  %v12476_v22 = vor.u32 %v16414_v40, %v12473_v20  ;;  %v12583_v52 = vld [vmem:[%s24953_s2 + $0x9e8] sm:$0xf] }
 0x3a2   : > { %v16378_v9 = vld [vmem:[%s24953_s2 + $0x7ec] sm:$0xf]  ;;  %3944 = vmatpush.bf16.msra.mxu3 %v12620_v28  ;;  %v12604_v46 = vor.u32 %v16446_v4, %v12601_v5  ;;  %v12457_v43 = vld [vmem:[%s24953_s2 + $0x8f8] sm:$0xf0]  ;;  %v12584_v48 = vor.u32 %v16444_v58, %v12583_v52 }
 0x3a3   : > { %3906 = vmatpush.bf16.msra.mxu1 %v12364_v62  ;;  %3925 = vmatpush.bf16.msra.mxu2 %v12492_v31  ;;  %v12329_v62 = vld [vmem:[%s24953_s2 + $0x7f8] sm:$0xf0]  ;;  %v16410_v31 = vld [vmem:[%s24953_s2 + $0x8ec] sm:$0xf] }
 0x3a4   : > { %v12332_v40 = vor.u32 %v16378_v9, %v12329_v62  ;;  %v12460_v20 = vor.u32 %v16410_v31, %v12457_v43  ;;  %v16442_v28 = vld [vmem:[%s24953_s2 + $0x9ec] sm:$0xf]  ;;  %v12585_v4 = vld [vmem:[%s24953_s2 + $0x9f8] sm:$0xf0] }
 0x3a5   : > { %3888 = vmatpush.bf16.msra.mxu0 %v12600_v44  ;;  %v12588_v5 = vor.u32 %v16442_v28, %v12585_v4  ;;  %v16461_v44 = vld [vmem:[%s24954_s21 + $0x40] sm:$0xff] }
 0x3a6   : > { %3945 = vmatpush.bf16.msra.mxu3 %v12604_v46 }
 0x3a7   : > { %3907 = vmatpush.bf16.msra.mxu1 %v12348_v37  ;;  %3926 = vmatpush.bf16.msra.mxu2 %v12476_v22 }
 0x3a9   : > { %3889 = vmatpush.bf16.msra.mxu0 %v12584_v48 }
 0x3aa   : > { %3946 = vmatpush.bf16.msra.mxu3 %v12588_v5 }
 0x3ab   : > { %3908 = vmatpush.bf16.msra.mxu1 %v12332_v40  ;;  %3927 = vmatpush.bf16.msra.mxu2 %v12460_v20 }
 0x3ac   : > { %3814 = vmatmul.bf16.vlgmr.msrb.gmra.mxu0 %v19848_v59  ;;  %12655 = vmatmul.msk.bf16.vlgmr.msrb.gmra.mxu1 %vm1197_vm2, %v19850_v60 }
 0x3ad   : > { %3871 = vmatmul.bf16.vlgmr.msrb.gmra.mxu3 %v19848_v59  ;;  %3997 = vmatpush.bf16.msrb.mxu0 %v17413_v12 }
 0x3ae   : > { %3852 = vmatmul.bf16.vlgmr.msrb.gmra.mxu2 %v19846_v33 }
 0x3af   : > { %4016 = vmatpush.bf16.msrb.mxu1 %v17415_v13  ;;  %4035 = vmatpush.bf16.msrb.mxu2 %v17417_v14 }
 0x3b1   : > { %3998 = vmatpush.bf16.msrb.mxu0 %v17421_v15 }
 0x3b3   : > { %4017 = vmatpush.bf16.msrb.mxu1 %v17423_v16  ;;  %4036 = vmatpush.bf16.msrb.mxu2 %v17427_v18 }
 0x3b5   : > { %3999 = vmatpush.bf16.msrb.mxu0 %v17436_v24 }
 0x3b7   : > { %4018 = vmatpush.bf16.msrb.mxu1 %v17438_v25  ;;  %4037 = vmatpush.bf16.msrb.mxu2 %v17442_v27 }
 0x3b9   : > { %4000 = vmatpush.bf16.msrb.mxu0 %v17452_v34 }
 0x3bb   : > { %4019 = vmatpush.bf16.msrb.mxu1 %v17454_v35  ;;  %4038 = vmatpush.bf16.msrb.mxu2 %v17464_v39 }
 0x3bc   : > { %3819 = vmatmul.bf16.gmra.mxu0 %v19919_v30  ;;  %12656 = vmatmul.msk.bf16.gmra.mxu1 %vm1197_vm2, %v19921_v38 }
 0x3bd   : > { %3876 = vmatmul.bf16.gmra.mxu3 %v19919_v30  ;;  %4001 = vmatpush.bf16.msrb.mxu0 %v17479_v49 }
 0x3be   : > { %3857 = vmatmul.bf16.gmra.mxu2 %v19917_v55 }
 0x3bf   : > { %4020 = vmatpush.bf16.msrb.mxu1 %v17481_v50  ;;  %4039 = vmatpush.bf16.msrb.mxu2 %v17491_v54 }
 0x3c1   : > { %4002 = vmatpush.bf16.msrb.mxu0 %v17511_v0 }
 0x3c3   : > { %4021 = vmatpush.bf16.msrb.mxu1 %v17513_v1  ;;  %4040 = vmatpush.bf16.msrb.mxu2 %v17516_v2 }
 0x3cc   : > { %12657 = vmatmul.msk.bf16.vlgmr.msra.gmra.mxu0 %vm1197_vm2, %v19850_v60  ;;  %3909 = vmatmul.bf16.vlgmr.msra.gmra.mxu1 %v19846_v33  ;;  %v16462_v33 = vld [vmem:[%s24954_s21 + $0x48] sm:$0x10] }
 0x3cd   : > { %12659 = vmatmul.msk.bf16.vlgmr.msra.gmra.mxu3 %vm1197_vm2, %v19850_v60 }
 0x3ce   : > { %3928 = vmatmul.bf16.vlgmr.msra.gmra.mxu2 %v19848_v59  ;;  %v12671_v59 = vld [vmem:[%s24954_s21 + $0x48] sm:$0xf] }
 0x3cf   : > { %v12672_v60 = vor.u32 %v16462_v33, %v12671_v59 }
 0x3dc   : > { %12658 = vmatmul.msk.bf16.gmra.mxu0 %vm1197_vm2, %v19921_v38  ;;  %3914 = vmatmul.bf16.gmra.mxu1 %v19917_v55  ;;  %v20079_v55 = vpop.f32.mrf.mxu0 }
 0x3dd   : > { %12660 = vmatmul.msk.bf16.gmra.mxu3 %vm1197_vm2, %v19921_v38  ;;  %25015 = vst [vmem:[#allocation71_spill] sm:$0xff] %v20079_v55 }
 0x3de   : > { %3933 = vmatmul.bf16.gmra.mxu2 %v19919_v30 }
 0x3ec   : > { %12673 = vmatmul.msk.bf16.vlgmr.msrb.gmra.mxu0 %vm613_vm1, %v16461_v44  ;;  %12675 = vmatmul.msk.bf16.vlgmr.msrb.gmra.mxu1 %vm613_vm1, %v16461_v44 }
 0x3ee   : > { %12677 = vmatmul.msk.bf16.vlgmr.msrb.gmra.mxu2 %vm613_vm1, %v16461_v44 }
 0x3fc   : > { %12674 = vmatmul.msk.bf16.gmra.mxu0 %vm613_vm1, %v12672_v60  ;;  %12676 = vmatmul.msk.bf16.gmra.mxu1 %vm613_vm1, %v12672_v60 }
 0x3fe   : > { %12678 = vmatmul.msk.bf16.gmra.mxu2 %vm613_vm1, %v12672_v60 }
 0x409   : > { %v3739_v30 = vpop.f32.mrf.mxu0  ;;  %v3758_v38 = vpop.f32.mrf.mxu1 }
 0x40a   : > { %v3759_v37 = vadd.f32 %v3758_v38, %v3739_v30 }
 0x410   : > { %v3796_v52 = vpop.f32.mrf.mxu3 }
 0x411   : > { %v3777_v22 = vpop.f32.mrf.mxu2  ;;  %v20081_v9 = vpop.f32.mrf.mxu0 }
 0x412   : > { %v3778_v58 = vadd.f32 %v3777_v22, %v3759_v37  ;;  %v20083_v46 = vpop.f32.mrf.mxu1 }
 0x413   : > { %25016 = vst [vmem:[#allocation72_spill] sm:$0xff] %v20083_v46 }
 0x414   : > { %v20086_v62 = vadd.f32 %v3778_v58, %v19423_v36 }
 0x418   : > { %v20090_v43 = vpop.f32.mrf.mxu3 }
 0x419   : > { %v20088_v31 = vpop.f32.mrf.mxu2  ;;  %25018 = vst [vmem:[#allocation74_spill] sm:$0xff] %v20090_v43  ;;  %v3744_v48 = vpop.f32.mrf.mxu0 }
 0x41a   : > { %25017 = vst [vmem:[#allocation73_spill] sm:$0xff] %v20088_v31  ;;  %v3763_v40 = vpop.f32.mrf.mxu1 }
 0x41b   : > { %v3764_v20 = vadd.f32 %v3763_v40, %v3744_v48 }
 0x420   : > { %v3801_v4 = vpop.f32.mrf.mxu3 }
 0x421   : > { %v3782_v28 = vpop.f32.mrf.mxu2  ;;  %v20092_v44 = vpop.f32.mrf.mxu0 }
 0x422   : > { %v3783_v5 = vadd.f32 %v3782_v28, %v3764_v20  ;;  %25019 = vst [vmem:[#allocation75_spill] sm:$0xff] %v20092_v44  ;;  %v20094_v59 = vpop.f32.mrf.mxu1  ;;  %v13077_v44 = vld [vmem:[%s24953_s2 + $0xce8] sm:$0xf] }
 0x423   : > { %25020 = vst [vmem:[#allocation76_spill] sm:$0xff] %v20094_v59 }
 0x424   : > { %v20097_v33 = vadd.f32 %v3783_v5, %v19434_v42  ;;  %v12877_v42 = vld [vmem:[%s24953_s2 + $0xb60] sm:$0xf] }
 0x428   : > { %v20101_v36 = vpop.f32.mrf.mxu3 }
 0x429   : > { %v20099_v60 = vpop.f32.mrf.mxu2  ;;  %25022 = vst [vmem:[#allocation78_spill] sm:$0xff] %v20101_v36  ;;  %v3815_v30 = vpop.f32.mrf.mxu0 }
 0x42a   : > { %25021 = vst [vmem:[#allocation77_spill] sm:$0xff] %v20099_v60  ;;  %v3834_v38 = vpop.f32.mrf.mxu1  ;;  %v3816_v37 = vadd.f32 %v3815_v30, %v3796_v52  ;;  %v16493_v52 = vld [vmem:[%s24953_s2 + $0xb6c] sm:$0xf0] }
 0x42b   : > { %v12878_v5 = vor.u32 %v16493_v52, %v12877_v42  ;;  %v16525_v30 = vld [vmem:[%s24953_s2 + $0xc6c] sm:$0xf0]  ;;  %v12989_v52 = vld [vmem:[%s24953_s2 + $0xc40] sm:$0xf] }
 0x42c   : > { %v3835_v22 = vadd.f32 %v3834_v38, %v3816_v37  ;;  %v16491_v38 = vld [vmem:[%s24953_s2 + $0xb64] sm:$0xf]  ;;  %v12879_v37 = vld [vmem:[%s24953_s2 + $0xb70] sm:$0xf0]  ;;  %v16489_v42 = vld [vmem:[%s24953_s2 + $0xb4c] sm:$0xf0] }
 0x42d   : > { %4569 = vmatpush.bf16.msrb.mxu3 %v12878_v5  ;;  %v16521_v5 = vld [vmem:[%s24953_s2 + $0xc4c] sm:$0xf0] }
 0x42e   : > { %v20104_v58 = vadd.f32 %v3835_v22, %v19447_v23  ;;  %v13005_v23 = vld [vmem:[%s24953_s2 + $0xc60] sm:$0xf] }
 0x42f   : > { %v13006_v22 = vor.u32 %v16525_v30, %v13005_v23  ;;  %v16487_v30 = vld [vmem:[%s24953_s2 + $0xb44] sm:$0xf] }
 0x430   : > { %v3872_v40 = vpop.f32.mrf.mxu3 }
 0x431   : > { %v3853_v48 = vpop.f32.mrf.mxu2  ;;  %v20108_v28 = vpop.f32.mrf.mxu0  ;;  %4588 = vmatpush.bf16.msra.mxu0 %v13006_v22 }
 0x432   : > { %v20106_v20 = vadd.f32 %v3872_v40, %v3853_v48  ;;  %25023 = vst [vmem:[#allocation79_spill] sm:$0xff] %v20108_v28  ;;  %v20110_v55 = vpop.f32.mrf.mxu1  ;;  %v12882_v48 = vor.u32 %v16491_v38, %v12879_v37  ;;  %v12861_v40 = vld [vmem:[%s24953_s2 + $0xb40] sm:$0xf]  ;;  %v12863_v38 = vld [vmem:[%s24953_s2 + $0xb50] sm:$0xf0] }
 0x433   : > { %25024 = vst [vmem:[#allocation80_spill] sm:$0xff] %v20110_v55  ;;  %v12862_v23 = vor.u32 %v16489_v42, %v12861_v40  ;;  %v12866_v28 = vor.u32 %v16487_v30, %v12863_v38  ;;  %v12845_v40 = vld [vmem:[%s24953_s2 + $0xb20] sm:$0xf]  ;;  %v16485_v42 = vld [vmem:[%s24953_s2 + $0xb2c] sm:$0xf0] }
 0x434   : > { %4626 = vmatpush.bf16.msra.mxu2 %v12882_v48  ;;  %v12990_v48 = vor.u32 %v16521_v5, %v12989_v52  ;;  %v12846_v60 = vor.u32 %v16485_v42, %v12845_v40  ;;  %v12847_v52 = vld [vmem:[%s24953_s2 + $0xb30] sm:$0xf0]  ;;  %v16481_v38 = vld [vmem:[%s24953_s2 + $0xb0c] sm:$0xf0] }
 0x435   : > { %4570 = vmatpush.bf16.msrb.mxu3 %v12862_v23 }
 0x436   : > { %4589 = vmatpush.bf16.msra.mxu0 %v12990_v48 }
 0x438   : > { %v20141_v36 = vpop.f32.mrf.mxu3  ;;  %4627 = vmatpush.bf16.msra.mxu2 %v12866_v28  ;;  %v16483_v28 = vld [vmem:[%s24953_s2 + $0xb24] sm:$0xf] }
 0x439   : > { %v20139_v55 = vpop.f32.mrf.mxu2  ;;  %25026 = vst [vmem:[#allocation82_spill] sm:$0xff] %v20141_v36  ;;  %v3820_v37 = vpop.f32.mrf.mxu0  ;;  %v12973_v36 = vld [vmem:[%s24953_s2 + $0xc20] sm:$0xf]  ;;  %v12850_v5 = vor.u32 %v16483_v28, %v12847_v52  ;;  %4571 = vmatpush.bf16.msrb.mxu3 %v12846_v60  ;;  %v12831_v60 = vld [vmem:[%s24953_s2 + $0xb10] sm:$0xf0] }
 0x43a   : > { %25025 = vst [vmem:[#allocation81_spill] sm:$0xff] %v20139_v55  ;;  %v3839_v22 = vpop.f32.mrf.mxu1  ;;  %v3821_v55 = vadd.f32 %v3820_v37, %v3801_v4  ;;  %v16517_v4 = vld [vmem:[%s24953_s2 + $0xc2c] sm:$0xf0]  ;;  %v12957_v37 = vld [vmem:[%s24953_s2 + $0xc00] sm:$0xf] }
 0x43b   : > { %v12974_v23 = vor.u32 %v16517_v4, %v12973_v36 }
 0x43c   : > { %v3840_v43 = vadd.f32 %v3839_v22, %v3821_v55  ;;  %4628 = vmatpush.bf16.msra.mxu2 %v12850_v5  ;;  %v12829_v55 = vld [vmem:[%s24953_s2 + $0xb00] sm:$0xf]  ;;  %v16477_v5 = vld [vmem:[%s24953_s2 + $0xaec] sm:$0xf0] }
 0x43d   : > { %4590 = vmatpush.bf16.msra.mxu0 %v12974_v23  ;;  %v12830_v48 = vor.u32 %v16481_v38, %v12829_v55  ;;  %v12813_v23 = vld [vmem:[%s24953_s2 + $0xae0] sm:$0xf] }
 0x43e   : > { %v20171_v30 = vadd.f32 %v3840_v43, %v19514_v8  ;;  %v16513_v8 = vld [vmem:[%s24953_s2 + $0xc0c] sm:$0xf0]  ;;  %v16479_v43 = vld [vmem:[%s24953_s2 + $0xb04] sm:$0xf]  ;;  %v12941_v55 = vld [vmem:[%s24953_s2 + $0xbe0] sm:$0xf]  ;;  %v12814_v38 = vor.u32 %v16477_v5, %v12813_v23 }
 0x43f   : > { %v12958_v28 = vor.u32 %v16513_v8, %v12957_v37  ;;  %v12834_v52 = vor.u32 %v16479_v43, %v12831_v60  ;;  %4572 = vmatpush.bf16.msrb.mxu3 %v12830_v48  ;;  %v16509_v37 = vld [vmem:[%s24953_s2 + $0xbec] sm:$0xf0]  ;;  %v13085_v43 = vld [vmem:[%s24953_s2 + $0xd00] sm:$0xf] }
 0x440   : > { %v3877_v22 = vpop.f32.mrf.mxu3  ;;  %v12942_v48 = vor.u32 %v16509_v37, %v12941_v55  ;;  %v16545_v60 = vld [vmem:[%s24953_s2 + $0xd0c] sm:$0xf0]  ;;  %v12925_v5 = vld [vmem:[%s24953_s2 + $0xbc0] sm:$0xf] }
 0x441   : > { %v3858_v36 = vpop.f32.mrf.mxu2  ;;  %v20193_v42 = vpop.f32.mrf.mxu0  ;;  %4591 = vmatpush.bf16.msra.mxu0 %v12958_v28  ;;  %4629 = vmatpush.bf16.msra.mxu2 %v12834_v52  ;;  %v13086_v28 = vor.u32 %v16545_v60, %v13085_v43  ;;  %v12797_v52 = vld [vmem:[%s24953_s2 + $0xac0] sm:$0xf]  ;;  %v16473_v23 = vld [vmem:[%s24953_s2 + $0xacc] sm:$0xf0] }
 0x442   : > { %v20191_v40 = vadd.f32 %v3877_v22, %v3858_v36  ;;  %25027 = vst [vmem:[#allocation83_spill] sm:$0xff] %v20193_v42  ;;  %v20195_v4 = vpop.f32.mrf.mxu1  ;;  %v16475_v36 = vld [vmem:[%s24953_s2 + $0xae4] sm:$0xf]  ;;  %v12815_v22 = vld [vmem:[%s24953_s2 + $0xaf0] sm:$0xf0] }
 0x443   : > { %25028 = vst [vmem:[#allocation84_spill] sm:$0xff] %v20195_v4  ;;  %v12818_v8 = vor.u32 %v16475_v36, %v12815_v22  ;;  %4573 = vmatpush.bf16.msrb.mxu3 %v12814_v38  ;;  %4610 = vmatpush.bf16.msra.mxu1 %v13086_v28  ;;  %v12798_v38 = vor.u32 %v16473_v23, %v12797_v52  ;;  %v16505_v36 = vld [vmem:[%s24953_s2 + $0xbcc] sm:$0xf0]  ;;  %v16471_v22 = vld [vmem:[%s24953_s2 + $0xac4] sm:$0xf] }
 0x444   : > { %v12926_v60 = vor.u32 %v16505_v36, %v12925_v5  ;;  %v13069_v28 = vld [vmem:[%s24953_s2 + $0xce0] sm:$0xf]  ;;  %v16541_v52 = vld [vmem:[%s24953_s2 + $0xcec] sm:$0xf0] }
 0x445   : > { %4592 = vmatpush.bf16.msra.mxu0 %v12942_v48  ;;  %4630 = vmatpush.bf16.msra.mxu2 %v12818_v8  ;;  %v12799_v48 = vld [vmem:[%s24953_s2 + $0xad0] sm:$0xf0]  ;;  %v12781_v4 = vld [vmem:[%s24953_s2 + $0xaa0] sm:$0xf]  ;;  %v16469_v5 = vld [vmem:[%s24953_s2 + $0xaac] sm:$0xf0] }
 0x446   : > { %v12909_v36 = vld [vmem:[%s24953_s2 + $0xba0] sm:$0xf] }
 0x447   : > { %4574 = vmatpush.bf16.msrb.mxu3 %v12798_v38  ;;  %v16467_v38 = vld [vmem:[%s24953_s2 + $0xaa4] sm:$0xf] }
 0x448   : > { %v20232_v37 = vpop.f32.mrf.mxu3 }
 0x449   : > { %v20230_v55 = vpop.f32.mrf.mxu2  ;;  %25030 = vst [vmem:[#allocation86_spill] sm:$0xff] %v20232_v37  ;;  %v3891_v8 = vpop.f32.mrf.mxu0  ;;  %v13070_v37 = vor.u32 %v16541_v52, %v13069_v28  ;;  %4593 = vmatpush.bf16.msra.mxu0 %v12926_v60  ;;  %v12765_v28 = vld [vmem:[%s24953_s2 + $0xa80] sm:$0xf]  ;;  %v16465_v52 = vld [vmem:[%s24953_s2 + $0xa8c] sm:$0xf0] }
 0x44a   : > { %25029 = vst [vmem:[#allocation85_spill] sm:$0xff] %v20230_v55  ;;  %v3910_v43 = vpop.f32.mrf.mxu1  ;;  %v12802_v55 = vor.u32 %v16471_v22, %v12799_v48  ;;  %v3892_v23 = vadd.f32 %v3891_v8, %v20106_v20  ;;  %v12782_v20 = vor.u32 %v16469_v5, %v12781_v4  ;;  %v12783_v48 = vld [vmem:[%s24953_s2 + $0xab0] sm:$0xf0]  ;;  %v16537_v4 = vld [vmem:[%s24953_s2 + $0xccc] sm:$0xf0] }
 0x44b   : > { %4611 = vmatpush.bf16.msra.mxu1 %v13070_v37  ;;  %v12786_v60 = vor.u32 %v16467_v38, %v12783_v48  ;;  %v16463_v38 = vld [vmem:[%s24953_s2 + $0xa84] sm:$0xf]  ;;  %v12767_v48 = vld [vmem:[%s24953_s2 + $0xa90] sm:$0xf0] }
 0x44c   : > { %4631 = vmatpush.bf16.msra.mxu2 %v12802_v55  ;;  %v20260_v22 = vadd.f32 %v3892_v23, %v19616_v47  ;;  %v16501_v55 = vld [vmem:[%s24953_s2 + $0xbac] sm:$0xf0]  ;;  %v13053_v47 = vld [vmem:[%s24953_s2 + $0xcc0] sm:$0xf]  ;;  %4575 = vmatpush.bf16.msrb.mxu3 %v12782_v20 }
 0x44d   : > { %v12910_v8 = vor.u32 %v16501_v55, %v12909_v36  ;;  %v13054_v37 = vor.u32 %v16537_v4, %v13053_v47  ;;  %v12893_v23 = vld [vmem:[%s24953_s2 + $0xb80] sm:$0xf]  ;;  %v12766_v55 = vor.u32 %v16465_v52, %v12765_v28  ;;  %v16497_v20 = vld [vmem:[%s24953_s2 + $0xb8c] sm:$0xf0] }
 0x44e   : > { %v12894_v4 = vor.u32 %v16497_v20, %v12893_v23  ;;  %v13037_v28 = vld [vmem:[%s24953_s2 + $0xca0] sm:$0xf]  ;;  %v16533_v52 = vld [vmem:[%s24953_s2 + $0xcac] sm:$0xf0]  ;;  %v13007_v23 = vld [vmem:[%s24953_s2 + $0xc70] sm:$0xf0] }
 0x44f   : > { %4594 = vmatpush.bf16.msra.mxu0 %v12910_v8  ;;  %4612 = vmatpush.bf16.msra.mxu1 %v13054_v37  ;;  %v12770_v37 = vor.u32 %v16463_v38, %v12767_v48  ;;  %v13038_v42 = vor.u32 %v16533_v52, %v13037_v28  ;;  %v13021_v48 = vld [vmem:[%s24953_s2 + $0xc80] sm:$0xf] }
 0x450   : > { %4632 = vmatpush.bf16.msra.mxu2 %v12786_v60  ;;  %v3948_v36 = vpop.f32.mrf.mxu3  ;;  %4576 = vmatpush.bf16.msrb.mxu3 %v12766_v55 }
 0x451   : > { %v3929_v5 = vpop.f32.mrf.mxu2  ;;  %v20295_v60 = vpop.f32.mrf.mxu0 }
 0x452   : > { %v3930_v8 = vadd.f32 %v3929_v5, %v3910_v43  ;;  %25031 = vst [vmem:[#allocation87_spill] sm:$0xff] %v20295_v60  ;;  %v20297_v47 = vpop.f32.mrf.mxu1  ;;  %v16523_v43 = vld [vmem:[%s24953_s2 + $0xc64] sm:$0xf]  ;;  %v13013_v5 = vld [vmem:[%s24953_s2 + $0xc68] sm:$0xf] }
 0x453   : > { %25032 = vst [vmem:[#allocation88_spill] sm:$0xff] %v20297_v47  ;;  %4595 = vmatpush.bf16.msra.mxu0 %v12894_v4  ;;  %4613 = vmatpush.bf16.msra.mxu1 %v13038_v42  ;;  %v13010_v20 = vor.u32 %v16523_v43, %v13007_v23  ;;  %v16519_v42 = vld [vmem:[%s24953_s2 + $0xc44] sm:$0xf]  ;;  %v16522_v43 = vld [vmem:[%s24953_s2 + $0xc54] sm:$0xf0] }
 0x454   : > { %v3949_v31 = vadd.f32 %v3948_v36, %v3930_v8  ;;  %4633 = vmatpush.bf16.msra.mxu2 %v12770_v37  ;;  %v16526_v36 = vld [vmem:[%s24953_s2 + $0xc74] sm:$0xf0]  ;;  %v16529_v8 = vld [vmem:[%s24953_s2 + $0xc8c] sm:$0xf0] }
 0x455   : > { %v13014_v38 = vor.u32 %v16526_v36, %v13013_v5  ;;  %4645 = vmatpush.bf16.msra.mxu3 %v13010_v20  ;;  %v13022_v4 = vor.u32 %v16529_v8, %v13021_v48  ;;  %v12885_v36 = vld [vmem:[%s24953_s2 + $0xb68] sm:$0xf] }
 0x456   : > { %v20318_v55 = vadd.f32 %v3949_v31, %v19625_v51  ;;  %v12991_v51 = vld [vmem:[%s24953_s2 + $0xc50] sm:$0xf0]  ;;  %v12997_v31 = vld [vmem:[%s24953_s2 + $0xc48] sm:$0xf] }
 0x457   : > { %4614 = vmatpush.bf16.msra.mxu1 %v13022_v4  ;;  %v12994_v52 = vor.u32 %v16519_v42, %v12991_v51  ;;  %v12998_v20 = vor.u32 %v16522_v43, %v12997_v31  ;;  %v16515_v4 = vld [vmem:[%s24953_s2 + $0xc24] sm:$0xf]  ;;  %v12975_v42 = vld [vmem:[%s24953_s2 + $0xc30] sm:$0xf0]  ;;  %v12981_v51 = vld [vmem:[%s24953_s2 + $0xc28] sm:$0xf] }
 0x458   : > { %4702 = vmatpush.bf16.msrb.mxu2 %v13014_v38  ;;  %v20337_v28 = vpop.f32.mrf.mxu3  ;;  %v16494_v38 = vld [vmem:[%s24953_s2 + $0xb74] sm:$0xf0] }
 0x459   : > { %v20335_v37 = vpop.f32.mrf.mxu2  ;;  %25034 = vst [vmem:[#allocation90_spill] sm:$0xff] %v20337_v28  ;;  %v3896_v23 = vpop.f32.mrf.mxu0  ;;  %4646 = vmatpush.bf16.msra.mxu3 %v12994_v52  ;;  %v12886_v8 = vor.u32 %v16494_v38, %v12885_v36  ;;  %v16518_v52 = vld [vmem:[%s24953_s2 + $0xc34] sm:$0xf0]  ;;  %v12959_v38 = vld [vmem:[%s24953_s2 + $0xc10] sm:$0xf0] }
 0x45a   : > { %25033 = vst [vmem:[#allocation89_spill] sm:$0xff] %v20335_v37  ;;  %v3915_v5 = vpop.f32.mrf.mxu1  ;;  %v3897_v48 = vadd.f32 %v3896_v23, %v20191_v40  ;;  %v12978_v40 = vor.u32 %v16515_v4, %v12975_v42  ;;  %v12982_v43 = vor.u32 %v16518_v52, %v12981_v51  ;;  %v12869_v23 = vld [vmem:[%s24953_s2 + $0xb48] sm:$0xf]  ;;  %v13087_v42 = vld [vmem:[%s24953_s2 + $0xd10] sm:$0xf0] }
 0x45b   : > { %4683 = vmatpush.bf16.msrb.mxu1 %v12886_v8  ;;  %v12965_v51 = vld [vmem:[%s24953_s2 + $0xc08] sm:$0xf] }
 0x45c   : > { %4703 = vmatpush.bf16.msrb.mxu2 %v12998_v20  ;;  %v20359_v31 = vadd.f32 %v3897_v48, %v19715_v11  ;;  %v16490_v20 = vld [vmem:[%s24953_s2 + $0xb54] sm:$0xf0]  ;;  %v16511_v11 = vld [vmem:[%s24953_s2 + $0xc04] sm:$0xf] }
 0x45d   : > { %4647 = vmatpush.bf16.msra.mxu3 %v12978_v40  ;;  %v12870_v36 = vor.u32 %v16490_v20, %v12869_v23  ;;  %v16543_v48 = vld [vmem:[%s24953_s2 + $0xd04] sm:$0xf]  ;;  %v12962_v4 = vor.u32 %v16511_v11, %v12959_v38  ;;  %v16514_v40 = vld [vmem:[%s24953_s2 + $0xc14] sm:$0xf0]  ;;  %v12853_v11 = vld [vmem:[%s24953_s2 + $0xb28] sm:$0xf] }
 0x45e   : > { %v13090_v20 = vor.u32 %v16543_v48, %v13087_v42  ;;  %v16486_v38 = vld [vmem:[%s24953_s2 + $0xb34] sm:$0xf0]  ;;  %v12943_v48 = vld [vmem:[%s24953_s2 + $0xbf0] sm:$0xf0] }
 0x45f   : > { %4684 = vmatpush.bf16.msrb.mxu1 %v12870_v36  ;;  %v12966_v36 = vor.u32 %v16514_v40, %v12965_v51  ;;  %v12854_v37 = vor.u32 %v16486_v38, %v12853_v11  ;;  %v16510_v51 = vld [vmem:[%s24953_s2 + $0xbf4] sm:$0xf0]  ;;  %v16503_v38 = vld [vmem:[%s24953_s2 + $0xbc4] sm:$0xf] }
 0x460   : > { %4704 = vmatpush.bf16.msrb.mxu2 %v12982_v43  ;;  %v3953_v28 = vpop.f32.mrf.mxu3  ;;  %4667 = vmatpush.bf16.msrb.mxu0 %v13090_v20 }
 0x461   : > { %v3934_v8 = vpop.f32.mrf.mxu2  ;;  %v20388_v43 = vpop.f32.mrf.mxu0  ;;  %4648 = vmatpush.bf16.msra.mxu3 %v12962_v4  ;;  %v12949_v4 = vld [vmem:[%s24953_s2 + $0xbe8] sm:$0xf] }
 0x462   : > { %v3935_v52 = vadd.f32 %v3934_v8, %v3915_v5  ;;  %25035 = vst [vmem:[#allocation91_spill] sm:$0xff] %v20388_v43  ;;  %v20390_v23 = vpop.f32.mrf.mxu1  ;;  %v16507_v5 = vld [vmem:[%s24953_s2 + $0xbe4] sm:$0xf]  ;;  %v12950_v20 = vor.u32 %v16510_v51, %v12949_v4 }
 0x463   : > { %25036 = vst [vmem:[#allocation92_spill] sm:$0xff] %v20390_v23  ;;  %v16539_v8 = vld [vmem:[%s24953_s2 + $0xce4] sm:$0xf]  ;;  %4685 = vmatpush.bf16.msrb.mxu1 %v12854_v37  ;;  %v12946_v42 = vor.u32 %v16507_v5, %v12943_v48  ;;  %v12837_v37 = vld [vmem:[%s24953_s2 + $0xb08] sm:$0xf] }
 0x464   : > { %v3954_v47 = vadd.f32 %v3953_v28, %v3935_v52  ;;  %4705 = vmatpush.bf16.msrb.mxu2 %v12966_v36  ;;  %v13071_v28 = vld [vmem:[%s24953_s2 + $0xcf0] sm:$0xf0]  ;;  %v16482_v36 = vld [vmem:[%s24953_s2 + $0xb14] sm:$0xf0] }
 0x465   : > { %v13074_v52 = vor.u32 %v16539_v8, %v13071_v28  ;;  %4649 = vmatpush.bf16.msra.mxu3 %v12946_v42  ;;  %v12838_v11 = vor.u32 %v16482_v36, %v12837_v37  ;;  %v13055_v8 = vld [vmem:[%s24953_s2 + $0xcd0] sm:$0xf0]  ;;  %v12933_v42 = vld [vmem:[%s24953_s2 + $0xbc8] sm:$0xf]  ;;  %v16506_v28 = vld [vmem:[%s24953_s2 + $0xbd4] sm:$0xf0] }
 0x466   : > { %v20417_v40 = vadd.f32 %v3954_v47, %v19718_v53  ;;  %v12927_v53 = vld [vmem:[%s24953_s2 + $0xbd0] sm:$0xf0]  ;;  %v16535_v47 = vld [vmem:[%s24953_s2 + $0xcc4] sm:$0xf]  ;;  %v12821_v37 = vld [vmem:[%s24953_s2 + $0xae8] sm:$0xf] }
 0x467   : > { %4668 = vmatpush.bf16.msrb.mxu0 %v13074_v52  ;;  %4686 = vmatpush.bf16.msrb.mxu1 %v12838_v11  ;;  %v12930_v48 = vor.u32 %v16503_v38, %v12927_v53  ;;  %v13058_v52 = vor.u32 %v16535_v47, %v13055_v8  ;;  %v16478_v36 = vld [vmem:[%s24953_s2 + $0xaf4] sm:$0xf0]  ;;  %v16499_v38 = vld [vmem:[%s24953_s2 + $0xba4] sm:$0xf]  ;;  %v12911_v53 = vld [vmem:[%s24953_s2 + $0xbb0] sm:$0xf0] }
 0x468   : > { %4706 = vmatpush.bf16.msrb.mxu2 %v12950_v20  ;;  %v12934_v20 = vor.u32 %v16506_v28, %v12933_v42  ;;  %v12822_v11 = vor.u32 %v16478_v36, %v12821_v37  ;;  %v16531_v47 = vld [vmem:[%s24953_s2 + $0xca4] sm:$0xf]  ;;  %v12914_v8 = vor.u32 %v16499_v38, %v12911_v53  ;;  %v12917_v42 = vld [vmem:[%s24953_s2 + $0xba8] sm:$0xf]  ;;  %v16502_v28 = vld [vmem:[%s24953_s2 + $0xbb4] sm:$0xf0] }
 0x469   : > { %v20434_v5 = vpop.f32.mrf.mxu2  ;;  %v4004_v4 = vpop.f32.mrf.mxu0  ;;  %4650 = vmatpush.bf16.msra.mxu3 %v12930_v48  ;;  %v13039_v48 = vld [vmem:[%s24953_s2 + $0xcb0] sm:$0xf0]  ;;  %v12805_v37 = vld [vmem:[%s24953_s2 + $0xac8] sm:$0xf]  ;;  %v16474_v36 = vld [vmem:[%s24953_s2 + $0xad4] sm:$0xf0] }
 0x46a   : > { %25037 = vst [vmem:[#allocation93_spill] sm:$0xff] %v20434_v5  ;;  %v4023_v51 = vpop.f32.mrf.mxu1  ;;  %v12806_v38 = vor.u32 %v16474_v36, %v12805_v37  ;;  %v12895_v53 = vld [vmem:[%s24953_s2 + $0xb90] sm:$0xf0]  ;;  %v16498_v37 = vld [vmem:[%s24953_s2 + $0xb94] sm:$0xf0] }
 0x46b   : > { %4669 = vmatpush.bf16.msrb.mxu0 %v13058_v52  ;;  %4687 = vmatpush.bf16.msrb.mxu1 %v12822_v11  ;;  %v13042_v52 = vor.u32 %v16531_v47, %v13039_v48  ;;  %v16495_v11 = vld [vmem:[%s24953_s2 + $0xb84] sm:$0xf]  ;;  %v13023_v48 = vld [vmem:[%s24953_s2 + $0xc90] sm:$0xf0]  ;;  %v12789_v36 = vld [vmem:[%s24953_s2 + $0xaa8] sm:$0xf] }
 0x46c   : > { %4707 = vmatpush.bf16.msrb.mxu2 %v12934_v20  ;;  %v12918_v20 = vor.u32 %v16502_v28, %v12917_v42  ;;  %v16527_v47 = vld [vmem:[%s24953_s2 + $0xc84] sm:$0xf]  ;;  %v12898_v42 = vor.u32 %v16495_v11, %v12895_v53  ;;  %v16492_v5 = vld [vmem:[%s24953_s2 + $0xb6c] sm:$0xf] }
 0x46d   : > { %4651 = vmatpush.bf16.msra.mxu3 %v12914_v8  ;;  %v13026_v28 = vor.u32 %v16527_v47, %v13023_v48  ;;  %v12901_v8 = vld [vmem:[%s24953_s2 + $0xb88] sm:$0xf] }
 0x46e   : > { %v12902_v60 = vor.u32 %v16498_v37, %v12901_v8 }
 0x46f   : > { %4670 = vmatpush.bf16.msrb.mxu0 %v13042_v52  ;;  %4688 = vmatpush.bf16.msrb.mxu1 %v12806_v38  ;;  %v16470_v52 = vld [vmem:[%s24953_s2 + $0xab4] sm:$0xf0]  ;;  %v12887_v38 = vld [vmem:[%s24953_s2 + $0xb78] sm:$0xf0] }
 0x470   : > { %4708 = vmatpush.bf16.msrb.mxu2 %v12918_v20  ;;  %v12790_v53 = vor.u32 %v16470_v52, %v12789_v36  ;;  %v12890_v8 = vor.u32 %v16492_v5, %v12887_v38  ;;  %v12871_v5 = vld [vmem:[%s24953_s2 + $0xb58] sm:$0xf0] }
 0x471   : > { %v4042_v43 = vpop.f32.mrf.mxu2  ;;  %v4006_v20 = vpop.f32.mrf.mxu0  ;;  %4652 = vmatpush.bf16.msra.mxu3 %v12898_v42 }
 0x472   : > { %v4025_v11 = vpop.f32.mrf.mxu1  ;;  %v20499_v47 = vpack.c.bf16 %v4006_v20, %v4004_v4  ;;  %v16466_v4 = vld [vmem:[%s24953_s2 + $0xa94] sm:$0xf0] }
 0x473   : > { %v20501_v48 = vpack.c.bf16 %v4025_v11, %v4023_v51  ;;  %4671 = vmatpush.bf16.msrb.mxu0 %v13026_v28  ;;  %4689 = vmatpush.bf16.msrb.mxu1 %v12790_v53  ;;  %v16488_v51 = vld [vmem:[%s24953_s2 + $0xb4c] sm:$0xf]  ;;  %v13015_v53 = vld [vmem:[%s24953_s2 + $0xc78] sm:$0xf0] }
 0x474   : > { %4709 = vmatpush.bf16.msrb.mxu2 %v12902_v60  ;;  %4577 = vmatmul.bf16.vlgmr.msrb.gmra.mxu3 %v20499_v47  ;;  %v12773_v60 = vld [vmem:[%s24953_s2 + $0xa88] sm:$0xf]  ;;  %v12874_v28 = vor.u32 %v16488_v51, %v12871_v5  ;;  %v16524_v11 = vld [vmem:[%s24953_s2 + $0xc6c] sm:$0xf]  ;;  %v12999_v51 = vld [vmem:[%s24953_s2 + $0xc58] sm:$0xf0] }
 0x475   : > { %4596 = vmatmul.bf16.vlgmr.msra.gmra.mxu0 %v20501_v48  ;;  %4634 = vmatmul.bf16.vlgmr.msra.gmra.mxu2 %v20499_v47  ;;  %v12774_v42 = vor.u32 %v16466_v4, %v12773_v60  ;;  %v13018_v38 = vor.u32 %v16524_v11, %v13015_v53  ;;  %v16520_v60 = vld [vmem:[%s24953_s2 + $0xc4c] sm:$0xf]  ;;  %v16546_v5 = vld [vmem:[%s24953_s2 + $0xd14] sm:$0xf0]  ;;  %v12839_v53 = vld [vmem:[%s24953_s2 + $0xb18] sm:$0xf0] }
 0x476   : > { %v16480_v11 = vld [vmem:[%s24953_s2 + $0xb0c] sm:$0xf] }
 0x477   : > { %4740 = vmatpush.bf16.msra.mxu0 %v12890_v8  ;;  %4690 = vmatpush.bf16.msrb.mxu1 %v12774_v42  ;;  %v12855_v8 = vld [vmem:[%s24953_s2 + $0xb38] sm:$0xf0]  ;;  %v13093_v42 = vld [vmem:[%s24953_s2 + $0xd08] sm:$0xf] }
 0x479   : > { %v4044_v37 = vpop.f32.mrf.mxu2  ;;  %v4009_v52 = vpop.f32.mrf.mxu0 }
 0x47a   : > { %v20524_v36 = vpack.c.bf16 %v4044_v37, %v4042_v43  ;;  %v4028_v20 = vpop.f32.mrf.mxu1  ;;  %v16484_v43 = vld [vmem:[%s24953_s2 + $0xb2c] sm:$0xf]  ;;  %v13094_v37 = vor.u32 %v16546_v5, %v13093_v42 }
 0x47b   : > { %4741 = vmatpush.bf16.msra.mxu0 %v12874_v28  ;;  %v12858_v4 = vor.u32 %v16484_v43, %v12855_v8  ;;  %v13002_v28 = vor.u32 %v16520_v60, %v12999_v51  ;;  %v12842_v43 = vor.u32 %v16480_v11, %v12839_v53  ;;  %v13095_v8 = vld [vmem:[%s24953_s2 + $0xd18] sm:$0xf0]  ;;  %v16516_v60 = vld [vmem:[%s24953_s2 + $0xc2c] sm:$0xf] }
 0x47c   : > { %13099 = vmatmul.msk.bf16.vlgmr.msra.gmra.mxu1 %vm1197_vm2, %v20524_v36  ;;  %v12983_v51 = vld [vmem:[%s24953_s2 + $0xc38] sm:$0xf0]  ;;  %4724 = vmatpush.bf16.msrb.mxu3 %v13094_v37  ;;  %v16542_v37 = vld [vmem:[%s24953_s2 + $0xcf4] sm:$0xf0] }
 0x47d   : > { %4759 = vmatpush.bf16.msra.mxu1 %v13018_v38  ;;  %v16544_v38 = vld [vmem:[%s24953_s2 + $0xd0c] sm:$0xf] }
 0x47e   : > { %v13098_v42 = vor.u32 %v16544_v38, %v13095_v8  ;;  %v12967_v8 = vld [vmem:[%s24953_s2 + $0xc18] sm:$0xf0] }
 0x47f   : > { %4742 = vmatpush.bf16.msra.mxu0 %v12858_v4  ;;  %v12986_v4 = vor.u32 %v16516_v60, %v12983_v51  ;;  %v13061_v60 = vld [vmem:[%s24953_s2 + $0xcc8] sm:$0xf] }
 0x480   : > { %4781 = vmatpush.bf16.msra.mxu2 %v13098_v42  ;;  %v16538_v42 = vld [vmem:[%s24953_s2 + $0xcd4] sm:$0xf0] }
 0x481   : > { %v4047_v5 = vpop.f32.mrf.mxu2  ;;  %4760 = vmatpush.bf16.msra.mxu1 %v13002_v28  ;;  %v4011_v23 = vpop.f32.mrf.mxu0  ;;  %v16476_v28 = vld [vmem:[%s24953_s2 + $0xaec] sm:$0xf] }
 0x482   : > { %v4030_v59 = vpop.f32.mrf.mxu1  ;;  %v20570_v11 = vpack.c.bf16 %v4011_v23, %v4009_v52  ;;  %v13078_v23 = vor.u32 %v16542_v37, %v13077_v44  ;;  %v16540_v52 = vld [vmem:[%s24953_s2 + $0xcec] sm:$0xf]  ;;  %v12807_v37 = vld [vmem:[%s24953_s2 + $0xad8] sm:$0xf0] }
 0x483   : > { %v20572_v53 = vpack.c.bf16 %v4030_v59, %v4028_v20  ;;  %4743 = vmatpush.bf16.msra.mxu0 %v12842_v43  ;;  %v12823_v59 = vld [vmem:[%s24953_s2 + $0xaf8] sm:$0xf0]  ;;  %v16512_v44 = vld [vmem:[%s24953_s2 + $0xc0c] sm:$0xf] }
 0x484   : > { %4582 = vmatmul.bf16.gmra.mxu3 %v20570_v11  ;;  %v13079_v20 = vld [vmem:[%s24953_s2 + $0xcf8] sm:$0xf0]  ;;  %v12826_v38 = vor.u32 %v16476_v28, %v12823_v59  ;;  %v12970_v51 = vor.u32 %v16512_v44, %v12967_v8  ;;  %v13062_v28 = vor.u32 %v16538_v42, %v13061_v60  ;;  %v16468_v42 = vld [vmem:[%s24953_s2 + $0xaac] sm:$0xf] }
 0x485   : > { %4601 = vmatmul.bf16.gmra.mxu0 %v20572_v53  ;;  %4639 = vmatmul.bf16.gmra.mxu2 %v20570_v11  ;;  %v13082_v43 = vor.u32 %v16540_v52, %v13079_v20  ;;  %v13063_v52 = vld [vmem:[%s24953_s2 + $0xcd8] sm:$0xf0] }
 0x486   : > { %4761 = vmatpush.bf16.msra.mxu1 %v12986_v4  ;;  %4725 = vmatpush.bf16.msrb.mxu3 %v13078_v23  ;;  %v16472_v4 = vld [vmem:[%s24953_s2 + $0xacc] sm:$0xf] }
 0x487   : > { %4744 = vmatpush.bf16.msra.mxu0 %v12826_v38  ;;  %4782 = vmatpush.bf16.msra.mxu2 %v13082_v43  ;;  %v12810_v59 = vor.u32 %v16472_v4, %v12807_v37  ;;  %v16536_v23 = vld [vmem:[%s24953_s2 + $0xccc] sm:$0xf]  ;;  %v12951_v43 = vld [vmem:[%s24953_s2 + $0xbf8] sm:$0xf0] }
 0x488   : > { %v13066_v44 = vor.u32 %v16536_v23, %v13063_v52  ;;  %v16508_v38 = vld [vmem:[%s24953_s2 + $0xbec] sm:$0xf]  ;;  %v12791_v37 = vld [vmem:[%s24953_s2 + $0xab8] sm:$0xf0] }
 0x489   : > { %v4049_v20 = vpop.f32.mrf.mxu2  ;;  %v12954_v60 = vor.u32 %v16508_v38, %v12951_v43  ;;  %v12794_v23 = vor.u32 %v16468_v42, %v12791_v37  ;;  %v13029_v38 = vld [vmem:[%s24953_s2 + $0xc88] sm:$0xf] }
 0x48a   : > { %v20619_v8 = vpack.c.bf16 %v4049_v20, %v4047_v5  ;;  %4762 = vmatpush.bf16.msra.mxu1 %v12970_v51  ;;  %4726 = vmatpush.bf16.msrb.mxu3 %v13062_v28  ;;  %v13045_v5 = vld [vmem:[%s24953_s2 + $0xca8] sm:$0xf]  ;;  %v16534_v51 = vld [vmem:[%s24953_s2 + $0xcb4] sm:$0xf0]  ;;  %v16532_v28 = vld [vmem:[%s24953_s2 + $0xcac] sm:$0xf] }
 0x48b   : > { %4745 = vmatpush.bf16.msra.mxu0 %v12810_v59  ;;  %4783 = vmatpush.bf16.msra.mxu2 %v13066_v44  ;;  %v13046_v4 = vor.u32 %v16534_v51, %v13045_v5  ;;  %v13047_v59 = vld [vmem:[%s24953_s2 + $0xcb8] sm:$0xf0]  ;;  %v16504_v20 = vld [vmem:[%s24953_s2 + $0xbcc] sm:$0xf] }
 0x48c   : > { %13100 = vmatmul.msk.bf16.gmra.mxu1 %vm1197_vm2, %v20619_v8  ;;  %v13050_v52 = vor.u32 %v16532_v28, %v13047_v59  ;;  %v12935_v44 = vld [vmem:[%s24953_s2 + $0xbd8] sm:$0xf0]  ;;  %v16464_v5 = vld [vmem:[%s24953_s2 + $0xa8c] sm:$0xf] }
 0x48d   : > { %v12938_v43 = vor.u32 %v16504_v20, %v12935_v44  ;;  %v12775_v51 = vld [vmem:[%s24953_s2 + $0xa98] sm:$0xf0]  ;;  %v16500_v59 = vld [vmem:[%s24953_s2 + $0xbac] sm:$0xf] }
 0x48e   : > { %4763 = vmatpush.bf16.msra.mxu1 %v12954_v60  ;;  %4727 = vmatpush.bf16.msrb.mxu3 %v13046_v4  ;;  %v16530_v60 = vld [vmem:[%s24953_s2 + $0xc94] sm:$0xf0]  ;;  %v12778_v37 = vor.u32 %v16464_v5, %v12775_v51  ;;  %v16528_v4 = vld [vmem:[%s24953_s2 + $0xc8c] sm:$0xf]  ;;  %v13031_v28 = vld [vmem:[%s24953_s2 + $0xc98] sm:$0xf0] }
 0x48f   : > { %4746 = vmatpush.bf16.msra.mxu0 %v12794_v23  ;;  %v13030_v42 = vor.u32 %v16530_v60, %v13029_v38  ;;  %4784 = vmatpush.bf16.msra.mxu2 %v13050_v52  ;;  %v12919_v20 = vld [vmem:[%s24953_s2 + $0xbb8] sm:$0xf0]  ;;  %v13034_v44 = vor.u32 %v16528_v4, %v13031_v28  ;;  %v16496_v52 = vld [vmem:[%s24953_s2 + $0xb8c] sm:$0xf]  ;;  %v16547_v60 = vld [vmem:[%s24954_s21 + $0x50] sm:$0xff] }
 0x490   : > { %v12922_v23 = vor.u32 %v16500_v59, %v12919_v20  ;;  %v12903_v38 = vld [vmem:[%s24953_s2 + $0xb98] sm:$0xf0] }
 0x492   : > { %4764 = vmatpush.bf16.msra.mxu1 %v12938_v43  ;;  %4728 = vmatpush.bf16.msrb.mxu3 %v13030_v42  ;;  %v12906_v43 = vor.u32 %v16496_v52, %v12903_v38 }
 0x493   : > { %4747 = vmatpush.bf16.msra.mxu0 %v12778_v37  ;;  %4785 = vmatpush.bf16.msra.mxu2 %v13034_v44 }
 0x494   : > { %4653 = vmatmul.bf16.vlgmr.msra.gmra.mxu3 %v20501_v48 }
 0x495   : > { %13101 = vmatmul.msk.bf16.vlgmr.msrb.gmra.mxu0 %vm1197_vm2, %v20524_v36  ;;  %4710 = vmatmul.bf16.vlgmr.msrb.gmra.mxu2 %v20501_v48 }
 0x496   : > { %4765 = vmatpush.bf16.msra.mxu1 %v12922_v23  ;;  %4836 = vmatpush.bf16.msra.mxu3 %v17413_v12 }
 0x497   : > { %4855 = vmatpush.bf16.msrb.mxu0 %v17415_v13 }
 0x49a   : > { %4766 = vmatpush.bf16.msra.mxu1 %v12906_v43  ;;  %4837 = vmatpush.bf16.msra.mxu3 %v17421_v15 }
 0x49b   : > { %4856 = vmatpush.bf16.msrb.mxu0 %v17423_v16 }
 0x49c   : > { %4691 = vmatmul.bf16.vlgmr.msrb.gmra.mxu1 %v20499_v47 }
 0x49e   : > { %4874 = vmatpush.bf16.msrb.mxu1 %v17417_v14  ;;  %4838 = vmatpush.bf16.msra.mxu3 %v17436_v24 }
 0x49f   : > { %4857 = vmatpush.bf16.msrb.mxu0 %v17438_v25 }
 0x4a2   : > { %4875 = vmatpush.bf16.msrb.mxu1 %v17427_v18  ;;  %4839 = vmatpush.bf16.msra.mxu3 %v17452_v34 }
 0x4a3   : > { %4858 = vmatpush.bf16.msrb.mxu0 %v17454_v35 }
 0x4a4   : > { %4658 = vmatmul.bf16.gmra.mxu3 %v20572_v53 }
 0x4a5   : > { %13102 = vmatmul.msk.bf16.gmra.mxu0 %vm1197_vm2, %v20619_v8  ;;  %4715 = vmatmul.bf16.gmra.mxu2 %v20572_v53 }
 0x4a6   : > { %4876 = vmatpush.bf16.msrb.mxu1 %v17442_v27  ;;  %4840 = vmatpush.bf16.msra.mxu3 %v17479_v49 }
 0x4a7   : > { %4859 = vmatpush.bf16.msrb.mxu0 %v17481_v50 }
 0x4aa   : > { %4877 = vmatpush.bf16.msrb.mxu1 %v17464_v39  ;;  %4841 = vmatpush.bf16.msra.mxu3 %v17511_v0 }
 0x4ab   : > { %4860 = vmatpush.bf16.msrb.mxu0 %v17513_v1 }
 0x4ac   : > { %4696 = vmatmul.bf16.gmra.mxu1 %v20570_v11 }
 0x4ae   : > { %4878 = vmatpush.bf16.msrb.mxu1 %v17491_v54 }
 0x4b2   : > { %4879 = vmatpush.bf16.msrb.mxu1 %v17516_v2 }
 0x4b4   : > { %13103 = vmatmul.msk.bf16.vlgmr.msrb.gmra.mxu3 %vm1197_vm2, %v20524_v36 }
 0x4b5   : > { %4748 = vmatmul.bf16.vlgmr.msra.gmra.mxu0 %v20499_v47  ;;  %13105 = vmatmul.msk.bf16.vlgmr.msra.gmra.mxu2 %vm1197_vm2, %v20524_v36  ;;  %v13117_v47 = vld [vmem:[%s24954_s21 + $0x58] sm:$0xf] }
 0x4bc   : > { %4767 = vmatmul.bf16.vlgmr.msra.gmra.mxu1 %v20501_v48  ;;  %v16548_v48 = vld [vmem:[%s24954_s21 + $0x58] sm:$0x10] }
 0x4bd   : > { %v13118_v36 = vor.u32 %v16548_v48, %v13117_v47 }
 0x4c4   : > { %13104 = vmatmul.msk.bf16.gmra.mxu3 %vm1197_vm2, %v20619_v8 }
 0x4c5   : > { %4753 = vmatmul.bf16.gmra.mxu0 %v20570_v11  ;;  %13106 = vmatmul.msk.bf16.gmra.mxu2 %vm1197_vm2, %v20619_v8  ;;  %v20738_v11 = vpop.f32.mrf.mxu3 }
 0x4c6   : > { %25038 = vst [vmem:[#allocation94_spill] sm:$0xff] %v20738_v11 }
 0x4cc   : > { %4772 = vmatmul.bf16.gmra.mxu1 %v20572_v53 }
 0x4d4   : > { %13119 = vmatmul.msk.bf16.vlgmr.msra.gmra.mxu3 %vm613_vm1, %v16547_v60 }
 0x4d5   : > { %13121 = vmatmul.msk.bf16.vlgmr.msrb.gmra.mxu0 %vm613_vm1, %v16547_v60 }
 0x4dc   : > { %13123 = vmatmul.msk.bf16.vlgmr.msrb.gmra.mxu1 %vm613_vm1, %v16547_v60 }
 0x4e4   : > { %13120 = vmatmul.msk.bf16.gmra.mxu3 %vm613_vm1, %v13118_v36 }
 0x4e5   : > { %13122 = vmatmul.msk.bf16.gmra.mxu0 %vm613_vm1, %v13118_v36 }
 0x4ec   : > { %13124 = vmatmul.msk.bf16.gmra.mxu1 %vm613_vm1, %v13118_v36 }
 0x4f2   : > { %v4597_v53 = vpop.f32.mrf.mxu0 }
 0x4f7   : > { %v4578_v8 = vpop.f32.mrf.mxu3 }
 0x4f8   : > { %v4598_v5 = vadd.f32 %v4597_v53, %v4578_v8  ;;  %v4635_v42 = vpop.f32.mrf.mxu2 }
 0x4f9   : > { %v4616_v51 = vpop.f32.mrf.mxu1 }
 0x4fa   : > { %v20740_v37 = vpop.f32.mrf.mxu0  ;;  %v4617_v4 = vadd.f32 %v4616_v51, %v4598_v5 }
 0x4fb   : > { %25039 = vst [vmem:[#allocation95_spill] sm:$0xff] %v20740_v37 }
 0x4fc   : > { %v20743_v28 = vadd.f32 %v4617_v4, %v20086_v62 }
 0x4ff   : > { %v20745_v59 = vpop.f32.mrf.mxu3 }
 0x500   : > { %25040 = vst [vmem:[#allocation96_spill] sm:$0xff] %v20745_v59  ;;  %v20749_v23 = vpop.f32.mrf.mxu2 }
 0x501   : > { %v20747_v20 = vpop.f32.mrf.mxu1  ;;  %25042 = vst [vmem:[#allocation98_spill] sm:$0xff] %v20749_v23 }
 0x502   : > { %25041 = vst [vmem:[#allocation97_spill] sm:$0xff] %v20747_v20  ;;  %v4602_v44 = vpop.f32.mrf.mxu0 }
 0x507   : > { %v4583_v52 = vpop.f32.mrf.mxu3 }
 0x508   : > { %v4603_v38 = vadd.f32 %v4602_v44, %v4583_v52  ;;  %v4640_v60 = vpop.f32.mrf.mxu2 }
 0x509   : > { %v4621_v43 = vpop.f32.mrf.mxu1 }
 0x50a   : > { %v20751_v47 = vpop.f32.mrf.mxu0  ;;  %v4622_v48 = vadd.f32 %v4621_v43, %v4603_v38  ;;  %v16611_v38 = vld [vmem:[%s24953_s2 + $0xf0c] sm:$0xf0] }
 0x50b   : > { %25043 = vst [vmem:[#allocation99_spill] sm:$0xff] %v20751_v47 }
 0x50c   : > { %v20754_v36 = vadd.f32 %v4622_v48, %v20097_v33  ;;  %v13451_v33 = vld [vmem:[%s24953_s2 + $0xf00] sm:$0xf] }
 0x50d   : > { %v13452_v48 = vor.u32 %v16611_v38, %v13451_v33  ;;  %v16577_v33 = vld [vmem:[%s24953_s2 + $0xe04] sm:$0xf] }
 0x50f   : > { %v20756_v53 = vpop.f32.mrf.mxu3  ;;  %5427 = vmatpush.bf16.msrb.mxu3 %v13452_v48  ;;  %v13325_v48 = vld [vmem:[%s24953_s2 + $0xe10] sm:$0xf0] }
 0x510   : > { %25044 = vst [vmem:[#allocation100_spill] sm:$0xff] %v20756_v53  ;;  %v20760_v8 = vpop.f32.mrf.mxu2 }
 0x511   : > { %v20758_v62 = vpop.f32.mrf.mxu1  ;;  %25046 = vst [vmem:[#allocation102_spill] sm:$0xff] %v20760_v8 }
 0x512   : > { %25045 = vst [vmem:[#allocation101_spill] sm:$0xff] %v20758_v62  ;;  %v4673_v5 = vpop.f32.mrf.mxu0 }
 0x517   : > { %v4654_v51 = vpop.f32.mrf.mxu3 }
 0x518   : > { %v4655_v4 = vadd.f32 %v4654_v51, %v4635_v42  ;;  %v4711_v23 = vpop.f32.mrf.mxu2 }
 0x519   : > { %v4692_v11 = vpop.f32.mrf.mxu1 }
 0x51a   : > { %v20762_v44 = vadd.f32 %v4711_v23, %v4692_v11  ;;  %v20764_v52 = vpop.f32.mrf.mxu0  ;;  %v4674_v20 = vadd.f32 %v4673_v5, %v4655_v4  ;;  %v13435_v11 = vld [vmem:[%s24953_s2 + $0xee0] sm:$0xf]  ;;  %v16607_v23 = vld [vmem:[%s24953_s2 + $0xeec] sm:$0xf0] }
 0x51b   : > { %25047 = vst [vmem:[#allocation103_spill] sm:$0xff] %v20764_v52  ;;  %v13436_v4 = vor.u32 %v16607_v23, %v13435_v11  ;;  %v13328_v11 = vor.u32 %v16577_v33, %v13325_v48  ;;  %v13419_v23 = vld [vmem:[%s24953_s2 + $0xec0] sm:$0xf] }
 0x51c   : > { %v20773_v43 = vadd.f32 %v4674_v20, %v20104_v58  ;;  %v13323_v58 = vld [vmem:[%s24953_s2 + $0xe00] sm:$0xf]  ;;  %v16579_v20 = vld [vmem:[%s24953_s2 + $0xe0c] sm:$0xf0] }
 0x51d   : > { %5428 = vmatpush.bf16.msrb.mxu3 %v13436_v4  ;;  %v13324_v38 = vor.u32 %v16579_v20, %v13323_v58  ;;  %5465 = vmatpush.bf16.msra.mxu1 %v13328_v11  ;;  %v13307_v4 = vld [vmem:[%s24953_s2 + $0xde0] sm:$0xf]  ;;  %v16575_v58 = vld [vmem:[%s24953_s2 + $0xdec] sm:$0xf0]  ;;  %v16573_v20 = vld [vmem:[%s24953_s2 + $0xde4] sm:$0xf] }
 0x51e   : > { %v13308_v33 = vor.u32 %v16575_v58, %v13307_v4  ;;  %v13403_v11 = vld [vmem:[%s24953_s2 + $0xea0] sm:$0xf] }
 0x51f   : > { %v20775_v42 = vpop.f32.mrf.mxu3  ;;  %5408 = vmatpush.bf16.msrb.mxu2 %v13324_v38  ;;  %v13309_v38 = vld [vmem:[%s24953_s2 + $0xdf0] sm:$0xf0] }
 0x520   : > { %25048 = vst [vmem:[#allocation104_spill] sm:$0xff] %v20775_v42  ;;  %v20785_v51 = vpop.f32.mrf.mxu2  ;;  %v13312_v48 = vor.u32 %v16573_v20, %v13309_v38  ;;  %v13291_v20 = vld [vmem:[%s24953_s2 + $0xdc0] sm:$0xf]  ;;  %v16571_v38 = vld [vmem:[%s24953_s2 + $0xdcc] sm:$0xf0] }
 0x521   : > { %v20783_v5 = vpop.f32.mrf.mxu1  ;;  %25050 = vst [vmem:[#allocation106_spill] sm:$0xff] %v20785_v51  ;;  %v16603_v51 = vld [vmem:[%s24953_s2 + $0xecc] sm:$0xf0] }
 0x522   : > { %25049 = vst [vmem:[#allocation105_spill] sm:$0xff] %v20783_v5  ;;  %v4678_v52 = vpop.f32.mrf.mxu0  ;;  %v13420_v5 = vor.u32 %v16603_v51, %v13419_v23  ;;  %v16599_v23 = vld [vmem:[%s24953_s2 + $0xeac] sm:$0xf0]  ;;  %5466 = vmatpush.bf16.msra.mxu1 %v13312_v48  ;;  %v13387_v48 = vld [vmem:[%s24953_s2 + $0xe80] sm:$0xf] }
 0x523   : > { %5409 = vmatpush.bf16.msrb.mxu2 %v13308_v33  ;;  %v13292_v33 = vor.u32 %v16571_v38, %v13291_v20  ;;  %v13531_v20 = vld [vmem:[%s24953_s2 + $0xfa0] sm:$0xf] }
 0x524   : > { %5429 = vmatpush.bf16.msrb.mxu3 %v13420_v5  ;;  %v13404_v5 = vor.u32 %v16599_v23, %v13403_v11  ;;  %v16595_v11 = vld [vmem:[%s24953_s2 + $0xe8c] sm:$0xf0] }
 0x527   : > { %v4659_v51 = vpop.f32.mrf.mxu3  ;;  %5410 = vmatpush.bf16.msrb.mxu2 %v13292_v33 }
 0x528   : > { %v4660_v8 = vadd.f32 %v4659_v51, %v4640_v60  ;;  %v4716_v62 = vpop.f32.mrf.mxu2  ;;  %v16569_v60 = vld [vmem:[%s24953_s2 + $0xdc4] sm:$0xf]  ;;  %5430 = vmatpush.bf16.msrb.mxu3 %v13404_v5  ;;  %v16567_v5 = vld [vmem:[%s24953_s2 + $0xdac] sm:$0xf0] }
 0x529   : > { %v4697_v42 = vpop.f32.mrf.mxu1 }
 0x52a   : > { %v20823_v4 = vadd.f32 %v4716_v62, %v4697_v42  ;;  %v20825_v58 = vpop.f32.mrf.mxu0  ;;  %v4679_v51 = vadd.f32 %v4678_v52, %v4660_v8  ;;  %v13293_v62 = vld [vmem:[%s24953_s2 + $0xdd0] sm:$0xf0]  ;;  %v13388_v8 = vor.u32 %v16595_v11, %v13387_v48  ;;  %v13275_v52 = vld [vmem:[%s24953_s2 + $0xda0] sm:$0xf]  ;;  %v16591_v11 = vld [vmem:[%s24953_s2 + $0xe6c] sm:$0xf0] }
 0x52b   : > { %25051 = vst [vmem:[#allocation107_spill] sm:$0xff] %v20825_v58  ;;  %v13296_v42 = vor.u32 %v16569_v60, %v13293_v62  ;;  %v13276_v38 = vor.u32 %v16567_v5, %v13275_v52  ;;  %v16565_v60 = vld [vmem:[%s24953_s2 + $0xda4] sm:$0xf]  ;;  %v13371_v48 = vld [vmem:[%s24953_s2 + $0xe60] sm:$0xf] }
 0x52c   : > { %v20846_v23 = vadd.f32 %v4679_v51, %v20171_v30  ;;  %5431 = vmatpush.bf16.msrb.mxu3 %v13388_v8  ;;  %v16631_v30 = vld [vmem:[%s24953_s2 + $0xfac] sm:$0xf0]  ;;  %v13277_v51 = vld [vmem:[%s24953_s2 + $0xdb0] sm:$0xf0]  ;;  %v13372_v5 = vor.u32 %v16591_v11, %v13371_v48 }
 0x52d   : > { %5467 = vmatpush.bf16.msra.mxu1 %v13296_v42  ;;  %v13532_v62 = vor.u32 %v16631_v30, %v13531_v20  ;;  %v13280_v42 = vor.u32 %v16565_v60, %v13277_v51  ;;  %5411 = vmatpush.bf16.msrb.mxu2 %v13276_v38  ;;  %v13259_v20 = vld [vmem:[%s24953_s2 + $0xd80] sm:$0xf]  ;;  %v16563_v30 = vld [vmem:[%s24953_s2 + $0xd8c] sm:$0xf0] }
 0x52e   : > { %v13515_v60 = vld [vmem:[%s24953_s2 + $0xf80] sm:$0xf]  ;;  %v13260_v51 = vor.u32 %v16563_v30, %v13259_v20  ;;  %v16627_v38 = vld [vmem:[%s24953_s2 + $0xf8c] sm:$0xf0] }
 0x52f   : > { %v20866_v33 = vpop.f32.mrf.mxu3  ;;  %5449 = vmatpush.bf16.msra.mxu0 %v13532_v62  ;;  %v16561_v62 = vld [vmem:[%s24953_s2 + $0xd84] sm:$0xf]  ;;  %v13516_v48 = vor.u32 %v16627_v38, %v13515_v60  ;;  %v13243_v30 = vld [vmem:[%s24953_s2 + $0xd60] sm:$0xf]  ;;  %v16559_v60 = vld [vmem:[%s24953_s2 + $0xd6c] sm:$0xf0] }
 0x530   : > { %25052 = vst [vmem:[#allocation108_spill] sm:$0xff] %v20866_v33  ;;  %v20876_v52 = vpop.f32.mrf.mxu2  ;;  %5432 = vmatpush.bf16.msrb.mxu3 %v13372_v5  ;;  %v16587_v5 = vld [vmem:[%s24953_s2 + $0xe4c] sm:$0xf0]  ;;  %v13499_v38 = vld [vmem:[%s24953_s2 + $0xf60] sm:$0xf] }
 0x531   : > { %v20874_v8 = vpop.f32.mrf.mxu1  ;;  %25054 = vst [vmem:[#allocation110_spill] sm:$0xff] %v20876_v52  ;;  %5468 = vmatpush.bf16.msra.mxu1 %v13280_v42  ;;  %v13261_v42 = vld [vmem:[%s24953_s2 + $0xd90] sm:$0xf0]  ;;  %v13355_v52 = vld [vmem:[%s24953_s2 + $0xe40] sm:$0xf]  ;;  %5412 = vmatpush.bf16.msrb.mxu2 %v13260_v51 }
 0x532   : > { %25053 = vst [vmem:[#allocation109_spill] sm:$0xff] %v20874_v8  ;;  %v4749_v58 = vpop.f32.mrf.mxu0  ;;  %v13264_v11 = vor.u32 %v16561_v62, %v13261_v42  ;;  %v13356_v20 = vor.u32 %v16587_v5, %v13355_v52  ;;  %v13244_v62 = vor.u32 %v16559_v60, %v13243_v30  ;;  %v16623_v52 = vld [vmem:[%s24953_s2 + $0xf6c] sm:$0xf0]  ;;  %v16557_v51 = vld [vmem:[%s24953_s2 + $0xd64] sm:$0xf] }
 0x533   : > { %5450 = vmatpush.bf16.msra.mxu0 %v13516_v48  ;;  %v13245_v42 = vld [vmem:[%s24953_s2 + $0xd70] sm:$0xf0]  ;;  %v16583_v30 = vld [vmem:[%s24953_s2 + $0xe2c] sm:$0xf0] }
 0x534   : > { %5433 = vmatpush.bf16.msrb.mxu3 %v13356_v20  ;;  %v13248_v5 = vor.u32 %v16557_v51, %v13245_v42  ;;  %v13339_v20 = vld [vmem:[%s24953_s2 + $0xe20] sm:$0xf]  ;;  %v16553_v51 = vld [vmem:[%s24953_s2 + $0xd44] sm:$0xf]  ;;  %v13229_v42 = vld [vmem:[%s24953_s2 + $0xd50] sm:$0xf0] }
 0x535   : > { %5469 = vmatpush.bf16.msra.mxu1 %v13264_v11  ;;  %v13500_v11 = vor.u32 %v16623_v52, %v13499_v38  ;;  %5413 = vmatpush.bf16.msrb.mxu2 %v13244_v62  ;;  %v13340_v47 = vor.u32 %v16583_v30, %v13339_v20  ;;  %v13227_v38 = vld [vmem:[%s24953_s2 + $0xd40] sm:$0xf]  ;;  %v16555_v52 = vld [vmem:[%s24953_s2 + $0xd4c] sm:$0xf0]  ;;  %v16549_v30 = vld [vmem:[%s24953_s2 + $0xd24] sm:$0xf] }
 0x536   : > { %v16551_v20 = vld [vmem:[%s24953_s2 + $0xd2c] sm:$0xf0] }
 0x537   : > { %v4730_v48 = vpop.f32.mrf.mxu3  ;;  %5451 = vmatpush.bf16.msra.mxu0 %v13500_v11 }
 0x538   : > { %v4731_v60 = vadd.f32 %v4730_v48, %v20762_v44  ;;  %v4787_v33 = vpop.f32.mrf.mxu2  ;;  %v13483_v44 = vld [vmem:[%s24953_s2 + $0xf40] sm:$0xf]  ;;  %5434 = vmatpush.bf16.msrb.mxu3 %v13340_v47 }
 0x539   : > { %v4768_v8 = vpop.f32.mrf.mxu1  ;;  %5470 = vmatpush.bf16.msra.mxu1 %v13248_v5  ;;  %v13232_v5 = vor.u32 %v16553_v51, %v13229_v42  ;;  %v13211_v47 = vld [vmem:[%s24953_s2 + $0xd20] sm:$0xf]  ;;  %v16609_v42 = vld [vmem:[%s24953_s2 + $0xf04] sm:$0xf] }
 0x53a   : > { %v4769_v53 = vadd.f32 %v4768_v8, %v4749_v58  ;;  %v20927_v37 = vpop.f32.mrf.mxu0  ;;  %v20939_v62 = vadd.f32 %v4731_v60, %v20260_v22  ;;  %v13228_v58 = vor.u32 %v16555_v52, %v13227_v38  ;;  %v16619_v8 = vld [vmem:[%s24953_s2 + $0xf4c] sm:$0xf0]  ;;  %v13213_v60 = vld [vmem:[%s24953_s2 + $0xd30] sm:$0xf0] }
 0x53b   : > { %25055 = vst [vmem:[#allocation111_spill] sm:$0xff] %v20927_v37  ;;  %v13484_v11 = vor.u32 %v16619_v8, %v13483_v44  ;;  %v13216_v44 = vor.u32 %v16549_v30, %v13213_v60  ;;  %v16605_v30 = vld [vmem:[%s24953_s2 + $0xee4] sm:$0xf]  ;;  %v13437_v60 = vld [vmem:[%s24953_s2 + $0xef0] sm:$0xf0] }
 0x53c   : > { %v4788_v48 = vadd.f32 %v4787_v33, %v4769_v53  ;;  %5414 = vmatpush.bf16.msrb.mxu2 %v13228_v58  ;;  %v13467_v53 = vld [vmem:[%s24953_s2 + $0xf20] sm:$0xf]  ;;  %v13212_v33 = vor.u32 %v16551_v20, %v13211_v47  ;;  %v16580_v47 = vld [vmem:[%s24953_s2 + $0xe14] sm:$0xf0]  ;;  %v13459_v20 = vld [vmem:[%s24953_s2 + $0xf08] sm:$0xf] }
 0x53d   : > { %5452 = vmatpush.bf16.msra.mxu0 %v13484_v11  ;;  %5471 = vmatpush.bf16.msra.mxu1 %v13232_v5  ;;  %v13331_v11 = vld [vmem:[%s24953_s2 + $0xe08] sm:$0xf] }
 0x53e   : > { %v20951_v22 = vadd.f32 %v4788_v48, %v20318_v55  ;;  %v16615_v55 = vld [vmem:[%s24953_s2 + $0xf2c] sm:$0xf0]  ;;  %v13453_v48 = vld [vmem:[%s24953_s2 + $0xf10] sm:$0xf0] }
 0x53f   : > { %v20971_v38 = vpop.f32.mrf.mxu3  ;;  %v13468_v52 = vor.u32 %v16615_v55, %v13467_v53  ;;  %v13456_v5 = vor.u32 %v16609_v42, %v13453_v48  ;;  %v16612_v53 = vld [vmem:[%s24953_s2 + $0xf14] sm:$0xf0]  ;;  %v13443_v48 = vld [vmem:[%s24953_s2 + $0xee8] sm:$0xf] }
 0x540   : > { %25056 = vst [vmem:[#allocation112_spill] sm:$0xff] %v20971_v38  ;;  %v20975_v8 = vpop.f32.mrf.mxu2  ;;  %5415 = vmatpush.bf16.msrb.mxu2 %v13212_v33  ;;  %v13332_v33 = vor.u32 %v16580_v47, %v13331_v11  ;;  %v13460_v55 = vor.u32 %v16612_v53, %v13459_v20  ;;  %v16576_v42 = vld [vmem:[%s24953_s2 + $0xdf4] sm:$0xf0]  ;;  %v16629_v53 = vld [vmem:[%s24953_s2 + $0xfa4] sm:$0xf] }
 0x541   : > { %v20973_v58 = vpop.f32.mrf.mxu1  ;;  %25058 = vst [vmem:[#allocation114_spill] sm:$0xff] %v20975_v8  ;;  %5453 = vmatpush.bf16.msra.mxu0 %v13468_v52  ;;  %5472 = vmatpush.bf16.msra.mxu1 %v13216_v44  ;;  %v13315_v52 = vld [vmem:[%s24953_s2 + $0xde8] sm:$0xf]  ;;  %v13440_v44 = vor.u32 %v16605_v30, %v13437_v60  ;;  %v16608_v11 = vld [vmem:[%s24953_s2 + $0xef4] sm:$0xf0] }
 0x542   : > { %25057 = vst [vmem:[#allocation113_spill] sm:$0xff] %v20973_v58  ;;  %v4754_v51 = vpop.f32.mrf.mxu0  ;;  %v13316_v47 = vor.u32 %v16576_v42, %v13315_v52  ;;  %v13444_v20 = vor.u32 %v16608_v11, %v13443_v48  ;;  %v16601_v52 = vld [vmem:[%s24953_s2 + $0xec4] sm:$0xf]  ;;  %v13421_v42 = vld [vmem:[%s24953_s2 + $0xed0] sm:$0xf0] }
 0x543   : > { %v13424_v48 = vor.u32 %v16601_v52, %v13421_v42  ;;  %v16572_v11 = vld [vmem:[%s24953_s2 + $0xdd4] sm:$0xf0]  ;;  %v13405_v52 = vld [vmem:[%s24953_s2 + $0xeb0] sm:$0xf0]  ;;  %v13283_v42 = vld [vmem:[%s24953_s2 + $0xda8] sm:$0xf] }
 0x544   : > { %5484 = vmatpush.bf16.msra.mxu2 %v13456_v5 }
 0x545   : > { %5522 = vmatpush.bf16.msrb.mxu0 %v13332_v33  ;;  %5541 = vmatpush.bf16.msrb.mxu1 %v13460_v55  ;;  %v13533_v33 = vld [vmem:[%s24953_s2 + $0xfb0] sm:$0xf0] }
 0x546   : > { %v13536_v60 = vor.u32 %v16629_v53, %v13533_v33 }
 0x547   : > { %v4735_v5 = vpop.f32.mrf.mxu3 }
 0x548   : > { %v4736_v55 = vadd.f32 %v4735_v5, %v20823_v4  ;;  %5485 = vmatpush.bf16.msra.mxu2 %v13440_v44  ;;  %v13299_v4 = vld [vmem:[%s24953_s2 + $0xdc8] sm:$0xf]  ;;  %5506 = vmatpush.bf16.msra.mxu3 %v13536_v60 }
 0x549   : > { %v4773_v30 = vpop.f32.mrf.mxu1  ;;  %5523 = vmatpush.bf16.msrb.mxu0 %v13316_v47  ;;  %5542 = vmatpush.bf16.msrb.mxu1 %v13444_v20  ;;  %v13427_v5 = vld [vmem:[%s24953_s2 + $0xec8] sm:$0xf]  ;;  %v16604_v47 = vld [vmem:[%s24953_s2 + $0xed4] sm:$0xf0]  ;;  %v13300_v53 = vor.u32 %v16572_v11, %v13299_v4 }
 0x54a   : > { %v4774_v8 = vadd.f32 %v4773_v30, %v4754_v51  ;;  %v21020_v58 = vpop.f32.mrf.mxu0  ;;  %v21032_v44 = vadd.f32 %v4736_v55, %v20359_v31  ;;  %v4792_v51 = vpop.f32.mrf.mxu2  ;;  %v13428_v33 = vor.u32 %v16604_v47, %v13427_v5  ;;  %v16625_v31 = vld [vmem:[%s24953_s2 + $0xf84] sm:$0xf]  ;;  %v13517_v55 = vld [vmem:[%s24953_s2 + $0xf90] sm:$0xf0] }
 0x54b   : > { %25059 = vst [vmem:[#allocation115_spill] sm:$0xff] %v21020_v58  ;;  %v13520_v30 = vor.u32 %v16625_v31, %v13517_v55  ;;  %v16578_v58 = vld [vmem:[%s24953_s2 + $0xe0c] sm:$0xf] }
 0x54c   : > { %v4793_v20 = vadd.f32 %v4792_v51, %v4774_v8  ;;  %5486 = vmatpush.bf16.msra.mxu2 %v13424_v48  ;;  %v16597_v8 = vld [vmem:[%s24953_s2 + $0xea4] sm:$0xf]  ;;  %v13411_v51 = vld [vmem:[%s24953_s2 + $0xea8] sm:$0xf]  ;;  %v16600_v48 = vld [vmem:[%s24953_s2 + $0xeb4] sm:$0xf0] }
 0x54d   : > { %5524 = vmatpush.bf16.msrb.mxu0 %v13300_v53  ;;  %5543 = vmatpush.bf16.msrb.mxu1 %v13428_v33  ;;  %v13408_v4 = vor.u32 %v16597_v8, %v13405_v52  ;;  %v13412_v47 = vor.u32 %v16600_v48, %v13411_v51  ;;  %v13501_v53 = vld [vmem:[%s24953_s2 + $0xf70] sm:$0xf0]  ;;  %v13267_v52 = vld [vmem:[%s24953_s2 + $0xd88] sm:$0xf]  ;;  %v16596_v51 = vld [vmem:[%s24953_s2 + $0xe94] sm:$0xf0] }
 0x54e   : > { %v21050_v60 = vadd.f32 %v4793_v20, %v20417_v40  ;;  %5507 = vmatpush.bf16.msra.mxu3 %v13520_v30  ;;  %v16568_v40 = vld [vmem:[%s24953_s2 + $0xdb4] sm:$0xf0]  ;;  %v16621_v20 = vld [vmem:[%s24953_s2 + $0xf64] sm:$0xf]  ;;  %v13389_v8 = vld [vmem:[%s24953_s2 + $0xe90] sm:$0xf0] }
 0x54f   : > { %v21070_v11 = vpop.f32.mrf.mxu3  ;;  %v13284_v5 = vor.u32 %v16568_v40, %v13283_v42  ;;  %v13504_v31 = vor.u32 %v16621_v20, %v13501_v53  ;;  %v16593_v30 = vld [vmem:[%s24953_s2 + $0xe84] sm:$0xf]  ;;  %v13395_v40 = vld [vmem:[%s24953_s2 + $0xe88] sm:$0xf]  ;;  %v13485_v20 = vld [vmem:[%s24953_s2 + $0xf50] sm:$0xf0] }
 0x550   : > { %25060 = vst [vmem:[#allocation116_spill] sm:$0xff] %v21070_v11  ;;  %5487 = vmatpush.bf16.msra.mxu2 %v13408_v4  ;;  %v13392_v42 = vor.u32 %v16593_v30, %v13389_v8  ;;  %v16564_v4 = vld [vmem:[%s24953_s2 + $0xd94] sm:$0xf0]  ;;  %v16589_v53 = vld [vmem:[%s24953_s2 + $0xe64] sm:$0xf] }
 0x551   : > { %v21078_v33 = vpop.f32.mrf.mxu1  ;;  %5525 = vmatpush.bf16.msrb.mxu0 %v13284_v5  ;;  %5544 = vmatpush.bf16.msrb.mxu1 %v13412_v47  ;;  %v13268_v48 = vor.u32 %v16564_v4, %v13267_v52  ;;  %v13396_v5 = vor.u32 %v16596_v51, %v13395_v40  ;;  %v16617_v47 = vld [vmem:[%s24953_s2 + $0xf44] sm:$0xf]  ;;  %v13373_v30 = vld [vmem:[%s24953_s2 + $0xe70] sm:$0xf0]  ;;  %v13251_v8 = vld [vmem:[%s24953_s2 + $0xd68] sm:$0xf] }
 0x552   : > { %25061 = vst [vmem:[#allocation117_spill] sm:$0xff] %v21078_v33  ;;  %v4862_v55 = vpop.f32.mrf.mxu0  ;;  %5508 = vmatpush.bf16.msra.mxu3 %v13504_v31  ;;  %v13488_v31 = vor.u32 %v16617_v47, %v13485_v20  ;;  %v16560_v52 = vld [vmem:[%s24953_s2 + $0xd74] sm:$0xf0]  ;;  %v13376_v4 = vor.u32 %v16589_v53, %v13373_v30  ;;  %v16613_v47 = vld [vmem:[%s24953_s2 + $0xf24] sm:$0xf] }
 0x553   : > { %v13252_v40 = vor.u32 %v16560_v52, %v13251_v8  ;;  %v16592_v51 = vld [vmem:[%s24953_s2 + $0xe74] sm:$0xf0]  ;;  %v13357_v53 = vld [vmem:[%s24953_s2 + $0xe50] sm:$0xf0]  ;;  %v13235_v52 = vld [vmem:[%s24953_s2 + $0xd48] sm:$0xf] }
 0x554   : > { %5488 = vmatpush.bf16.msra.mxu2 %v13392_v42  ;;  %v13379_v42 = vld [vmem:[%s24953_s2 + $0xe68] sm:$0xf]  ;;  %v16588_v11 = vld [vmem:[%s24953_s2 + $0xe54] sm:$0xf0] }
 0x555   : > { %5526 = vmatpush.bf16.msrb.mxu0 %v13268_v48  ;;  %5545 = vmatpush.bf16.msrb.mxu1 %v13396_v5  ;;  %v13380_v20 = vor.u32 %v16592_v51, %v13379_v42  ;;  %v13469_v48 = vld [vmem:[%s24953_s2 + $0xf30] sm:$0xf0]  ;;  %v16585_v5 = vld [vmem:[%s24953_s2 + $0xe44] sm:$0xf]  ;;  %v13363_v42 = vld [vmem:[%s24953_s2 + $0xe48] sm:$0xf] }
 0x556   : > { %5509 = vmatpush.bf16.msra.mxu3 %v13488_v31  ;;  %v13472_v8 = vor.u32 %v16613_v47, %v13469_v48  ;;  %v16556_v31 = vld [vmem:[%s24953_s2 + $0xd54] sm:$0xf0]  ;;  %v13360_v37 = vor.u32 %v16585_v5, %v13357_v53  ;;  %v13364_v38 = vor.u32 %v16588_v11, %v13363_v42  ;;  %v13341_v11 = vld [vmem:[%s24953_s2 + $0xe30] sm:$0xf0] }
 0x557   : > { %v4843_v30 = vpop.f32.mrf.mxu3  ;;  %v13236_v48 = vor.u32 %v16556_v31, %v13235_v52  ;;  %v16584_v53 = vld [vmem:[%s24953_s2 + $0xe34] sm:$0xf0]  ;;  %v13317_v31 = vld [vmem:[%s24953_s2 + $0xdf8] sm:$0xf0] }
 0x558   : > { %5489 = vmatpush.bf16.msra.mxu2 %v13376_v4  ;;  %v13333_v4 = vld [vmem:[%s24953_s2 + $0xe18] sm:$0xf0] }
 0x559   : > { %v4881_v51 = vpop.f32.mrf.mxu1  ;;  %5527 = vmatpush.bf16.msrb.mxu0 %v13252_v40  ;;  %5546 = vmatpush.bf16.msrb.mxu1 %v13380_v20  ;;  %v13336_v5 = vor.u32 %v16578_v58, %v13333_v4  ;;  %v16581_v40 = vld [vmem:[%s24953_s2 + $0xe24] sm:$0xf]  ;;  %v13347_v58 = vld [vmem:[%s24953_s2 + $0xe28] sm:$0xf] }
 0x55a   : > { %v4864_v47 = vpop.f32.mrf.mxu0  ;;  %5510 = vmatpush.bf16.msra.mxu3 %v13472_v8  ;;  %v13344_v20 = vor.u32 %v16581_v40, %v13341_v11  ;;  %v13348_v52 = vor.u32 %v16584_v53, %v13347_v58  ;;  %v13445_v53 = vld [vmem:[%s24953_s2 + $0xef8] sm:$0xf0] }
 0x55b   : > { %v21146_v33 = vpack.c.bf16 %v4864_v47, %v4862_v55  ;;  %v13219_v55 = vld [vmem:[%s24953_s2 + $0xd28] sm:$0xf] }
 0x55c   : > { %5490 = vmatpush.bf16.msra.mxu2 %v13360_v37  ;;  %v16552_v37 = vld [vmem:[%s24953_s2 + $0xd34] sm:$0xf0] }
 0x55d   : > { %5435 = vmatmul.bf16.vlgmr.msrb.gmra.mxu3 %v21146_v33  ;;  %5528 = vmatpush.bf16.msrb.mxu0 %v13236_v48  ;;  %v13220_v8 = vor.u32 %v16552_v37, %v13219_v55  ;;  %v13461_v55 = vld [vmem:[%s24953_s2 + $0xf18] sm:$0xf0]  ;;  %v16606_v37 = vld [vmem:[%s24953_s2 + $0xeec] sm:$0xf] }
 0x55e   : > { %5547 = vmatpush.bf16.msrb.mxu1 %v13364_v38  ;;  %5579 = vmatpush.bf16.msrb.mxu3 %v13336_v5  ;;  %v16574_v38 = vld [vmem:[%s24953_s2 + $0xdec] sm:$0xf] }
 0x55f   : > { %v4845_v42 = vpop.f32.mrf.mxu3  ;;  %v13320_v47 = vor.u32 %v16574_v38, %v13317_v31  ;;  %v16610_v5 = vld [vmem:[%s24953_s2 + $0xf0c] sm:$0xf]  ;;  %v13448_v38 = vor.u32 %v16606_v37, %v13445_v53  ;;  %v13269_v37 = vld [vmem:[%s24953_s2 + $0xd98] sm:$0xf0]  ;;  %v13539_v53 = vld [vmem:[%s24953_s2 + $0xfa8] sm:$0xf] }
 0x560   : > { %v21179_v48 = vpack.c.bf16 %v4845_v42, %v4843_v30  ;;  %5491 = vmatpush.bf16.msra.mxu2 %v13344_v20  ;;  %v13464_v30 = vor.u32 %v16610_v5, %v13461_v55  ;;  %v13301_v20 = vld [vmem:[%s24953_s2 + $0xdd8] sm:$0xf0]  ;;  %v16602_v31 = vld [vmem:[%s24953_s2 + $0xecc] sm:$0xf] }
 0x561   : > { %v4883_v4 = vpop.f32.mrf.mxu1  ;;  %5529 = vmatpush.bf16.msrb.mxu0 %v13220_v8  ;;  %v16566_v8 = vld [vmem:[%s24953_s2 + $0xdac] sm:$0xf]  ;;  %v13429_v42 = vld [vmem:[%s24953_s2 + $0xed8] sm:$0xf0] }
 0x562   : > { %v21181_v40 = vpack.c.bf16 %v4883_v4, %v4881_v51  ;;  %v4867_v11 = vpop.f32.mrf.mxu0  ;;  %5548 = vmatpush.bf16.msrb.mxu1 %v13348_v52  ;;  %5416 = vmatmul.bf16.vlgmr.msrb.gmra.mxu2 %v21179_v48  ;;  %v16570_v51 = vld [vmem:[%s24953_s2 + $0xdcc] sm:$0xf]  ;;  %v13285_v52 = vld [vmem:[%s24953_s2 + $0xdb8] sm:$0xf0]  ;;  %v13432_v55 = vor.u32 %v16602_v31, %v13429_v42 }
 0x563   : > { %5473 = vmatmul.bf16.vlgmr.msra.gmra.mxu1 %v21179_v48  ;;  %5580 = vmatpush.bf16.msrb.mxu3 %v13320_v47  ;;  %v13304_v58 = vor.u32 %v16570_v51, %v13301_v20  ;;  %v13288_v4 = vor.u32 %v16566_v8, %v13285_v52  ;;  %v16562_v20 = vld [vmem:[%s24953_s2 + $0xd8c] sm:$0xf]  ;;  %v13541_v42 = vld [vmem:[%s24953_s2 + $0xfb8] sm:$0xf0] }
 0x564   : > { %13545 = vmatmul.msk.bf16.vlgmr.msra.gmra.mxu0 %vm1197_vm2, %v21181_v40  ;;  %v16598_v8 = vld [vmem:[%s24953_s2 + $0xeac] sm:$0xf] }
 0x565   : > { %5598 = vmatpush.bf16.msra.mxu0 %v13464_v30  ;;  %v16630_v31 = vld [vmem:[%s24953_s2 + $0xfac] sm:$0xf] }
 0x567   : > { %v4848_v47 = vpop.f32.mrf.mxu3  ;;  %5581 = vmatpush.bf16.msrb.mxu3 %v13304_v58  ;;  %v13272_v58 = vor.u32 %v16562_v20, %v13269_v37  ;;  %v13253_v20 = vld [vmem:[%s24953_s2 + $0xd78] sm:$0xf0] }
 0x569   : > { %v4886_v5 = vpop.f32.mrf.mxu1  ;;  %5599 = vmatpush.bf16.msra.mxu0 %v13448_v38  ;;  %v13413_v38 = vld [vmem:[%s24953_s2 + $0xeb8] sm:$0xf0] }
 0x56a   : > { %v4869_v30 = vpop.f32.mrf.mxu0 }
 0x56b   : > { %v21217_v51 = vpack.c.bf16 %v4869_v30, %v4867_v11  ;;  %5582 = vmatpush.bf16.msrb.mxu3 %v13288_v4  ;;  %v16632_v11 = vld [vmem:[%s24953_s2 + $0xfb4] sm:$0xf0]  ;;  %v13416_v4 = vor.u32 %v16598_v8, %v13413_v38  ;;  %v16558_v30 = vld [vmem:[%s24953_s2 + $0xd6c] sm:$0xf]  ;;  %v13523_v8 = vld [vmem:[%s24953_s2 + $0xf88] sm:$0xf] }
 0x56c   : > { %v13540_v52 = vor.u32 %v16632_v11, %v13539_v53  ;;  %v13256_v53 = vor.u32 %v16558_v30, %v13253_v20  ;;  %v16628_v38 = vld [vmem:[%s24953_s2 + $0xf94] sm:$0xf0]  ;;  %v13507_v30 = vld [vmem:[%s24953_s2 + $0xf68] sm:$0xf] }
 0x56d   : > { %5440 = vmatmul.bf16.gmra.mxu3 %v21217_v51  ;;  %5600 = vmatpush.bf16.msra.mxu0 %v13432_v55  ;;  %v13544_v55 = vor.u32 %v16630_v31, %v13541_v42 }
 0x56e   : > { %5563 = vmatpush.bf16.msrb.mxu2 %v13540_v52  ;;  %v13525_v52 = vld [vmem:[%s24953_s2 + $0xf98] sm:$0xf0] }
 0x56f   : > { %v4850_v37 = vpop.f32.mrf.mxu3  ;;  %5583 = vmatpush.bf16.msrb.mxu3 %v13272_v58  ;;  %5620 = vmatpush.bf16.msra.mxu1 %v13544_v55  ;;  %v16594_v58 = vld [vmem:[%s24953_s2 + $0xe8c] sm:$0xf]  ;;  %v13237_v55 = vld [vmem:[%s24953_s2 + $0xd58] sm:$0xf0] }
 0x570   : > { %v21250_v11 = vpack.c.bf16 %v4850_v37, %v4848_v47  ;;  %v13524_v47 = vor.u32 %v16628_v38, %v13523_v8  ;;  %v16624_v37 = vld [vmem:[%s24953_s2 + $0xf74] sm:$0xf0]  ;;  %v13381_v8 = vld [vmem:[%s24953_s2 + $0xe78] sm:$0xf0] }
 0x571   : > { %v4888_v59 = vpop.f32.mrf.mxu1  ;;  %5601 = vmatpush.bf16.msra.mxu0 %v13416_v4  ;;  %v16554_v4 = vld [vmem:[%s24953_s2 + $0xd4c] sm:$0xf]  ;;  %v13508_v38 = vor.u32 %v16624_v37, %v13507_v30  ;;  %v13365_v37 = vld [vmem:[%s24953_s2 + $0xe58] sm:$0xf0] }
 0x572   : > { %v21252_v46 = vpack.c.bf16 %v4888_v59, %v4886_v5  ;;  %5421 = vmatmul.bf16.gmra.mxu2 %v21250_v11  ;;  %v13397_v59 = vld [vmem:[%s24953_s2 + $0xe98] sm:$0xf0]  ;;  %v16626_v5 = vld [vmem:[%s24953_s2 + $0xf8c] sm:$0xf]  ;;  %v13240_v20 = vor.u32 %v16554_v4, %v13237_v55  ;;  %v16620_v4 = vld [vmem:[%s24953_s2 + $0xf54] sm:$0xf0] }
 0x573   : > { %5478 = vmatmul.bf16.gmra.mxu1 %v21250_v11  ;;  %5584 = vmatpush.bf16.msrb.mxu3 %v13256_v53  ;;  %v13400_v31 = vor.u32 %v16594_v58, %v13397_v59  ;;  %v13528_v42 = vor.u32 %v16626_v5, %v13525_v52  ;;  %v16590_v53 = vld [vmem:[%s24953_s2 + $0xe6c] sm:$0xf]  ;;  %v13509_v59 = vld [vmem:[%s24953_s2 + $0xf78] sm:$0xf0] }
 0x574   : > { %13546 = vmatmul.msk.bf16.gmra.mxu0 %vm1197_vm2, %v21252_v46  ;;  %5564 = vmatpush.bf16.msrb.mxu2 %v13524_v47  ;;  %v13384_v58 = vor.u32 %v16590_v53, %v13381_v8  ;;  %v16622_v47 = vld [vmem:[%s24953_s2 + $0xf6c] sm:$0xf] }
 0x575   : > { %5602 = vmatpush.bf16.msra.mxu0 %v13400_v31  ;;  %5621 = vmatpush.bf16.msra.mxu1 %v13528_v42  ;;  %v16550_v5 = vld [vmem:[%s24953_s2 + $0xd2c] sm:$0xf]  ;;  %v13512_v52 = vor.u32 %v16622_v47, %v13509_v59  ;;  %v13221_v31 = vld [vmem:[%s24953_s2 + $0xd38] sm:$0xf0]  ;;  %v13491_v42 = vld [vmem:[%s24953_s2 + $0xf48] sm:$0xf] }
 0x576   : > { %v13224_v55 = vor.u32 %v16550_v5, %v13221_v31  ;;  %v16586_v30 = vld [vmem:[%s24953_s2 + $0xe4c] sm:$0xf]  ;;  %v13492_v8 = vor.u32 %v16620_v4, %v13491_v42  ;;  %v13493_v47 = vld [vmem:[%s24953_s2 + $0xf58] sm:$0xf0]  ;;  %v13475_v5 = vld [vmem:[%s24953_s2 + $0xf28] sm:$0xf] }
 0x577   : > { %5585 = vmatpush.bf16.msrb.mxu3 %v13240_v20  ;;  %v16618_v53 = vld [vmem:[%s24953_s2 + $0xf4c] sm:$0xf]  ;;  %v13368_v20 = vor.u32 %v16586_v30, %v13365_v37  ;;  %v13349_v31 = vld [vmem:[%s24953_s2 + $0xe38] sm:$0xf0] }
 0x578   : > { %5565 = vmatpush.bf16.msrb.mxu2 %v13508_v38  ;;  %v13496_v59 = vor.u32 %v16618_v53, %v13493_v47  ;;  %v16616_v38 = vld [vmem:[%s24953_s2 + $0xf34] sm:$0xf0]  ;;  %v16614_v42 = vld [vmem:[%s24953_s2 + $0xf2c] sm:$0xf]  ;;  %v13477_v4 = vld [vmem:[%s24953_s2 + $0xf38] sm:$0xf0] }
 0x579   : > { %5603 = vmatpush.bf16.msra.mxu0 %v13384_v58  ;;  %5622 = vmatpush.bf16.msra.mxu1 %v13512_v52  ;;  %v16582_v58 = vld [vmem:[%s24953_s2 + $0xe2c] sm:$0xf]  ;;  %v13476_v52 = vor.u32 %v16616_v38, %v13475_v5  ;;  %v13480_v30 = vor.u32 %v16614_v42, %v13477_v4  ;;  %v16697_v4 = vld [vmem:[%s24953_s2 + $0x11ac] sm:$0xf0] }
 0x57b   : > { %5586 = vmatpush.bf16.msrb.mxu3 %v13224_v55  ;;  %v13352_v55 = vor.u32 %v16582_v58, %v13349_v31 }
 0x57c   : > { %5566 = vmatpush.bf16.msrb.mxu2 %v13492_v8 }
 0x57d   : > { %13547 = vmatmul.msk.bf16.vlgmr.msra.gmra.mxu3 %vm1197_vm2, %v21181_v40  ;;  %5604 = vmatpush.bf16.msra.mxu0 %v13368_v20 }
 0x57e   : > { %5623 = vmatpush.bf16.msra.mxu1 %v13496_v59 }
 0x57f   : > { %5694 = vmatpush.bf16.msra.mxu3 %v17415_v13  ;;  %v13563_v13 = vld [vmem:[%s24954_s21 + $0x68] sm:$0xf] }
 0x580   : > { %5567 = vmatpush.bf16.msrb.mxu2 %v13476_v52 }
 0x581   : > { %5605 = vmatpush.bf16.msra.mxu0 %v13352_v55 }
 0x582   : > { %5624 = vmatpush.bf16.msra.mxu1 %v13480_v30  ;;  %5492 = vmatmul.bf16.vlgmr.msra.gmra.mxu2 %v21146_v33 }
 0x583   : > { %5549 = vmatmul.bf16.vlgmr.msrb.gmra.mxu1 %v21146_v33  ;;  %5695 = vmatpush.bf16.msra.mxu3 %v17423_v16  ;;  %v21397_v16 = vpop.f32.mrf.mxu2 }
 0x584   : > { %5530 = vmatmul.bf16.vlgmr.msrb.gmra.mxu0 %v21179_v48  ;;  %5675 = vmatpush.bf16.msra.mxu2 %v17413_v12  ;;  %v16633_v12 = vld [vmem:[%s24954_s21 + $0x60] sm:$0xff]  ;;  %25062 = vst [vmem:[#allocation118_spill] sm:$0xff] %v21397_v16  ;;  %v13795_v16 = vld [vmem:[%s24953_s2 + $0x10d8] sm:$0xf0] }
 0x585   : > { %5713 = vmatpush.bf16.msrb.mxu0 %v17417_v14  ;;  %v16634_v14 = vld [vmem:[%s24954_s21 + $0x68] sm:$0x10] }
 0x587   : > { %5696 = vmatpush.bf16.msra.mxu3 %v17438_v25 }
 0x588   : > { %5676 = vmatpush.bf16.msra.mxu2 %v17421_v15  ;;  %v13564_v15 = vor.u32 %v16634_v14, %v13563_v13  ;;  %v13881_v13 = vld [vmem:[%s24953_s2 + $0x1180] sm:$0xf]  ;;  %v16693_v14 = vld [vmem:[%s24953_s2 + $0x118c] sm:$0xf0] }
 0x589   : > { %5714 = vmatpush.bf16.msrb.mxu0 %v17427_v18 }
 0x58b   : > { %5697 = vmatpush.bf16.msra.mxu3 %v17454_v35 }
 0x58c   : > { %5677 = vmatpush.bf16.msra.mxu2 %v17436_v24 }
 0x58d   : > { %13548 = vmatmul.msk.bf16.gmra.mxu3 %vm1197_vm2, %v21252_v46  ;;  %5715 = vmatpush.bf16.msrb.mxu0 %v17442_v27 }
 0x58f   : > { %5698 = vmatpush.bf16.msra.mxu3 %v17481_v50 }
 0x590   : > { %5678 = vmatpush.bf16.msra.mxu2 %v17452_v34 }
 0x591   : > { %5716 = vmatpush.bf16.msrb.mxu0 %v17464_v39 }
 0x592   : > { %5497 = vmatmul.bf16.gmra.mxu2 %v21217_v51 }
 0x593   : > { %5554 = vmatmul.bf16.gmra.mxu1 %v21217_v51  ;;  %5699 = vmatpush.bf16.msra.mxu3 %v17513_v1 }
 0x594   : > { %5535 = vmatmul.bf16.gmra.mxu0 %v21250_v11  ;;  %5679 = vmatpush.bf16.msra.mxu2 %v17479_v49 }
 0x595   : > { %5717 = vmatpush.bf16.msrb.mxu0 %v17491_v54 }
 0x598   : > { %5680 = vmatpush.bf16.msra.mxu2 %v17511_v0 }
 0x599   : > { %5718 = vmatpush.bf16.msrb.mxu0 %v17516_v2 }
 0x59d   : > { %5587 = vmatmul.bf16.vlgmr.msrb.gmra.mxu3 %v21179_v48 }
 0x5a2   : > { %13549 = vmatmul.msk.bf16.vlgmr.msrb.gmra.mxu2 %vm1197_vm2, %v21181_v40 }
 0x5a3   : > { %13551 = vmatmul.msk.bf16.vlgmr.msra.gmra.mxu1 %vm1197_vm2, %v21181_v40 }
 0x5a4   : > { %5606 = vmatmul.bf16.vlgmr.msra.gmra.mxu0 %v21146_v33 }
 0x5ad   : > { %5592 = vmatmul.bf16.gmra.mxu3 %v21250_v11 }
 0x5b2   : > { %13550 = vmatmul.msk.bf16.gmra.mxu2 %vm1197_vm2, %v21252_v46 }
 0x5b3   : > { %13552 = vmatmul.msk.bf16.gmra.mxu1 %vm1197_vm2, %v21252_v46 }
 0x5b4   : > { %5611 = vmatmul.bf16.gmra.mxu0 %v21217_v51 }
 0x5bd   : > { %13567 = vmatmul.msk.bf16.vlgmr.msra.gmra.mxu3 %vm613_vm1, %v16633_v12 }
 0x5c2   : > { %13565 = vmatmul.msk.bf16.vlgmr.msra.gmra.mxu2 %vm613_vm1, %v16633_v12 }
 0x5c4   : > { %13569 = vmatmul.msk.bf16.vlgmr.msrb.gmra.mxu0 %vm613_vm1, %v16633_v12 }
 0x5cd   : > { %13568 = vmatmul.msk.bf16.gmra.mxu3 %vm613_vm1, %v13564_v15 }
 0x5d2   : > { %13566 = vmatmul.msk.bf16.gmra.mxu2 %vm613_vm1, %v13564_v15 }
 0x5d4   : > { %13570 = vmatmul.msk.bf16.gmra.mxu0 %vm613_vm1, %v13564_v15  ;;  %v13882_v15 = vor.u32 %v16693_v14, %v13881_v13  ;;  %v16685_v13 = vld [vmem:[%s24953_s2 + $0x114c] sm:$0xf0]  ;;  %v13977_v14 = vld [vmem:[%s24953_s2 + $0x1240] sm:$0xf] }
 0x5e0   : > { %v5436_v18 = vpop.f32.mrf.mxu3  ;;  %v5474_v24 = vpop.f32.mrf.mxu1 }
 0x5e1   : > { %v5455_v25 = vpop.f32.mrf.mxu0 }
 0x5e5   : > { %v5417_v27 = vpop.f32.mrf.mxu2 }
 0x5e6   : > { %v5437_v34 = vadd.f32 %v5436_v18, %v5417_v27  ;;  %v16663_v27 = vld [vmem:[%s24953_s2 + $0x10a4] sm:$0xf] }
 0x5e8   : > { %v21399_v35 = vpop.f32.mrf.mxu3  ;;  %v21401_v39 = vpop.f32.mrf.mxu1  ;;  %v5456_v49 = vadd.f32 %v5455_v25, %v5437_v34  ;;  %v13769_v25 = vld [vmem:[%s24953_s2 + $0x10a0] sm:$0xf] }
 0x5e9   : > { %v21403_v50 = vpop.f32.mrf.mxu0 }
 0x5ea   : > { %v21406_v54 = vadd.f32 %v5456_v49, %v20743_v28 }
 0x5ed   : > { %v21408_v0 = vpop.f32.mrf.mxu2 }
 0x5f0   : > { %v5441_v1 = vpop.f32.mrf.mxu3  ;;  %v5479_v2 = vpop.f32.mrf.mxu1 }
 0x5f1   : > { %v5460_v46 = vpop.f32.mrf.mxu0 }
 0x5f5   : > { %v5422_v33 = vpop.f32.mrf.mxu2 }
 0x5f6   : > { %v5442_v48 = vadd.f32 %v5441_v1, %v5422_v33  ;;  %v13771_v1 = vld [vmem:[%s24953_s2 + $0x10b0] sm:$0xf0] }
 0x5f7   : > { %v13774_v33 = vor.u32 %v16663_v27, %v13771_v1  ;;  %v16655_v1 = vld [vmem:[%s24953_s2 + $0x1064] sm:$0xf] }
 0x5f8   : > { %v21410_v40 = vpop.f32.mrf.mxu3  ;;  %v21412_v51 = vpop.f32.mrf.mxu1  ;;  %v5461_v11 = vadd.f32 %v5460_v46, %v5442_v48  ;;  %v13865_v48 = vld [vmem:[%s24953_s2 + $0x1160] sm:$0xf] }
 0x5f9   : > { %v21414_v37 = vpop.f32.mrf.mxu0  ;;  %6304 = vmatpush.bf16.msra.mxu0 %v13774_v33 }
 0x5fa   : > { %v21417_v53 = vadd.f32 %v5461_v11, %v20754_v36  ;;  %v13897_v36 = vld [vmem:[%s24953_s2 + $0x11a0] sm:$0xf]  ;;  %v16689_v11 = vld [vmem:[%s24953_s2 + $0x116c] sm:$0xf0] }
 0x5fb   : > { %v13898_v55 = vor.u32 %v16697_v4, %v13897_v36 }
 0x5fd   : > { %v21419_v8 = vpop.f32.mrf.mxu2  ;;  %6266 = vmatpush.bf16.msrb.mxu2 %v13898_v55  ;;  %v13849_v55 = vld [vmem:[%s24953_s2 + $0x1140] sm:$0xf] }
 0x600   : > { %v5512_v28 = vpop.f32.mrf.mxu3  ;;  %v5550_v47 = vpop.f32.mrf.mxu1 }
 0x601   : > { %v5531_v20 = vpop.f32.mrf.mxu0  ;;  %6267 = vmatpush.bf16.msrb.mxu2 %v13882_v15 }
 0x602   : > { %v21421_v59 = vadd.f32 %v5550_v47, %v5531_v20  ;;  %v13753_v47 = vld [vmem:[%s24953_s2 + $0x1080] sm:$0xf]  ;;  %v16661_v20 = vld [vmem:[%s24953_s2 + $0x108c] sm:$0xf0] }
 0x605   : > { %v5493_v5 = vpop.f32.mrf.mxu2 }
 0x606   : > { %v5494_v38 = vadd.f32 %v5493_v5, %v5474_v24  ;;  %v16659_v5 = vld [vmem:[%s24953_s2 + $0x1084] sm:$0xf] }
 0x608   : > { %v21423_v58 = vpop.f32.mrf.mxu3  ;;  %v21425_v52 = vpop.f32.mrf.mxu1  ;;  %v5513_v31 = vadd.f32 %v5512_v28, %v5494_v38  ;;  %v13866_v28 = vor.u32 %v16689_v11, %v13865_v48  ;;  %v13754_v38 = vor.u32 %v16661_v20, %v13753_v47  ;;  %v13833_v20 = vld [vmem:[%s24953_s2 + $0x1120] sm:$0xf] }
 0x609   : > { %v21427_v42 = vpop.f32.mrf.mxu0 }
 0x60a   : > { %v21436_v30 = vadd.f32 %v5513_v31, %v20773_v43  ;;  %v16665_v43 = vld [vmem:[%s24953_s2 + $0x10ac] sm:$0xf0]  ;;  %6268 = vmatpush.bf16.msrb.mxu2 %v13866_v28  ;;  %v13755_v31 = vld [vmem:[%s24953_s2 + $0x1090] sm:$0xf0] }
 0x60b   : > { %v13770_v49 = vor.u32 %v16665_v43, %v13769_v25  ;;  %v13758_v4 = vor.u32 %v16659_v5, %v13755_v31  ;;  %v16717_v25 = vld [vmem:[%s24953_s2 + $0x124c] sm:$0xf0]  ;;  %v13739_v28 = vld [vmem:[%s24953_s2 + $0x1070] sm:$0xf0] }
 0x60c   : > { %v13742_v47 = vor.u32 %v16655_v1, %v13739_v28  ;;  %v16681_v5 = vld [vmem:[%s24953_s2 + $0x112c] sm:$0xf0] }
 0x60d   : > { %v21438_v12 = vpop.f32.mrf.mxu2  ;;  %6247 = vmatpush.bf16.msrb.mxu1 %v13770_v49  ;;  %6305 = vmatpush.bf16.msra.mxu0 %v13758_v4  ;;  %v13737_v49 = vld [vmem:[%s24953_s2 + $0x1060] sm:$0xf]  ;;  %v16713_v31 = vld [vmem:[%s24953_s2 + $0x122c] sm:$0xf0] }
 0x610   : > { %v5517_v18 = vpop.f32.mrf.mxu3  ;;  %v5555_v24 = vpop.f32.mrf.mxu1 }
 0x611   : > { %v5536_v34 = vpop.f32.mrf.mxu0  ;;  %6248 = vmatpush.bf16.msrb.mxu1 %v13754_v38  ;;  %v13834_v38 = vor.u32 %v16681_v5, %v13833_v20  ;;  %6306 = vmatpush.bf16.msra.mxu0 %v13742_v47  ;;  %v13705_v20 = vld [vmem:[%s24953_s2 + $0x1020] sm:$0xf]  ;;  %v16649_v5 = vld [vmem:[%s24953_s2 + $0x102c] sm:$0xf0] }
 0x612   : > { %v21458_v46 = vadd.f32 %v5555_v24, %v5536_v34  ;;  %v13850_v24 = vor.u32 %v16685_v13, %v13849_v55  ;;  %v13978_v34 = vor.u32 %v16717_v25, %v13977_v14  ;;  %v13721_v55 = vld [vmem:[%s24953_s2 + $0x1040] sm:$0xf]  ;;  %v16653_v13 = vld [vmem:[%s24953_s2 + $0x104c] sm:$0xf0]  ;;  %v16651_v14 = vld [vmem:[%s24953_s2 + $0x1044] sm:$0xf] }
 0x614   : > { %6269 = vmatpush.bf16.msrb.mxu2 %v13850_v24  ;;  %6288 = vmatpush.bf16.msrb.mxu3 %v13978_v34  ;;  %v13817_v34 = vld [vmem:[%s24953_s2 + $0x1100] sm:$0xf] }
 0x615   : > { %v5498_v36 = vpop.f32.mrf.mxu2 }
 0x616   : > { %v5499_v15 = vadd.f32 %v5498_v36, %v5479_v2  ;;  %v16657_v2 = vld [vmem:[%s24953_s2 + $0x106c] sm:$0xf0] }
 0x617   : > { %v13738_v11 = vor.u32 %v16657_v2, %v13737_v49  ;;  %v16677_v49 = vld [vmem:[%s24953_s2 + $0x110c] sm:$0xf0]  ;;  %v13945_v2 = vld [vmem:[%s24953_s2 + $0x1200] sm:$0xf] }
 0x618   : > { %v21490_v43 = vpop.f32.mrf.mxu3  ;;  %v21492_v27 = vpop.f32.mrf.mxu1  ;;  %v5518_v33 = vadd.f32 %v5517_v18, %v5499_v15  ;;  %v13961_v18 = vld [vmem:[%s24953_s2 + $0x1220] sm:$0xf]  ;;  %6270 = vmatpush.bf16.msrb.mxu2 %v13834_v38  ;;  %v13722_v15 = vor.u32 %v16653_v13, %v13721_v55  ;;  %v13818_v1 = vor.u32 %v16677_v49, %v13817_v34  ;;  %v16673_v13 = vld [vmem:[%s24953_s2 + $0x10ec] sm:$0xf0] }
 0x619   : > { %25063 = vst [vmem:[#allocation119_spill] sm:$0xff] %v21492_v27  ;;  %v21503_v48 = vpop.f32.mrf.mxu0  ;;  %6249 = vmatpush.bf16.msrb.mxu1 %v13738_v11  ;;  %v13962_v4 = vor.u32 %v16713_v31, %v13961_v18  ;;  %v16647_v18 = vld [vmem:[%s24953_s2 + $0x1024] sm:$0xf]  ;;  %v13706_v31 = vor.u32 %v16649_v5, %v13705_v20  ;;  %v13801_v55 = vld [vmem:[%s24953_s2 + $0x10e0] sm:$0xf] }
 0x61a   : > { %v21521_v36 = vadd.f32 %v5518_v33, %v20846_v23  ;;  %v13723_v23 = vld [vmem:[%s24953_s2 + $0x1050] sm:$0xf0]  ;;  %v16709_v33 = vld [vmem:[%s24953_s2 + $0x120c] sm:$0xf0] }
 0x61b   : > { %6289 = vmatpush.bf16.msrb.mxu3 %v13962_v4  ;;  %v13726_v25 = vor.u32 %v16651_v14, %v13723_v23  ;;  %v13946_v47 = vor.u32 %v16709_v33, %v13945_v2  ;;  %v13707_v4 = vld [vmem:[%s24953_s2 + $0x1030] sm:$0xf0]  ;;  %v13802_v23 = vor.u32 %v16673_v13, %v13801_v55  ;;  %v16705_v34 = vld [vmem:[%s24953_s2 + $0x11ec] sm:$0xf0] }
 0x61c   : > { %6271 = vmatpush.bf16.msrb.mxu2 %v13818_v1  ;;  %v13689_v1 = vld [vmem:[%s24953_s2 + $0x1000] sm:$0xf]  ;;  %v16645_v33 = vld [vmem:[%s24953_s2 + $0x100c] sm:$0xf0]  ;;  %v13691_v20 = vld [vmem:[%s24953_s2 + $0x1010] sm:$0xf0] }
 0x61d   : > { %v21535_v24 = vpop.f32.mrf.mxu2  ;;  %6250 = vmatpush.bf16.msrb.mxu1 %v13722_v15  ;;  %6307 = vmatpush.bf16.msra.mxu0 %v13726_v25  ;;  %v13710_v15 = vor.u32 %v16647_v18, %v13707_v4  ;;  %v13929_v25 = vld [vmem:[%s24953_s2 + $0x11e0] sm:$0xf]  ;;  %v16701_v13 = vld [vmem:[%s24953_s2 + $0x11cc] sm:$0xf0] }
 0x61e   : > { %v13930_v49 = vor.u32 %v16705_v34, %v13929_v25  ;;  %v13913_v4 = vld [vmem:[%s24953_s2 + $0x11c0] sm:$0xf]  ;;  %v16641_v25 = vld [vmem:[%s24953_s2 + $0xfec] sm:$0xf0] }
 0x61f   : > { %6290 = vmatpush.bf16.msrb.mxu3 %v13946_v47  ;;  %v13690_v47 = vor.u32 %v16645_v33, %v13689_v1  ;;  %v13675_v33 = vld [vmem:[%s24953_s2 + $0xff0] sm:$0xf0] }
 0x620   : > { %v5588_v11 = vpop.f32.mrf.mxu3  ;;  %v5626_v28 = vpop.f32.mrf.mxu1  ;;  %6272 = vmatpush.bf16.msrb.mxu2 %v13802_v23  ;;  %v13673_v23 = vld [vmem:[%s24953_s2 + $0xfe0] sm:$0xf] }
 0x621   : > { %v5607_v38 = vpop.f32.mrf.mxu0  ;;  %6251 = vmatpush.bf16.msrb.mxu1 %v13706_v31  ;;  %6308 = vmatpush.bf16.msra.mxu0 %v13710_v15  ;;  %v16669_v31 = vld [vmem:[%s24953_s2 + $0x10cc] sm:$0xf0]  ;;  %v13914_v15 = vor.u32 %v16701_v13, %v13913_v4  ;;  %v13674_v1 = vor.u32 %v16641_v25, %v13673_v23  ;;  %v13659_v4 = vld [vmem:[%s24953_s2 + $0xfd0] sm:$0xf0]  ;;  %v13761_v13 = vld [vmem:[%s24953_s2 + $0x1088] sm:$0xf] }
 0x622   : > { %v5608_v14 = vadd.f32 %v5607_v38, %v5588_v11  ;;  %v16643_v11 = vld [vmem:[%s24953_s2 + $0x1004] sm:$0xf]  ;;  %v13785_v38 = vld [vmem:[%s24953_s2 + $0x10c0] sm:$0xf] }
 0x623   : > { %6291 = vmatpush.bf16.msrb.mxu3 %v13930_v49  ;;  %v13694_v18 = vor.u32 %v16643_v11, %v13691_v20 }
 0x624   : > { %v5627_v2 = vadd.f32 %v5626_v28, %v5608_v14 }
 0x625   : > { %v5569_v5 = vpop.f32.mrf.mxu2  ;;  %6252 = vmatpush.bf16.msrb.mxu1 %v13690_v47  ;;  %6309 = vmatpush.bf16.msra.mxu0 %v13694_v18  ;;  %v13777_v47 = vld [vmem:[%s24953_s2 + $0x10a8] sm:$0xf]  ;;  %v16637_v18 = vld [vmem:[%s24953_s2 + $0xfcc] sm:$0xf0] }
 0x626   : > { %v21586_v28 = vadd.f32 %v5627_v2, %v20951_v22  ;;  %v5570_v55 = vadd.f32 %v5569_v5, %v21421_v59  ;;  %v13786_v22 = vor.u32 %v16669_v31, %v13785_v38  ;;  %v16639_v59 = vld [vmem:[%s24953_s2 + $0xfe4] sm:$0xf]  ;;  %v13657_v5 = vld [vmem:[%s24953_s2 + $0xfc0] sm:$0xf] }
 0x627   : > { %6292 = vmatpush.bf16.msrb.mxu3 %v13914_v15  ;;  %v13678_v11 = vor.u32 %v16639_v59, %v13675_v33  ;;  %v16635_v38 = vld [vmem:[%s24953_s2 + $0xfc4] sm:$0xf]  ;;  %v13658_v31 = vor.u32 %v16637_v18, %v13657_v5  ;;  %v16662_v15 = vld [vmem:[%s24953_s2 + $0x1094] sm:$0xf0]  ;;  %v13905_v33 = vld [vmem:[%s24953_s2 + $0x11a8] sm:$0xf] }
 0x628   : > { %25064 = vst [vmem:[#allocation120_spill] sm:$0xff] %v21586_v28  ;;  %v21601_v14 = vpop.f32.mrf.mxu3  ;;  %v21613_v34 = vadd.f32 %v5570_v55, %v20939_v62  ;;  %v21617_v2 = vpop.f32.mrf.mxu1  ;;  %6273 = vmatpush.bf16.msrb.mxu2 %v13786_v22  ;;  %v16666_v62 = vld [vmem:[%s24953_s2 + $0x10b4] sm:$0xf0]  ;;  %v13662_v22 = vor.u32 %v16635_v38, %v13659_v4  ;;  %v13762_v23 = vor.u32 %v16662_v15, %v13761_v13  ;;  %v16695_v59 = vld [vmem:[%s24953_s2 + $0x11a4] sm:$0xf] }
 0x629   : > { %25065 = vst [vmem:[#allocation121_spill] sm:$0xff] %v21601_v14  ;;  %v21615_v49 = vpop.f32.mrf.mxu0  ;;  %6253 = vmatpush.bf16.msrb.mxu1 %v13674_v1  ;;  %v13778_v20 = vor.u32 %v16666_v62, %v13777_v47  ;;  %6310 = vmatpush.bf16.msra.mxu0 %v13678_v11  ;;  %v13899_v1 = vld [vmem:[%s24953_s2 + $0x11b0] sm:$0xf0]  ;;  %v16698_v62 = vld [vmem:[%s24953_s2 + $0x11b4] sm:$0xf0] }
 0x62a   : > { %25066 = vst [vmem:[#allocation122_spill] sm:$0xff] %v21613_v34  ;;  %v13902_v47 = vor.u32 %v16695_v59, %v13899_v1  ;;  %v16658_v5 = vld [vmem:[%s24953_s2 + $0x1074] sm:$0xf0]  ;;  %v13906_v38 = vor.u32 %v16698_v62, %v13905_v33  ;;  %v16691_v13 = vld [vmem:[%s24953_s2 + $0x1184] sm:$0xf] }
 0x62b   : > { %25067 = vst [vmem:[#allocation123_spill] sm:$0xff] %v21615_v49  ;;  %6361 = vmatpush.bf16.msra.mxu3 %v13778_v20  ;;  %v13745_v20 = vld [vmem:[%s24953_s2 + $0x1068] sm:$0xf]  ;;  %v13883_v15 = vld [vmem:[%s24953_s2 + $0x1190] sm:$0xf0] }
 0x62c   : > { %25068 = vst [vmem:[#allocation124_spill] sm:$0xff] %v21617_v2  ;;  %v16694_v59 = vld [vmem:[%s24953_s2 + $0x1194] sm:$0xf0]  ;;  %v13979_v62 = vld [vmem:[%s24953_s2 + $0x1250] sm:$0xf0] }
 0x62d   : > { %v21640_v55 = vpop.f32.mrf.mxu2  ;;  %6254 = vmatpush.bf16.msrb.mxu1 %v13658_v31  ;;  %6311 = vmatpush.bf16.msra.mxu0 %v13662_v22  ;;  %v13746_v31 = vor.u32 %v16658_v5, %v13745_v20  ;;  %v13729_v20 = vld [vmem:[%s24953_s2 + $0x1048] sm:$0xf] }
 0x62e   : > { %25069 = vst [vmem:[#allocation125_spill] sm:$0xff] %v21640_v55 }
 0x62f   : > { %6362 = vmatpush.bf16.msra.mxu3 %v13762_v23  ;;  %v13889_v23 = vld [vmem:[%s24953_s2 + $0x1188] sm:$0xf] }
 0x630   : > { %v5593_v25 = vpop.f32.mrf.mxu3  ;;  %v5631_v4 = vpop.f32.mrf.mxu1 }
 0x631   : > { %v5612_v11 = vpop.f32.mrf.mxu0  ;;  %6323 = vmatpush.bf16.msra.mxu1 %v13902_v47  ;;  %6380 = vmatpush.bf16.msrb.mxu0 %v13906_v38  ;;  %v16715_v47 = vld [vmem:[%s24953_s2 + $0x1244] sm:$0xf] }
 0x632   : > { %v5613_v18 = vadd.f32 %v5612_v11, %v5593_v25  ;;  %v13886_v25 = vor.u32 %v16691_v13, %v13883_v15  ;;  %v13890_v11 = vor.u32 %v16694_v59, %v13889_v23 }
 0x633   : > { %6363 = vmatpush.bf16.msra.mxu3 %v13746_v31 }
 0x634   : > { %v5632_v22 = vadd.f32 %v5631_v4, %v5613_v18  ;;  %v13982_v18 = vor.u32 %v16715_v47, %v13979_v62  ;;  %v16687_v4 = vld [vmem:[%s24953_s2 + $0x1164] sm:$0xf]  ;;  %v16650_v62 = vld [vmem:[%s24953_s2 + $0x1034] sm:$0xf0] }
 0x635   : > { %v5574_v33 = vpop.f32.mrf.mxu2  ;;  %6324 = vmatpush.bf16.msra.mxu1 %v13886_v25  ;;  %6381 = vmatpush.bf16.msrb.mxu0 %v13890_v11  ;;  %v16690_v25 = vld [vmem:[%s24953_s2 + $0x1174] sm:$0xf0]  ;;  %v13963_v11 = vld [vmem:[%s24953_s2 + $0x1230] sm:$0xf0] }
 0x636   : > { %v21679_v1 = vadd.f32 %v5632_v22, %v21050_v60  ;;  %v5575_v5 = vadd.f32 %v5574_v33, %v21458_v46  ;;  %v16654_v60 = vld [vmem:[%s24953_s2 + $0x1054] sm:$0xf0]  ;;  %v13867_v22 = vld [vmem:[%s24953_s2 + $0x1170] sm:$0xf0]  ;;  %v13873_v46 = vld [vmem:[%s24953_s2 + $0x1168] sm:$0xf]  ;;  %6345 = vmatpush.bf16.msra.mxu2 %v13982_v18 }
 0x637   : > { %v13730_v31 = vor.u32 %v16654_v60, %v13729_v20  ;;  %v13870_v23 = vor.u32 %v16687_v4, %v13867_v22  ;;  %v13874_v59 = vor.u32 %v16690_v25, %v13873_v46  ;;  %v16711_v33 = vld [vmem:[%s24953_s2 + $0x1224] sm:$0xf]  ;;  %v13851_v18 = vld [vmem:[%s24953_s2 + $0x1150] sm:$0xf0]  ;;  %v13857_v60 = vld [vmem:[%s24953_s2 + $0x1148] sm:$0xf] }
 0x638   : > { %25070 = vst [vmem:[#allocation126_spill] sm:$0xff] %v21679_v1  ;;  %v21694_v38 = vpop.f32.mrf.mxu3  ;;  %v21706_v13 = vadd.f32 %v5575_v5, %v21032_v44  ;;  %v13713_v44 = vld [vmem:[%s24953_s2 + $0x1028] sm:$0xf]  ;;  %v13966_v47 = vor.u32 %v16711_v33, %v13963_v11  ;;  %v16683_v5 = vld [vmem:[%s24953_s2 + $0x1144] sm:$0xf] }
 0x639   : > { %25071 = vst [vmem:[#allocation127_spill] sm:$0xff] %v21694_v38  ;;  %v21708_v15 = vpop.f32.mrf.mxu0  ;;  %6364 = vmatpush.bf16.msra.mxu3 %v13730_v31  ;;  %6325 = vmatpush.bf16.msra.mxu1 %v13870_v23  ;;  %v13714_v20 = vor.u32 %v16650_v62, %v13713_v44  ;;  %v13854_v31 = vor.u32 %v16683_v5, %v13851_v18  ;;  %v16686_v4 = vld [vmem:[%s24953_s2 + $0x1154] sm:$0xf0]  ;;  %v16707_v23 = vld [vmem:[%s24953_s2 + $0x1204] sm:$0xf] }
 0x63a   : > { %25072 = vst [vmem:[#allocation128_spill] sm:$0xff] %v21706_v13  ;;  %6382 = vmatpush.bf16.msrb.mxu0 %v13874_v59  ;;  %6346 = vmatpush.bf16.msra.mxu2 %v13966_v47  ;;  %v13858_v46 = vor.u32 %v16686_v4, %v13857_v60  ;;  %v13947_v25 = vld [vmem:[%s24953_s2 + $0x1210] sm:$0xf0]  ;;  %v13697_v59 = vld [vmem:[%s24953_s2 + $0x1008] sm:$0xf] }
 0x63b   : > { %25073 = vst [vmem:[#allocation129_spill] sm:$0xff] %v21708_v15  ;;  %v13950_v33 = vor.u32 %v16707_v23, %v13947_v25  ;;  %v16646_v11 = vld [vmem:[%s24953_s2 + $0x1014] sm:$0xf0]  ;;  %v16679_v62 = vld [vmem:[%s24953_s2 + $0x1124] sm:$0xf] }
 0x63c   : > { %v13698_v47 = vor.u32 %v16646_v11, %v13697_v59  ;;  %v13841_v5 = vld [vmem:[%s24953_s2 + $0x1128] sm:$0xf]  ;;  %v16703_v4 = vld [vmem:[%s24953_s2 + $0x11e4] sm:$0xf]  ;;  %v16648_v13 = vld [vmem:[%s24953_s2 + $0x102c] sm:$0xf] }
 0x63d   : > { %v21737_v22 = vpop.f32.mrf.mxu2  ;;  %6365 = vmatpush.bf16.msra.mxu3 %v13714_v20  ;;  %6326 = vmatpush.bf16.msra.mxu1 %v13854_v31  ;;  %v13835_v20 = vld [vmem:[%s24953_s2 + $0x1130] sm:$0xf0]  ;;  %v16682_v31 = vld [vmem:[%s24953_s2 + $0x1134] sm:$0xf0]  ;;  %v13681_v59 = vld [vmem:[%s24953_s2 + $0xfe8] sm:$0xf] }
 0x63e   : > { %25074 = vst [vmem:[#allocation130_spill] sm:$0xff] %v21737_v22  ;;  %6383 = vmatpush.bf16.msrb.mxu0 %v13858_v46  ;;  %6347 = vmatpush.bf16.msra.mxu2 %v13950_v33  ;;  %v13838_v60 = vor.u32 %v16679_v62, %v13835_v20  ;;  %v13931_v46 = vld [vmem:[%s24953_s2 + $0x11f0] sm:$0xf0]  ;;  %v13842_v23 = vor.u32 %v16682_v31, %v13841_v5  ;;  %v16642_v33 = vld [vmem:[%s24953_s2 + $0xff4] sm:$0xf0] }
 0x63f   : > { %v13934_v25 = vor.u32 %v16703_v4, %v13931_v46  ;;  %v16675_v11 = vld [vmem:[%s24953_s2 + $0x1104] sm:$0xf]  ;;  %v13682_v62 = vor.u32 %v16642_v33, %v13681_v59  ;;  %v13825_v20 = vld [vmem:[%s24953_s2 + $0x1108] sm:$0xf]  ;;  %v16678_v5 = vld [vmem:[%s24953_s2 + $0x1114] sm:$0xf0] }
 0x640   : > { %v5701_v44 = vpop.f32.mrf.mxu3  ;;  %v13826_v4 = vor.u32 %v16678_v5, %v13825_v20  ;;  %v13915_v46 = vld [vmem:[%s24953_s2 + $0x11d0] sm:$0xf0]  ;;  %v13665_v59 = vld [vmem:[%s24953_s2 + $0xfc8] sm:$0xf]  ;;  %v13939_v15 = vld [vmem:[%s24953_s2 + $0x11f8] sm:$0xf0] }
 0x641   : > { %v5720_v18 = vpop.f32.mrf.mxu0  ;;  %6366 = vmatpush.bf16.msra.mxu3 %v13698_v47  ;;  %6327 = vmatpush.bf16.msra.mxu1 %v13838_v60  ;;  %v13819_v47 = vld [vmem:[%s24953_s2 + $0x1110] sm:$0xf0]  ;;  %v16699_v60 = vld [vmem:[%s24953_s2 + $0x11c4] sm:$0xf] }
 0x642   : > { %6384 = vmatpush.bf16.msrb.mxu0 %v13842_v23  ;;  %v13822_v31 = vor.u32 %v16675_v11, %v13819_v47  ;;  %6348 = vmatpush.bf16.msra.mxu2 %v13934_v25  ;;  %v13918_v33 = vor.u32 %v16699_v60, %v13915_v46  ;;  %v16638_v23 = vld [vmem:[%s24953_s2 + $0xfd4] sm:$0xf0]  ;;  %v16671_v11 = vld [vmem:[%s24953_s2 + $0x10e4] sm:$0xf]  ;;  %v13803_v47 = vld [vmem:[%s24953_s2 + $0x10f0] sm:$0xf0] }
 0x643   : > { %v13666_v5 = vor.u32 %v16638_v23, %v13665_v59  ;;  %v13809_v25 = vld [vmem:[%s24953_s2 + $0x10e8] sm:$0xf]  ;;  %v16674_v60 = vld [vmem:[%s24953_s2 + $0x10f4] sm:$0xf0]  ;;  %v13806_v46 = vor.u32 %v16671_v11, %v13803_v47  ;;  %v13779_v59 = vld [vmem:[%s24953_s2 + $0x10b8] sm:$0xf0] }
 0x644   : > { %v13810_v2 = vor.u32 %v16674_v60, %v13809_v25  ;;  %v16660_v11 = vld [vmem:[%s24953_s2 + $0x108c] sm:$0xf]  ;;  %v13763_v47 = vld [vmem:[%s24953_s2 + $0x1098] sm:$0xf0] }
 0x645   : > { %v5682_v20 = vpop.f32.mrf.mxu2  ;;  %6367 = vmatpush.bf16.msra.mxu3 %v13682_v62  ;;  %6328 = vmatpush.bf16.msra.mxu1 %v13822_v31  ;;  %v16664_v62 = vld [vmem:[%s24953_s2 + $0x10ac] sm:$0xf]  ;;  %v13766_v60 = vor.u32 %v16660_v11, %v13763_v47  ;;  %v13731_v47 = vld [vmem:[%s24953_s2 + $0x1058] sm:$0xf0] }
 0x646   : > { %6385 = vmatpush.bf16.msrb.mxu0 %v13826_v4  ;;  %6349 = vmatpush.bf16.msra.mxu2 %v13918_v33  ;;  %v16696_v31 = vld [vmem:[%s24953_s2 + $0x11ac] sm:$0xf]  ;;  %v13787_v4 = vld [vmem:[%s24953_s2 + $0x10d0] sm:$0xf0]  ;;  %v13793_v33 = vld [vmem:[%s24953_s2 + $0x10c8] sm:$0xf] }
 0x648   : > { %v5703_v28 = vpop.f32.mrf.mxu3 }
 0x649   : > { %v21811_v49 = vpack.c.bf16 %v5703_v28, %v5701_v44  ;;  %v5722_v14 = vpop.f32.mrf.mxu0  ;;  %6368 = vmatpush.bf16.msra.mxu3 %v13666_v5  ;;  %6329 = vmatpush.bf16.msra.mxu1 %v13806_v46  ;;  %v13782_v28 = vor.u32 %v16664_v62, %v13779_v59  ;;  %v16692_v46 = vld [vmem:[%s24953_s2 + $0x118c] sm:$0xf]  ;;  %v13891_v62 = vld [vmem:[%s24953_s2 + $0x1198] sm:$0xf0] }
 0x64a   : > { %v21813_v1 = vpack.c.bf16 %v5722_v14, %v5720_v18  ;;  %v13907_v14 = vld [vmem:[%s24953_s2 + $0x11b8] sm:$0xf0]  ;;  %6386 = vmatpush.bf16.msrb.mxu0 %v13810_v2  ;;  %v16667_v18 = vld [vmem:[%s24953_s2 + $0x10c4] sm:$0xf]  ;;  %v16670_v2 = vld [vmem:[%s24953_s2 + $0x10d4] sm:$0xf0] }
 0x64b   : > { %6274 = vmatmul.bf16.vlgmr.msrb.gmra.mxu2 %v21811_v49  ;;  %v21830_v44 = vor.u32 %v16696_v31, %v13907_v14  ;;  %v13790_v23 = vor.u32 %v16667_v18, %v13787_v4  ;;  %v13794_v25 = vor.u32 %v16670_v2, %v13793_v33  ;;  %v21859_v31 = vor.u32 %v16692_v46, %v13891_v62  ;;  %v16656_v18 = vld [vmem:[%s24953_s2 + $0x106c] sm:$0xf]  ;;  %v13747_v4 = vld [vmem:[%s24953_s2 + $0x1078] sm:$0xf0] }
 0x64c   : > { %13991 = vmatmul.msk.bf16.vlgmr.msrb.gmra.mxu3 %vm1197_vm2, %v21813_v1  ;;  %6418 = vmatpush.bf16.msrb.mxu2 %v13782_v28  ;;  %v13750_v33 = vor.u32 %v16656_v18, %v13747_v4  ;;  %v16652_v2 = vld [vmem:[%s24953_s2 + $0x104c] sm:$0xf] }
 0x64d   : > { %v5684_v5 = vpop.f32.mrf.mxu2  ;;  %17137 = vmatpush.bf16.msrb.mxu3 %v21830_v44  ;;  %6330 = vmatpush.bf16.msra.mxu1 %v13790_v23  ;;  %v13875_v23 = vld [vmem:[%s24953_s2 + $0x1178] sm:$0xf0]  ;;  %v13734_v46 = vor.u32 %v16652_v2, %v13731_v47  ;;  %v16680_v2 = vld [vmem:[%s24953_s2 + $0x112c] sm:$0xf] }
 0x64e   : > { %v21857_v59 = vpack.c.bf16 %v5684_v5, %v5682_v20  ;;  %6387 = vmatpush.bf16.msrb.mxu0 %v13794_v25  ;;  %v16688_v20 = vld [vmem:[%s24953_s2 + $0x116c] sm:$0xf]  ;;  %v13859_v25 = vld [vmem:[%s24953_s2 + $0x1158] sm:$0xf0] }
 0x64f   : > { %v21879_v11 = vor.u32 %v16688_v20, %v13875_v23  ;;  %v16684_v5 = vld [vmem:[%s24953_s2 + $0x114c] sm:$0xf] }
 0x650   : > { %v5706_v28 = vpop.f32.mrf.mxu3  ;;  %6255 = vmatmul.bf16.vlgmr.msrb.gmra.mxu1 %v21857_v59  ;;  %6312 = vmatmul.bf16.vlgmr.msra.gmra.mxu0 %v21857_v59  ;;  %v21891_v62 = vor.u32 %v16684_v5, %v13859_v25  ;;  %v13985_v5 = vld [vmem:[%s24953_s2 + $0x1248] sm:$0xf]  ;;  %v16718_v25 = vld [vmem:[%s24953_s2 + $0x1254] sm:$0xf0] }
 0x651   : > { %v5725_v14 = vpop.f32.mrf.mxu0  ;;  %6419 = vmatpush.bf16.msrb.mxu2 %v13766_v60  ;;  %17138 = vmatpush.bf16.msrb.mxu3 %v21859_v31 }
 0x655   : > { %v5687_v60 = vpop.f32.mrf.mxu2  ;;  %6420 = vmatpush.bf16.msrb.mxu2 %v13750_v33  ;;  %17139 = vmatpush.bf16.msrb.mxu3 %v21879_v11  ;;  %v13715_v33 = vld [vmem:[%s24953_s2 + $0x1038] sm:$0xf0] }
 0x658   : > { %v5708_v18 = vpop.f32.mrf.mxu3 }
 0x659   : > { %v21893_v4 = vpack.c.bf16 %v5708_v18, %v5706_v28  ;;  %v5727_v20 = vpop.f32.mrf.mxu0  ;;  %6421 = vmatpush.bf16.msrb.mxu2 %v13734_v46  ;;  %17140 = vmatpush.bf16.msrb.mxu3 %v21891_v62  ;;  %v13718_v28 = vor.u32 %v16648_v13, %v13715_v33  ;;  %v16716_v13 = vld [vmem:[%s24953_s2 + $0x124c] sm:$0xf]  ;;  %v13986_v46 = vor.u32 %v16718_v25, %v13985_v5  ;;  %v13987_v18 = vld [vmem:[%s24953_s2 + $0x1258] sm:$0xf0] }
 0x65a   : > { %v21895_v23 = vpack.c.bf16 %v5727_v20, %v5725_v14  ;;  %v13843_v14 = vld [vmem:[%s24953_s2 + $0x1138] sm:$0xf0]  ;;  %v16644_v20 = vld [vmem:[%s24953_s2 + $0x100c] sm:$0xf] }
 0x65b   : > { %6279 = vmatmul.bf16.gmra.mxu2 %v21893_v4  ;;  %v21913_v47 = vor.u32 %v16680_v2, %v13843_v14  ;;  %v13699_v33 = vld [vmem:[%s24953_s2 + $0x1018] sm:$0xf0]  ;;  %v13990_v14 = vor.u32 %v16716_v13, %v13987_v18  ;;  %v16676_v5 = vld [vmem:[%s24953_s2 + $0x110c] sm:$0xf]  ;;  %6402 = vmatpush.bf16.msrb.mxu1 %v13986_v46  ;;  %v16714_v13 = vld [vmem:[%s24953_s2 + $0x1234] sm:$0xf0] }
 0x65c   : > { %13992 = vmatmul.msk.bf16.gmra.mxu3 %vm1197_vm2, %v21895_v23  ;;  %v13702_v34 = vor.u32 %v16644_v20, %v13699_v33  ;;  %v13827_v25 = vld [vmem:[%s24953_s2 + $0x1118] sm:$0xf0]  ;;  %v16712_v18 = vld [vmem:[%s24953_s2 + $0x122c] sm:$0xf] }
 0x65d   : > { %v5689_v2 = vpop.f32.mrf.mxu2  ;;  %6422 = vmatpush.bf16.msrb.mxu2 %v13718_v28  ;;  %17141 = vmatpush.bf16.msrb.mxu3 %v21913_v47  ;;  %v21942_v55 = vor.u32 %v16676_v5, %v13827_v25  ;;  %v13969_v28 = vld [vmem:[%s24953_s2 + $0x1228] sm:$0xf]  ;;  %v13971_v46 = vld [vmem:[%s24953_s2 + $0x1238] sm:$0xf0]  ;;  %v16640_v20 = vld [vmem:[%s24953_s2 + $0xfec] sm:$0xf] }
 0x65e   : > { %v21940_v22 = vpack.c.bf16 %v5689_v2, %v5687_v60  ;;  %6459 = vmatpush.bf16.msra.mxu0 %v13990_v14  ;;  %v13970_v60 = vor.u32 %v16714_v13, %v13969_v28  ;;  %v13683_v33 = vld [vmem:[%s24953_s2 + $0xff8] sm:$0xf0]  ;;  %v13974_v2 = vor.u32 %v16712_v18, %v13971_v46  ;;  %v16672_v5 = vld [vmem:[%s24953_s2 + $0x10ec] sm:$0xf]  ;;  %v13953_v28 = vld [vmem:[%s24953_s2 + $0x1208] sm:$0xf] }
 0x65f   : > { %v13686_v14 = vor.u32 %v16640_v20, %v13683_v33  ;;  %v13811_v25 = vld [vmem:[%s24953_s2 + $0x10f8] sm:$0xf0]  ;;  %v16708_v18 = vld [vmem:[%s24953_s2 + $0x120c] sm:$0xf] }
 0x660   : > { %6260 = vmatmul.bf16.gmra.mxu1 %v21940_v22  ;;  %6317 = vmatmul.bf16.gmra.mxu0 %v21940_v22  ;;  %v13814_v13 = vor.u32 %v16672_v5, %v13811_v25  ;;  %v13955_v46 = vld [vmem:[%s24953_s2 + $0x1218] sm:$0xf0]  ;;  %v16668_v25 = vld [vmem:[%s24953_s2 + $0x10cc] sm:$0xf] }
 0x661   : > { %6423 = vmatpush.bf16.msrb.mxu2 %v13702_v34  ;;  %17142 = vmatpush.bf16.msrb.mxu3 %v21942_v55  ;;  %v16710_v34 = vld [vmem:[%s24953_s2 + $0x1214] sm:$0xf0]  ;;  %v13958_v33 = vor.u32 %v16708_v18, %v13955_v46  ;;  %v13667_v5 = vld [vmem:[%s24953_s2 + $0xfd8] sm:$0xf0]  ;;  %v13798_v18 = vor.u32 %v16668_v25, %v13795_v16  ;;  %v16704_v46 = vld [vmem:[%s24953_s2 + $0x11ec] sm:$0xf] }
 0x662   : > { %6403 = vmatpush.bf16.msrb.mxu1 %v13970_v60  ;;  %6460 = vmatpush.bf16.msra.mxu0 %v13974_v2  ;;  %v13954_v20 = vor.u32 %v16710_v34, %v13953_v28  ;;  %v16636_v60 = vld [vmem:[%s24953_s2 + $0xfcc] sm:$0xf]  ;;  %v13937_v2 = vld [vmem:[%s24953_s2 + $0x11e8] sm:$0xf]  ;;  %v16706_v28 = vld [vmem:[%s24953_s2 + $0x11f4] sm:$0xf0]  ;;  %v13942_v27 = vor.u32 %v16704_v46, %v13939_v15 }
 0x663   : > { %v13670_v34 = vor.u32 %v16636_v60, %v13667_v5  ;;  %v13938_v38 = vor.u32 %v16706_v28, %v13937_v2  ;;  %v13921_v16 = vld [vmem:[%s24953_s2 + $0x11c8] sm:$0xf]  ;;  %v16700_v15 = vld [vmem:[%s24953_s2 + $0x11cc] sm:$0xf]  ;;  %v25079_v2 = vld [vmem:[#allocation95_spill] sm:$0xff] }
 0x664   : > { %v25075_v5 = vld [vmem:[#allocation33_spill] sm:$0xff]  ;;  %v25083_v46 = vld [vmem:[#allocation100_spill] sm:$0xff] }
 0x665   : > { %6424 = vmatpush.bf16.msrb.mxu2 %v13686_v14  ;;  %17143 = vmatpush.bf16.msrb.mxu3 %v13814_v13  ;;  %v16702_v14 = vld [vmem:[%s24953_s2 + $0x11d4] sm:$0xf0] }
 0x666   : > { %6404 = vmatpush.bf16.msrb.mxu1 %v13954_v20  ;;  %6461 = vmatpush.bf16.msra.mxu0 %v13958_v33  ;;  %v13922_v20 = vor.u32 %v16702_v14, %v13921_v16  ;;  %v25084_v16 = vld [vmem:[#allocation99_spill] sm:$0xff] }
 0x667   : > { %v4605_v14 = vadd.f32 %v25084_v16, %v25083_v46 }
 0x669   : > { %6425 = vmatpush.bf16.msrb.mxu2 %v13670_v34  ;;  %17144 = vmatpush.bf16.msrb.mxu3 %v13798_v18  ;;  %v25080_v34 = vld [vmem:[#allocation54_spill] sm:$0xff] }
 0x66a   : > { %6405 = vmatpush.bf16.msrb.mxu1 %v13938_v38  ;;  %6462 = vmatpush.bf16.msra.mxu0 %v13942_v27  ;;  %v13923_v38 = vld [vmem:[%s24953_s2 + $0x11d8] sm:$0xf0]  ;;  %v22047_v27 = vpop.f32.mrf.mxu1 }
 0x66b   : > { %13993 = vmatmul.msk.bf16.vlgmr.msra.gmra.mxu2 %vm1197_vm2, %v21813_v1  ;;  %v13926_v33 = vor.u32 %v16700_v15, %v13923_v38 }
 0x66c   : > { %6369 = vmatmul.bf16.vlgmr.msra.gmra.mxu3 %v21857_v59 }
 0x66e   : > { %6406 = vmatpush.bf16.msrb.mxu1 %v13922_v20  ;;  %6463 = vmatpush.bf16.msra.mxu0 %v13926_v33  ;;  %v25085_v33 = vld [vmem:[#allocation73_spill] sm:$0xff] }
 0x670   : > { %6331 = vmatmul.bf16.vlgmr.msra.gmra.mxu1 %v21811_v49  ;;  %6388 = vmatmul.bf16.vlgmr.msrb.gmra.mxu0 %v21811_v49 }
 0x672   : > { %6437 = vmatpush.bf16.msra.mxu1 %v21830_v44 }
 0x676   : > { %6438 = vmatpush.bf16.msra.mxu1 %v21859_v31 }
 0x67a   : > { %6439 = vmatpush.bf16.msra.mxu1 %v21879_v11 }
 0x67b   : > { %13994 = vmatmul.msk.bf16.gmra.mxu2 %vm1197_vm2, %v21895_v23 }
 0x67c   : > { %6374 = vmatmul.bf16.gmra.mxu3 %v21940_v22 }
 0x67e   : > { %6440 = vmatpush.bf16.msra.mxu1 %v21891_v62 }
 0x680   : > { %6336 = vmatmul.bf16.gmra.mxu1 %v21893_v4  ;;  %6393 = vmatmul.bf16.gmra.mxu0 %v21893_v4 }
 0x682   : > { %6441 = vmatpush.bf16.msra.mxu1 %v21913_v47 }
 0x686   : > { %6442 = vmatpush.bf16.msra.mxu1 %v21942_v55 }
 0x68a   : > { %6443 = vmatpush.bf16.msra.mxu1 %v13814_v13  ;;  %v2088_v13 = vadd.f32 %v18763_v7, %v18773_v56  ;;  %v25077_v7 = vld [vmem:[#allocation72_spill] sm:$0xff] }
 0x68b   : > { %6426 = vmatmul.bf16.vlgmr.msrb.gmra.mxu2 %v21857_v59  ;;  %v3761_v56 = vadd.f32 %v25077_v7, %v20081_v9  ;;  %v25088_v7 = vld [vmem:[#allocation101_spill] sm:$0xff] }
 0x68c   : > { %6450 = vmatmul.bf16.vlgmr.msrb.gmra.mxu3 %v21893_v4  ;;  %v2107_v25 = vadd.f32 %v25075_v5, %v2088_v13  ;;  %v5444_v13 = vadd.f32 %v21410_v40, %v21419_v8 }
 0x68d   : > { %v3780_v9 = vadd.f32 %v25085_v33, %v3761_v56  ;;  %v14001_v33 = vld [vmem:[%s24910_s4] sm:$0xf] }
 0x68e   : > { %6444 = vmatpush.bf16.msra.mxu1 %v13798_v18 }
 0x690   : > { %13995 = vmatmul.msk.bf16.vlgmr.msrb.gmra.mxu1 %vm1197_vm2, %v21813_v1  ;;  %13997 = vmatmul.msk.bf16.vlgmr.msra.gmra.mxu0 %vm1197_vm2, %v21813_v1  ;;  %v1235_v1 = vadd.f32 %v18087_v61, %v18091_v63  ;;  %v2922_v61 = vadd.f32 %v19427_v57, %v19425_v29  ;;  %v2927_v63 = vadd.f32 %v19438_v6, %v19436_v21  ;;  %v25081_v6 = vld [vmem:[#allocation75_spill] sm:$0xff] }
 0x692   : > { %v2946_v21 = vadd.f32 %v25080_v34, %v2927_v63 }
 0x69b   : > { %6431 = vmatmul.bf16.gmra.mxu2 %v21940_v22  ;;  %v1240_v22 = vadd.f32 %v18097_v10, %v18101_v17 }
 0x69d   : > { %v1259_v60 = vadd.f32 %v18103_v19, %v1240_v22  ;;  %v25078_v19 = vld [vmem:[#allocation96_spill] sm:$0xff] }
 0x69e   : > { %v4600_v28 = vadd.f32 %v25079_v2, %v25078_v19  ;;  %v4624_v19 = vadd.f32 %v25088_v7, %v4605_v14 }
 0x6a0   : > { %13996 = vmatmul.msk.bf16.gmra.mxu1 %vm1197_vm2, %v21895_v23  ;;  %13998 = vmatmul.msk.bf16.gmra.mxu0 %vm1197_vm2, %v21895_v23  ;;  %v1254_v23 = vadd.f32 %v18093_v3, %v1235_v1  ;;  %v25076_v3 = vld [vmem:[#allocation52_spill] sm:$0xff]  ;;  %v5439_v1 = vadd.f32 %v21399_v35, %v21408_v0  ;;  %v5463_v35 = vadd.f32 %v21414_v37, %v5444_v13 }
 0x6a2   : > { %v1445_v17 = vadd.f32 %v18749_v26, %v1254_v23 }
 0x6b0   : > { %6445 = vmatmul.bf16.vlgmr.msra.gmra.mxu1 %v21811_v49  ;;  %v2083_v49 = vadd.f32 %v18751_v45, %v18761_v41  ;;  %v1453_v45 = vadd.f32 %v18749_v26, %v1259_v60  ;;  %v2941_v41 = vadd.f32 %v25076_v3, %v2922_v61  ;;  %v25087_v61 = vld [vmem:[#allocation97_spill] sm:$0xff] }
 0x6b1   : > { %v4619_v63 = vadd.f32 %v25087_v61, %v4600_v28 }
 0x6b2   : > { %v2102_v10 = vadd.f32 %v18757_v32, %v2083_v49  ;;  %v25082_v32 = vld [vmem:[#allocation76_spill] sm:$0xff]  ;;  %v2292_v22 = vadd.f32 %v2107_v25, %v1453_v45  ;;  %v25086_v49 = vld [vmem:[#allocation77_spill] sm:$0xff] }
 0x6b3   : > { %v3766_v18 = vadd.f32 %v25082_v32, %v25081_v6 }
 0x6b4   : > { %v2284_v38 = vadd.f32 %v2102_v10, %v1445_v17  ;;  %v3131_v3 = vadd.f32 %v2946_v21, %v2292_v22  ;;  %v5458_v17 = vadd.f32 %v21403_v50, %v5439_v1 }
 0x6b5   : > { %v3785_v23 = vadd.f32 %v25086_v49, %v3766_v18  ;;  %v25089_v49 = vld [vmem:[#allocation12_spill] sm:$0xff] }
 0x6b6   : > { %v3123_v60 = vadd.f32 %v2941_v41, %v2284_v38 }
 0x6b8   : > { %v3962_v10 = vadd.f32 %v3780_v9, %v3123_v60  ;;  %v16719_v9 = vld [vmem:[%s24910_s4] sm:$0x30] }
 0x6ba   : > { %v4801_v0 = vadd.f32 %v4619_v63, %v3962_v10  ;;  %v22117_v63 = vor.u32 %v16719_v9, %v14001_v33  ;;  %v25094_v10 = vld [vmem:[#allocation38_spill] sm:$0xff]  ;;  %v25110_v33 = vld [vmem:[#allocation57_spill] sm:$0xff] }
 0x6bc   : > { %v5640_v28 = vadd.f32 %v5458_v17, %v4801_v0  ;;  %v25097_v0 = vld [vmem:[#allocation14_spill] sm:$0xff] }
 0x6cd   : > { %v6256_v55 = vpop.f32.mrf.mxu1  ;;  %v22049_v31 = vpop.f32.mrf.mxu0 }
 0x6ce   : > { %v6275_v44 = vpop.f32.mrf.mxu2 }
 0x6cf   : > { %v6294_v59 = vpop.f32.mrf.mxu3  ;;  %v6276_v56 = vadd.f32 %v6275_v44, %v6256_v55 }
 0x6d5   : > { %v6258_v11 = vpop.f32.mrf.mxu1  ;;  %v22055_v47 = vpop.f32.mrf.mxu0 }
 0x6d6   : > { %v6277_v62 = vpop.f32.mrf.mxu2 }
 0x6d7   : > { %v6296_v4 = vpop.f32.mrf.mxu3  ;;  %v6278_v5 = vadd.f32 %v6277_v62, %v6258_v11  ;;  %v6295_v62 = vadd.f32 %v6294_v59, %v6276_v56  ;;  %v25095_v56 = vld [vmem:[#allocation32_spill] sm:$0xff] }
 0x6d9   : > { %v6297_v25 = vadd.f32 %v6296_v4, %v6278_v5  ;;  %v6475_v37 = vadd.f32 %v6295_v62, %v21406_v54  ;;  %v25091_v5 = vld [vmem:[#allocation13_spill] sm:$0xff]  ;;  %v25101_v62 = vld [vmem:[#allocation55_spill] sm:$0xff] }
 0x6db   : > { %v6479_v50 = vadd.f32 %v6297_v25, %v5640_v28  ;;  %v6507_v14 = vmul.f32 0.01, %v6475_v37  ;;  %vm6491_vm7 = vcmp.gt.f32.partialorder %v6475_v37, 0.0  ;;  %v25102_v28 = vld [vmem:[#allocation60_spill] sm:$0xff] }
 0x6dd   : > { %v6261_v29 = vpop.f32.mrf.mxu1  ;;  %v22081_v20 = vpop.f32.mrf.mxu0  ;;  %v6511_v32 = vmul.f32 0.01, %v6479_v50  ;;  %vm6495_vm5 = vcmp.gt.f32.partialorder %v6479_v50, 0.0  ;;  %v6523_v1 = vsel %vm6491_vm7, %v6475_v37, %v6507_v14  ;;  %v25106_v37 = vld [vmem:[#allocation39_spill] sm:$0xff] }
 0x6de   : > { %v6280_v57 = vpop.f32.mrf.mxu2 }
 0x6df   : > { %v6281_v15 = vadd.f32 %v6280_v57, %v6261_v29  ;;  %v6299_v26 = vpop.f32.mrf.mxu3  ;;  %v3970_v29 = vadd.f32 %v3785_v23, %v3131_v3  ;;  %v25090_v23 = vld [vmem:[#allocation15_spill] sm:$0xff] }
 0x6e0   : > { %v1292_v13 = vadd.f32 %v25090_v23, %v25089_v49  ;;  %v25092_v3 = vld [vmem:[#allocation19_spill] sm:$0xff]  ;;  %v25112_v49 = vld [vmem:[#allocation104_spill] sm:$0xff] }
 0x6e1   : > { %v6300_v2 = vadd.f32 %v6299_v26, %v6281_v15  ;;  %v4809_v40 = vadd.f32 %v4624_v19, %v3970_v29  ;;  %v6527_v26 = vsel %vm6495_vm5, %v6479_v50, %v6511_v32  ;;  %v1297_v7 = vadd.f32 %v25092_v3, %v25091_v5  ;;  %v25096_v29 = vld [vmem:[#allocation42_spill] sm:$0xff] }
 0x6e2   : > { %v22113_v22 = vpack.c.bf16 %v6527_v26, %v6523_v1  ;;  %v1311_v25 = vadd.f32 %v25097_v0, %v1292_v13  ;;  %v25104_v50 = vld [vmem:[#allocation74_spill] sm:$0xff]  ;;  %vm6944_vm5 = vcmask 261120  }
 0x6e3   : > { %v6483_v8 = vadd.f32 %v6300_v2, %v21417_v53  ;;  %v5648_v21 = vadd.f32 %v5463_v35, %v4809_v40  ;;  %v25093_v2 = vld [vmem:[#allocation31_spill] sm:$0xff]  ;;  %v2145_v35 = vadd.f32 %v25096_v29, %v25095_v56  ;;  %v25107_v32 = vld [vmem:[#allocation78_spill] sm:$0xff] }
 0x6e4   : > { %v2140_v17 = vadd.f32 %v25094_v10, %v25093_v2  ;;  %v25111_v1 = vld [vmem:[#allocation98_spill] sm:$0xff] }
 0x6e5   : > { %v6263_v45 = vpop.f32.mrf.mxu1  ;;  %v22094_v11 = vpop.f32.mrf.mxu0  ;;  %v6515_v55 = vmul.f32 0.01, %v6483_v8  ;;  %vm6499_vm3 = vcmp.gt.f32.partialorder %v6483_v8, 0.0  ;;  %v4657_v23 = vadd.f32 %v25112_v49, %v25111_v1  ;;  %v25114_v10 = vld [vmem:[#allocation102_spill] sm:$0xff] }
 0x6e6   : > { %v6282_v57 = vpop.f32.mrf.mxu2 }
 0x6e7   : > { %v6283_v41 = vadd.f32 %v6282_v57, %v6263_v45  ;;  %v6301_v34 = vpop.f32.mrf.mxu3  ;;  %v6531_v53 = vsel %vm6499_vm3, %v6483_v8, %v6515_v55  ;;  %v25098_v45 = vld [vmem:[#allocation53_spill] sm:$0xff]  ;;  %v25099_v57 = vld [vmem:[#allocation56_spill] sm:$0xff]  ;;  %v25100_v8 = vld [vmem:[#allocation18_spill] sm:$0xff] }
 0x6e8   : > { %v2979_v40 = vadd.f32 %v25099_v57, %v25098_v45  ;;  %v25105_v55 = vld [vmem:[#allocation79_spill] sm:$0xff]  ;;  %v5496_v57 = vadd.f32 %v21438_v12, %v21401_v39 }
 0x6e9   : > { %v6302_v6 = vadd.f32 %v6301_v34, %v6283_v41  ;;  %v1316_v41 = vadd.f32 %v25100_v8, %v1297_v7  ;;  %v2984_v34 = vadd.f32 %v25102_v28, %v25101_v62  ;;  %v25113_v7 = vld [vmem:[#allocation61_spill] sm:$0xff]  ;;  %v25117_v8 = vld [vmem:[#allocation84_spill] sm:$0xff] }
 0x6ea   : > { %v2998_v9 = vadd.f32 %v25110_v33, %v2979_v40 }
 0x6eb   : > { %v6487_v44 = vadd.f32 %v6302_v6, %v5648_v21  ;;  %v25103_v21 = vld [vmem:[#allocation35_spill] sm:$0xff]  ;;  %v3003_v2 = vadd.f32 %v25113_v7, %v2984_v34 }
 0x6ec   : > { %v2159_v6 = vadd.f32 %v25103_v21, %v2140_v17  ;;  %v25115_v17 = vld [vmem:[#allocation108_spill] sm:$0xff]  ;;  %v25118_v34 = vld [vmem:[#allocation103_spill] sm:$0xff] }
 0x6ed   : > { %vm6503_vm4 = vcmp.gt.f32.partialorder %v6487_v44, 0.0  ;;  %v6519_v4 = vmul.f32 0.01, %v6487_v44  ;;  %v6332_v18 = vpop.f32.mrf.mxu1  ;;  %v22099_v59 = vpop.f32.mrf.mxu0  ;;  %v4662_v56 = vadd.f32 %v25115_v17, %v25114_v10  ;;  %v4676_v21 = vadd.f32 %v25118_v34, %v4657_v23  ;;  %v25120_v10 = vld [vmem:[#allocation16_spill] sm:$0xff]  ;;  %v25121_v17 = vld [vmem:[#allocation17_spill] sm:$0xff] }
 0x6ee   : > { %v22097_v46 = vpop.f32.mrf.mxu2  ;;  %v6333_v39 = vadd.f32 %v6332_v18, %v22049_v31  ;;  %v25127_v34 = vld [vmem:[#allocation28_spill] sm:$0xff] }
 0x6ef   : > { %v6535_v16 = vsel %vm6503_vm4, %v6487_v44, %v6519_v4  ;;  %v22104_v54 = vpop.f32.mrf.mxu3  ;;  %v3818_v44 = vadd.f32 %v25105_v55, %v25104_v50  ;;  %v2164_v4 = vadd.f32 %v25106_v37, %v2145_v35  ;;  %v25119_v55 = vld [vmem:[#allocation107_spill] sm:$0xff] }
 0x6f0   : > { %v6543_v15 = vpack.c.bf16 %v6535_v16, %v6531_v53  ;;  %v25108_v53 = vld [vmem:[#allocation83_spill] sm:$0xff]  ;;  %v4681_v37 = vadd.f32 %v25119_v55, %v4662_v56  ;;  %v1349_v56 = vadd.f32 %v25121_v17, %v25120_v10  ;;  %v25143_v10 = vld [vmem:[#allocation64_spill] sm:$0xff] }
 0x6f1   : > { %v3823_v16 = vadd.f32 %v25108_v53, %v25107_v32 }
 0x6f2   : > { %v22102_v38 = vsel %vm6559_vm6, %v6543_v15, 0  ;;  %v25109_v15 = vld [vmem:[#allocation34_spill] sm:$0xff] }
 0x6f3   : > { %6578 = vmatpush.bf16.msrb.mxu1 %v22102_v38  ;;  %v1446_v26 = vadd.f32 %v25109_v15, %v1311_v25  ;;  %v1454_v3 = vadd.f32 %v25109_v15, %v1316_v41  ;;  %v25116_v25 = vld [vmem:[#allocation80_spill] sm:$0xff]  ;;  %v3842_v62 = vadd.f32 %v25117_v8, %v3823_v16  ;;  %v5501_v41 = vadd.f32 %v21535_v24, %v21412_v51 }
 0x6f4   : > { %v3837_v45 = vadd.f32 %v25116_v25, %v3818_v44  ;;  %v5515_v44 = vadd.f32 %v21423_v58, %v5496_v57  ;;  %v6352_v58 = vadd.f32 %v22097_v46, %v6333_v39  ;;  %v25124_v25 = vld [vmem:[#allocation27_spill] sm:$0xff]  ;;  %v25133_v39 = vld [vmem:[#allocation49_spill] sm:$0xff] }
 0x6f5   : > { %v6334_v60 = vpop.f32.mrf.mxu1  ;;  %v22121_v19 = vpop.f32.mrf.mxu0  ;;  %v2285_v0 = vadd.f32 %v2159_v6, %v1446_v26  ;;  %v2293_v40 = vadd.f32 %v2164_v4, %v1454_v3  ;;  %v5520_v4 = vadd.f32 %v21490_v43, %v5501_v41  ;;  %v25126_v41 = vld [vmem:[#allocation24_spill] sm:$0xff] }
 0x6f6   : > { %v6353_v61 = vpop.f32.mrf.mxu2  ;;  %v6335_v50 = vadd.f32 %v6334_v60, %v22055_v47 }
 0x6f7   : > { %6579 = vmatpush.bf16.msrb.mxu1 %v22113_v22  ;;  %v22142_v14 = vpop.f32.mrf.mxu3  ;;  %v3124_v28 = vadd.f32 %v2998_v9, %v2285_v0 }
 0x6f8   : > { %v6354_v16 = vadd.f32 %v6353_v61, %v6335_v50  ;;  %v6476_v61 = vadd.f32 %v6352_v58, %v21436_v30  ;;  %v25123_v30 = vld [vmem:[#allocation21_spill] sm:$0xff]  ;;  %v25137_v58 = vld [vmem:[#allocation58_spill] sm:$0xff] }
 0x6f9   : > { %v3963_v32 = vadd.f32 %v3837_v45, %v3124_v28  ;;  %v25125_v45 = vld [vmem:[#allocation29_spill] sm:$0xff]  ;;  %v1368_v28 = vadd.f32 %v25126_v41, %v1349_v56  ;;  %v25144_v56 = vld [vmem:[#allocation68_spill] sm:$0xff] }
 0x6fa   : > { %14003 = vmatmul.msk.bf16.vlgmr.msrb.gmra.mxu1 %vm6555_vm8, %v22117_v63  ;;  %v6508_v7 = vmul.f32 0.01, %v6476_v61  ;;  %v1411_v57 = vadd.f32 %v25125_v45, %v25124_v25  ;;  %vm6492_vm12 = vcmp.gt.f32.partialorder %v6476_v61, 0.0  ;;  %v25128_v50 = vld [vmem:[#allocation37_spill] sm:$0xff]  ;;  %v25147_v45 = vld [vmem:[#allocation22_spill] sm:$0xff] }
 0x6fb   : > { %v4802_v53 = vadd.f32 %v4676_v21, %v3963_v32 }
 0x6fd   : > { %v6337_v13 = vpop.f32.mrf.mxu1  ;;  %v22153_v35 = vpop.f32.mrf.mxu0  ;;  %v5641_v9 = vadd.f32 %v5515_v44, %v4802_v53  ;;  %v25132_v44 = vld [vmem:[#allocation48_spill] sm:$0xff]  ;;  %v25134_v53 = vld [vmem:[#allocation30_spill] sm:$0xff] }
 0x6fe   : > { %v6356_v5 = vpop.f32.mrf.mxu2  ;;  %v6338_v29 = vadd.f32 %v6337_v13, %v22081_v20  ;;  %v3132_v20 = vadd.f32 %v3003_v2, %v2293_v40 }
 0x6ff   : > { %v22168_v47 = vpop.f32.mrf.mxu3  ;;  %v6480_v1 = vadd.f32 %v6354_v16, %v5641_v9  ;;  %v1430_v16 = vadd.f32 %v25134_v53, %v1411_v57  ;;  %v25138_v9 = vld [vmem:[#allocation59_spill] sm:$0xff] }
 0x700   : > { %v6357_v6 = vadd.f32 %v6356_v5, %v6338_v29  ;;  %v3971_v12 = vadd.f32 %v3842_v62, %v3132_v20  ;;  %v25122_v29 = vld [vmem:[#allocation20_spill] sm:$0xff]  ;;  %v25154_v53 = vld [vmem:[#allocation71_spill] sm:$0xff] }
 0x701   : > { %vm6496_vm11 = vcmp.gt.f32.partialorder %v6480_v1, 0.0  ;;  %v1354_v0 = vadd.f32 %v25123_v30, %v25122_v29  ;;  %v25129_v20 = vld [vmem:[#allocation36_spill] sm:$0xff]  ;;  %v25145_v30 = vld [vmem:[#allocation69_spill] sm:$0xff]  ;;  %v1456_v57 = vadd.f32 %v25147_v45, %v1430_v16 }
 0x702   : > { %v4810_v15 = vadd.f32 %v4681_v37, %v3971_v12  ;;  %v6484_v26 = vadd.f32 %v6357_v6, %v21521_v36  ;;  %v6512_v36 = vmul.f32 0.01, %v6480_v1  ;;  %v2197_v55 = vadd.f32 %v25129_v20, %v25128_v50  ;;  %v25130_v37 = vld [vmem:[#allocation41_spill] sm:$0xff]  ;;  %v25131_v6 = vld [vmem:[#allocation40_spill] sm:$0xff]  ;;  %v25151_v20 = vld [vmem:[#allocation82_spill] sm:$0xff] }
 0x703   : > { %v1373_v21 = vadd.f32 %v25127_v34, %v1354_v0  ;;  %v2202_v32 = vadd.f32 %v25131_v6, %v25130_v37  ;;  %v2259_v12 = vadd.f32 %v25133_v39, %v25132_v44  ;;  %v25146_v0 = vld [vmem:[#allocation70_spill] sm:$0xff]  ;;  %v25149_v34 = vld [vmem:[#allocation93_spill] sm:$0xff] }
 0x704   : > { %v5649_v31 = vadd.f32 %v5520_v4, %v4810_v15  ;;  %v6516_v43 = vmul.f32 0.01, %v6484_v26  ;;  %vm6500_vm9 = vcmp.gt.f32.partialorder %v6484_v26, 0.0  ;;  %v6528_v8 = vsel %vm6496_vm11, %v6480_v1, %v6512_v36  ;;  %v25140_v1 = vld [vmem:[#allocation63_spill] sm:$0xff]  ;;  %v25150_v50 = vld [vmem:[#allocation81_spill] sm:$0xff]  ;;  %v25153_v6 = vld [vmem:[#allocation86_spill] sm:$0xff] }
 0x705   : > { %v6339_v51 = vpop.f32.mrf.mxu1  ;;  %v22171_v33 = vpop.f32.mrf.mxu0  ;;  %v6524_v4 = vsel %vm6492_vm12, %v6476_v61, %v6508_v7  ;;  %v25141_v36 = vld [vmem:[#allocation43_spill] sm:$0xff]  ;;  %v3098_v25 = vadd.f32 %v25146_v0, %v25145_v30  ;;  %v25152_v37 = vld [vmem:[#allocation85_spill] sm:$0xff]  ;;  %v25164_v30 = vld [vmem:[#allocation112_spill] sm:$0xff] }
 0x706   : > { %v6358_v24 = vpop.f32.mrf.mxu2  ;;  %v6340_v60 = vadd.f32 %v6339_v51, %v22094_v11  ;;  %v6532_v11 = vsel %vm6500_vm9, %v6484_v26, %v6516_v43  ;;  %v22202_v51 = vpack.c.bf16 %v6528_v8, %v6524_v4  ;;  %v25136_v26 = vld [vmem:[#allocation50_spill] sm:$0xff]  ;;  %v1455_v61 = vadd.f32 %v25141_v36, %v1373_v21  ;;  %v25142_v7 = vld [vmem:[#allocation51_spill] sm:$0xff] }
 0x707   : > { %v22187_v40 = vpop.f32.mrf.mxu3  ;;  %v3117_v16 = vadd.f32 %v25154_v53, %v3098_v25  ;;  %v25165_v25 = vld [vmem:[#allocation116_spill] sm:$0xff] }
 0x708   : > { %v6359_v18 = vadd.f32 %v6358_v24, %v6340_v60  ;;  %v25135_v24 = vld [vmem:[#allocation47_spill] sm:$0xff]  ;;  %v2221_v60 = vadd.f32 %v25136_v26, %v2202_v32  ;;  %v3880_v32 = vadd.f32 %v25153_v6, %v25152_v37 }
 0x709   : > { %v2216_v15 = vadd.f32 %v25135_v24, %v2197_v55  ;;  %v3875_v55 = vadd.f32 %v25151_v20, %v25150_v50  ;;  %v25155_v24 = vld [vmem:[#allocation87_spill] sm:$0xff]  ;;  %v25168_v20 = vld [vmem:[#allocation129_spill] sm:$0xff] }
 0x70a   : > { %v6488_v49 = vadd.f32 %v6359_v18, %v5649_v31  ;;  %v3036_v31 = vadd.f32 %v25138_v9, %v25137_v58  ;;  %v25139_v18 = vld [vmem:[#allocation62_spill] sm:$0xff]  ;;  %v2294_v41 = vadd.f32 %v2221_v60, %v1455_v61  ;;  %v25156_v26 = vld [vmem:[#allocation91_spill] sm:$0xff]  ;;  %v25157_v58 = vld [vmem:[#allocation105_spill] sm:$0xff] }
 0x70b   : > { %v3041_v43 = vadd.f32 %v25140_v1, %v25139_v18  ;;  %v3899_v60 = vadd.f32 %v25156_v26, %v3880_v32  ;;  %v25158_v9 = vld [vmem:[#allocation106_spill] sm:$0xff]  ;;  %v25159_v18 = vld [vmem:[#allocation109_spill] sm:$0xff]  ;;  %v25162_v61 = vld [vmem:[#allocation115_spill] sm:$0xff] }
 0x70c   : > { %vm6504_vm10 = vcmp.gt.f32.partialorder %v6488_v49, 0.0  ;;  %v6520_v23 = vmul.f32 0.01, %v6488_v49  ;;  %v3055_v17 = vadd.f32 %v25143_v10, %v3036_v31  ;;  %v4714_v31 = vadd.f32 %v25158_v9, %v25157_v58  ;;  %v25160_v1 = vld [vmem:[#allocation110_spill] sm:$0xff]  ;;  %v25167_v50 = vld [vmem:[#allocation127_spill] sm:$0xff] }
 0x70d   : > { %v22175_v13 = vpop.f32.mrf.mxu1  ;;  %v22179_v46 = vpop.f32.mrf.mxu0  ;;  %v3060_v29 = vadd.f32 %v25144_v56, %v3041_v43  ;;  %v4719_v43 = vadd.f32 %v25160_v1, %v25159_v18 }
 0x70e   : > { %v22177_v5 = vpop.f32.mrf.mxu2  ;;  %v6536_v3 = vsel %vm6504_vm10, %v6488_v49, %v6520_v23  ;;  %v4733_v0 = vadd.f32 %v25164_v30, %v4714_v31  ;;  %vm9103_vm10 = vcmask 89088  }
 0x70f   : > { %v6544_v2 = vpack.c.bf16 %v6536_v3, %v6532_v11  ;;  %v1447_v11 = vadd.f32 %v25141_v36, %v1368_v28  ;;  %v25148_v28 = vld [vmem:[#allocation92_spill] sm:$0xff]  ;;  %v6451_v44 = vpop.f32.mrf.mxu3  ;;  %v3133_v4 = vadd.f32 %v3060_v29, %v2294_v41  ;;  %v25161_v36 = vld [vmem:[#allocation94_spill] sm:$0xff] }
 0x710   : > { %v3937_v21 = vadd.f32 %v25149_v34, %v25148_v28  ;;  %v25166_v34 = vld [vmem:[#allocation119_spill] sm:$0xff] }
 0x711   : > { %v22190_v62 = vsel %vm6559_vm6, %v6544_v2, 0  ;;  %v2278_v2 = vadd.f32 %v25142_v7, %v2259_v12  ;;  %v2286_v8 = vadd.f32 %v2216_v15, %v1447_v11  ;;  %v3894_v15 = vadd.f32 %v25155_v24, %v3875_v55  ;;  %v25163_v7 = vld [vmem:[#allocation117_spill] sm:$0xff]  ;;  %v25171_v24 = vld [vmem:[#allocation118_spill] sm:$0xff] }
 0x712   : > { %6592 = vmatpush.bf16.msra.mxu2 %v22190_v62  ;;  %v3956_v11 = vadd.f32 %v25161_v36, %v3937_v21  ;;  %v4776_v10 = vadd.f32 %v25163_v7, %v25162_v61  ;;  %v5558_v21 = vadd.f32 %v25166_v34, %v21503_v48  ;;  %v25170_v55 = vld [vmem:[#allocation25_spill] sm:$0xff]  ;;  %v3972_v53 = vadd.f32 %v3899_v60, %v3133_v4 }
 0x713   : > { %v2295_v39 = vadd.f32 %v2278_v2, %v1456_v57  ;;  %v3125_v12 = vadd.f32 %v3055_v17, %v2286_v8  ;;  %v6390_v2 = vadd.f32 %v22099_v59, %v22104_v54  ;;  %v6395_v17 = vadd.f32 %v22153_v35, %v22168_v47  ;;  %v25169_v47 = vld [vmem:[#allocation23_spill] sm:$0xff] }
 0x714   : > { %v4738_v57 = vadd.f32 %v25165_v25, %v4719_v43  ;;  %v5553_v8 = vadd.f32 %v21425_v52, %v21427_v42  ;;  %v5615_v59 = vadd.f32 %v25168_v20, %v25167_v50  ;;  %v1406_v37 = vadd.f32 %v25170_v55, %v25169_v47  ;;  %v25172_v52 = vld [vmem:[#allocation125_spill] sm:$0xff]  ;;  %v25174_v43 = vld [vmem:[#allocation122_spill] sm:$0xff] }
 0x715   : > { %v6410_v49 = vpop.f32.mrf.mxu1  ;;  %v22214_v3 = vpop.f32.mrf.mxu0  ;;  %v6409_v54 = vadd.f32 %v22175_v13, %v6390_v2  ;;  %v3134_v6 = vadd.f32 %v3117_v16, %v2295_v39  ;;  %v3964_v32 = vadd.f32 %v3894_v15, %v3125_v12  ;;  %v4795_v26 = vadd.f32 %v25171_v24, %v4776_v10  ;;  %v25175_v12 = vld [vmem:[#allocation128_spill] sm:$0xff]  ;;  %v25176_v16 = vld [vmem:[#allocation26_spill] sm:$0xff] }
 0x716   : > { %v22210_v23 = vpop.f32.mrf.mxu2  ;;  %6593 = vmatpush.bf16.msra.mxu2 %v22202_v51  ;;  %v5572_v42 = vadd.f32 %v25172_v52, %v5553_v8  ;;  %v6392_v48 = vadd.f32 %v22121_v19, %v22142_v14  ;;  %v4811_v18 = vadd.f32 %v4738_v57, %v3972_v53  ;;  %v5634_v1 = vadd.f32 %v22047_v27, %v5615_v59  ;;  %v14065_v19 = vld [vmem:[%s24911_s5 + $0x70] sm:$0xf]  ;;  %v25177_v14 = vld [vmem:[#allocation44_spill] sm:$0xff] }
 0x717   : > { %v3973_v9 = vadd.f32 %v3956_v11, %v3134_v6  ;;  %v4803_v31 = vadd.f32 %v4733_v0, %v3964_v32  ;;  %v22263_v36 = vadd.f32 %v6409_v54, %v25174_v43  ;;  %v1425_v15 = vadd.f32 %v25176_v16, %v1406_v37  ;;  %v6453_v61 = vpop.f32.mrf.mxu3  ;;  %v25178_v11 = vld [vmem:[#allocation45_spill] sm:$0xff]  ;;  %v25180_v59 = vld [vmem:[#allocation46_spill] sm:$0xff]  ;;  %v25183_v37 = vld [vmem:[#allocation88_spill] sm:$0xff] }
 0x718   : > { %v6411_v39 = vadd.f32 %v6410_v49, %v6392_v48  ;;  %v6397_v60 = vadd.f32 %v22171_v33, %v22187_v40  ;;  %v2254_v7 = vadd.f32 %v25178_v11, %v25177_v14  ;;  %v14057_v33 = vld [vmem:[%s24911_s5 + $0x60] sm:$0xf]  ;;  %v16733_v40 = vld [vmem:[%s24911_s5 + $0x64] sm:$0xf0]  ;;  %v25182_v47 = vld [vmem:[#allocation66_spill] sm:$0xff] }
 0x719   : > { %14004 = vmatmul.msk.bf16.vlgmr.msra.gmra.mxu2 %vm6555_vm8, %v22117_v63  ;;  %v4812_v27 = vadd.f32 %v4795_v26, %v3973_v9  ;;  %v5642_v10 = vadd.f32 %v5572_v42, %v4803_v31  ;;  %vm6493_vm13 = vcmp.gt.f32.partialorder %v22263_v36, 0.0  ;;  %v14058_v20 = vor.u32 %v16733_v40, %v14057_v33  ;;  %v25184_v6 = vld [vmem:[#allocation89_spill] sm:$0xff]  ;;  %v16731_v26 = vld [vmem:[%s24911_s5 + $0x54] sm:$0xf0] }
 0x71a   : > { %v2273_v54 = vadd.f32 %v25180_v59, %v2254_v7  ;;  %v3932_v32 = vadd.f32 %v25184_v6, %v25183_v37  ;;  %v6509_v53 = vmul.f32 0.01, %v22263_v36  ;;  %v14049_v24 = vld [vmem:[%s24911_s5 + $0x50] sm:$0xf]  ;;  %v25185_v43 = vld [vmem:[#allocation67_spill] sm:$0xff] }
 0x71b   : > { %v5651_v8 = vadd.f32 %v5634_v1, %v4812_v27  ;;  %v1448_v1 = vadd.f32 %v25147_v45, %v1425_v15  ;;  %v25187_v16 = vld [vmem:[#allocation113_spill] sm:$0xff]  ;;  %v16751_v11 = vld [vmem:[%s24911_s5 + $0xf4] sm:$0xf0]  ;;  %v14025_v37 = vld [vmem:[%s24911_s5 + $0x20] sm:$0xf] }
 0x71c   : > { %v14129_v14 = vld [vmem:[%s24911_s5 + $0xf0] sm:$0xf] }
 0x71d   : > { %v6413_v56 = vpop.f32.mrf.mxu1  ;;  %v6470_v28 = vpop.f32.mrf.mxu0  ;;  %v14130_v27 = vor.u32 %v16751_v11, %v14129_v14  ;;  %v25189_v40 = vld [vmem:[#allocation121_spill] sm:$0xff]  ;;  %v16732_v11 = vld [vmem:[%s24911_s5 + $0x64] sm:$0xf] }
 0x71e   : > { %v6432_v29 = vpop.f32.mrf.mxu2  ;;  %v6414_v35 = vadd.f32 %v6413_v56, %v6395_v17  ;;  %v16735_v56 = vld [vmem:[%s24911_s5 + $0x74] sm:$0xf0] }
 0x71f   : > { %v6452_v41 = vadd.f32 %v6451_v44, %v6432_v29  ;;  %v25173_v44 = vld [vmem:[#allocation130_spill] sm:$0xff]  ;;  %v14066_v57 = vor.u32 %v16735_v56, %v14065_v19  ;;  %6962 = vmatpush.bf16.msrb.mxu2 %v14130_v27  ;;  %v14051_v27 = vld [vmem:[%s24911_s5 + $0x58] sm:$0xf0] }
 0x720   : > { %v5577_v58 = vadd.f32 %v25173_v44, %v5558_v21  ;;  %v6485_v4 = vadd.f32 %v6414_v35, %v25175_v12  ;;  %v25179_v29 = vld [vmem:[#allocation126_spill] sm:$0xff]  ;;  %v25181_v35 = vld [vmem:[#allocation65_spill] sm:$0xff]  ;;  %v25186_v12 = vld [vmem:[#allocation111_spill] sm:$0xff] }
 0x721   : > { %v6471_v13 = vadd.f32 %v6470_v28, %v6452_v41  ;;  %v6481_v41 = vadd.f32 %v6411_v39, %v5642_v10  ;;  %6948 = vmatpush.bf16.msrb.mxu0 %v14066_v57  ;;  %v3093_v55 = vadd.f32 %v25182_v47, %v25181_v35  ;;  %v2287_v10 = vadd.f32 %v2273_v54, %v1448_v1  ;;  %v25188_v56 = vld [vmem:[#allocation90_spill] sm:$0xff]  ;;  %v25192_v35 = vld [vmem:[#allocation124_spill] sm:$0xff] }
 0x722   : > { %v5650_v2 = vadd.f32 %v5577_v58, %v4811_v18  ;;  %v6517_v28 = vmul.f32 0.01, %v6485_v4  ;;  %vm6501_vm14 = vcmp.gt.f32.partialorder %v6485_v4, 0.0  ;;  %v14050_v18 = vor.u32 %v16731_v26, %v14049_v24  ;;  %v25193_v26 = vld [vmem:[#allocation120_spill] sm:$0xff] }
 0x723   : > { %v6486_v30 = vadd.f32 %v6471_v13, %v25179_v29  ;;  %vm6497_vm0 = vcmp.gt.f32.partialorder %v6481_v41, 0.0  ;;  %v6513_v58 = vmul.f32 0.01, %v6481_v41  ;;  %v14041_v13 = vld [vmem:[%s24911_s5 + $0x40] sm:$0xf]  ;;  %v3112_v39 = vadd.f32 %v25185_v43, %v3093_v55 }
 0x724   : > { %v6533_v48 = vsel %vm6501_vm14, %v6485_v4, %v6517_v28  ;;  %v16729_v4 = vld [vmem:[%s24911_s5 + $0x44] sm:$0xf0]  ;;  %v3951_v33 = vadd.f32 %v25188_v56, %v3932_v32  ;;  %v25190_v29 = vld [vmem:[#allocation123_spill] sm:$0xff]  ;;  %v16726_v56 = vld [vmem:[%s24911_s5 + $0x34] sm:$0xf]  ;;  %vm9841_vm14 = vcmask 1043456  }
 0x725   : > { %v6415_v17 = vpop.f32.mrf.mxu1  ;;  %v6472_v34 = vpop.f32.mrf.mxu0  ;;  %v6518_v52 = vmul.f32 0.01, %v6486_v30  ;;  %vm6502_vm1 = vcmp.gt.f32.partialorder %v6486_v30, 0.0  ;;  %6949 = vmatpush.bf16.msrb.mxu0 %v14058_v20  ;;  %v3126_v57 = vadd.f32 %v3112_v39, %v2287_v10  ;;  %v14121_v28 = vld [vmem:[%s24911_s5 + $0xe0] sm:$0xf] }
 0x726   : > { %v6434_v49 = vpop.f32.mrf.mxu2  ;;  %v6416_v0 = vadd.f32 %v6415_v17, %v6397_v60  ;;  %v4771_v60 = vadd.f32 %v25187_v16, %v25186_v12  ;;  %v16725_v32 = vld [vmem:[%s24911_s5 + $0x24] sm:$0xf0] }
 0x727   : > { %v6454_v25 = vadd.f32 %v6453_v61, %v6434_v49  ;;  %v6534_v45 = vsel %vm6502_vm1, %v6486_v30, %v6518_v52  ;;  %v14042_v30 = vor.u32 %v16729_v4, %v14041_v13  ;;  %v3965_v54 = vadd.f32 %v3951_v33, %v3126_v57  ;;  %v16721_v39 = vld [vmem:[%s24911_s5 + $0x4] sm:$0xf0]  ;;  %v14035_v33 = vld [vmem:[%s24911_s5 + $0x38] sm:$0xf0]  ;;  %v16722_v57 = vld [vmem:[%s24911_s5 + $0x14] sm:$0xf] }
 0x728   : > { %v6489_v21 = vadd.f32 %v6416_v0, %v5650_v2  ;;  %v6529_v2 = vsel %vm6497_vm0, %v6481_v41, %v6513_v58  ;;  %v5610_v0 = vadd.f32 %v25190_v29, %v25189_v40  ;;  %v14038_v40 = vor.u32 %v16726_v56, %v14035_v33  ;;  %v16724_v29 = vld [vmem:[%s24911_s5 + $0x24] sm:$0xf]  ;;  %v14185_v33 = vld [vmem:[%s24911_s5 + $0x160] sm:$0xf] }
 0x729   : > { %v6473_v50 = vadd.f32 %v6472_v34, %v6454_v25  ;;  %6950 = vmatpush.bf16.msrb.mxu0 %v14050_v18  ;;  %v16727_v25 = vld [vmem:[%s24911_s5 + $0x34] sm:$0xf0]  ;;  %v16749_v34 = vld [vmem:[%s24911_s5 + $0xe4] sm:$0xf0] }
 0x72a   : > { %vm6505_vm15 = vcmp.gt.f32.partialorder %v6489_v21, 0.0  ;;  %v6521_v42 = vmul.f32 0.01, %v6489_v21  ;;  %v5629_v47 = vadd.f32 %v25192_v35, %v5610_v0  ;;  %v16723_v18 = vld [vmem:[%s24911_s5 + $0x14] sm:$0xf0] }
 0x72b   : > { %v6490_v44 = vadd.f32 %v6473_v50, %v5651_v8  ;;  %v6525_v8 = vsel %vm6493_vm13, %v22263_v36, %v6509_v53  ;;  %v14122_v36 = vor.u32 %v16749_v34, %v14121_v28  ;;  %v16747_v53 = vld [vmem:[%s24911_s5 + $0xd4] sm:$0xf0]  ;;  %v14027_v0 = vld [vmem:[%s24911_s5 + $0x28] sm:$0xf0]  ;;  %v14097_v34 = vld [vmem:[%s24911_s5 + $0xb0] sm:$0xf] }
 0x72c   : > { %v6537_v9 = vsel %vm6505_vm15, %v6489_v21, %v6521_v42  ;;  %v25191_v21 = vld [vmem:[#allocation114_spill] sm:$0xff]  ;;  %v22342_v20 = vpack.c.bf16 %v6529_v2, %v6525_v8  ;;  %v16728_v2 = vld [vmem:[%s24911_s5 + $0x44] sm:$0xf]  ;;  %v14019_v8 = vld [vmem:[%s24911_s5 + $0x18] sm:$0xf0]  ;;  %vm9278_vm13 = vcmask 392192  }
 0x72d   : > { %vm6506_vm2 = vcmp.gt.f32.partialorder %v6490_v44, 0.0  ;;  %v6522_v31 = vmul.f32 0.01, %v6490_v44  ;;  %v6446_v61 = vpop.f32.mrf.mxu1  ;;  %v6545_v19 = vpack.c.bf16 %v6537_v9, %v6533_v48  ;;  %v4790_v50 = vadd.f32 %v25191_v21, %v4771_v60  ;;  %6951 = vmatpush.bf16.msrb.mxu0 %v14042_v30  ;;  %6963 = vmatpush.bf16.msrb.mxu2 %v14122_v36  ;;  %v16734_v60 = vld [vmem:[%s24911_s5 + $0x74] sm:$0xf] }
 0x72e   : > { %v6447_v7 = vadd.f32 %v6446_v61, %v22177_v5  ;;  %v14033_v5 = vld [vmem:[%s24911_s5 + $0x30] sm:$0xf]  ;;  %v14026_v9 = vor.u32 %v16725_v32, %v14025_v37  ;;  %v14067_v61 = vld [vmem:[%s24911_s5 + $0x78] sm:$0xf0]  ;;  %v14105_v30 = vld [vmem:[%s24911_s5 + $0xc0] sm:$0xf] }
 0x72f   : > { %v6538_v15 = vsel %vm6506_vm2, %v6490_v44, %v6522_v31  ;;  %v22317_v17 = vsel %vm6559_vm6, %v6545_v19, 0  ;;  %v14034_v55 = vor.u32 %v16727_v25, %v14033_v5  ;;  %v4804_v24 = vadd.f32 %v4790_v50, %v3965_v54  ;;  %v14017_v31 = vld [vmem:[%s24911_s5 + $0x10] sm:$0xf]  ;;  %v16745_v25 = vld [vmem:[%s24911_s5 + $0xc4] sm:$0xf0] }
 0x730   : > { %v6546_v49 = vpack.c.bf16 %v6538_v15, %v6534_v45  ;;  %6606 = vmatpush.bf16.msra.mxu3 %v22317_v17  ;;  %v6466_v59 = vadd.f32 %v22179_v46, %v6447_v7  ;;  %v14113_v46 = vld [vmem:[%s24911_s5 + $0xd0] sm:$0xf]  ;;  %v14018_v43 = vor.u32 %v16723_v18, %v14017_v31  ;;  %v14070_v14 = vor.u32 %v16734_v60, %v14067_v61  ;;  %v14059_v45 = vld [vmem:[%s24911_s5 + $0x68] sm:$0xf0]  ;;  %v16730_v7 = vld [vmem:[%s24911_s5 + $0x54] sm:$0xf] }
 0x731   : > { %v14114_v44 = vor.u32 %v16747_v53, %v14113_v46  ;;  %v5643_v58 = vadd.f32 %v5629_v47, %v4804_v24  ;;  %6952 = vmatpush.bf16.msrb.mxu0 %v14034_v55  ;;  %v14062_v15 = vor.u32 %v16732_v11, %v14059_v45  ;;  %v14054_v10 = vor.u32 %v16730_v7, %v14051_v27  ;;  %v16743_v21 = vld [vmem:[%s24911_s5 + $0xb4] sm:$0xf0]  ;;  %v16720_v36 = vld [vmem:[%s24911_s5 + $0x4] sm:$0xf]  ;;  %v14011_v54 = vld [vmem:[%s24911_s5 + $0x8] sm:$0xf0] }
 0x732   : > { %v22333_v41 = vsel %vm6559_vm6, %v6546_v49, 0  ;;  %v6478_v52 = vadd.f32 %v6466_v59, %v25193_v26  ;;  %v14030_v5 = vor.u32 %v16724_v29, %v14027_v0  ;;  %v14106_v28 = vor.u32 %v16745_v25, %v14105_v30  ;;  %v14089_v47 = vld [vmem:[%s24911_s5 + $0xa0] sm:$0xf]  ;;  %v16741_v55 = vld [vmem:[%s24911_s5 + $0xa4] sm:$0xf0] }
 0x733   : > { %6620 = vmatpush.bf16.msra.mxu1 %v22333_v41  ;;  %6964 = vmatpush.bf16.msrb.mxu2 %v14114_v44  ;;  %v14022_v50 = vor.u32 %v16722_v57, %v14019_v8  ;;  %v14098_v59 = vor.u32 %v16743_v21, %v14097_v34  ;;  %v14014_v35 = vor.u32 %v16720_v36, %v14011_v54  ;;  %v16739_v32 = vld [vmem:[%s24911_s5 + $0x94] sm:$0xf0]  ;;  %v14073_v53 = vld [vmem:[%s24911_s5 + $0x80] sm:$0xf]  ;;  %v16737_v24 = vld [vmem:[%s24911_s5 + $0x84] sm:$0xf0] }
 0x734   : > { %6607 = vmatpush.bf16.msra.mxu3 %v22342_v20  ;;  %v6510_v13 = vmul.f32 0.01, %v6478_v52  ;;  %vm6494_vm3 = vcmp.gt.f32.partialorder %v6478_v52, 0.0  ;;  %v14090_v37 = vor.u32 %v16741_v55, %v14089_v47  ;;  %v16766_v26 = vld [vmem:[%s24911_s5 + $0x174] sm:$0xf] }
 0x735   : > { %v6448_v6 = vpop.f32.mrf.mxu1  ;;  %6953 = vmatpush.bf16.msrb.mxu0 %v14026_v9  ;;  %v16762_v31 = vld [vmem:[%s24911_s5 + $0x154] sm:$0xf]  ;;  %v14179_v18 = vld [vmem:[%s24911_s5 + $0x158] sm:$0xf0]  ;;  %v16756_v60 = vld [vmem:[%s24911_s5 + $0x124] sm:$0xf] }
 0x736   : > { %v6449_v42 = vadd.f32 %v6448_v6, %v22210_v23  ;;  %v6526_v12 = vsel %vm6494_vm3, %v6478_v52, %v6510_v13  ;;  %v14081_v6 = vld [vmem:[%s24911_s5 + $0x90] sm:$0xf]  ;;  %v14074_v52 = vor.u32 %v16737_v24, %v14073_v53  ;;  %v14182_v13 = vor.u32 %v16762_v31, %v14179_v18  ;;  %v14155_v61 = vld [vmem:[%s24911_s5 + $0x128] sm:$0xf0]  ;;  %v16754_v45 = vld [vmem:[%s24911_s5 + $0x114] sm:$0xf] }
 0x737   : > { %14005 = vmatmul.msk.bf16.vlgmr.msra.gmra.mxu3 %vm6555_vm8, %v22117_v63  ;;  %6965 = vmatpush.bf16.msrb.mxu2 %v14106_v28  ;;  %v14082_v46 = vor.u32 %v16739_v32, %v14081_v6  ;;  %v14193_v27 = vld [vmem:[%s24911_s5 + $0x170] sm:$0xf]  ;;  %v16771_v30 = vld [vmem:[%s24911_s5 + $0x194] sm:$0xf0]  ;;  %v14201_v28 = vld [vmem:[%s24911_s5 + $0x180] sm:$0xf] }
 0x738   : > { %v6468_v48 = vadd.f32 %v22214_v3, %v6449_v42  ;;  %v14009_v3 = vld [vmem:[%s24911_s5] sm:$0xf]  ;;  %v14195_v42 = vld [vmem:[%s24911_s5 + $0x178] sm:$0xf0]  ;;  %v14209_v0 = vld [vmem:[%s24911_s5 + $0x190] sm:$0xf] }
 0x739   : > { %6954 = vmatpush.bf16.msrb.mxu0 %v14018_v43  ;;  %v14010_v4 = vor.u32 %v16721_v39, %v14009_v3  ;;  %v14198_v44 = vor.u32 %v16766_v26, %v14195_v42  ;;  %v16758_v3 = vld [vmem:[%s24911_s5 + $0x134] sm:$0xf]  ;;  %v14163_v39 = vld [vmem:[%s24911_s5 + $0x138] sm:$0xf0]  ;;  %v14210_v25 = vor.u32 %v16771_v30, %v14209_v0  ;;  %v16763_v57 = vld [vmem:[%s24911_s5 + $0x154] sm:$0xf0] }
 0x73a   : > { %v6482_v23 = vadd.f32 %v6468_v48, %v5643_v58  ;;  %v16764_v58 = vld [vmem:[%s24911_s5 + $0x164] sm:$0xf]  ;;  %v14187_v48 = vld [vmem:[%s24911_s5 + $0x168] sm:$0xf0]  ;;  %v16769_v34 = vld [vmem:[%s24911_s5 + $0x184] sm:$0xf0] }
 0x73b   : > { %6966 = vmatpush.bf16.msrb.mxu2 %v14098_v59  ;;  %v14190_v9 = vor.u32 %v16764_v58, %v14187_v48  ;;  %v14169_v21 = vld [vmem:[%s24911_s5 + $0x140] sm:$0xf]  ;;  %v16761_v59 = vld [vmem:[%s24911_s5 + $0x144] sm:$0xf0]  ;;  %v16750_v36 = vld [vmem:[%s24911_s5 + $0xf4] sm:$0xf] }
 0x73c   : > { %vm6498_vm4 = vcmp.gt.f32.partialorder %v6482_v23, 0.0  ;;  %v6514_v1 = vmul.f32 0.01, %v6482_v23  ;;  %v14131_v54 = vld [vmem:[%s24911_s5 + $0xf8] sm:$0xf0]  ;;  %vm9837_vm3 = vcmask 72704  }
 0x73d   : > { %6955 = vmatpush.bf16.msrb.mxu0 %v14010_v4  ;;  %v14158_v4 = vor.u32 %v16756_v60, %v14155_v61  ;;  %v14134_v47 = vor.u32 %v16750_v36, %v14131_v54  ;;  %v14161_v55 = vld [vmem:[%s24911_s5 + $0x130] sm:$0xf]  ;;  %v16748_v6 = vld [vmem:[%s24911_s5 + $0xe4] sm:$0xf]  ;;  %v14123_v32 = vld [vmem:[%s24911_s5 + $0xe8] sm:$0xf0] }
 0x73e   : > { %v6530_v16 = vsel %vm6498_vm4, %v6482_v23, %v6514_v1  ;;  %v16760_v23 = vld [vmem:[%s24911_s5 + $0x144] sm:$0xf]  ;;  %v14171_v1 = vld [vmem:[%s24911_s5 + $0x148] sm:$0xf0]  ;;  %v14126_v53 = vor.u32 %v16748_v6, %v14123_v32  ;;  %v14153_v24 = vld [vmem:[%s24911_s5 + $0x120] sm:$0xf] }
 0x73f   : > { %v22383_v19 = vpack.c.bf16 %v6530_v16, %v6526_v12  ;;  %6967 = vmatpush.bf16.msrb.mxu2 %v14090_v37  ;;  %v14174_v43 = vor.u32 %v16760_v23, %v14171_v1  ;;  %v14166_v16 = vor.u32 %v16758_v3, %v14163_v39  ;;  %v16759_v37 = vld [vmem:[%s24911_s5 + $0x134] sm:$0xf0]  ;;  %v16757_v26 = vld [vmem:[%s24911_s5 + $0x124] sm:$0xf0]  ;;  %v14115_v42 = vld [vmem:[%s24911_s5 + $0xd8] sm:$0xf0] }
 0x740   : > { %v14221_v48 = vld [vmem:[%s24910_s4 + $0x8] sm:$0xf]  ;;  %v14145_v31 = vld [vmem:[%s24911_s5 + $0x110] sm:$0xf]  ;;  %v16755_v18 = vld [vmem:[%s24911_s5 + $0x114] sm:$0xf0] }
 0x741   : > { %6621 = vmatpush.bf16.msra.mxu1 %v22383_v19  ;;  %7004 = vmatpush.bf16.msra.mxu0 %v14070_v14  ;;  %v14146_v23 = vor.u32 %v16755_v18, %v14145_v31  ;;  %v14107_v1 = vld [vmem:[%s24911_s5 + $0xc8] sm:$0xf0]  ;;  %v16753_v3 = vld [vmem:[%s24911_s5 + $0x104] sm:$0xf0]  ;;  %v16770_v60 = vld [vmem:[%s24911_s5 + $0x194] sm:$0xf] }
 0x742   : > { %v16736_v30 = vld [vmem:[%s24911_s5 + $0x84] sm:$0xf]  ;;  %v16804_v36 = vld [vmem:[%s24911_s5 + $0x294] sm:$0xf0]  ;;  %v14393_v54 = vld [vmem:[%s24911_s5 + $0x280] sm:$0xf] }
 0x743   : > { %6968 = vmatpush.bf16.msrb.mxu2 %v14082_v46  ;;  %v14162_v46 = vor.u32 %v16759_v37, %v14161_v55  ;;  %v14385_v37 = vld [vmem:[%s24911_s5 + $0x270] sm:$0xf]  ;;  %v16800_v6 = vld [vmem:[%s24911_s5 + $0x274] sm:$0xf0] }
 0x744   : > { %14006 = vmatmul.msk.bf16.vlgmr.msra.gmra.mxu1 %vm6555_vm8, %v22117_v63  ;;  %v14043_v63 = vld [vmem:[%s24911_s5 + $0x48] sm:$0xf0]  ;;  %v14386_v32 = vor.u32 %v16800_v6, %v14385_v37  ;;  %v16792_v31 = vld [vmem:[%s24911_s5 + $0x234] sm:$0xf0]  ;;  %v14473_v37 = vld [vmem:[%s24911_s5 + $0x320] sm:$0xf] }
 0x745   : > { %7005 = vmatpush.bf16.msra.mxu0 %v14062_v15  ;;  %v14046_v49 = vor.u32 %v16728_v2, %v14043_v63  ;;  %v14147_v15 = vld [vmem:[%s24911_s5 + $0x118] sm:$0xf0]  ;;  %v16752_v63 = vld [vmem:[%s24911_s5 + $0x104] sm:$0xf]  ;;  %6996 = vmatpush.bf16.msrb.mxu1 %v14210_v25 }
 0x746   : > { %v14150_v7 = vor.u32 %v16754_v45, %v14147_v15 }
 0x747   : > { %6969 = vmatpush.bf16.msrb.mxu2 %v14074_v52  ;;  %v16746_v52 = vld [vmem:[%s24911_s5 + $0xd4] sm:$0xf] }
 0x748   : > { %v14118_v58 = vor.u32 %v16746_v52, %v14115_v42  ;;  %v16796_v52 = vld [vmem:[%s24911_s5 + $0x254] sm:$0xf0] }
 0x749   : > { %7006 = vmatpush.bf16.msra.mxu0 %v14054_v10  ;;  %v16767_v10 = vld [vmem:[%s24911_s5 + $0x174] sm:$0xf0] }
 0x74a   : > { %v14194_v2 = vor.u32 %v16767_v10, %v14193_v27  ;;  %v14091_v27 = vld [vmem:[%s24911_s5 + $0xa8] sm:$0xf0] }
 0x74b   : > { %7032 = vmatpush.bf16.msra.mxu2 %v14198_v44  ;;  %v14154_v44 = vor.u32 %v16757_v26, %v14153_v24  ;;  %v14369_v26 = vld [vmem:[%s24911_s5 + $0x250] sm:$0xf] }
 0x74c   : > { %6976 = vmatpush.bf16.msrb.mxu3 %v14194_v2  ;;  %v16768_v2 = vld [vmem:[%s24911_s5 + $0x184] sm:$0xf]  ;;  %v14370_v42 = vor.u32 %v16796_v52, %v14369_v26  ;;  %v14313_v26 = vld [vmem:[%s24911_s5 + $0x1e0] sm:$0xf]  ;;  %v16782_v52 = vld [vmem:[%s24911_s5 + $0x1e4] sm:$0xf0] }
 0x74d   : > { %7007 = vmatpush.bf16.msra.mxu0 %v14046_v49  ;;  %v14139_v49 = vld [vmem:[%s24911_s5 + $0x108] sm:$0xf0] }
 0x74e   : > { %v14142_v56 = vor.u32 %v16752_v63, %v14139_v49  ;;  %v14203_v63 = vld [vmem:[%s24911_s5 + $0x188] sm:$0xf0] }
 0x74f   : > { %7033 = vmatpush.bf16.msra.mxu2 %v14190_v9  ;;  %v16772_v9 = vld [vmem:[%s24910_s4 + $0x8] sm:$0x30]  ;;  %v14206_v49 = vor.u32 %v16768_v2, %v14203_v63  ;;  %v16809_v63 = vld [vmem:[%s24911_s5 + $0x2c4] sm:$0xf] }
 0x751   : > { %7008 = vmatpush.bf16.msra.mxu0 %v14038_v40  ;;  %v16765_v40 = vld [vmem:[%s24911_s5 + $0x164] sm:$0xf0] }
 0x752   : > { %v14186_v29 = vor.u32 %v16765_v40, %v14185_v33  ;;  %v16738_v40 = vld [vmem:[%s24911_s5 + $0x94] sm:$0xf] }
 0x753   : > { %7034 = vmatpush.bf16.msra.mxu2 %v14182_v13  ;;  %v16744_v13 = vld [vmem:[%s24911_s5 + $0xc4] sm:$0xf] }
 0x754   : > { %6977 = vmatpush.bf16.msrb.mxu3 %v14186_v29  ;;  %v14110_v39 = vor.u32 %v16744_v13, %v14107_v1  ;;  %v14083_v29 = vld [vmem:[%s24911_s5 + $0x98] sm:$0xf0]  ;;  %v14345_v13 = vld [vmem:[%s24911_s5 + $0x220] sm:$0xf]  ;;  %v16819_v1 = vld [vmem:[%s24911_s5 + $0x314] sm:$0xf] }
 0x755   : > { %7009 = vmatpush.bf16.msra.mxu0 %v14030_v5  ;;  %v14177_v5 = vld [vmem:[%s24911_s5 + $0x150] sm:$0xf]  ;;  %v14086_v0 = vor.u32 %v16738_v40, %v14083_v29  ;;  %v14419_v40 = vld [vmem:[%s24911_s5 + $0x2b8] sm:$0xf0] }
 0x756   : > { %v14178_v8 = vor.u32 %v16763_v57, %v14177_v5  ;;  %v14075_v5 = vld [vmem:[%s24911_s5 + $0x88] sm:$0xf0] }
 0x757   : > { %7035 = vmatpush.bf16.msra.mxu2 %v14174_v43  ;;  %v14137_v43 = vld [vmem:[%s24911_s5 + $0x100] sm:$0xf]  ;;  %v14078_v25 = vor.u32 %v16736_v30, %v14075_v5  ;;  %v16805_v30 = vld [vmem:[%s24911_s5 + $0x2a4] sm:$0xf]  ;;  %v14411_v5 = vld [vmem:[%s24911_s5 + $0x2a8] sm:$0xf0] }
 0x758   : > { %6978 = vmatpush.bf16.msrb.mxu3 %v14178_v8 }
 0x759   : > { %7010 = vmatpush.bf16.msra.mxu0 %v14022_v50  ;;  %v14202_v50 = vor.u32 %v16769_v34, %v14201_v28 }
 0x75b   : > { %7036 = vmatpush.bf16.msra.mxu2 %v14166_v16  ;;  %6997 = vmatpush.bf16.msrb.mxu1 %v14202_v50  ;;  %v14099_v16 = vld [vmem:[%s24911_s5 + $0xb8] sm:$0xf0] }
 0x75d   : > { %7011 = vmatpush.bf16.msra.mxu0 %v14014_v35  ;;  %v14170_v35 = vor.u32 %v16761_v59, %v14169_v21  ;;  %v14401_v59 = vld [vmem:[%s24911_s5 + $0x290] sm:$0xf] }
 0x75f   : > { %7037 = vmatpush.bf16.msra.mxu2 %v14158_v4  ;;  %6979 = vmatpush.bf16.msrb.mxu3 %v14170_v35  ;;  %v14138_v4 = vor.u32 %v16753_v3, %v14137_v43  ;;  %v14402_v35 = vor.u32 %v16804_v36, %v14401_v59  ;;  %v14467_v43 = vld [vmem:[%s24911_s5 + $0x318] sm:$0xf0]  ;;  %v14321_v59 = vld [vmem:[%s24911_s5 + $0x1f0] sm:$0xf] }
 0x760   : > { %7018 = vmatpush.bf16.msra.mxu1 %v14134_v47  ;;  %v16802_v47 = vld [vmem:[%s24911_s5 + $0x284] sm:$0xf0] }
 0x761   : > { %v14394_v55 = vor.u32 %v16802_v47, %v14393_v54  ;;  %v16784_v54 = vld [vmem:[%s24911_s5 + $0x1f4] sm:$0xf0] }
 0x762   : > { %v16824_v47 = vld [vmem:[%s24911_s5 + $0x334] sm:$0xf0] }
 0x763   : > { %7038 = vmatpush.bf16.msra.mxu2 %v14150_v7  ;;  %6980 = vmatpush.bf16.msrb.mxu3 %v14162_v46  ;;  %v16740_v7 = vld [vmem:[%s24911_s5 + $0xa4] sm:$0xf]  ;;  %v14377_v46 = vld [vmem:[%s24911_s5 + $0x260] sm:$0xf] }
 0x764   : > { %7019 = vmatpush.bf16.msra.mxu1 %v14126_v53  ;;  %v14094_v10 = vor.u32 %v16740_v7, %v14091_v27  ;;  %v16798_v53 = vld [vmem:[%s24911_s5 + $0x264] sm:$0xf0]  ;;  %v14435_v27 = vld [vmem:[%s24911_s5 + $0x2d8] sm:$0xf0] }
 0x765   : > { %v14378_v24 = vor.u32 %v16798_v53, %v14377_v46  ;;  %v16822_v46 = vld [vmem:[%s24911_s5 + $0x324] sm:$0xf0]  ;;  %v16787_v53 = vld [vmem:[%s24911_s5 + $0x214] sm:$0xf] }
 0x767   : > { %7039 = vmatpush.bf16.msra.mxu2 %v14142_v56  ;;  %6981 = vmatpush.bf16.msrb.mxu3 %v14154_v44  ;;  %v14361_v44 = vld [vmem:[%s24911_s5 + $0x240] sm:$0xf] }
 0x768   : > { %7020 = vmatpush.bf16.msra.mxu1 %v14118_v58  ;;  %v16794_v58 = vld [vmem:[%s24911_s5 + $0x244] sm:$0xf0] }
 0x76b   : > { %6982 = vmatpush.bf16.msrb.mxu3 %v14146_v23  ;;  %v16790_v23 = vld [vmem:[%s24911_s5 + $0x224] sm:$0xf0] }
 0x76c   : > { %7021 = vmatpush.bf16.msra.mxu1 %v14110_v39  ;;  %v14346_v3 = vor.u32 %v16790_v23, %v14345_v13  ;;  %v14470_v39 = vor.u32 %v16819_v1, %v14467_v43  ;;  %v16780_v13 = vld [vmem:[%s24911_s5 + $0x1d4] sm:$0xf0]  ;;  %v16785_v1 = vld [vmem:[%s24911_s5 + $0x204] sm:$0xf]  ;;  %v14331_v43 = vld [vmem:[%s24911_s5 + $0x208] sm:$0xf0] }
 0x76f   : > { %6983 = vmatpush.bf16.msrb.mxu3 %v14138_v4  ;;  %v14451_v4 = vld [vmem:[%s24911_s5 + $0x2f8] sm:$0xf0] }
 0x777   : > { %v6581_v12 = vpop.f32.mrf.mxu1 }
 0x77f   : > { %v6583_v14 = vpop.f32.mrf.mxu1 }
 0x780   : > { %v6628_v11 = vpack.c.bf16 %v6583_v14, %v6581_v12  ;;  %v16742_v12 = vld [vmem:[%s24911_s5 + $0xb4] sm:$0xf]  ;;  %v14211_v14 = vld [vmem:[%s24911_s5 + $0x198] sm:$0xf0] }
 0x781   : > { %v14102_v45 = vor.u32 %v16742_v12, %v14099_v16  ;;  %v14214_v15 = vor.u32 %v16770_v60, %v14211_v14  ;;  %v16817_v12 = vld [vmem:[%s24911_s5 + $0x304] sm:$0xf]  ;;  %v14459_v16 = vld [vmem:[%s24911_s5 + $0x308] sm:$0xf0]  ;;  %v16815_v60 = vld [vmem:[%s24911_s5 + $0x2f4] sm:$0xf] }
 0x782   : > { %6956 = vmatmul.bf16.vlgmr.msrb.gmra.mxu0 %v6628_v11  ;;  %v14454_v14 = vor.u32 %v16815_v60, %v14451_v4  ;;  %v16778_v60 = vld [vmem:[%s24911_s5 + $0x1c4] sm:$0xf0]  ;;  %v16783_v4 = vld [vmem:[%s24911_s5 + $0x1f4] sm:$0xf] }
 0x783   : > { %7100 = vmatpush.bf16.msrb.mxu0 %v22190_v62  ;;  %7022 = vmatpush.bf16.msra.mxu1 %v14102_v45  ;;  %v14443_v45 = vld [vmem:[%s24911_s5 + $0x2e8] sm:$0xf0] }
 0x784   : > { %7052 = vmatpush.bf16.msra.mxu3 %v14214_v15  ;;  %v16811_v15 = vld [vmem:[%s24911_s5 + $0x2d4] sm:$0xf] }
 0x787   : > { %7101 = vmatpush.bf16.msrb.mxu0 %v22202_v51  ;;  %7023 = vmatpush.bf16.msra.mxu1 %v14094_v10  ;;  %v14438_v10 = vor.u32 %v16811_v15, %v14435_v27  ;;  %v16776_v15 = vld [vmem:[%s24911_s5 + $0x1b4] sm:$0xf0]  ;;  %v14465_v27 = vld [vmem:[%s24911_s5 + $0x310] sm:$0xf] }
 0x788   : > { %7053 = vmatpush.bf16.msra.mxu3 %v14206_v49  ;;  %v14427_v49 = vld [vmem:[%s24911_s5 + $0x2c8] sm:$0xf0] }
 0x78b   : > { %7024 = vmatpush.bf16.msra.mxu1 %v14086_v0 }
 0x78f   : > { %7025 = vmatpush.bf16.msra.mxu1 %v14078_v25  ;;  %v14414_v25 = vor.u32 %v16805_v30, %v14411_v5  ;;  %v14457_v30 = vld [vmem:[%s24911_s5 + $0x300] sm:$0xf]  ;;  %v16818_v5 = vld [vmem:[%s24911_s5 + $0x304] sm:$0xf0] }
 0x792   : > { %7012 = vmatmul.bf16.vlgmr.msra.gmra.mxu0 %v6628_v11  ;;  %v22612_v11 = vor.u32 %v16772_v9, %v14221_v48  ;;  %v14362_v48 = vor.u32 %v16794_v58, %v14361_v44  ;;  %v14353_v9 = vld [vmem:[%s24911_s5 + $0x230] sm:$0xf]  ;;  %v14314_v58 = vor.u32 %v16782_v52, %v14313_v26  ;;  %v16814_v26 = vld [vmem:[%s24911_s5 + $0x2e4] sm:$0xf0]  ;;  %v16775_v52 = vld [vmem:[%s24911_s5 + $0x1b4] sm:$0xf] }
 0x793   : > { %7470 = vmatpush.bf16.msra.mxu0 %v14402_v35  ;;  %v14354_v18 = vor.u32 %v16792_v31, %v14353_v9  ;;  %v14481_v35 = vld [vmem:[%s24911_s5 + $0x330] sm:$0xf] }
 0x797   : > { %7471 = vmatpush.bf16.msra.mxu0 %v14394_v55  ;;  %v14482_v55 = vor.u32 %v16824_v47, %v14481_v35  ;;  %v16777_v35 = vld [vmem:[%s24911_s5 + $0x1c4] sm:$0xf] }
 0x79b   : > { %7472 = vmatpush.bf16.msra.mxu0 %v14386_v32  ;;  %v14322_v32 = vor.u32 %v16784_v54, %v14321_v59  ;;  %v16816_v54 = vld [vmem:[%s24911_s5 + $0x2f4] sm:$0xf0] }
 0x79c   : > { %v6595_v61 = vpop.f32.mrf.mxu2 }
 0x79f   : > { %7473 = vmatpush.bf16.msra.mxu0 %v14378_v24  ;;  %v14339_v24 = vld [vmem:[%s24911_s5 + $0x218] sm:$0xf0] }
 0x7a0   : > { %v14342_v44 = vor.u32 %v16787_v53, %v14339_v24  ;;  %v14441_v24 = vld [vmem:[%s24911_s5 + $0x2e0] sm:$0xf] }
 0x7a2   : > { %14224 = vmatmul.msk.bf16.vlgmr.msrb.gmra.mxu0 %vm6555_vm8, %v22612_v11 }
 0x7a3   : > { %7474 = vmatpush.bf16.msra.mxu0 %v14370_v42  ;;  %v14474_v42 = vor.u32 %v16822_v46, %v14473_v37  ;;  %v16801_v37 = vld [vmem:[%s24911_s5 + $0x284] sm:$0xf] }
 0x7a4   : > { %v6597_v56 = vpop.f32.mrf.mxu2 }
 0x7a5   : > { %v6629_v33 = vpack.c.bf16 %v6597_v56, %v6595_v61  ;;  %v14462_v61 = vor.u32 %v16817_v12, %v14459_v16  ;;  %v16807_v56 = vld [vmem:[%s24911_s5 + $0x2b4] sm:$0xf]  ;;  %v14297_v16 = vld [vmem:[%s24911_s5 + $0x1c0] sm:$0xf] }
 0x7a6   : > { %v14422_v29 = vor.u32 %v16807_v56, %v14419_v40  ;;  %v16774_v40 = vld [vmem:[%s24911_s5 + $0x1a4] sm:$0xf0] }
 0x7a7   : > { %6970 = vmatmul.bf16.vlgmr.msrb.gmra.mxu2 %v6629_v33  ;;  %7475 = vmatpush.bf16.msra.mxu0 %v14362_v48 }
 0x7a8   : > { %7128 = vmatpush.bf16.msrb.mxu2 %v22333_v41 }
 0x7ab   : > { %7476 = vmatpush.bf16.msra.mxu0 %v14354_v18  ;;  %v14305_v18 = vld [vmem:[%s24911_s5 + $0x1d0] sm:$0xf] }
 0x7ac   : > { %7129 = vmatpush.bf16.msrb.mxu2 %v22383_v19  ;;  %v14306_v23 = vor.u32 %v16780_v13, %v14305_v18 }
 0x7af   : > { %7477 = vmatpush.bf16.msra.mxu0 %v14346_v3  ;;  %v14334_v3 = vor.u32 %v16785_v1, %v14331_v43  ;;  %v16812_v1 = vld [vmem:[%s24911_s5 + $0x2d4] sm:$0xf0]  ;;  %v16773_v43 = vld [vmem:[%s24911_s5 + $0x1a4] sm:$0xf] }
 0x7b3   : > { %7540 = vmatpush.bf16.msrb.mxu0 %v14470_v39 }
 0x7b7   : > { %7541 = vmatpush.bf16.msrb.mxu0 %v14462_v61  ;;  %v14298_v61 = vor.u32 %v16778_v60, %v14297_v16  ;;  %v16797_v16 = vld [vmem:[%s24911_s5 + $0x264] sm:$0xf]  ;;  %v14379_v60 = vld [vmem:[%s24911_s5 + $0x268] sm:$0xf0] }
 0x7ba   : > { %v6609_v57 = vpop.f32.mrf.mxu3 }
 0x7bb   : > { %7542 = vmatpush.bf16.msrb.mxu0 %v14454_v14  ;;  %v14323_v14 = vld [vmem:[%s24911_s5 + $0x1f8] sm:$0xf0] }
 0x7c1   : > { %v6623_v8 = vpop.f32.mrf.mxu1 }
 0x7c2   : > { %v6611_v28 = vpop.f32.mrf.mxu3 }
 0x7c3   : > { %v6630_v34 = vpack.c.bf16 %v6611_v28, %v6609_v57  ;;  %v16788_v28 = vld [vmem:[%s24911_s5 + $0x214] sm:$0xf0] }
 0x7c5   : > { %6984 = vmatmul.bf16.vlgmr.msrb.gmra.mxu3 %v6630_v34  ;;  %7040 = vmatmul.bf16.vlgmr.msra.gmra.mxu2 %v6630_v34 }
 0x7c6   : > { %7086 = vmatpush.bf16.msrb.mxu3 %v22102_v38  ;;  %7504 = vmatpush.bf16.msra.mxu2 %v14482_v55  ;;  %v14299_v55 = vld [vmem:[%s24911_s5 + $0x1c8] sm:$0xf0] }
 0x7c7   : > { %v14302_v46 = vor.u32 %v16777_v35, %v14299_v55  ;;  %v16789_v55 = vld [vmem:[%s24911_s5 + $0x224] sm:$0xf] }
 0x7c9   : > { %v6625_v21 = vpop.f32.mrf.mxu1 }
 0x7ca   : > { %v6631_v50 = vpack.c.bf16 %v6625_v21, %v6623_v8  ;;  %7087 = vmatpush.bf16.msrb.mxu3 %v22113_v22  ;;  %v14337_v8 = vld [vmem:[%s24911_s5 + $0x210] sm:$0xf]  ;;  %v14329_v21 = vld [vmem:[%s24911_s5 + $0x200] sm:$0xf]  ;;  %7505 = vmatpush.bf16.msra.mxu2 %v14474_v42  ;;  %v14442_v42 = vor.u32 %v16814_v26, %v14441_v24  ;;  %v14475_v24 = vld [vmem:[%s24911_s5 + $0x328] sm:$0xf0] }
 0x7cb   : > { %v14338_v34 = vor.u32 %v16788_v28, %v14337_v8  ;;  %v14458_v8 = vor.u32 %v16818_v5, %v14457_v30  ;;  %v14307_v28 = vld [vmem:[%s24911_s5 + $0x1d8] sm:$0xf0]  ;;  %v14363_v30 = vld [vmem:[%s24911_s5 + $0x248] sm:$0xf0]  ;;  %v14409_v5 = vld [vmem:[%s24911_s5 + $0x2a0] sm:$0xf] }
 0x7cc   : > { %14215 = vmatmul.msk.bf16.vlgmr.msrb.gmra.mxu1 %vm6944_vm5, %v6631_v50 }
 0x7cd   : > { %7114 = vmatpush.bf16.msrb.mxu1 %v22317_v17 }
 0x7d1   : > { %7115 = vmatpush.bf16.msrb.mxu1 %v22342_v20 }
 0x7d5   : > { %14216 = vmatmul.msk.bf16.vlgmr.msra.gmra.mxu3 %vm6944_vm5, %v6631_v50  ;;  %14226 = vmatmul.msk.bf16.vlgmr.msrb.gmra.mxu2 %vm6555_vm8, %v22612_v11  ;;  %v16786_v50 = vld [vmem:[%s24911_s5 + $0x204] sm:$0xf0] }
 0x7d6   : > { %7456 = vmatpush.bf16.msra.mxu3 %v14338_v34  ;;  %v14330_v36 = vor.u32 %v16786_v50, %v14329_v21  ;;  %7512 = vmatpush.bf16.msrb.mxu2 %v14342_v44  ;;  %v16803_v34 = vld [vmem:[%s24911_s5 + $0x294] sm:$0xf]  ;;  %v14403_v21 = vld [vmem:[%s24911_s5 + $0x298] sm:$0xf0] }
 0x7d7   : > { %v14406_v59 = vor.u32 %v16803_v34, %v14403_v21  ;;  %v14291_v44 = vld [vmem:[%s24911_s5 + $0x1b8] sm:$0xf0]  ;;  %v16823_v34 = vld [vmem:[%s24911_s5 + $0x334] sm:$0xf] }
 0x7da   : > { %7457 = vmatpush.bf16.msra.mxu3 %v14330_v36  ;;  %7513 = vmatpush.bf16.msrb.mxu2 %v14334_v3  ;;  %v14449_v36 = vld [vmem:[%s24911_s5 + $0x2f0] sm:$0xf] }
 0x7db   : > { %v14450_v47 = vor.u32 %v16816_v54, %v14449_v36 }
 0x7dc   : > { %7026 = vmatmul.bf16.vlgmr.msra.gmra.mxu1 %v6629_v33  ;;  %v14430_v33 = vor.u32 %v16809_v63, %v14427_v49  ;;  %v14315_v49 = vld [vmem:[%s24911_s5 + $0x1e8] sm:$0xf0] }
 0x7de   : > { %7458 = vmatpush.bf16.msra.mxu3 %v14322_v32  ;;  %v14395_v32 = vld [vmem:[%s24911_s5 + $0x288] sm:$0xf0] }
 0x7df   : > { %v14398_v53 = vor.u32 %v16801_v37, %v14395_v32  ;;  %v14347_v37 = vld [vmem:[%s24911_s5 + $0x228] sm:$0xf0] }
 0x7e2   : > { %7459 = vmatpush.bf16.msra.mxu3 %v14314_v58  ;;  %v16799_v58 = vld [vmem:[%s24911_s5 + $0x274] sm:$0xf] }
 0x7e5   : > { %14223 = vmatmul.msk.bf16.vlgmr.msrb.gmra.mxu3 %vm6555_vm8, %v22612_v11 }
 0x7e6   : > { %7460 = vmatpush.bf16.msra.mxu3 %v14306_v23  ;;  %v14433_v23 = vld [vmem:[%s24911_s5 + $0x2d0] sm:$0xf] }
 0x7e7   : > { %v14434_v3 = vor.u32 %v16812_v1, %v14433_v23 }
 0x7ea   : > { %7461 = vmatpush.bf16.msra.mxu3 %v14298_v61 }
 0x7ec   : > { %14225 = vmatmul.msk.bf16.vlgmr.msrb.gmra.mxu1 %vm6555_vm8, %v22612_v11  ;;  %v16813_v11 = vld [vmem:[%s24911_s5 + $0x2e4] sm:$0xf] }
 0x7ed   : > { %v14446_v7 = vor.u32 %v16813_v11, %v14443_v45  ;;  %v14326_v11 = vor.u32 %v16783_v4, %v14323_v14  ;;  %v14289_v45 = vld [vmem:[%s24911_s5 + $0x1b0] sm:$0xf]  ;;  %v14382_v4 = vor.u32 %v16797_v16, %v14379_v60  ;;  %v14425_v14 = vld [vmem:[%s24911_s5 + $0x2c0] sm:$0xf] }
 0x7ef   : > { %7543 = vmatpush.bf16.msrb.mxu0 %v14446_v7  ;;  %7514 = vmatpush.bf16.msrb.mxu2 %v14326_v11  ;;  %v14290_v7 = vor.u32 %v16776_v15, %v14289_v45  ;;  %v16810_v11 = vld [vmem:[%s24911_s5 + $0x2c4] sm:$0xf0]  ;;  %v16795_v45 = vld [vmem:[%s24911_s5 + $0x254] sm:$0xf] }
 0x7f0   : > { %v14426_v15 = vor.u32 %v16810_v11, %v14425_v14  ;;  %v16857_v14 = vld [vmem:[%s24911_s5 + $0x434] sm:$0xf0]  ;;  %v14665_v11 = vld [vmem:[%s24911_s5 + $0x420] sm:$0xf] }
 0x7f1   : > { %7462 = vmatpush.bf16.msra.mxu3 %v14290_v7  ;;  %v14371_v7 = vld [vmem:[%s24911_s5 + $0x258] sm:$0xf0] }
 0x7f3   : > { %7544 = vmatpush.bf16.msrb.mxu0 %v14438_v10  ;;  %v16820_v10 = vld [vmem:[%s24911_s5 + $0x314] sm:$0xf0] }
 0x7f4   : > { %v14466_v63 = vor.u32 %v16820_v10, %v14465_v27  ;;  %v14374_v27 = vor.u32 %v16795_v45, %v14371_v7 }
 0x7f6   : > { %7484 = vmatpush.bf16.msra.mxu1 %v14466_v63  ;;  %v14417_v63 = vld [vmem:[%s24911_s5 + $0x2b0] sm:$0xf] }
 0x7f7   : > { %7545 = vmatpush.bf16.msrb.mxu0 %v14430_v33  ;;  %v14281_v33 = vld [vmem:[%s24911_s5 + $0x1a0] sm:$0xf] }
 0x7fa   : > { %7485 = vmatpush.bf16.msra.mxu1 %v14458_v8 }
 0x7fb   : > { %7546 = vmatpush.bf16.msrb.mxu0 %v14422_v29  ;;  %v14282_v29 = vor.u32 %v16774_v40, %v14281_v33 }
 0x7fd   : > { %7463 = vmatpush.bf16.msra.mxu3 %v14282_v29 }
 0x7fe   : > { %7486 = vmatpush.bf16.msra.mxu1 %v14450_v47 }
 0x7ff   : > { %v6957_v2 = vpop.f32.mrf.mxu0  ;;  %7547 = vmatpush.bf16.msrb.mxu0 %v14414_v25  ;;  %v16779_v25 = vld [vmem:[%s24911_s5 + $0x1d4] sm:$0xf] }
 0x800   : > { %v14310_v50 = vor.u32 %v16779_v25, %v14307_v28  ;;  %v16806_v25 = vld [vmem:[%s24911_s5 + $0x2a4] sm:$0xf0]  ;;  %v16791_v28 = vld [vmem:[%s24911_s5 + $0x234] sm:$0xf] }
 0x801   : > { %7526 = vmatpush.bf16.msrb.mxu3 %v14406_v59  ;;  %v14483_v59 = vld [vmem:[%s24911_s5 + $0x338] sm:$0xf0] }
 0x802   : > { %7487 = vmatpush.bf16.msra.mxu1 %v14442_v42  ;;  %v14486_v54 = vor.u32 %v16823_v34, %v14483_v59  ;;  %v16849_v34 = vld [vmem:[%s24911_s5 + $0x3f4] sm:$0xf0]  ;;  %v14593_v59 = vld [vmem:[%s24911_s5 + $0x390] sm:$0xf] }
 0x805   : > { %7527 = vmatpush.bf16.msrb.mxu3 %v14398_v53  ;;  %v16821_v53 = vld [vmem:[%s24911_s5 + $0x324] sm:$0xf] }
 0x806   : > { %7488 = vmatpush.bf16.msra.mxu1 %v14434_v3  ;;  %v14478_v26 = vor.u32 %v16821_v53, %v14475_v24  ;;  %v16847_v53 = vld [vmem:[%s24911_s5 + $0x3e4] sm:$0xf0] }
 0x807   : > { %v22744_v0 = vpop.f32.mrf.mxu0 }
 0x80a   : > { %7489 = vmatpush.bf16.msra.mxu1 %v14426_v15  ;;  %v16855_v15 = vld [vmem:[%s24911_s5 + $0x424] sm:$0xf0] }
 0x80b   : > { %v14666_v7 = vor.u32 %v16855_v15, %v14665_v11  ;;  %v14617_v11 = vld [vmem:[%s24911_s5 + $0x3c0] sm:$0xf]  ;;  %v16838_v15 = vld [vmem:[%s24911_s5 + $0x3a4] sm:$0xf] }
 0x80f   : > { %v22752_v57 = vpop.f32.mrf.mxu0 }
 0x817   : > { %v22781_v6 = vpop.f32.mrf.mxu0 }
 0x81f   : > { %v7103_v48 = vpop.f32.mrf.mxu0 }
 0x827   : > { %v7105_v9 = vpop.f32.mrf.mxu0 }
 0x828   : > { %v22798_v31 = vpack.c.bf16 %v7105_v9, %v7103_v48  ;;  %v14387_v48 = vld [vmem:[%s24911_s5 + $0x278] sm:$0xf0]  ;;  %v14294_v9 = vor.u32 %v16775_v52, %v14291_v44 }
 0x829   : > { %v14390_v18 = vor.u32 %v16799_v58, %v14387_v48 }
 0x82a   : > { %7478 = vmatmul.bf16.vlgmr.msra.gmra.mxu0 %v22798_v31  ;;  %v6971_v39 = vpop.f32.mrf.mxu2 }
 0x82b   : > { %7631 = vmatpush.bf16.msra.mxu0 %v22333_v41  ;;  %v22814_v12 = vadd.f32 %v6971_v39, %v6957_v2  ;;  %v16781_v2 = vld [vmem:[%s24911_s5 + $0x1e4] sm:$0xf]  ;;  %7528 = vmatpush.bf16.msrb.mxu3 %v14390_v18  ;;  %v14283_v39 = vld [vmem:[%s24911_s5 + $0x1a8] sm:$0xf0] }
 0x82c   : > { %v14318_v56 = vor.u32 %v16781_v2, %v14315_v49  ;;  %v14286_v61 = vor.u32 %v16773_v43, %v14283_v39  ;;  %v16808_v49 = vld [vmem:[%s24911_s5 + $0x2b4] sm:$0xf0] }
 0x82d   : > { %v14418_v29 = vor.u32 %v16808_v49, %v14417_v63  ;;  %v14493_v63 = vld [vmem:[%s24910_s4 + $0x10] sm:$0xf]  ;;  %v16825_v49 = vld [vmem:[%s24910_s4 + $0x10] sm:$0x30] }
 0x82e   : > { %7515 = vmatpush.bf16.msrb.mxu2 %v14318_v56  ;;  %v16793_v56 = vld [vmem:[%s24911_s5 + $0x244] sm:$0xf] }
 0x82f   : > { %7632 = vmatpush.bf16.msra.mxu0 %v22383_v19  ;;  %7529 = vmatpush.bf16.msrb.mxu3 %v14382_v4  ;;  %v14366_v8 = vor.u32 %v16793_v56, %v14363_v30  ;;  %v14673_v4 = vld [vmem:[%s24911_s5 + $0x430] sm:$0xf]  ;;  %v14494_v56 = vor.u32 %v16825_v49, %v14493_v63 }
 0x830   : > { %7490 = vmatpush.bf16.msra.mxu1 %v14418_v29  ;;  %v14674_v45 = vor.u32 %v16857_v14, %v14673_v4  ;;  %v14649_v29 = vld [vmem:[%s24911_s5 + $0x400] sm:$0xf]  ;;  %v16833_v4 = vld [vmem:[%s24911_s5 + $0x374] sm:$0xf0] }
 0x832   : > { %7516 = vmatpush.bf16.msrb.mxu2 %v14310_v50  ;;  %v22907_v13 = vpop.f32.mrf.mxu2  ;;  %v14410_v50 = vor.u32 %v16806_v25, %v14409_v5  ;;  %v14601_v25 = vld [vmem:[%s24911_s5 + $0x3a0] sm:$0xf] }
 0x833   : > { %7530 = vmatpush.bf16.msrb.mxu3 %v14374_v27  ;;  %v14657_v27 = vld [vmem:[%s24911_s5 + $0x410] sm:$0xf] }
 0x834   : > { %7491 = vmatpush.bf16.msra.mxu1 %v14410_v50 }
 0x836   : > { %7517 = vmatpush.bf16.msrb.mxu2 %v14302_v46  ;;  %v14350_v46 = vor.u32 %v16789_v55, %v14347_v37  ;;  %v16877_v37 = vld [vmem:[%s24911_s5 + $0x4d4] sm:$0xf0] }
 0x837   : > { %7531 = vmatpush.bf16.msrb.mxu3 %v14366_v8  ;;  %v16839_v8 = vld [vmem:[%s24911_s5 + $0x3a4] sm:$0xf0] }
 0x838   : > { %7560 = vmatpush.bf16.msrb.mxu1 %v14486_v54  ;;  %v14753_v54 = vld [vmem:[%s24911_s5 + $0x4d0] sm:$0xf] }
 0x839   : > { %v14754_v24 = vor.u32 %v16877_v37, %v14753_v54  ;;  %v16868_v54 = vld [vmem:[%s24911_s5 + $0x494] sm:$0xf] }
 0x83a   : > { %7518 = vmatpush.bf16.msrb.mxu2 %v14294_v9 }
 0x83c   : > { %7561 = vmatpush.bf16.msrb.mxu1 %v14478_v26 }
 0x83e   : > { %7519 = vmatpush.bf16.msrb.mxu2 %v14286_v61 }
 0x848   : > { %v6985_v10 = vpop.f32.mrf.mxu3  ;;  %v7041_v2 = vpop.f32.mrf.mxu2 }
 0x849   : > { %v6986_v33 = vadd.f32 %v6985_v10, %v22814_v12  ;;  %v6999_v40 = vpop.f32.mrf.mxu1  ;;  %v14355_v12 = vld [vmem:[%s24911_s5 + $0x238] sm:$0xf0]  ;;  %v16853_v10 = vld [vmem:[%s24911_s5 + $0x414] sm:$0xf0] }
 0x84a   : > { %v14358_v36 = vor.u32 %v16791_v28, %v14355_v12  ;;  %v14602_v28 = vor.u32 %v16839_v8, %v14601_v25  ;;  %v14641_v12 = vld [vmem:[%s24911_s5 + $0x3f0] sm:$0xf]  ;;  %v14731_v25 = vld [vmem:[%s24911_s5 + $0x4a8] sm:$0xf0] }
 0x84b   : > { %v22967_v21 = vadd.f32 %v6999_v40, %v6986_v33  ;;  %v14609_v33 = vld [vmem:[%s24911_s5 + $0x3b0] sm:$0xf]  ;;  %v16841_v40 = vld [vmem:[%s24911_s5 + $0x3b4] sm:$0xf0]  ;;  %v14642_v50 = vor.u32 %v16849_v34, %v14641_v12 }
 0x84c   : > { %7532 = vmatpush.bf16.msrb.mxu3 %v14358_v36  ;;  %v14610_v30 = vor.u32 %v16841_v40, %v14609_v33  ;;  %v16837_v36 = vld [vmem:[%s24911_s5 + $0x394] sm:$0xf0]  ;;  %v16831_v33 = vld [vmem:[%s24911_s5 + $0x364] sm:$0xf0] }
 0x84d   : > { %v14594_v55 = vor.u32 %v16837_v36, %v14593_v59  ;;  %v16829_v12 = vld [vmem:[%s24911_s5 + $0x354] sm:$0xf0]  ;;  %v14587_v59 = vld [vmem:[%s24911_s5 + $0x388] sm:$0xf0] }
 0x850   : > { %v22972_v35 = vpop.f32.mrf.mxu3  ;;  %v22974_v47 = vpop.f32.mrf.mxu2  ;;  %7533 = vmatpush.bf16.msrb.mxu3 %v14350_v46  ;;  %v14633_v46 = vld [vmem:[%s24911_s5 + $0x3e0] sm:$0xf] }
 0x851   : > { %v22982_v32 = vpop.f32.mrf.mxu1  ;;  %v14634_v26 = vor.u32 %v16847_v53, %v14633_v46  ;;  %v14553_v46 = vld [vmem:[%s24911_s5 + $0x340] sm:$0xf]  ;;  %v16827_v53 = vld [vmem:[%s24911_s5 + $0x344] sm:$0xf0] }
 0x858   : > { %v7055_v52 = vpop.f32.mrf.mxu3  ;;  %v7131_v42 = vpop.f32.mrf.mxu2 }
 0x859   : > { %v7027_v44 = vpop.f32.mrf.mxu1 }
 0x85a   : > { %v7028_v58 = vadd.f32 %v7027_v44, %v22752_v57  ;;  %v14745_v44 = vld [vmem:[%s24911_s5 + $0x4c0] sm:$0xf] }
 0x85c   : > { %v7042_v48 = vadd.f32 %v7041_v2, %v7028_v58  ;;  %v14658_v2 = vor.u32 %v16853_v10, %v14657_v27  ;;  %v14603_v27 = vld [vmem:[%s24911_s5 + $0x3a8] sm:$0xf0]  ;;  %v16872_v10 = vld [vmem:[%s24911_s5 + $0x4b4] sm:$0xf] }
 0x85d   : > { %v14606_v63 = vor.u32 %v16838_v15, %v14603_v27  ;;  %v16854_v15 = vld [vmem:[%s24911_s5 + $0x424] sm:$0xf] }
 0x85e   : > { %v22991_v9 = vadd.f32 %v7055_v52, %v7042_v48  ;;  %v14585_v52 = vld [vmem:[%s24911_s5 + $0x380] sm:$0xf]  ;;  %v16875_v48 = vld [vmem:[%s24911_s5 + $0x4c4] sm:$0xf0] }
 0x860   : > { %v22993_v18 = vpop.f32.mrf.mxu3  ;;  %v7133_v23 = vpop.f32.mrf.mxu2 }
 0x861   : > { %v7139_v1 = vpack.c.bf16 %v7133_v23, %v7131_v42  ;;  %v22995_v43 = vpop.f32.mrf.mxu1  ;;  %v16835_v42 = vld [vmem:[%s24911_s5 + $0x384] sm:$0xf0]  ;;  %v14625_v23 = vld [vmem:[%s24911_s5 + $0x3d0] sm:$0xf] }
 0x862   : > { %v14586_v58 = vor.u32 %v16835_v42, %v14585_v52  ;;  %v16873_v52 = vld [vmem:[%s24911_s5 + $0x4b4] sm:$0xf0]  ;;  %v16832_v42 = vld [vmem:[%s24911_s5 + $0x374] sm:$0xf] }
 0x863   : > { %14487 = vmatmul.msk.bf16.vlgmr.msra.gmra.mxu2 %vm6944_vm5, %v7139_v1 }
 0x864   : > { %7603 = vmatpush.bf16.msra.mxu2 %v22190_v62 }
 0x868   : > { %7604 = vmatpush.bf16.msra.mxu2 %v22202_v51  ;;  %v7089_v3 = vpop.f32.mrf.mxu3 }
 0x869   : > { %v7117_v39 = vpop.f32.mrf.mxu1 }
 0x870   : > { %v7091_v16 = vpop.f32.mrf.mxu3 }
 0x871   : > { %v7136_v60 = vpack.c.bf16 %v7091_v16, %v7089_v3  ;;  %v7119_v57 = vpop.f32.mrf.mxu1  ;;  %v14746_v3 = vor.u32 %v16875_v48, %v14745_v44  ;;  %v16840_v16 = vld [vmem:[%s24911_s5 + $0x3b4] sm:$0xf]  ;;  %v14579_v48 = vld [vmem:[%s24911_s5 + $0x378] sm:$0xf0] }
 0x872   : > { %v7138_v61 = vpack.c.bf16 %v7119_v57, %v7117_v39 }
 0x873   : > { %7464 = vmatmul.bf16.vlgmr.msra.gmra.mxu3 %v7136_v60  ;;  %7520 = vmatmul.bf16.vlgmr.msrb.gmra.mxu2 %v7136_v60  ;;  %v14611_v60 = vld [vmem:[%s24911_s5 + $0x3b8] sm:$0xf0] }
 0x874   : > { %7617 = vmatpush.bf16.msra.mxu3 %v22317_v17  ;;  %7492 = vmatmul.bf16.vlgmr.msra.gmra.mxu1 %v7138_v61  ;;  %v14614_v57 = vor.u32 %v16840_v16, %v14611_v60  ;;  %v16866_v16 = vld [vmem:[%s24911_s5 + $0x484] sm:$0xf]  ;;  %v14715_v60 = vld [vmem:[%s24911_s5 + $0x488] sm:$0xf0] }
 0x875   : > { %7548 = vmatmul.bf16.vlgmr.msrb.gmra.mxu0 %v7138_v61  ;;  %7589 = vmatpush.bf16.msra.mxu1 %v22102_v38  ;;  %v14577_v61 = vld [vmem:[%s24911_s5 + $0x370] sm:$0xf] }
 0x876   : > { %7973 = vmatpush.bf16.msrb.mxu2 %v14674_v45  ;;  %8007 = vmatpush.bf16.msrb.mxu0 %v14754_v24  ;;  %v14578_v14 = vor.u32 %v16833_v4, %v14577_v61  ;;  %v16843_v45 = vld [vmem:[%s24911_s5 + $0x3c4] sm:$0xf0]  ;;  %v14554_v24 = vor.u32 %v16827_v53, %v14553_v46  ;;  %v14729_v61 = vld [vmem:[%s24911_s5 + $0x4a0] sm:$0xf]  ;;  %v14555_v46 = vld [vmem:[%s24911_s5 + $0x348] sm:$0xf0] }
 0x877   : > { %v16871_v4 = vld [vmem:[%s24911_s5 + $0x4a4] sm:$0xf0]  ;;  %v16850_v53 = vld [vmem:[%s24911_s5 + $0x404] sm:$0xf] }
 0x878   : > { %7618 = vmatpush.bf16.msra.mxu3 %v22342_v20 }
 0x879   : > { %7590 = vmatpush.bf16.msra.mxu1 %v22113_v22 }
 0x87a   : > { %7974 = vmatpush.bf16.msrb.mxu2 %v14666_v7  ;;  %8008 = vmatpush.bf16.msrb.mxu0 %v14746_v3  ;;  %v14618_v7 = vor.u32 %v16843_v45, %v14617_v11  ;;  %v14582_v3 = vor.u32 %v16832_v42, %v14579_v48  ;;  %v14730_v11 = vor.u32 %v16871_v4, %v14729_v61  ;;  %v14571_v45 = vld [vmem:[%s24911_s5 + $0x368] sm:$0xf0]  ;;  %v16860_v42 = vld [vmem:[%s24911_s5 + $0x454] sm:$0xf] }
 0x87b   : > { %v14683_v61 = vld [vmem:[%s24911_s5 + $0x448] sm:$0xf0] }
 0x87e   : > { %7975 = vmatpush.bf16.msrb.mxu2 %v14658_v2  ;;  %v14739_v2 = vld [vmem:[%s24911_s5 + $0x4b8] sm:$0xf0] }
 0x87f   : > { %v14742_v49 = vor.u32 %v16872_v10, %v14739_v2  ;;  %v16864_v2 = vld [vmem:[%s24911_s5 + $0x474] sm:$0xf] }
 0x883   : > { %7534 = vmatmul.bf16.vlgmr.msrb.gmra.mxu3 %v22798_v31  ;;  %14496 = vmatmul.msk.bf16.vlgmr.msra.gmra.mxu2 %vm6555_vm8, %v14494_v56  ;;  %v16851_v31 = vld [vmem:[%s24911_s5 + $0x404] sm:$0xf0] }
 0x884   : > { %14488 = vmatmul.msk.bf16.vlgmr.msrb.gmra.mxu1 %vm6944_vm5, %v7139_v1  ;;  %v14650_v5 = vor.u32 %v16851_v31, %v14649_v29  ;;  %v16845_v1 = vld [vmem:[%s24911_s5 + $0x3d4] sm:$0xf0]  ;;  %v16836_v29 = vld [vmem:[%s24911_s5 + $0x394] sm:$0xf] }
 0x885   : > { %14498 = vmatmul.msk.bf16.vlgmr.msra.gmra.mxu0 %vm6555_vm8, %v14494_v56  ;;  %7959 = vmatpush.bf16.msrb.mxu1 %v14610_v30  ;;  %v14626_v39 = vor.u32 %v16845_v1, %v14625_v23  ;;  %v14595_v30 = vld [vmem:[%s24911_s5 + $0x398] sm:$0xf0]  ;;  %v16856_v23 = vld [vmem:[%s24911_s5 + $0x434] sm:$0xf] }
 0x886   : > { %7976 = vmatpush.bf16.msrb.mxu2 %v14650_v5  ;;  %8015 = vmatpush.bf16.msra.mxu0 %v14614_v57  ;;  %v14598_v31 = vor.u32 %v16836_v29, %v14595_v30  ;;  %v16870_v5 = vld [vmem:[%s24911_s5 + $0x4a4] sm:$0xf]  ;;  %v14675_v1 = vld [vmem:[%s24911_s5 + $0x438] sm:$0xf0]  ;;  %v14718_v57 = vor.u32 %v16866_v16, %v14715_v60 }
 0x887   : > { %v14734_v8 = vor.u32 %v16870_v5, %v14731_v25  ;;  %v16852_v5 = vld [vmem:[%s24911_s5 + $0x414] sm:$0xf]  ;;  %v14659_v25 = vld [vmem:[%s24911_s5 + $0x418] sm:$0xf0] }
 0x888   : > { %v14643_v60 = vld [vmem:[%s24911_s5 + $0x3f8] sm:$0xf0] }
 0x889   : > { %7960 = vmatpush.bf16.msrb.mxu1 %v14602_v28  ;;  %v14561_v28 = vld [vmem:[%s24911_s5 + $0x350] sm:$0xf] }
 0x88a   : > { %7977 = vmatpush.bf16.msrb.mxu2 %v14642_v50  ;;  %8016 = vmatpush.bf16.msra.mxu0 %v14606_v63  ;;  %v14562_v34 = vor.u32 %v16829_v12, %v14561_v28  ;;  %v16834_v50 = vld [vmem:[%s24911_s5 + $0x384] sm:$0xf]  ;;  %v14707_v63 = vld [vmem:[%s24911_s5 + $0x478] sm:$0xf0]  ;;  %v14662_v28 = vor.u32 %v16852_v5, %v14659_v25 }
 0x88b   : > { %v14590_v36 = vor.u32 %v16834_v50, %v14587_v59  ;;  %v16862_v12 = vld [vmem:[%s24911_s5 + $0x464] sm:$0xf] }
 0x88d   : > { %7961 = vmatpush.bf16.msrb.mxu1 %v14594_v55  ;;  %v14723_v55 = vld [vmem:[%s24911_s5 + $0x498] sm:$0xf0] }
 0x88e   : > { %7978 = vmatpush.bf16.msrb.mxu2 %v14634_v26  ;;  %8017 = vmatpush.bf16.msra.mxu0 %v14598_v31  ;;  %v14726_v37 = vor.u32 %v16868_v54, %v14723_v55  ;;  %v14737_v26 = vld [vmem:[%s24911_s5 + $0x4b0] sm:$0xf]  ;;  %v14563_v31 = vld [vmem:[%s24911_s5 + $0x358] sm:$0xf0]  ;;  %v16867_v54 = vld [vmem:[%s24911_s5 + $0x484] sm:$0xf0] }
 0x88f   : > { %v16826_v55 = vld [vmem:[%s24911_s5 + $0x344] sm:$0xf] }
 0x891   : > { %7962 = vmatpush.bf16.msrb.mxu1 %v14586_v58  ;;  %v14738_v58 = vor.u32 %v16873_v52, %v14737_v26  ;;  %v14558_v26 = vor.u32 %v16826_v55, %v14555_v46  ;;  %v16842_v55 = vld [vmem:[%s24911_s5 + $0x3c4] sm:$0xf] }
 0x892   : > { %7979 = vmatpush.bf16.msrb.mxu2 %v14626_v39  ;;  %8018 = vmatpush.bf16.msra.mxu0 %v14590_v36  ;;  %v14678_v39 = vor.u32 %v16856_v23, %v14675_v1  ;;  %v14713_v36 = vld [vmem:[%s24911_s5 + $0x480] sm:$0xf]  ;;  %v14705_v1 = vld [vmem:[%s24911_s5 + $0x470] sm:$0xf] }
 0x893   : > { %14497 = vmatmul.msk.bf16.vlgmr.msra.gmra.mxu3 %vm6555_vm8, %v14494_v56 }
 0x894   : > { %14495 = vmatmul.msk.bf16.vlgmr.msra.gmra.mxu1 %vm6555_vm8, %v14494_v56  ;;  %v14569_v56 = vld [vmem:[%s24911_s5 + $0x360] sm:$0xf]  ;;  %7987 = vmatpush.bf16.msrb.mxu3 %v14738_v58  ;;  %v14691_v58 = vld [vmem:[%s24911_s5 + $0x458] sm:$0xf0] }
 0x895   : > { %7963 = vmatpush.bf16.msrb.mxu1 %v14578_v14  ;;  %v14570_v40 = vor.u32 %v16831_v33, %v14569_v56  ;;  %v16830_v14 = vld [vmem:[%s24911_s5 + $0x364] sm:$0xf]  ;;  %v14721_v56 = vld [vmem:[%s24911_s5 + $0x490] sm:$0xf]  ;;  %v16869_v33 = vld [vmem:[%s24911_s5 + $0x494] sm:$0xf0]  ;;  %v14694_v48 = vor.u32 %v16860_v42, %v14691_v58 }
 0x896   : > { %7980 = vmatpush.bf16.msrb.mxu2 %v14618_v7  ;;  %8019 = vmatpush.bf16.msra.mxu0 %v14582_v3  ;;  %v14667_v7 = vld [vmem:[%s24911_s5 + $0x428] sm:$0xf0]  ;;  %v14574_v27 = vor.u32 %v16830_v14, %v14571_v45  ;;  %v14722_v30 = vor.u32 %v16869_v33, %v14721_v56  ;;  %v16865_v3 = vld [vmem:[%s24911_s5 + $0x474] sm:$0xf0] }
 0x897   : > { %v14670_v10 = vor.u32 %v16854_v15, %v14667_v7  ;;  %v14706_v16 = vor.u32 %v16865_v3, %v14705_v1  ;;  %v14697_v15 = vld [vmem:[%s24911_s5 + $0x460] sm:$0xf]  ;;  %v16863_v7 = vld [vmem:[%s24911_s5 + $0x464] sm:$0xf0]  ;;  %v16874_v1 = vld [vmem:[%s24911_s5 + $0x4c4] sm:$0xf] }
 0x898   : > { %7988 = vmatpush.bf16.msrb.mxu3 %v14730_v11  ;;  %v14747_v3 = vld [vmem:[%s24911_s5 + $0x4c8] sm:$0xf0] }
 0x899   : > { %7964 = vmatpush.bf16.msrb.mxu1 %v14570_v40  ;;  %v16828_v40 = vld [vmem:[%s24911_s5 + $0x354] sm:$0xf] }
 0x89a   : > { %8043 = vmatpush.bf16.msra.mxu2 %v14742_v49  ;;  %v14710_v49 = vor.u32 %v16864_v2, %v14707_v63  ;;  %8020 = vmatpush.bf16.msra.mxu0 %v14574_v27  ;;  %v16846_v27 = vld [vmem:[%s24911_s5 + $0x3e4] sm:$0xf]  ;;  %v14635_v2 = vld [vmem:[%s24911_s5 + $0x3e8] sm:$0xf0]  ;;  %v23303_v63 = vld [vmem:[%s24912_s6] sm:$0x3] }
 0x89b   : > { %v7061_v5 = vperm.slane %v23303_v63, 0 }
 0x89c   : > { %7989 = vmatpush.bf16.msrb.mxu3 %v14722_v30  ;;  %v16861_v30 = vld [vmem:[%s24911_s5 + $0x454] sm:$0xf0] }
 0x89d   : > { %7965 = vmatpush.bf16.msrb.mxu1 %v14562_v34  ;;  %v14699_v34 = vld [vmem:[%s24911_s5 + $0x468] sm:$0xf0] }
 0x89e   : > { %8044 = vmatpush.bf16.msra.mxu2 %v14734_v8  ;;  %v14566_v8 = vor.u32 %v16828_v40, %v14563_v31  ;;  %v14702_v59 = vor.u32 %v16862_v12, %v14699_v34  ;;  %v14689_v40 = vld [vmem:[%s24911_s5 + $0x450] sm:$0xf]  ;;  %v16844_v31 = vld [vmem:[%s24911_s5 + $0x3d4] sm:$0xf] }
 0x8a0   : > { %8021 = vmatpush.bf16.msra.mxu0 %v14566_v8  ;;  %v14690_v8 = vor.u32 %v16861_v30, %v14689_v40 }
 0x8a1   : > { %7966 = vmatpush.bf16.msrb.mxu1 %v14554_v24  ;;  %v14651_v24 = vld [vmem:[%s24911_s5 + $0x408] sm:$0xf0] }
 0x8a2   : > { %8045 = vmatpush.bf16.msra.mxu2 %v14726_v37  ;;  %v14714_v37 = vor.u32 %v16867_v54, %v14713_v36  ;;  %v14654_v52 = vor.u32 %v16850_v53, %v14651_v24  ;;  %v14681_v54 = vld [vmem:[%s24911_s5 + $0x440] sm:$0xf]  ;;  %v14619_v24 = vld [vmem:[%s24911_s5 + $0x3c8] sm:$0xf0] }
 0x8a3   : > { %v14622_v42 = vor.u32 %v16842_v55, %v14619_v24  ;;  %v16878_v24 = vld [vmem:[%s24910_s4 + $0x18] sm:$0x30] }
 0x8a4   : > { %7990 = vmatpush.bf16.msrb.mxu3 %v14714_v37  ;;  %8022 = vmatpush.bf16.msra.mxu0 %v14558_v26  ;;  %v7065_v37 = vadd.f32 %v7061_v5, %v22967_v21  ;;  %v16876_v26 = vld [vmem:[%s24911_s5 + $0x4d4] sm:$0xf] }
 0x8a5   : > { %8029 = vmatpush.bf16.msra.mxu1 %v14678_v39  ;;  %v16848_v39 = vld [vmem:[%s24911_s5 + $0x3f4] sm:$0xf] }
 0x8a6   : > { %8046 = vmatpush.bf16.msra.mxu2 %v14718_v57  ;;  %v16858_v57 = vld [vmem:[%s24911_s5 + $0x444] sm:$0xf]  ;;  %v14646_v4 = vor.u32 %v16848_v39, %v14643_v60  ;;  %v14750_v39 = vor.u32 %v16874_v1, %v14747_v3  ;;  %v14913_v3 = vld [vmem:[%s24911_s5 + $0x590] sm:$0xf] }
 0x8a7   : > { %v23175_v44 = vpop.f32.mrf.mxu0  ;;  %v14686_v14 = vor.u32 %v16858_v57, %v14683_v61 }
 0x8a8   : > { %7991 = vmatpush.bf16.msrb.mxu3 %v14706_v16 }
 0x8a9   : > { %8030 = vmatpush.bf16.msra.mxu1 %v14670_v10  ;;  %v14698_v10 = vor.u32 %v16863_v7, %v14697_v15 }
 0x8aa   : > { %8047 = vmatpush.bf16.msra.mxu2 %v14710_v49  ;;  %v14638_v49 = vor.u32 %v16846_v27, %v14635_v2 }
 0x8ac   : > { %7992 = vmatpush.bf16.msrb.mxu3 %v14698_v10 }
 0x8ad   : > { %8031 = vmatpush.bf16.msra.mxu1 %v14662_v28  ;;  %v14627_v28 = vld [vmem:[%s24911_s5 + $0x3d8] sm:$0xf0] }
 0x8ae   : > { %8048 = vmatpush.bf16.msra.mxu2 %v14702_v59  ;;  %v14630_v12 = vor.u32 %v16844_v31, %v14627_v28  ;;  %v14945_v28 = vld [vmem:[%s24911_s5 + $0x5d0] sm:$0xf] }
 0x8af   : > { %v23242_v50 = vpop.f32.mrf.mxu0 }
 0x8b0   : > { %7993 = vmatpush.bf16.msrb.mxu3 %v14690_v8 }
 0x8b1   : > { %8032 = vmatpush.bf16.msra.mxu1 %v14654_v52  ;;  %v14755_v52 = vld [vmem:[%s24911_s5 + $0x4d8] sm:$0xf0] }
 0x8b2   : > { %8049 = vmatpush.bf16.msra.mxu2 %v14694_v48  ;;  %v14758_v58 = vor.u32 %v16876_v26, %v14755_v52 }
 0x8b5   : > { %8033 = vmatpush.bf16.msra.mxu1 %v14646_v4  ;;  %v7062_v4 = vperm.slane %v23303_v63, 1 }
 0x8b6   : > { %8050 = vmatpush.bf16.msra.mxu2 %v14686_v14 }
 0x8b7   : > { %v7066_v2 = vadd.f32 %v7062_v4, %v22991_v9 }
 0x8b9   : > { %8034 = vmatpush.bf16.msra.mxu1 %v14638_v49 }
 0x8bd   : > { %8035 = vmatpush.bf16.msra.mxu1 %v14630_v12  ;;  %v16910_v12 = vld [vmem:[%s24911_s5 + $0x5d4] sm:$0xf0] }
 0x8c1   : > { %8036 = vmatpush.bf16.msra.mxu1 %v14622_v42  ;;  %v14921_v42 = vld [vmem:[%s24911_s5 + $0x5a0] sm:$0xf] }
 0x8e6   : > { %v23225_v29 = vpop.f32.mrf.mxu2 }
 0x8ee   : > { %v23268_v23 = vpop.f32.mrf.mxu2 }
 0x8f1   : > { %v7493_v11 = vpop.f32.mrf.mxu1 }
 0x8f2   : > { %v7549_v45 = vpop.f32.mrf.mxu0 }
 0x8f6   : > { %v7465_v56 = vpop.f32.mrf.mxu3  ;;  %v7521_v33 = vpop.f32.mrf.mxu2 }
 0x8f7   : > { %v7480_v25 = vadd.f32 %v23175_v44, %v7465_v56  ;;  %v16859_v44 = vld [vmem:[%s24911_s5 + $0x444] sm:$0xf0] }
 0x8f8   : > { %v14682_v53 = vor.u32 %v16859_v44, %v14681_v54  ;;  %v14946_v54 = vor.u32 %v16910_v12, %v14945_v28  ;;  %v16908_v44 = vld [vmem:[%s24911_s5 + $0x5c4] sm:$0xf0]  ;;  %v16923_v12 = vld [vmem:[%s24911_s5 + $0x644] sm:$0xf] }
 0x8f9   : > { %v7494_v34 = vadd.f32 %v7493_v11, %v7480_v25  ;;  %v23319_v59 = vpop.f32.mrf.mxu1 }
 0x8fa   : > { %v23321_v36 = vpop.f32.mrf.mxu0  ;;  %7994 = vmatpush.bf16.msrb.mxu3 %v14682_v53  ;;  %v14765_v53 = vld [vmem:[%s24910_s4 + $0x18] sm:$0xf] }
 0x8fb   : > { %v7508_v46 = vadd.f32 %v23225_v29, %v7494_v34  ;;  %v14937_v34 = vld [vmem:[%s24911_s5 + $0x5c0] sm:$0xf]  ;;  %v14766_v52 = vor.u32 %v16878_v24, %v14765_v53  ;;  %v16930_v53 = vld [vmem:[%s24911_s5 + $0x674] sm:$0xf0]  ;;  %v16921_v24 = vld [vmem:[%s24911_s5 + $0x634] sm:$0xf] }
 0x8fc   : > { %v14938_v55 = vor.u32 %v16908_v44, %v14937_v34  ;;  %v15003_v34 = vld [vmem:[%s24911_s5 + $0x648] sm:$0xf0]  ;;  %v14865_v44 = vld [vmem:[%s24911_s5 + $0x530] sm:$0xf] }
 0x8fd   : > { %v23345_v48 = vadd.f32 %v7508_v46, %v7065_v37  ;;  %v14929_v37 = vld [vmem:[%s24911_s5 + $0x5b0] sm:$0xf]  ;;  %v16906_v46 = vld [vmem:[%s24911_s5 + $0x5b4] sm:$0xf0] }
 0x8fe   : > { %v23347_v21 = vpop.f32.mrf.mxu3  ;;  %v23349_v29 = vpop.f32.mrf.mxu2  ;;  %8063 = vmatpush.bf16.msra.mxu3 %v14758_v58  ;;  %v14930_v26 = vor.u32 %v16906_v46, %v14929_v37  ;;  %v16904_v58 = vld [vmem:[%s24911_s5 + $0x5a4] sm:$0xf0]  ;;  %v15025_v37 = vld [vmem:[%s24911_s5 + $0x670] sm:$0xf] }
 0x8ff   : > { %v14922_v1 = vor.u32 %v16904_v58, %v14921_v42  ;;  %v14857_v58 = vld [vmem:[%s24911_s5 + $0x520] sm:$0xf] }
 0x901   : > { %v7563_v16 = vpop.f32.mrf.mxu1 }
 0x902   : > { %v7634_v60 = vpop.f32.mrf.mxu0  ;;  %8064 = vmatpush.bf16.msra.mxu3 %v14750_v39  ;;  %v16902_v39 = vld [vmem:[%s24911_s5 + $0x594] sm:$0xf0] }
 0x906   : > { %v7535_v57 = vpop.f32.mrf.mxu3  ;;  %v7606_v61 = vpop.f32.mrf.mxu2 }
 0x907   : > { %v7536_v14 = vadd.f32 %v7535_v57, %v7521_v33  ;;  %v16900_v57 = vld [vmem:[%s24911_s5 + $0x584] sm:$0xf0] }
 0x909   : > { %v7550_v11 = vadd.f32 %v7549_v45, %v7536_v14  ;;  %v23358_v15 = vpop.f32.mrf.mxu1  ;;  %v14897_v14 = vld [vmem:[%s24911_s5 + $0x570] sm:$0xf] }
 0x90a   : > { %v7636_v7 = vpop.f32.mrf.mxu0 }
 0x90b   : > { %v7564_v27 = vadd.f32 %v7563_v16, %v7550_v11  ;;  %v7642_v10 = vpack.c.bf16 %v7636_v7, %v7634_v60  ;;  %v14914_v16 = vor.u32 %v16902_v39, %v14913_v3  ;;  %v14905_v60 = vld [vmem:[%s24911_s5 + $0x580] sm:$0xf]  ;;  %v16898_v11 = vld [vmem:[%s24911_s5 + $0x574] sm:$0xf0] }
 0x90c   : > { %v14898_v7 = vor.u32 %v16898_v11, %v14897_v14  ;;  %v15017_v3 = vld [vmem:[%s24911_s5 + $0x660] sm:$0xf]  ;;  %v16893_v11 = vld [vmem:[%s24911_s5 + $0x554] sm:$0xf] }
 0x90d   : > { %14759 = vmatmul.msk.bf16.vlgmr.msrb.gmra.mxu0 %vm6944_vm5, %v7642_v10  ;;  %v23364_v49 = vadd.f32 %v7564_v27, %v7066_v2  ;;  %v14881_v27 = vld [vmem:[%s24911_s5 + $0x550] sm:$0xf]  ;;  %v14889_v2 = vld [vmem:[%s24911_s5 + $0x560] sm:$0xf] }
 0x90e   : > { %8106 = vmatpush.bf16.msrb.mxu0 %v22190_v62  ;;  %v23367_v56 = vpop.f32.mrf.mxu3  ;;  %v7608_v40 = vpop.f32.mrf.mxu2 }
 0x90f   : > { %v7640_v33 = vpack.c.bf16 %v7608_v40, %v7606_v61  ;;  %v14906_v61 = vor.u32 %v16900_v57, %v14905_v60  ;;  %v15009_v60 = vld [vmem:[%s24911_s5 + $0x650] sm:$0xf]  ;;  %v16926_v57 = vld [vmem:[%s24911_s5 + $0x654] sm:$0xf0] }
 0x910   : > { %v15010_v14 = vor.u32 %v16926_v57, %v15009_v60  ;;  %v14833_v60 = vld [vmem:[%s24911_s5 + $0x4f0] sm:$0xf]  ;;  %v16882_v57 = vld [vmem:[%s24911_s5 + $0x4f4] sm:$0xf0] }
 0x911   : > { %v7592_v45 = vpop.f32.mrf.mxu1  ;;  %7981 = vmatmul.bf16.vlgmr.msrb.gmra.mxu2 %v7640_v33 }
 0x912   : > { %8107 = vmatpush.bf16.msrb.mxu0 %v22202_v51  ;;  %8134 = vmatpush.bf16.msrb.mxu2 %v22333_v41 }
 0x916   : > { %8135 = vmatpush.bf16.msrb.mxu2 %v22383_v19  ;;  %v7620_v30 = vpop.f32.mrf.mxu3 }
 0x919   : > { %v7594_v9 = vpop.f32.mrf.mxu1 }
 0x91a   : > { %v7639_v31 = vpack.c.bf16 %v7594_v9, %v7592_v45  ;;  %v16925_v45 = vld [vmem:[%s24911_s5 + $0x654] sm:$0xf] }
 0x91c   : > { %7967 = vmatmul.bf16.vlgmr.msrb.gmra.mxu1 %v7639_v31 }
 0x91d   : > { %8023 = vmatmul.bf16.vlgmr.msra.gmra.mxu0 %v7639_v31  ;;  %8120 = vmatpush.bf16.msrb.mxu1 %v22317_v17 }
 0x91e   : > { %v7622_v25 = vpop.f32.mrf.mxu3  ;;  %8476 = vmatpush.bf16.msra.mxu0 %v14946_v54  ;;  %v15006_v54 = vor.u32 %v16923_v12, %v15003_v34  ;;  %v16917_v12 = vld [vmem:[%s24911_s5 + $0x614] sm:$0xf]  ;;  %v14979_v34 = vld [vmem:[%s24911_s5 + $0x618] sm:$0xf0] }
 0x91f   : > { %v7641_v8 = vpack.c.bf16 %v7622_v25, %v7620_v30  ;;  %v15011_v30 = vld [vmem:[%s24911_s5 + $0x658] sm:$0xf0]  ;;  %v14873_v25 = vld [vmem:[%s24911_s5 + $0x540] sm:$0xf] }
 0x920   : > { %v15014_v31 = vor.u32 %v16925_v45, %v15011_v30  ;;  %v16886_v45 = vld [vmem:[%s24911_s5 + $0x514] sm:$0xf0] }
 0x921   : > { %8121 = vmatpush.bf16.msrb.mxu1 %v22342_v20  ;;  %7995 = vmatmul.bf16.vlgmr.msrb.gmra.mxu3 %v7641_v8 }
 0x922   : > { %8051 = vmatmul.bf16.vlgmr.msra.gmra.mxu2 %v7641_v8  ;;  %8092 = vmatpush.bf16.msrb.mxu3 %v22102_v38  ;;  %v16892_v8 = vld [vmem:[%s24911_s5 + $0x544] sm:$0xf0] }
 0x923   : > { %8477 = vmatpush.bf16.msra.mxu0 %v14938_v55  ;;  %v14874_v28 = vor.u32 %v16892_v8, %v14873_v25  ;;  %v16890_v55 = vld [vmem:[%s24911_s5 + $0x534] sm:$0xf0]  ;;  %v16891_v25 = vld [vmem:[%s24911_s5 + $0x544] sm:$0xf] }
 0x924   : > { %v14866_v46 = vor.u32 %v16890_v55, %v14865_v44  ;;  %v14982_v44 = vor.u32 %v16917_v12, %v14979_v34  ;;  %v14841_v55 = vld [vmem:[%s24911_s5 + $0x500] sm:$0xf] }
 0x926   : > { %8093 = vmatpush.bf16.msrb.mxu3 %v22113_v22 }
 0x927   : > { %8478 = vmatpush.bf16.msra.mxu0 %v14930_v26  ;;  %v14995_v26 = vld [vmem:[%s24911_s5 + $0x638] sm:$0xf0] }
 0x928   : > { %v14998_v42 = vor.u32 %v16921_v24, %v14995_v26  ;;  %v16922_v24 = vld [vmem:[%s24911_s5 + $0x634] sm:$0xf0]  ;;  %v16889_v26 = vld [vmem:[%s24911_s5 + $0x534] sm:$0xf] }
 0x92b   : > { %8479 = vmatpush.bf16.msra.mxu0 %v14922_v1  ;;  %v16888_v1 = vld [vmem:[%s24911_s5 + $0x524] sm:$0xf0] }
 0x92c   : > { %8037 = vmatmul.bf16.vlgmr.msra.gmra.mxu1 %v7640_v33  ;;  %v16896_v33 = vld [vmem:[%s24911_s5 + $0x564] sm:$0xf0]  ;;  %v14858_v39 = vor.u32 %v16888_v1, %v14857_v58  ;;  %v14867_v58 = vld [vmem:[%s24911_s5 + $0x538] sm:$0xf0]  ;;  %v16915_v1 = vld [vmem:[%s24911_s5 + $0x604] sm:$0xf] }
 0x92d   : > { %14768 = vmatmul.msk.bf16.vlgmr.msrb.gmra.mxu0 %vm6555_vm8, %v14766_v52  ;;  %v14890_v9 = vor.u32 %v16896_v33, %v14889_v2  ;;  %v14987_v2 = vld [vmem:[%s24911_s5 + $0x628] sm:$0xf0]  ;;  %8490 = vmatpush.bf16.msra.mxu1 %v15010_v14  ;;  %v14849_v33 = vld [vmem:[%s24911_s5 + $0x510] sm:$0xf]  ;;  %v14985_v14 = vld [vmem:[%s24911_s5 + $0x620] sm:$0xf] }
 0x92e   : > { %v14850_v30 = vor.u32 %v16886_v45, %v14849_v33 }
 0x92f   : > { %8480 = vmatpush.bf16.msra.mxu0 %v14914_v16  ;;  %v16928_v16 = vld [vmem:[%s24911_s5 + $0x664] sm:$0xf0] }
 0x931   : > { %14760 = vmatmul.msk.bf16.vlgmr.msra.gmra.mxu3 %vm6944_vm5, %v7642_v10  ;;  %v16894_v10 = vld [vmem:[%s24911_s5 + $0x554] sm:$0xf0] }
 0x932   : > { %14770 = vmatmul.msk.bf16.vlgmr.msrb.gmra.mxu2 %vm6555_vm8, %v14766_v52  ;;  %v14882_v40 = vor.u32 %v16894_v10, %v14881_v27  ;;  %v16919_v27 = vld [vmem:[%s24911_s5 + $0x624] sm:$0xf] }
 0x933   : > { %8481 = vmatpush.bf16.msra.mxu0 %v14906_v61  ;;  %v15018_v61 = vor.u32 %v16928_v16, %v15017_v3  ;;  %v14971_v3 = vld [vmem:[%s24911_s5 + $0x608] sm:$0xf0] }
 0x934   : > { %8462 = vmatpush.bf16.msra.mxu3 %v14882_v40  ;;  %v14990_v40 = vor.u32 %v16919_v27, %v14987_v2  ;;  %v14974_v16 = vor.u32 %v16915_v1, %v14971_v3  ;;  %v16913_v2 = vld [vmem:[%s24911_s5 + $0x5f4] sm:$0xf]  ;;  %v16916_v1 = vld [vmem:[%s24911_s5 + $0x604] sm:$0xf0]  ;;  %v16883_v3 = vld [vmem:[%s24911_s5 + $0x504] sm:$0xf] }
 0x937   : > { %8482 = vmatpush.bf16.msra.mxu0 %v14898_v7  ;;  %v14883_v7 = vld [vmem:[%s24911_s5 + $0x558] sm:$0xf0] }
 0x938   : > { %8463 = vmatpush.bf16.msra.mxu3 %v14874_v28  ;;  %v14886_v10 = vor.u32 %v16893_v11, %v14883_v7  ;;  %v14875_v28 = vld [vmem:[%s24911_s5 + $0x548] sm:$0xf0]  ;;  %v16920_v11 = vld [vmem:[%s24911_s5 + $0x624] sm:$0xf0]  ;;  %v16887_v7 = vld [vmem:[%s24911_s5 + $0x524] sm:$0xf] }
 0x939   : > { %v14986_v27 = vor.u32 %v16920_v11, %v14985_v14 }
 0x93b   : > { %8483 = vmatpush.bf16.msra.mxu0 %v14890_v9  ;;  %v15001_v9 = vld [vmem:[%s24911_s5 + $0x640] sm:$0xf] }
 0x93c   : > { %14769 = vmatmul.msk.bf16.vlgmr.msrb.gmra.mxu1 %vm6555_vm8, %v14766_v52  ;;  %8464 = vmatpush.bf16.msra.mxu3 %v14866_v46 }
 0x93f   : > { %8546 = vmatpush.bf16.msrb.mxu0 %v15014_v31  ;;  %v16924_v31 = vld [vmem:[%s24911_s5 + $0x644] sm:$0xf0] }
 0x940   : > { %8465 = vmatpush.bf16.msra.mxu3 %v14858_v39  ;;  %v15002_v8 = vor.u32 %v16924_v31, %v15001_v9  ;;  %v14870_v39 = vor.u32 %v16889_v26, %v14867_v58  ;;  %v16880_v9 = vld [vmem:[%s24911_s5 + $0x4e4] sm:$0xf0]  ;;  %v14969_v58 = vld [vmem:[%s24911_s5 + $0x600] sm:$0xf] }
 0x941   : > { %14767 = vmatmul.msk.bf16.vlgmr.msrb.gmra.mxu3 %vm6555_vm8, %v14766_v52  ;;  %v15026_v52 = vor.u32 %v16930_v53, %v15025_v37  ;;  %v16884_v37 = vld [vmem:[%s24911_s5 + $0x504] sm:$0xf0]  ;;  %v14993_v53 = vld [vmem:[%s24911_s5 + $0x630] sm:$0xf] }
 0x942   : > { %8491 = vmatpush.bf16.msra.mxu1 %v15002_v8  ;;  %v14842_v46 = vor.u32 %v16884_v37, %v14841_v55  ;;  %v16918_v8 = vld [vmem:[%s24911_s5 + $0x614] sm:$0xf0]  ;;  %v14947_v55 = vld [vmem:[%s24911_s5 + $0x5d8] sm:$0xf0] }
 0x943   : > { %8547 = vmatpush.bf16.msrb.mxu0 %v15006_v54  ;;  %8510 = vmatpush.bf16.msra.mxu2 %v15026_v52  ;;  %v14878_v54 = vor.u32 %v16891_v25, %v14875_v28  ;;  %v14977_v25 = vld [vmem:[%s24911_s5 + $0x610] sm:$0xf]  ;;  %v16885_v28 = vld [vmem:[%s24911_s5 + $0x514] sm:$0xf] }
 0x944   : > { %8466 = vmatpush.bf16.msra.mxu3 %v14850_v30  ;;  %v14825_v30 = vld [vmem:[%s24911_s5 + $0x4e0] sm:$0xf]  ;;  %v14978_v34 = vor.u32 %v16918_v8, %v14977_v25 }
 0x945   : > { %v14826_v31 = vor.u32 %v16880_v9, %v14825_v30  ;;  %v16905_v30 = vld [vmem:[%s24911_s5 + $0x5b4] sm:$0xf]  ;;  %v14931_v9 = vld [vmem:[%s24911_s5 + $0x5b8] sm:$0xf0] }
 0x946   : > { %v14934_v25 = vor.u32 %v16905_v30, %v14931_v9 }
 0x947   : > { %8548 = vmatpush.bf16.msrb.mxu0 %v14998_v42  ;;  %8511 = vmatpush.bf16.msra.mxu2 %v15018_v61  ;;  %v14994_v42 = vor.u32 %v16922_v24, %v14993_v53  ;;  %v14834_v61 = vor.u32 %v16882_v57, %v14833_v60  ;;  %v16911_v53 = vld [vmem:[%s24911_s5 + $0x5e4] sm:$0xf]  ;;  %v14955_v24 = vld [vmem:[%s24911_s5 + $0x5e8] sm:$0xf0] }
 0x948   : > { %8467 = vmatpush.bf16.msra.mxu3 %v14842_v46  ;;  %v16907_v60 = vld [vmem:[%s24911_s5 + $0x5c4] sm:$0xf]  ;;  %v14939_v57 = vld [vmem:[%s24911_s5 + $0x5c8] sm:$0xf0] }
 0x949   : > { %8492 = vmatpush.bf16.msra.mxu1 %v14994_v42  ;;  %v14958_v42 = vor.u32 %v16911_v53, %v14955_v24  ;;  %v14942_v14 = vor.u32 %v16907_v60, %v14939_v57  ;;  %v16927_v57 = vld [vmem:[%s24911_s5 + $0x664] sm:$0xf] }
 0x94b   : > { %8518 = vmatpush.bf16.msrb.mxu2 %v14886_v10  ;;  %8549 = vmatpush.bf16.msrb.mxu0 %v14990_v40  ;;  %v14859_v10 = vld [vmem:[%s24911_s5 + $0x528] sm:$0xf0]  ;;  %v14963_v40 = vld [vmem:[%s24911_s5 + $0x5f8] sm:$0xf0] }
 0x94c   : > { %8468 = vmatpush.bf16.msra.mxu3 %v14834_v61  ;;  %v14862_v33 = vor.u32 %v16887_v7, %v14859_v10  ;;  %v14966_v45 = vor.u32 %v16913_v2, %v14963_v40  ;;  %v14961_v7 = vld [vmem:[%s24911_s5 + $0x5f0] sm:$0xf]  ;;  %v16881_v10 = vld [vmem:[%s24911_s5 + $0x4f4] sm:$0xf] }
 0x94d   : > { %8493 = vmatpush.bf16.msra.mxu1 %v14986_v27  ;;  %v16914_v27 = vld [vmem:[%s24911_s5 + $0x5f4] sm:$0xf0] }
 0x94f   : > { %8519 = vmatpush.bf16.msrb.mxu2 %v14878_v54  ;;  %8550 = vmatpush.bf16.msrb.mxu0 %v14982_v44  ;;  %v14851_v54 = vld [vmem:[%s24911_s5 + $0x518] sm:$0xf0]  ;;  %v16909_v44 = vld [vmem:[%s24911_s5 + $0x5d4] sm:$0xf] }
 0x950   : > { %8469 = vmatpush.bf16.msra.mxu3 %v14826_v31  ;;  %v14854_v37 = vor.u32 %v16885_v28, %v14851_v54  ;;  %v14950_v46 = vor.u32 %v16909_v44, %v14947_v55  ;;  %v14953_v28 = vld [vmem:[%s24911_s5 + $0x5e0] sm:$0xf]  ;;  %v16879_v54 = vld [vmem:[%s24911_s5 + $0x4e4] sm:$0xf]  ;;  %v14827_v55 = vld [vmem:[%s24911_s5 + $0x4e8] sm:$0xf0] }
 0x951   : > { %8494 = vmatpush.bf16.msra.mxu1 %v14978_v34  ;;  %v16912_v34 = vld [vmem:[%s24911_s5 + $0x5e4] sm:$0xf0]  ;;  %v14830_v53 = vor.u32 %v16879_v54, %v14827_v55 }
 0x952   : > { %v14954_v44 = vor.u32 %v16912_v34, %v14953_v28 }
 0x953   : > { %8520 = vmatpush.bf16.msrb.mxu2 %v14870_v39  ;;  %8551 = vmatpush.bf16.msrb.mxu0 %v14974_v16  ;;  %v14970_v39 = vor.u32 %v16916_v1, %v14969_v58  ;;  %v14843_v16 = vld [vmem:[%s24911_s5 + $0x508] sm:$0xf0] }
 0x954   : > { %8532 = vmatpush.bf16.msrb.mxu3 %v14950_v46  ;;  %v14846_v61 = vor.u32 %v16883_v3, %v14843_v16  ;;  %v14923_v46 = vld [vmem:[%s24911_s5 + $0x5a8] sm:$0xf0]  ;;  %v16901_v3 = vld [vmem:[%s24911_s5 + $0x594] sm:$0xf] }
 0x955   : > { %8495 = vmatpush.bf16.msra.mxu1 %v14970_v39  ;;  %v14915_v39 = vld [vmem:[%s24911_s5 + $0x598] sm:$0xf0] }
 0x956   : > { %v14918_v60 = vor.u32 %v16901_v3, %v14915_v39 }
 0x957   : > { %8521 = vmatpush.bf16.msrb.mxu2 %v14862_v33  ;;  %8552 = vmatpush.bf16.msrb.mxu0 %v14966_v45  ;;  %v14962_v33 = vor.u32 %v16914_v27, %v14961_v7  ;;  %v14835_v45 = vld [vmem:[%s24911_s5 + $0x4f8] sm:$0xf0] }
 0x958   : > { %8533 = vmatpush.bf16.msrb.mxu3 %v14942_v14  ;;  %v14838_v31 = vor.u32 %v16881_v10, %v14835_v45  ;;  %v16899_v10 = vld [vmem:[%s24911_s5 + $0x584] sm:$0xf] }
 0x959   : > { %8496 = vmatpush.bf16.msra.mxu1 %v14962_v33  ;;  %v14907_v33 = vld [vmem:[%s24911_s5 + $0x588] sm:$0xf0] }
 0x95a   : > { %v14910_v45 = vor.u32 %v16899_v10, %v14907_v33  ;;  %v15145_v33 = vld [vmem:[%s24911_s5 + $0x6e0] sm:$0xf] }
 0x95b   : > { %8522 = vmatpush.bf16.msrb.mxu2 %v14854_v37  ;;  %8553 = vmatpush.bf16.msrb.mxu0 %v14958_v42  ;;  %v16903_v37 = vld [vmem:[%s24911_s5 + $0x5a4] sm:$0xf]  ;;  %v15027_v42 = vld [vmem:[%s24911_s5 + $0x678] sm:$0xf0] }
 0x95c   : > { %8534 = vmatpush.bf16.msrb.mxu3 %v14934_v25  ;;  %v14926_v24 = vor.u32 %v16903_v37, %v14923_v46  ;;  %v14899_v25 = vld [vmem:[%s24911_s5 + $0x578] sm:$0xf0]  ;;  %v14891_v37 = vld [vmem:[%s24911_s5 + $0x568] sm:$0xf0] }
 0x95d   : > { %8497 = vmatpush.bf16.msra.mxu1 %v14954_v44 }
 0x95f   : > { %8523 = vmatpush.bf16.msrb.mxu2 %v14846_v61  ;;  %v15019_v61 = vld [vmem:[%s24911_s5 + $0x668] sm:$0xf0] }
 0x960   : > { %8535 = vmatpush.bf16.msrb.mxu3 %v14926_v24  ;;  %v15022_v14 = vor.u32 %v16927_v57, %v15019_v61 }
 0x963   : > { %8524 = vmatpush.bf16.msrb.mxu2 %v14838_v31 }
 0x964   : > { %8536 = vmatpush.bf16.msrb.mxu3 %v14918_v60 }
 0x967   : > { %8525 = vmatpush.bf16.msrb.mxu2 %v14830_v53 }
 0x968   : > { %8537 = vmatpush.bf16.msrb.mxu3 %v14910_v45  ;;  %v16945_v45 = vld [vmem:[%s24911_s5 + $0x6e4] sm:$0xf0] }
 0x98a   : > { %v23546_v52 = vpop.f32.mrf.mxu0 }
 0x992   : > { %v23596_v12 = vpop.f32.mrf.mxu0 }
 0x994   : > { %v7982_v26 = vpop.f32.mrf.mxu2 }
 0x999   : > { %v7968_v11 = vpop.f32.mrf.mxu1 }
 0x99a   : > { %v7983_v2 = vadd.f32 %v7982_v26, %v7968_v11  ;;  %v8024_v40 = vpop.f32.mrf.mxu0  ;;  %v16929_v26 = vld [vmem:[%s24911_s5 + $0x674] sm:$0xf] }
 0x99b   : > { %v15030_v58 = vor.u32 %v16929_v26, %v15027_v42 }
 0x99c   : > { %v23649_v8 = vpop.f32.mrf.mxu2 }
 0x99d   : > { %8566 = vmatpush.bf16.msrb.mxu1 %v15030_v58 }
 0x9a1   : > { %v23675_v1 = vpop.f32.mrf.mxu1  ;;  %8567 = vmatpush.bf16.msrb.mxu1 %v15022_v14 }
 0x9a2   : > { %v23683_v16 = vpop.f32.mrf.mxu0 }
 0x9a4   : > { %v7996_v11 = vpop.f32.mrf.mxu3 }
 0x9a5   : > { %v7997_v7 = vadd.f32 %v7996_v11, %v7983_v2  ;;  %v8052_v27 = vpop.f32.mrf.mxu2  ;;  %v16897_v2 = vld [vmem:[%s24911_s5 + $0x574] sm:$0xf] }
 0x9a6   : > { %v14902_v54 = vor.u32 %v16897_v2, %v14899_v25  ;;  %v16961_v2 = vld [vmem:[%s24911_s5 + $0x764] sm:$0xf0]  ;;  %v15137_v25 = vld [vmem:[%s24911_s5 + $0x6d0] sm:$0xf] }
 0x9a7   : > { %v8011_v30 = vadd.f32 %v23546_v52, %v7997_v7 }
 0x9a8   : > { %8538 = vmatpush.bf16.msrb.mxu3 %v14902_v54 }
 0x9a9   : > { %v23699_v9 = vadd.f32 %v8011_v30, %v23345_v48  ;;  %v8038_v31 = vpop.f32.mrf.mxu1  ;;  %v16895_v48 = vld [vmem:[%s24911_s5 + $0x564] sm:$0xf]  ;;  %v15209_v30 = vld [vmem:[%s24911_s5 + $0x760] sm:$0xf] }
 0x9aa   : > { %v8039_v28 = vadd.f32 %v8038_v31, %v8024_v40  ;;  %v8109_v34 = vpop.f32.mrf.mxu0  ;;  %v14894_v46 = vor.u32 %v16895_v48, %v14891_v37  ;;  %v15146_v31 = vor.u32 %v16945_v45, %v15145_v33  ;;  %v16959_v48 = vld [vmem:[%s24911_s5 + $0x754] sm:$0xf0]  ;;  %v16937_v33 = vld [vmem:[%s24911_s5 + $0x6a4] sm:$0xf0]  ;;  %v16944_v45 = vld [vmem:[%s24911_s5 + $0x6e4] sm:$0xf] }
 0x9ac   : > { %v23707_v44 = vpop.f32.mrf.mxu3  ;;  %v8053_v55 = vadd.f32 %v8052_v27, %v8039_v28  ;;  %8539 = vmatpush.bf16.msrb.mxu3 %v14894_v46  ;;  %v16963_v27 = vld [vmem:[%s24911_s5 + $0x774] sm:$0xf0]  ;;  %v15297_v46 = vld [vmem:[%s24911_s5 + $0x810] sm:$0xf] }
 0x9ad   : > { %v23709_v52 = vpop.f32.mrf.mxu2  ;;  %v16943_v28 = vld [vmem:[%s24911_s5 + $0x6d4] sm:$0xf0] }
 0x9ae   : > { %v15138_v54 = vor.u32 %v16943_v28, %v15137_v25  ;;  %v16953_v25 = vld [vmem:[%s24911_s5 + $0x724] sm:$0xf0] }
 0x9b1   : > { %v23717_v53 = vpop.f32.mrf.mxu1 }
 0x9b2   : > { %v8111_v40 = vpop.f32.mrf.mxu0 }
 0x9b3   : > { %v8143_v24 = vpack.c.bf16 %v8111_v40, %v8109_v34  ;;  %v15210_v34 = vor.u32 %v16961_v2, %v15209_v30  ;;  %v16983_v40 = vld [vmem:[%s24911_s5 + $0x814] sm:$0xf0]  ;;  %v15177_v2 = vld [vmem:[%s24911_s5 + $0x720] sm:$0xf] }
 0x9b4   : > { %v8066_v26 = vpop.f32.mrf.mxu3 }
 0x9b5   : > { %v8067_v42 = vadd.f32 %v8066_v26, %v8053_v55  ;;  %v8137_v58 = vpop.f32.mrf.mxu2  ;;  %8484 = vmatmul.bf16.vlgmr.msra.gmra.mxu0 %v8143_v24  ;;  %v15201_v55 = vld [vmem:[%s24911_s5 + $0x750] sm:$0xf]  ;;  %v15129_v26 = vld [vmem:[%s24911_s5 + $0x6c0] sm:$0xf] }
 0x9b6   : > { %8637 = vmatpush.bf16.msra.mxu0 %v22333_v41  ;;  %v15202_v37 = vor.u32 %v16959_v48, %v15201_v55  ;;  %v16935_v55 = vld [vmem:[%s24911_s5 + $0x694] sm:$0xf0]  ;;  %v16942_v48 = vld [vmem:[%s24911_s5 + $0x6d4] sm:$0xf] }
 0x9b7   : > { %v23721_v3 = vadd.f32 %v8067_v42, %v23364_v49  ;;  %v15037_v49 = vld [vmem:[%s24910_s4 + $0x20] sm:$0xf]  ;;  %v16941_v42 = vld [vmem:[%s24911_s5 + $0x6c4] sm:$0xf0] }
 0x9b9   : > { %v8123_v39 = vpop.f32.mrf.mxu1 }
 0x9ba   : > { %8638 = vmatpush.bf16.msra.mxu0 %v22383_v19 }
 0x9bc   : > { %v23724_v60 = vpop.f32.mrf.mxu3 }
 0x9bd   : > { %v8139_v57 = vpop.f32.mrf.mxu2 }
 0x9be   : > { %v8145_v61 = vpack.c.bf16 %v8139_v57, %v8137_v58  ;;  %v15193_v58 = vld [vmem:[%s24911_s5 + $0x740] sm:$0xf]  ;;  %v16957_v57 = vld [vmem:[%s24911_s5 + $0x744] sm:$0xf0] }
 0x9c0   : > { %15031 = vmatmul.msk.bf16.vlgmr.msra.gmra.mxu2 %vm6944_vm5, %v8145_v61 }
 0x9c1   : > { %8609 = vmatpush.bf16.msra.mxu2 %v22190_v62  ;;  %v8125_v14 = vpop.f32.mrf.mxu1  ;;  %v16931_v62 = vld [vmem:[%s24910_s4 + $0x20] sm:$0x30] }
 0x9c2   : > { %v8144_v11 = vpack.c.bf16 %v8125_v14, %v8123_v39  ;;  %v15130_v39 = vor.u32 %v16941_v42, %v15129_v26  ;;  %v16981_v14 = vld [vmem:[%s24911_s5 + $0x804] sm:$0xf0] }
 0x9c4   : > { %v8095_v7 = vpop.f32.mrf.mxu3  ;;  %8498 = vmatmul.bf16.vlgmr.msra.gmra.mxu1 %v8144_v11 }
 0x9c5   : > { %8610 = vmatpush.bf16.msra.mxu2 %v22202_v51  ;;  %8595 = vmatpush.bf16.msra.mxu1 %v22102_v38  ;;  %v15038_v51 = vor.u32 %v16931_v62, %v15037_v49  ;;  %v15153_v38 = vld [vmem:[%s24911_s5 + $0x6f0] sm:$0xf]  ;;  %v16946_v49 = vld [vmem:[%s24911_s5 + $0x6f4] sm:$0xf] }
 0x9c6   : > { %8554 = vmatmul.bf16.vlgmr.msrb.gmra.mxu0 %v8144_v11  ;;  %v15194_v11 = vor.u32 %v16957_v57, %v15193_v58  ;;  %v16933_v57 = vld [vmem:[%s24911_s5 + $0x684] sm:$0xf0] }
 0x9c9   : > { %8596 = vmatpush.bf16.msra.mxu1 %v22113_v22  ;;  %v16947_v22 = vld [vmem:[%s24911_s5 + $0x6f4] sm:$0xf0] }
 0x9cc   : > { %v8097_v41 = vpop.f32.mrf.mxu3 }
 0x9cd   : > { %v8142_v19 = vpack.c.bf16 %v8097_v41, %v8095_v7  ;;  %v15121_v41 = vld [vmem:[%s24911_s5 + $0x6b0] sm:$0xf] }
 0x9cf   : > { %8470 = vmatmul.bf16.vlgmr.msra.gmra.mxu3 %v8142_v19 }
 0x9d0   : > { %8526 = vmatmul.bf16.vlgmr.msrb.gmra.mxu2 %v8142_v19  ;;  %8623 = vmatpush.bf16.msra.mxu3 %v22317_v17  ;;  %v15154_v17 = vor.u32 %v16947_v22, %v15153_v38  ;;  %v16939_v19 = vld [vmem:[%s24911_s5 + $0x6b4] sm:$0xf0]  ;;  %v15185_v22 = vld [vmem:[%s24911_s5 + $0x730] sm:$0xf] }
 0x9d1   : > { %v15122_v62 = vor.u32 %v16939_v19, %v15121_v41  ;;  %v16949_v41 = vld [vmem:[%s24911_s5 + $0x704] sm:$0xf0] }
 0x9d4   : > { %8624 = vmatpush.bf16.msra.mxu3 %v22342_v20  ;;  %15032 = vmatmul.msk.bf16.vlgmr.msrb.gmra.mxu1 %vm6944_vm5, %v8145_v61  ;;  %v15217_v20 = vld [vmem:[%s24911_s5 + $0x770] sm:$0xf]  ;;  %v15289_v61 = vld [vmem:[%s24911_s5 + $0x800] sm:$0xf] }
 0x9d5   : > { %8965 = vmatpush.bf16.msrb.mxu1 %v15154_v17  ;;  %v15218_v10 = vor.u32 %v16963_v27, %v15217_v20  ;;  %v15290_v7 = vor.u32 %v16981_v14, %v15289_v61  ;;  %v16955_v17 = vld [vmem:[%s24911_s5 + $0x734] sm:$0xf0]  ;;  %v16940_v61 = vld [vmem:[%s24911_s5 + $0x6c4] sm:$0xf] }
 0x9d6   : > { %15042 = vmatmul.msk.bf16.vlgmr.msra.gmra.mxu0 %vm6555_vm8, %v15038_v51  ;;  %v15186_v20 = vor.u32 %v16955_v17, %v15185_v22  ;;  %v16979_v17 = vld [vmem:[%s24911_s5 + $0x7f4] sm:$0xf0] }
 0x9d7   : > { %8979 = vmatpush.bf16.msrb.mxu2 %v15218_v10  ;;  %v15113_v10 = vld [vmem:[%s24911_s5 + $0x6a0] sm:$0xf] }
 0x9d8   : > { %v15114_v30 = vor.u32 %v16937_v33, %v15113_v10  ;;  %v15283_v10 = vld [vmem:[%s24911_s5 + $0x7f8] sm:$0xf0] }
 0x9d9   : > { %8966 = vmatpush.bf16.msrb.mxu1 %v15146_v31  ;;  %v15147_v31 = vld [vmem:[%s24911_s5 + $0x6e8] sm:$0xf0] }
 0x9da   : > { %v15150_v28 = vor.u32 %v16944_v45, %v15147_v31  ;;  %v15123_v31 = vld [vmem:[%s24911_s5 + $0x6b8] sm:$0xf0] }
 0x9db   : > { %8980 = vmatpush.bf16.msrb.mxu2 %v15210_v34  ;;  %v15178_v34 = vor.u32 %v16953_v25, %v15177_v2  ;;  %v16960_v25 = vld [vmem:[%s24911_s5 + $0x764] sm:$0xf] }
 0x9dd   : > { %8967 = vmatpush.bf16.msrb.mxu1 %v15138_v54  ;;  %v15105_v54 = vld [vmem:[%s24911_s5 + $0x690] sm:$0xf] }
 0x9df   : > { %8540 = vmatmul.bf16.vlgmr.msrb.gmra.mxu3 %v8143_v24  ;;  %8981 = vmatpush.bf16.msrb.mxu2 %v15202_v37  ;;  %v15298_v24 = vor.u32 %v16983_v40, %v15297_v46  ;;  %v15106_v37 = vor.u32 %v16935_v55, %v15105_v54  ;;  %v15139_v46 = vld [vmem:[%s24911_s5 + $0x6d8] sm:$0xf0]  ;;  %v15169_v40 = vld [vmem:[%s24911_s5 + $0x710] sm:$0xf]  ;;  %v15273_v55 = vld [vmem:[%s24911_s5 + $0x7e0] sm:$0xf] }
 0x9e0   : > { %15040 = vmatmul.msk.bf16.vlgmr.msra.gmra.mxu2 %vm6555_vm8, %v15038_v51  ;;  %v15142_v26 = vor.u32 %v16942_v48, %v15139_v46  ;;  %v16977_v48 = vld [vmem:[%s24911_s5 + $0x7e4] sm:$0xf0] }
 0x9e1   : > { %9013 = vmatpush.bf16.msrb.mxu0 %v15298_v24  ;;  %8968 = vmatpush.bf16.msrb.mxu1 %v15130_v39  ;;  %v16951_v24 = vld [vmem:[%s24911_s5 + $0x714] sm:$0xf0]  ;;  %v15097_v39 = vld [vmem:[%s24911_s5 + $0x680] sm:$0xf]  ;;  %v15274_v46 = vor.u32 %v16977_v48, %v15273_v55 }
 0x9e2   : > { %v15170_v42 = vor.u32 %v16951_v24, %v15169_v40  ;;  %v15098_v14 = vor.u32 %v16933_v57, %v15097_v39  ;;  %v15275_v40 = vld [vmem:[%s24911_s5 + $0x7e8] sm:$0xf0]  ;;  %v16936_v39 = vld [vmem:[%s24911_s5 + $0x6a4] sm:$0xf] }
 0x9e3   : > { %8982 = vmatpush.bf16.msrb.mxu2 %v15194_v11  ;;  %v15131_v11 = vld [vmem:[%s24911_s5 + $0x6c8] sm:$0xf0] }
 0x9e4   : > { %15039 = vmatmul.msk.bf16.vlgmr.msra.gmra.mxu1 %vm6555_vm8, %v15038_v51  ;;  %v15134_v19 = vor.u32 %v16940_v61, %v15131_v11  ;;  %v15115_v57 = vld [vmem:[%s24911_s5 + $0x6a8] sm:$0xf0]  ;;  %v15203_v11 = vld [vmem:[%s24911_s5 + $0x758] sm:$0xf0] }
 0x9e5   : > { %9014 = vmatpush.bf16.msrb.mxu0 %v15290_v7  ;;  %8969 = vmatpush.bf16.msrb.mxu1 %v15122_v62  ;;  %v15161_v7 = vld [vmem:[%s24911_s5 + $0x700] sm:$0xf]  ;;  %v16962_v62 = vld [vmem:[%s24911_s5 + $0x774] sm:$0xf]  ;;  %v15118_v61 = vor.u32 %v16936_v39, %v15115_v57  ;;  %v15187_v57 = vld [vmem:[%s24911_s5 + $0x738] sm:$0xf0] }
 0x9e6   : > { %v16954_v39 = vld [vmem:[%s24911_s5 + $0x734] sm:$0xf] }
 0x9e7   : > { %8983 = vmatpush.bf16.msrb.mxu2 %v15186_v20  ;;  %v16978_v20 = vld [vmem:[%s24911_s5 + $0x7f4] sm:$0xf] }
 0x9e8   : > { %v15286_v45 = vor.u32 %v16978_v20, %v15283_v10  ;;  %v16956_v10 = vld [vmem:[%s24911_s5 + $0x744] sm:$0xf] }
 0x9e9   : > { %8970 = vmatpush.bf16.msrb.mxu1 %v15114_v30  ;;  %v16938_v30 = vld [vmem:[%s24911_s5 + $0x6b4] sm:$0xf] }
 0x9ea   : > { %v15126_v2 = vor.u32 %v16938_v30, %v15123_v31  ;;  %v15257_v31 = vld [vmem:[%s24911_s5 + $0x7c0] sm:$0xf] }
 0x9eb   : > { %8984 = vmatpush.bf16.msrb.mxu2 %v15178_v34 }
 0x9ed   : > { %8971 = vmatpush.bf16.msrb.mxu1 %v15106_v37  ;;  %v16976_v37 = vld [vmem:[%s24911_s5 + $0x7e4] sm:$0xf] }
 0x9ef   : > { %15041 = vmatmul.msk.bf16.vlgmr.msra.gmra.mxu3 %vm6555_vm8, %v15038_v51  ;;  %v15155_v51 = vld [vmem:[%s24911_s5 + $0x6f8] sm:$0xf0]  ;;  %8985 = vmatpush.bf16.msrb.mxu2 %v15170_v42  ;;  %v15278_v42 = vor.u32 %v16976_v37, %v15275_v40  ;;  %v15099_v40 = vld [vmem:[%s24911_s5 + $0x688] sm:$0xf0]  ;;  %vm9107_vm8 = vcmask 1045504  }
 0x9f0   : > { %v15158_v38 = vor.u32 %v16946_v49, %v15155_v51  ;;  %v15162_v49 = vor.u32 %v16949_v41, %v15161_v7  ;;  %v15219_v51 = vld [vmem:[%s24911_s5 + $0x778] sm:$0xf0]  ;;  %v15265_v41 = vld [vmem:[%s24911_s5 + $0x7d0] sm:$0xf] }
 0x9f1   : > { %8972 = vmatpush.bf16.msrb.mxu1 %v15098_v14  ;;  %v15222_v22 = vor.u32 %v16962_v62, %v15219_v51  ;;  %v16958_v14 = vld [vmem:[%s24911_s5 + $0x754] sm:$0xf]  ;;  %v15267_v51 = vld [vmem:[%s24911_s5 + $0x7d8] sm:$0xf0] }
 0x9f2   : > { %9021 = vmatpush.bf16.msra.mxu0 %v15158_v38  ;;  %v15281_v38 = vld [vmem:[%s24911_s5 + $0x7f0] sm:$0xf]  ;;  %v15206_v7 = vor.u32 %v16958_v14, %v15203_v11  ;;  %v16971_v11 = vld [vmem:[%s24911_s5 + $0x7b4] sm:$0xf0] }
 0x9f3   : > { %8986 = vmatpush.bf16.msrb.mxu2 %v15162_v49  ;;  %v15282_v33 = vor.u32 %v16979_v17, %v15281_v38  ;;  %v16974_v49 = vld [vmem:[%s24911_s5 + $0x7d4] sm:$0xf]  ;;  %v15107_v17 = vld [vmem:[%s24911_s5 + $0x698] sm:$0xf0]  ;;  %v15249_v14 = vld [vmem:[%s24911_s5 + $0x7b0] sm:$0xf] }
 0x9f4   : > { %v15270_v38 = vor.u32 %v16974_v49, %v15267_v51  ;;  %v15179_v51 = vld [vmem:[%s24911_s5 + $0x728] sm:$0xf0] }
 0x9f5   : > { %9035 = vmatpush.bf16.msra.mxu1 %v15222_v22  ;;  %8993 = vmatpush.bf16.msrb.mxu3 %v15282_v33  ;;  %v16934_v22 = vld [vmem:[%s24911_s5 + $0x694] sm:$0xf]  ;;  %v15195_v33 = vld [vmem:[%s24911_s5 + $0x748] sm:$0xf0] }
 0x9f6   : > { %9022 = vmatpush.bf16.msra.mxu0 %v15150_v28  ;;  %v15211_v28 = vld [vmem:[%s24911_s5 + $0x768] sm:$0xf0]  ;;  %v15110_v20 = vor.u32 %v16934_v22, %v15107_v17  ;;  %v15198_v30 = vor.u32 %v16956_v10, %v15195_v33  ;;  %v15241_v17 = vld [vmem:[%s24911_s5 + $0x7a0] sm:$0xf]  ;;  %v16968_v10 = vld [vmem:[%s24911_s5 + $0x7a4] sm:$0xf] }
 0x9f7   : > { %9049 = vmatpush.bf16.msra.mxu2 %v15286_v45  ;;  %v15214_v54 = vor.u32 %v16960_v25, %v15211_v28  ;;  %v16972_v25 = vld [vmem:[%s24911_s5 + $0x7c4] sm:$0xf] }
 0x9f9   : > { %9036 = vmatpush.bf16.msra.mxu1 %v15214_v54  ;;  %8994 = vmatpush.bf16.msrb.mxu3 %v15274_v46  ;;  %v15259_v54 = vld [vmem:[%s24911_s5 + $0x7c8] sm:$0xf0]  ;;  %v16932_v46 = vld [vmem:[%s24911_s5 + $0x684] sm:$0xf] }
 0x9fa   : > { %9023 = vmatpush.bf16.msra.mxu0 %v15142_v26  ;;  %v15262_v37 = vor.u32 %v16972_v25, %v15259_v54  ;;  %v15171_v25 = vld [vmem:[%s24911_s5 + $0x718] sm:$0xf0] }
 0x9fb   : > { %9050 = vmatpush.bf16.msra.mxu2 %v15278_v42  ;;  %v15102_v42 = vor.u32 %v16932_v46, %v15099_v40  ;;  %v15233_v40 = vld [vmem:[%s24911_s5 + $0x790] sm:$0xf] }
 0x9fd   : > { %9037 = vmatpush.bf16.msra.mxu1 %v15206_v7  ;;  %v16970_v7 = vld [vmem:[%s24911_s5 + $0x7b4] sm:$0xf] }
 0x9fe   : > { %9024 = vmatpush.bf16.msra.mxu0 %v15134_v19  ;;  %v16975_v19 = vld [vmem:[%s24911_s5 + $0x7d4] sm:$0xf0] }
 0x9ff   : > { %v15266_v62 = vor.u32 %v16975_v19, %v15265_v41  ;;  %9051 = vmatpush.bf16.msra.mxu2 %v15270_v38  ;;  %v15250_v41 = vor.u32 %v16971_v11, %v15249_v14  ;;  %v15251_v19 = vld [vmem:[%s24911_s5 + $0x7b8] sm:$0xf0] }
 0xa00   : > { %v15254_v49 = vor.u32 %v16970_v7, %v15251_v19  ;;  %v16948_v7 = vld [vmem:[%s24911_s5 + $0x704] sm:$0xf] }
 0xa01   : > { %8995 = vmatpush.bf16.msrb.mxu3 %v15266_v62  ;;  %9038 = vmatpush.bf16.msra.mxu1 %v15198_v30  ;;  %v16952_v62 = vld [vmem:[%s24911_s5 + $0x724] sm:$0xf] }
 0xa02   : > { %9025 = vmatpush.bf16.msra.mxu0 %v15126_v2  ;;  %v16973_v2 = vld [vmem:[%s24911_s5 + $0x7c4] sm:$0xf0]  ;;  %v15182_v38 = vor.u32 %v16952_v62, %v15179_v51 }
 0xa03   : > { %v15258_v28 = vor.u32 %v16973_v2, %v15257_v31  ;;  %9052 = vmatpush.bf16.msra.mxu2 %v15262_v37  ;;  %v15243_v31 = vld [vmem:[%s24911_s5 + $0x7a8] sm:$0xf0]  ;;  %v16950_v2 = vld [vmem:[%s24911_s5 + $0x714] sm:$0xf]  ;;  %v16965_v51 = vld [vmem:[%s24911_s5 + $0x784] sm:$0xf0] }
 0xa04   : > { %v15246_v46 = vor.u32 %v16968_v10, %v15243_v31  ;;  %v15227_v10 = vld [vmem:[%s24911_s5 + $0x788] sm:$0xf0] }
 0xa05   : > { %8996 = vmatpush.bf16.msrb.mxu3 %v15258_v28 }
 0xa06   : > { %9026 = vmatpush.bf16.msra.mxu0 %v15118_v61  ;;  %v15190_v61 = vor.u32 %v16954_v39, %v15187_v57  ;;  %v16966_v39 = vld [vmem:[%s24911_s5 + $0x794] sm:$0xf]  ;;  %v15174_v57 = vor.u32 %v16950_v2, %v15171_v25  ;;  %v15299_v25 = vld [vmem:[%s24911_s5 + $0x818] sm:$0xf0] }
 0xa07   : > { %9053 = vmatpush.bf16.msra.mxu2 %v15254_v49 }
 0xa08   : > { %9039 = vmatpush.bf16.msra.mxu1 %v15190_v61 }
 0xa09   : > { %8997 = vmatpush.bf16.msrb.mxu3 %v15250_v41  ;;  %v15163_v41 = vld [vmem:[%s24911_s5 + $0x708] sm:$0xf0] }
 0xa0a   : > { %9027 = vmatpush.bf16.msra.mxu0 %v15110_v20  ;;  %v16969_v20 = vld [vmem:[%s24911_s5 + $0x7a4] sm:$0xf0]  ;;  %v15166_v49 = vor.u32 %v16948_v7, %v15163_v41 }
 0xa0b   : > { %v15242_v30 = vor.u32 %v16969_v20, %v15241_v17  ;;  %9054 = vmatpush.bf16.msra.mxu2 %v15246_v46 }
 0xa0c   : > { %9040 = vmatpush.bf16.msra.mxu1 %v15182_v38  ;;  %v16964_v38 = vld [vmem:[%s24911_s5 + $0x784] sm:$0xf] }
 0xa0d   : > { %8998 = vmatpush.bf16.msrb.mxu3 %v15242_v30  ;;  %v15230_v31 = vor.u32 %v16964_v38, %v15227_v10  ;;  %v17004_v10 = vld [vmem:[%s24914_s8 + $0x94] sm:$0xf0] }
 0xa0e   : > { %9028 = vmatpush.bf16.msra.mxu0 %v15102_v42  ;;  %v16967_v42 = vld [vmem:[%s24911_s5 + $0x794] sm:$0xf0] }
 0xa0f   : > { %v15234_v14 = vor.u32 %v16967_v42, %v15233_v40 }
 0xa10   : > { %9041 = vmatpush.bf16.msra.mxu1 %v15174_v57 }
 0xa11   : > { %8999 = vmatpush.bf16.msrb.mxu3 %v15234_v14 }
 0xa14   : > { %9042 = vmatpush.bf16.msra.mxu1 %v15166_v49 }
 0xa32   : > { %v23822_v27 = vpop.f32.mrf.mxu0 }
 0xa3a   : > { %v23860_v58 = vpop.f32.mrf.mxu0 }
 0xa41   : > { %v23910_v34 = vpop.f32.mrf.mxu1 }
 0xa43   : > { %v23924_v24 = vpop.f32.mrf.mxu2  ;;  %v23926_v26 = vpop.f32.mrf.mxu0 }
 0xa49   : > { %v23964_v45 = vpop.f32.mrf.mxu1 }
 0xa4b   : > { %v23978_v55 = vpop.f32.mrf.mxu2  ;;  %v23980_v48 = vpop.f32.mrf.mxu0 }
 0xa51   : > { %v8569_v22 = vpop.f32.mrf.mxu1 }
 0xa52   : > { %v8471_v33 = vpop.f32.mrf.mxu3 }
 0xa53   : > { %v8486_v28 = vadd.f32 %v23822_v27, %v8471_v33  ;;  %v8527_v54 = vpop.f32.mrf.mxu2  ;;  %v8640_v37 = vpop.f32.mrf.mxu0  ;;  %v15235_v27 = vld [vmem:[%s24911_s5 + $0x798] sm:$0xf0] }
 0xa54   : > { %v15238_v11 = vor.u32 %v16966_v39, %v15235_v27 }
 0xa55   : > { %v8500_v61 = vadd.f32 %v23910_v34, %v8486_v28  ;;  %v15225_v34 = vld [vmem:[%s24911_s5 + $0x780] sm:$0xf]  ;;  %v16980_v28 = vld [vmem:[%s24911_s5 + $0x804] sm:$0xf] }
 0xa56   : > { %9055 = vmatpush.bf16.msra.mxu2 %v15238_v11  ;;  %v15226_v20 = vor.u32 %v16965_v51, %v15225_v34 }
 0xa57   : > { %v8514_v19 = vadd.f32 %v23924_v24, %v8500_v61 }
 0xa58   : > { %9000 = vmatpush.bf16.msrb.mxu3 %v15226_v20  ;;  %v15385_v20 = vld [vmem:[%s24914_s8 + $0x90] sm:$0xf] }
 0xa59   : > { %v24051_v62 = vpop.f32.mrf.mxu1  ;;  %v24063_v24 = vadd.f32 %v8514_v19, %v23699_v9  ;;  %v16982_v9 = vld [vmem:[%s24911_s5 + $0x814] sm:$0xf] }
 0xa5a   : > { %v8473_v17 = vpop.f32.mrf.mxu3  ;;  %9056 = vmatpush.bf16.msra.mxu2 %v15230_v31  ;;  %v15302_v46 = vor.u32 %v16982_v9, %v15299_v25  ;;  %v17002_v9 = vld [vmem:[%s24914_s8 + $0x84] sm:$0xf0] }
 0xa5b   : > { %v24068_v33 = vpop.f32.mrf.mxu2  ;;  %v8642_v30 = vpop.f32.mrf.mxu0 }
 0xa5c   : > { %v8648_v2 = vpack.c.bf16 %v8642_v30, %v8640_v37  ;;  %v15291_v37 = vld [vmem:[%s24911_s5 + $0x808] sm:$0xf0]  ;;  %9069 = vmatpush.bf16.msra.mxu3 %v15302_v46  ;;  %v15386_v30 = vor.u32 %v17004_v10, %v15385_v20 }
 0xa5d   : > { %v15294_v42 = vor.u32 %v16980_v28, %v15291_v37  ;;  %v6974_v37 = vadd.f32 %v22907_v13, %v22744_v0 }
 0xa5e   : > { %15303 = vmatmul.msk.bf16.vlgmr.msrb.gmra.mxu0 %vm6944_vm5, %v8648_v2 }
 0xa60   : > { %9070 = vmatpush.bf16.msra.mxu3 %v15294_v42  ;;  %v6988_v42 = vadd.f32 %v22972_v35, %v6974_v37  ;;  %v16984_v37 = vld [vmem:[%s24913_s7] sm:$0x10] }
 0xa61   : > { %v8598_v40 = vpop.f32.mrf.mxu1 }
 0xa62   : > { %v8541_v39 = vpop.f32.mrf.mxu3 }
 0xa63   : > { %v8542_v57 = vadd.f32 %v8541_v39, %v8527_v54  ;;  %v8612_v27 = vpop.f32.mrf.mxu2 }
 0xa65   : > { %v8556_v61 = vadd.f32 %v23926_v26, %v8542_v57  ;;  %v17006_v26 = vld [vmem:[%s24914_s8 + $0xa4] sm:$0xf0] }
 0xa67   : > { %v8570_v14 = vadd.f32 %v8569_v22, %v8556_v61  ;;  %v8488_v61 = vadd.f32 %v23860_v58, %v8473_v17 }
 0xa69   : > { %v8600_v11 = vpop.f32.mrf.mxu1  ;;  %v24085_v7 = vadd.f32 %v8570_v14, %v23721_v3  ;;  %v15393_v3 = vld [vmem:[%s24914_s8 + $0xa0] sm:$0xf]  ;;  %v8502_v35 = vadd.f32 %v23964_v45, %v8488_v61 }
 0xa6a   : > { %v8645_v41 = vpack.c.bf16 %v8600_v11, %v8598_v40  ;;  %v24087_v19 = vpop.f32.mrf.mxu3  ;;  %v15394_v22 = vor.u32 %v17006_v26, %v15393_v3  ;;  %v7482_v40 = vadd.f32 %v23242_v50, %v23347_v21 }
 0xa6b   : > { %v8614_v49 = vpop.f32.mrf.mxu2  ;;  %v8516_v17 = vadd.f32 %v23978_v55, %v8502_v35 }
 0xa6c   : > { %v8646_v34 = vpack.c.bf16 %v8614_v49, %v8612_v27  ;;  %8973 = vmatmul.bf16.vlgmr.msrb.gmra.mxu1 %v8645_v41  ;;  %v7496_v57 = vadd.f32 %v23319_v59, %v7482_v40  ;;  %v7985_v27 = vadd.f32 %v23649_v8, %v23675_v1  ;;  %v7030_v1 = vadd.f32 %v22995_v43, %v22781_v6 }
 0xa6d   : > { %v8041_v43 = vadd.f32 %v23717_v53, %v23683_v16 }
 0xa6e   : > { %8987 = vmatmul.bf16.vlgmr.msrb.gmra.mxu2 %v8646_v34  ;;  %9029 = vmatmul.bf16.vlgmr.msra.gmra.mxu0 %v8645_v41  ;;  %v7999_v0 = vadd.f32 %v23707_v44, %v7985_v27  ;;  %v7510_v50 = vadd.f32 %v23268_v23, %v7496_v57  ;;  %v7538_v44 = vadd.f32 %v23367_v56, %v23349_v29 }
 0xa6f   : > { %9301 = vmatpush.bf16.msrb.mxu2 %v15394_v22  ;;  %v8544_v29 = vadd.f32 %v24087_v19, %v24068_v33  ;;  %v8055_v16 = vadd.f32 %v23709_v52, %v8041_v43  ;;  %v16999_v19 = vld [vmem:[%s24914_s8 + $0x74] sm:$0xf]  ;;  %v15339_v43 = vld [vmem:[%s24914_s8 + $0x38] sm:$0xf0] }
 0xa70   : > { %v8013_v21 = vadd.f32 %v23596_v12, %v7999_v0  ;;  %v7044_v12 = vadd.f32 %v22974_v47, %v7030_v1  ;;  %v7552_v6 = vadd.f32 %v23321_v36, %v7538_v44  ;;  %v15363_v0 = vld [vmem:[%s24914_s8 + $0x68] sm:$0xf0] }
 0xa71   : > { %v8558_v53 = vadd.f32 %v23980_v48, %v8544_v29  ;;  %v15307_v48 = vld [vmem:[%s24913_s7] sm:$0xf]  ;;  %v8069_v27 = vadd.f32 %v23724_v60, %v8055_v16 }
 0xa72   : > { %v8626_v51 = vpop.f32.mrf.mxu3  ;;  %v7058_v47 = vadd.f32 %v22993_v18, %v7044_v12  ;;  %v7566_v36 = vadd.f32 %v23358_v15, %v7552_v6  ;;  %v15369_v18 = vld [vmem:[%s24914_s8 + $0x70] sm:$0xf]  ;;  %v16991_v6 = vld [vmem:[%s24914_s8 + $0x34] sm:$0xf] }
 0xa73   : > { %9302 = vmatpush.bf16.msrb.mxu2 %v15386_v30 }
 0xa74   : > { %v7068_v57 = vadd.f32 %v7062_v4, %v7058_v47  ;;  %v8572_v4 = vadd.f32 %v24051_v62, %v8558_v53  ;;  %v15355_v62 = vld [vmem:[%s24914_s8 + $0x58] sm:$0xf0]  ;;  %v15342_v47 = vor.u32 %v16991_v6, %v15339_v43  ;;  %v15353_v53 = vld [vmem:[%s24914_s8 + $0x50] sm:$0xf]  ;;  %v15405_v6 = vld [vmem:[%s24913_s7 + $0x8] sm:$0xf] }
 0xa75   : > { %v17007_v43 = vld [vmem:[%s24913_s7 + $0x8] sm:$0x10] }
 0xa76   : > { %v7571_v63 = vadd.f32 %v7566_v36, %v7068_v57  ;;  %v15379_v36 = vld [vmem:[%s24914_s8 + $0x88] sm:$0xf0] }
 0xa78   : > { %v8074_v35 = vadd.f32 %v8069_v27, %v7571_v63  ;;  %v15329_v27 = vld [vmem:[%s24914_s8 + $0x20] sm:$0xf] }
 0xa7a   : > { %v8628_v38 = vpop.f32.mrf.mxu3 }
 0xa7b   : > { %v8647_v54 = vpack.c.bf16 %v8628_v38, %v8626_v51 }
 0xa7c   : > { %9043 = vmatmul.bf16.vlgmr.msra.gmra.mxu1 %v8646_v34  ;;  %v7002_v34 = vadd.f32 %v22982_v32, %v6988_v42  ;;  %v15361_v42 = vld [vmem:[%s24914_s8 + $0x60] sm:$0xf] }
 0xa7d   : > { %9001 = vmatmul.bf16.vlgmr.msrb.gmra.mxu3 %v8647_v54 }
 0xa7e   : > { %9057 = vmatmul.bf16.vlgmr.msra.gmra.mxu2 %v8647_v54  ;;  %v7067_v59 = vadd.f32 %v7061_v5, %v7002_v34  ;;  %v16997_v34 = vld [vmem:[%s24914_s8 + $0x64] sm:$0xf] }
 0xa80   : > { %v7570_v58 = vadd.f32 %v7510_v50, %v7067_v59  ;;  %v15308_v50 = vor.u32 %v16984_v37, %v15307_v48  ;;  %v15323_v48 = vld [vmem:[%s24914_s8 + $0x18] sm:$0xf0]  ;;  %v16992_v37 = vld [vmem:[%s24914_s8 + $0x34] sm:$0xf0] }
 0xa82   : > { %v8073_v38 = vadd.f32 %v8013_v21, %v7570_v58  ;;  %v16995_v58 = vld [vmem:[%s24914_s8 + $0x54] sm:$0xf] }
 0xa84   : > { %v8576_v26 = vadd.f32 %v8516_v17, %v8073_v38  ;;  %v8577_v17 = vadd.f32 %v8572_v4, %v8074_v35  ;;  %v15347_v38 = vld [vmem:[%s24914_s8 + $0x48] sm:$0xf0] }
 0xa8d   : > { %15304 = vmatmul.msk.bf16.vlgmr.msra.gmra.mxu3 %vm6944_vm5, %v8648_v2  ;;  %v15377_v2 = vld [vmem:[%s24914_s8 + $0x80] sm:$0xf]  ;;  %vm10317_vm5 = vcmask 916480  }
 0xa8e   : > { %v15378_v28 = vor.u32 %v17002_v9, %v15377_v2 }
 0xa90   : > { %9303 = vmatpush.bf16.msrb.mxu2 %v15378_v28 }
 0xadb   : > { %v9016_v25 = vpop.f32.mrf.mxu0 }
 0xae3   : > { %v9018_v14 = vpop.f32.mrf.mxu0 }
 0xae9   : > { %v8974_v31 = vpop.f32.mrf.mxu1 }
 0xaeb   : > { %v9030_v5 = vpop.f32.mrf.mxu0 }
 0xaf1   : > { %v8988_v46 = vpop.f32.mrf.mxu2  ;;  %v8976_v39 = vpop.f32.mrf.mxu1 }
 0xaf2   : > { %v8989_v11 = vadd.f32 %v8988_v46, %v8974_v31  ;;  %v15371_v31 = vld [vmem:[%s24914_s8 + $0x78] sm:$0xf0] }
 0xaf9   : > { %v8990_v41 = vpop.f32.mrf.mxu2  ;;  %v9044_v51 = vpop.f32.mrf.mxu1 }
 0xafa   : > { %v8991_v32 = vadd.f32 %v8990_v41, %v8976_v39  ;;  %v9045_v10 = vadd.f32 %v9044_v51, %v9030_v5  ;;  %v16998_v39 = vld [vmem:[%s24914_s8 + $0x64] sm:$0xf0]  ;;  %v15395_v5 = vld [vmem:[%s24914_s8 + $0xa8] sm:$0xf0] }
 0xb00   : > { %v9002_v49 = vpop.f32.mrf.mxu3 }
 0xb01   : > { %v9003_v13 = vadd.f32 %v9002_v49, %v8989_v11  ;;  %v9058_v3 = vpop.f32.mrf.mxu2  ;;  %v9046_v28 = vpop.f32.mrf.mxu1 }
 0xb02   : > { %v9059_v9 = vadd.f32 %v9058_v3, %v9045_v10  ;;  %v9032_v11 = vpop.f32.mrf.mxu0 }
 0xb03   : > { %v9017_v8 = vadd.f32 %v9016_v25, %v9003_v13  ;;  %v17000_v25 = vld [vmem:[%s24914_s8 + $0x74] sm:$0xf0]  ;;  %v15362_v13 = vor.u32 %v16998_v39, %v15361_v42  ;;  %v9047_v60 = vadd.f32 %v9046_v28, %v9032_v11  ;;  %v15315_v39 = vld [vmem:[%s24914_s8 + $0x8] sm:$0xf0]  ;;  %v15321_v11 = vld [vmem:[%s24914_s8 + $0x10] sm:$0xf] }
 0xb04   : > { %v15370_v40 = vor.u32 %v17000_v25, %v15369_v18  ;;  %v15331_v18 = vld [vmem:[%s24914_s8 + $0x28] sm:$0xf0] }
 0xb05   : > { %v9077_v45 = vadd.f32 %v9017_v8, %v24063_v24  ;;  %v17256_v24 = vmov 65535   ;;  %v15366_v8 = vor.u32 %v16997_v34, %v15363_v0  ;;  %v15313_v0 = vld [vmem:[%s24914_s8] sm:$0xf] }
 0xb06   : > { %v9108_v20 = vsel %vm6559_vm6, 4294967295, %v17256_v24  ;;  %9282 = vmatpush.bf16.msrb.mxu1 %v15370_v40  ;;  %v16985_v40 = vld [vmem:[%s24914_s8 + $0x4] sm:$0xf] }
 0xb07   : > { %v9085_v56 = vmul.f32 0.01, %v9077_v45  ;;  %vm9081_vm7 = vcmp.gt.f32.partialorder %v9077_v45, 0.0  ;;  %v9109_v52 = vsel %vm9107_vm8, %v9108_v20, 0  ;;  %v15387_v20 = vld [vmem:[%s24914_s8 + $0x98] sm:$0xf0]  ;;  %v15318_v57 = vor.u32 %v16985_v40, %v15315_v39 }
 0xb08   : > { %v9004_v23 = vpop.f32.mrf.mxu3  ;;  %v17015_v39 = vld [vmem:[%s24914_s8 + $0xe4] sm:$0xf0]  ;;  %vm10872_vm8 = vcmask 40960  }
 0xb09   : > { %v9005_v54 = vadd.f32 %v9004_v23, %v8991_v32  ;;  %v9089_v2 = vsel %vm9081_vm7, %v9077_v45, %v9085_v56  ;;  %v9060_v41 = vpop.f32.mrf.mxu2  ;;  %v16993_v23 = vld [vmem:[%s24914_s8 + $0x44] sm:$0xf] }
 0xb0a   : > { %v9061_v59 = vadd.f32 %v9060_v41, %v9047_v60  ;;  %9283 = vmatpush.bf16.msrb.mxu1 %v15362_v13  ;;  %v16988_v41 = vld [vmem:[%s24914_s8 + $0x14] sm:$0xf0]  ;;  %v16986_v13 = vld [vmem:[%s24914_s8 + $0x4] sm:$0xf0] }
 0xb0b   : > { %v9019_v22 = vadd.f32 %v9018_v14, %v9005_v54  ;;  %v15374_v14 = vor.u32 %v16999_v19, %v15371_v31  ;;  %v17005_v54 = vld [vmem:[%s24914_s8 + $0xa4] sm:$0xf]  ;;  %v15322_v34 = vor.u32 %v16988_v41, %v15321_v11  ;;  %v15314_v63 = vor.u32 %v16986_v13, %v15313_v0  ;;  %v15449_v11 = vld [vmem:[%s24914_s8 + $0xd0] sm:$0xf]  ;;  %v17013_v41 = vld [vmem:[%s24914_s8 + $0xd4] sm:$0xf0] }
 0xb0c   : > { %v15398_v29 = vor.u32 %v17005_v54, %v15395_v5  ;;  %v16989_v19 = vld [vmem:[%s24914_s8 + $0x24] sm:$0xf]  ;;  %v15497_v54 = vld [vmem:[%s24914_s8 + $0x130] sm:$0xf]  ;;  %v17025_v5 = vld [vmem:[%s24914_s8 + $0x134] sm:$0xf0]  ;;  %v15450_v0 = vor.u32 %v17013_v41, %v15449_v11 }
 0xb0d   : > { %v9079_v55 = vadd.f32 %v9019_v22, %v8576_v26  ;;  %v15350_v26 = vor.u32 %v16993_v23, %v15347_v38  ;;  %v15507_v23 = vld [vmem:[%s24914_s8 + $0x148] sm:$0xf0]  ;;  %v15451_v13 = vld [vmem:[%s24914_s8 + $0xd8] sm:$0xf0]  ;;  %v17037_v11 = vld [vmem:[%s24914_s8 + $0x194] sm:$0xf] }
 0xb0f   : > { %vm9083_vm9 = vcmp.gt.f32.partialorder %v9079_v55, 0.0  ;;  %v9087_v30 = vmul.f32 0.01, %v9079_v55 }
 0xb10   : > { %v9072_v33 = vpop.f32.mrf.mxu3 }
 0xb11   : > { %v9091_v15 = vsel %vm9083_vm9, %v9079_v55, %v9087_v30  ;;  %v9073_v61 = vadd.f32 %v9072_v33, %v9059_v9  ;;  %v17003_v55 = vld [vmem:[%s24914_s8 + $0x94] sm:$0xf]  ;;  %v17001_v30 = vld [vmem:[%s24914_s8 + $0x84] sm:$0xf]  ;;  %v16996_v33 = vld [vmem:[%s24914_s8 + $0x54] sm:$0xf0] }
 0xb12   : > { %v9093_v46 = vpack.c.bf16 %v9091_v15, %v9089_v2  ;;  %v15390_v10 = vor.u32 %v17003_v55, %v15387_v20  ;;  %v15382_v16 = vor.u32 %v17001_v30, %v15379_v36  ;;  %v15354_v31 = vor.u32 %v16996_v33, %v15353_v53  ;;  %v15345_v2 = vld [vmem:[%s24914_s8 + $0x40] sm:$0xf]  ;;  %v16994_v9 = vld [vmem:[%s24914_s8 + $0x44] sm:$0xf0]  ;;  %v15491_v30 = vld [vmem:[%s24914_s8 + $0x128] sm:$0xf0] }
 0xb13   : > { %v9078_v21 = vadd.f32 %v9073_v61, %v24085_v7  ;;  %v15358_v7 = vor.u32 %v16995_v58, %v15355_v62  ;;  %v15334_v15 = vor.u32 %v16989_v19, %v15331_v18  ;;  %v15346_v25 = vor.u32 %v16994_v9, %v15345_v2  ;;  %v16990_v61 = vld [vmem:[%s24914_s8 + $0x24] sm:$0xf0]  ;;  %v15489_v55 = vld [vmem:[%s24914_s8 + $0x120] sm:$0xf]  ;;  %v17021_v36 = vld [vmem:[%s24914_s8 + $0x114] sm:$0xf0] }
 0xb14   : > { %v24170_v49 = vand.u32 %v9109_v52, %v9093_v46  ;;  %9284 = vmatpush.bf16.msrb.mxu1 %v15354_v31  ;;  %v15337_v46 = vld [vmem:[%s24914_s8 + $0x30] sm:$0xf]  ;;  %v17023_v20 = vld [vmem:[%s24914_s8 + $0x124] sm:$0xf0]  ;;  %v15483_v33 = vld [vmem:[%s24914_s8 + $0x118] sm:$0xf0] }
 0xb15   : > { %v9086_v44 = vmul.f32 0.01, %v9078_v21  ;;  %vm9082_vm11 = vcmp.gt.f32.partialorder %v9078_v21, 0.0  ;;  %v15338_v42 = vor.u32 %v16992_v37, %v15337_v46  ;;  %v15473_v31 = vld [vmem:[%s24914_s8 + $0x100] sm:$0xf] }
 0xb16   : > { %9123 = vmatpush.bf16.msrb.mxu3 %v24170_v49  ;;  %9365 = vmatpush.bf16.msra.mxu2 %v24170_v49  ;;  %v17019_v18 = vld [vmem:[%s24914_s8 + $0x104] sm:$0xf0]  ;;  %v17018_v2 = vld [vmem:[%s24914_s8 + $0x104] sm:$0xf]  ;;  %v15467_v37 = vld [vmem:[%s24914_s8 + $0xf8] sm:$0xf0] }
 0xb17   : > { %v9090_v3 = vsel %vm9082_vm11, %v9078_v21, %v9086_v44  ;;  %v17029_v21 = vld [vmem:[%s24914_s8 + $0x154] sm:$0xf0]  ;;  %v15474_v9 = vor.u32 %v17019_v18, %v15473_v31  ;;  %v17041_v31 = vld [vmem:[%s24914_s8 + $0x1b4] sm:$0xf] }
 0xb18   : > { %v9074_v1 = vpop.f32.mrf.mxu3  ;;  %9285 = vmatpush.bf16.msrb.mxu1 %v15346_v25  ;;  %v17017_v25 = vld [vmem:[%s24914_s8 + $0xf4] sm:$0xf0] }
 0xb19   : > { %v9075_v32 = vadd.f32 %v9074_v1, %v9061_v59  ;;  %15309 = vmatmul.msk.bf16.vlgmr.msrb.gmra.mxu3 %vm9103_vm10, %v15308_v50  ;;  %v15513_v59 = vld [vmem:[%s24914_s8 + $0x150] sm:$0xf]  ;;  %v15515_v1 = vld [vmem:[%s24914_s8 + $0x158] sm:$0xf0] }
 0xb1a   : > { %9310 = vmatpush.bf16.msra.mxu3 %v15374_v14  ;;  %v15330_v14 = vor.u32 %v16990_v61, %v15329_v27  ;;  %v15514_v62 = vor.u32 %v17029_v21, %v15513_v59  ;;  %v15459_v61 = vld [vmem:[%s24914_s8 + $0xe8] sm:$0xf0] }
 0xb1b   : > { %v9080_v51 = vadd.f32 %v9075_v32, %v8577_v17  ;;  %v15505_v32 = vld [vmem:[%s24914_s8 + $0x140] sm:$0xf]  ;;  %v15443_v59 = vld [vmem:[%s24914_s8 + $0xc8] sm:$0xf0] }
 0xb1c   : > { %9286 = vmatpush.bf16.msrb.mxu1 %v15338_v42  ;;  %v15457_v42 = vld [vmem:[%s24914_s8 + $0xe0] sm:$0xf] }
 0xb1d   : > { %vm9084_vm12 = vcmp.gt.f32.partialorder %v9080_v51, 0.0  ;;  %v9088_v45 = vmul.f32 0.01, %v9080_v51  ;;  %v15458_v27 = vor.u32 %v17015_v39, %v15457_v42  ;;  %v17051_v42 = vld [vmem:[%s24914_s8 + $0x204] sm:$0xf] }
 0xb1e   : > { %9311 = vmatpush.bf16.msra.mxu3 %v15366_v8  ;;  %v17028_v8 = vld [vmem:[%s24914_s8 + $0x154] sm:$0xf] }
 0xb1f   : > { %v9092_v12 = vsel %vm9084_vm12, %v9080_v51, %v9088_v45  ;;  %v15518_v17 = vor.u32 %v17028_v8, %v15515_v1  ;;  %v17027_v51 = vld [vmem:[%s24914_s8 + $0x144] sm:$0xf0]  ;;  %v15433_v8 = vld [vmem:[%s24914_s8 + $0xb0] sm:$0xf]  ;;  %v17009_v1 = vld [vmem:[%s24914_s8 + $0xb4] sm:$0xf0] }
 0xb20   : > { %v9094_v22 = vpack.c.bf16 %v9092_v12, %v9090_v3  ;;  %9287 = vmatpush.bf16.msrb.mxu1 %v15330_v14  ;;  %v15506_v38 = vor.u32 %v17027_v51, %v15505_v32  ;;  %v17024_v3 = vld [vmem:[%s24914_s8 + $0x134] sm:$0xf]  ;;  %v15499_v12 = vld [vmem:[%s24914_s8 + $0x138] sm:$0xf0] }
 0xb22   : > { %9312 = vmatpush.bf16.msra.mxu3 %v15358_v7  ;;  %v24207_v56 = vand.u32 %v9109_v52, %v9094_v22  ;;  %v16987_v52 = vld [vmem:[%s24914_s8 + $0x14] sm:$0xf]  ;;  %v17026_v7 = vld [vmem:[%s24914_s8 + $0x144] sm:$0xf]  ;;  %v15502_v22 = vor.u32 %v17024_v3, %v15499_v12 }
 0xb23   : > { %v15326_v28 = vor.u32 %v16987_v52, %v15323_v48  ;;  %v15510_v45 = vor.u32 %v17026_v7, %v15507_v23  ;;  %v15465_v48 = vld [vmem:[%s24914_s8 + $0xf0] sm:$0xf] }
 0xb24   : > { %9137 = vmatpush.bf16.msrb.mxu0 %v24207_v56  ;;  %9288 = vmatpush.bf16.msrb.mxu1 %v15322_v34  ;;  %v15466_v46 = vor.u32 %v17017_v25, %v15465_v48  ;;  %v17012_v34 = vld [vmem:[%s24914_s8 + $0xd4] sm:$0xf]  ;;  %v17039_v48 = vld [vmem:[%s24914_s8 + $0x1a4] sm:$0xf] }
 0xb26   : > { %9313 = vmatpush.bf16.msra.mxu3 %v15350_v26  ;;  %v15498_v26 = vor.u32 %v17025_v5, %v15497_v54 }
 0xb27   : > { %15310 = vmatmul.msk.bf16.vlgmr.msrb.gmra.mxu0 %vm9103_vm10, %v15308_v50 }
 0xb28   : > { %9329 = vmatpush.bf16.msra.mxu0 %v15398_v29  ;;  %9289 = vmatpush.bf16.msrb.mxu1 %v15314_v63  ;;  %v15406_v29 = vor.u32 %v17007_v43, %v15405_v6  ;;  %v15454_v63 = vor.u32 %v17012_v34, %v15451_v13  ;;  %v15609_v43 = vld [vmem:[%s24914_s8 + $0x1d0] sm:$0xf]  ;;  %v15579_v34 = vld [vmem:[%s24914_s8 + $0x198] sm:$0xf0] }
 0xb29   : > { %v15625_v13 = vld [vmem:[%s24914_s8 + $0x1f0] sm:$0xf] }
 0xb2a   : > { %9314 = vmatpush.bf16.msra.mxu3 %v15342_v47  ;;  %v15490_v47 = vor.u32 %v17023_v20, %v15489_v55  ;;  %v17045_v55 = vld [vmem:[%s24914_s8 + $0x1d4] sm:$0xf] }
 0xb2c   : > { %9330 = vmatpush.bf16.msra.mxu0 %v15390_v10  ;;  %v17022_v10 = vld [vmem:[%s24914_s8 + $0x124] sm:$0xf]  ;;  %9524 = vmatpush.bf16.msra.mxu1 %v15490_v47  ;;  %v15611_v47 = vld [vmem:[%s24914_s8 + $0x1d8] sm:$0xf0] }
 0xb2e   : > { %9315 = vmatpush.bf16.msra.mxu3 %v15334_v15  ;;  %v15475_v15 = vld [vmem:[%s24914_s8 + $0x108] sm:$0xf0] }
 0xb2f   : > { %v15478_v52 = vor.u32 %v17018_v2, %v15475_v15  ;;  %v15595_v2 = vld [vmem:[%s24914_s8 + $0x1b8] sm:$0xf0]  ;;  %v15585_v15 = vld [vmem:[%s24914_s8 + $0x1a0] sm:$0xf] }
 0xb30   : > { %9331 = vmatpush.bf16.msra.mxu0 %v15382_v16  ;;  %v17020_v16 = vld [vmem:[%s24914_s8 + $0x114] sm:$0xf] }
 0xb31   : > { %v15486_v19 = vor.u32 %v17020_v16, %v15483_v33  ;;  %v15603_v16 = vld [vmem:[%s24914_s8 + $0x1c8] sm:$0xf0]  ;;  %v15593_v33 = vld [vmem:[%s24914_s8 + $0x1b0] sm:$0xf] }
 0xb32   : > { %9316 = vmatpush.bf16.msra.mxu3 %v15326_v28  ;;  %v17016_v28 = vld [vmem:[%s24914_s8 + $0xf4] sm:$0xf] }
 0xb33   : > { %v15470_v40 = vor.u32 %v17016_v28, %v15467_v37  ;;  %v15587_v28 = vld [vmem:[%s24914_s8 + $0x1a8] sm:$0xf0]  ;;  %v15633_v37 = vld [vmem:[%s24914_s8 + $0x200] sm:$0xf] }
 0xb34   : > { %9379 = vmatpush.bf16.msrb.mxu0 %v24207_v56 }
 0xb36   : > { %9317 = vmatpush.bf16.msra.mxu3 %v15318_v57  ;;  %v17014_v57 = vld [vmem:[%s24914_s8 + $0xe4] sm:$0xf] }
 0xb37   : > { %v15462_v14 = vor.u32 %v17014_v57, %v15459_v61  ;;  %v15635_v57 = vld [vmem:[%s24914_s8 + $0x208] sm:$0xf0]  ;;  %v15577_v61 = vld [vmem:[%s24914_s8 + $0x190] sm:$0xf] }
 0xb9c   : > { %v9125_v4 = vpop.f32.mrf.mxu3 }
 0xba4   : > { %v9139_v60 = vpop.f32.mrf.mxu0  ;;  %v9127_v50 = vpop.f32.mrf.mxu3 }
 0xba5   : > { %v9144_v35 = vpack.c.bf16 %v9127_v50, %v9125_v4  ;;  %v15441_v4 = vld [vmem:[%s24914_s8 + $0xc0] sm:$0xf]  ;;  %v17010_v50 = vld [vmem:[%s24914_s8 + $0xc4] sm:$0xf] }
 0xba6   : > { %v15446_v21 = vor.u32 %v17010_v50, %v15443_v59 }
 0xba7   : > { %9318 = vmatmul.bf16.vlgmr.msra.gmra.mxu3 %v9144_v35  ;;  %9290 = vmatmul.bf16.vlgmr.msrb.gmra.mxu1 %v9144_v35 }
 0xbac   : > { %v9141_v58 = vpop.f32.mrf.mxu0 }
 0xbad   : > { %v9145_v44 = vpack.c.bf16 %v9141_v58, %v9139_v60  ;;  %v17011_v60 = vld [vmem:[%s24914_s8 + $0xc4] sm:$0xf0]  ;;  %v17008_v58 = vld [vmem:[%s24914_s8 + $0xb4] sm:$0xf] }
 0xbae   : > { %v15442_v35 = vor.u32 %v17011_v60, %v15441_v4  ;;  %v17049_v4 = vld [vmem:[%s24914_s8 + $0x1f4] sm:$0xf] }
 0xbaf   : > { %15399 = vmatmul.msk.bf16.vlgmr.msrb.gmra.mxu2 %vm9278_vm13, %v9145_v44  ;;  %15400 = vmatmul.msk.bf16.vlgmr.msra.gmra.mxu0 %vm9278_vm13, %v9145_v44 }
 0xbb0   : > { %9543 = vmatpush.bf16.msrb.mxu2 %v15514_v62  ;;  %9571 = vmatpush.bf16.msra.mxu0 %v15518_v17  ;;  %v15434_v62 = vor.u32 %v17009_v1, %v15433_v8  ;;  %v15435_v17 = vld [vmem:[%s24914_s8 + $0xb8] sm:$0xf0]  ;;  %v17036_v8 = vld [vmem:[%s24914_s8 + $0x184] sm:$0xf0]  ;;  %v17035_v1 = vld [vmem:[%s24914_s8 + $0x184] sm:$0xf] }
 0xbb1   : > { %v15438_v32 = vor.u32 %v17008_v58, %v15435_v17 }
 0xbb4   : > { %9544 = vmatpush.bf16.msrb.mxu2 %v15506_v38  ;;  %9572 = vmatpush.bf16.msra.mxu0 %v15510_v45 }
 0xbb8   : > { %9545 = vmatpush.bf16.msrb.mxu2 %v15498_v26  ;;  %9573 = vmatpush.bf16.msra.mxu0 %v15502_v22  ;;  %v15525_v26 = vld [vmem:[%s24913_s7 + $0x10] sm:$0xf]  ;;  %v17030_v22 = vld [vmem:[%s24913_s7 + $0x10] sm:$0x10] }
 0xbb9   : > { %v15526_v6 = vor.u32 %v17030_v22, %v15525_v26  ;;  %v17034_v26 = vld [vmem:[%s24914_s8 + $0x174] sm:$0xf0]  ;;  %v17033_v22 = vld [vmem:[%s24914_s8 + $0x174] sm:$0xf] }
 0xbbf   : > { %15407 = vmatmul.msk.bf16.vlgmr.msra.gmra.mxu2 %vm9103_vm10, %v15406_v29  ;;  %15408 = vmatmul.msk.bf16.vlgmr.msrb.gmra.mxu0 %vm9103_vm10, %v15406_v29  ;;  %v17046_v29 = vld [vmem:[%s24914_s8 + $0x1d4] sm:$0xf0] }
 0xbc0   : > { %9602 = vmatpush.bf16.msra.mxu2 %v24170_v49  ;;  %9616 = vmatpush.bf16.msrb.mxu0 %v24207_v56  ;;  %v15494_v49 = vor.u32 %v17022_v10, %v15491_v30  ;;  %v15481_v56 = vld [vmem:[%s24914_s8 + $0x110] sm:$0xf]  ;;  %v15610_v20 = vor.u32 %v17046_v29, %v15609_v43  ;;  %v15614_v10 = vor.u32 %v17045_v55, %v15611_v47  ;;  %v15601_v30 = vld [vmem:[%s24914_s8 + $0x1c0] sm:$0xf]  ;;  %v15563_v29 = vld [vmem:[%s24914_s8 + $0x178] sm:$0xf0] }
 0xbc1   : > { %v15482_v53 = vor.u32 %v17021_v36, %v15481_v56  ;;  %v17043_v56 = vld [vmem:[%s24914_s8 + $0x1c4] sm:$0xf]  ;;  %v15566_v55 = vor.u32 %v17033_v22, %v15563_v29  ;;  %v17032_v47 = vld [vmem:[%s24914_s8 + $0x164] sm:$0xf0]  ;;  %v9842_v29 = vsel %vm9841_vm14, 4294967295, %v17256_v24 }
 0xbc2   : > { %9552 = vmatpush.bf16.msrb.mxu3 %v15494_v49  ;;  %v17044_v49 = vld [vmem:[%s24914_s8 + $0x1c4] sm:$0xf0] }
 0xbc3   : > { %9525 = vmatpush.bf16.msra.mxu1 %v15482_v53  ;;  %v15602_v36 = vor.u32 %v17044_v49, %v15601_v30  ;;  %v15606_v53 = vor.u32 %v17043_v56, %v15603_v16  ;;  %v15555_v56 = vld [vmem:[%s24914_s8 + $0x168] sm:$0xf0] }
 0xbc6   : > { %9553 = vmatpush.bf16.msrb.mxu3 %v15486_v19  ;;  %v17042_v19 = vld [vmem:[%s24914_s8 + $0x1b4] sm:$0xf0] }
 0xbc7   : > { %9526 = vmatpush.bf16.msra.mxu1 %v15474_v9  ;;  %v15594_v18 = vor.u32 %v17042_v19, %v15593_v33  ;;  %v15598_v9 = vor.u32 %v17041_v31, %v15595_v2 }
 0xbca   : > { %9554 = vmatpush.bf16.msrb.mxu3 %v15478_v52  ;;  %v17040_v52 = vld [vmem:[%s24914_s8 + $0x1a4] sm:$0xf0] }
 0xbcb   : > { %9527 = vmatpush.bf16.msra.mxu1 %v15466_v46  ;;  %v15586_v25 = vor.u32 %v17040_v52, %v15585_v15  ;;  %v15590_v46 = vor.u32 %v17039_v48, %v15587_v28 }
 0xbce   : > { %9555 = vmatpush.bf16.msrb.mxu3 %v15470_v40  ;;  %v17052_v40 = vld [vmem:[%s24914_s8 + $0x204] sm:$0xf0] }
 0xbcf   : > { %9528 = vmatpush.bf16.msra.mxu1 %v15458_v27  ;;  %v15634_v39 = vor.u32 %v17052_v40, %v15633_v37  ;;  %v15638_v27 = vor.u32 %v17051_v42, %v15635_v57 }
 0xbd2   : > { %9556 = vmatpush.bf16.msrb.mxu3 %v15462_v14  ;;  %v17038_v14 = vld [vmem:[%s24914_s8 + $0x194] sm:$0xf0] }
 0xbd3   : > { %9529 = vmatpush.bf16.msra.mxu1 %v15450_v0  ;;  %v15578_v41 = vor.u32 %v17038_v14, %v15577_v61  ;;  %v15582_v0 = vor.u32 %v17037_v11, %v15579_v34 }
 0xbd6   : > { %9557 = vmatpush.bf16.msrb.mxu3 %v15454_v63  ;;  %v17050_v63 = vld [vmem:[%s24914_s8 + $0x1f4] sm:$0xf0] }
 0xbd7   : > { %9530 = vmatpush.bf16.msra.mxu1 %v15442_v35  ;;  %v15626_v50 = vor.u32 %v17050_v63, %v15625_v13  ;;  %v15627_v35 = vld [vmem:[%s24914_s8 + $0x1f8] sm:$0xf0] }
 0xbd8   : > { %v15630_v59 = vor.u32 %v17049_v4, %v15627_v35  ;;  %v17059_v35 = vld [vmem:[%s24917_s11 + $0x30] sm:$0xff] }
 0xbda   : > { %9558 = vmatpush.bf16.msrb.mxu3 %v15446_v21  ;;  %v15569_v21 = vld [vmem:[%s24914_s8 + $0x180] sm:$0xf] }
 0xbdb   : > { %9531 = vmatpush.bf16.msra.mxu1 %v15434_v62  ;;  %v15570_v58 = vor.u32 %v17036_v8, %v15569_v21  ;;  %v15571_v62 = vld [vmem:[%s24914_s8 + $0x188] sm:$0xf0]  ;;  %v17057_v21 = vld [vmem:[%s24917_s11 + $0x20] sm:$0xff]  ;;  %v17056_v8 = vld [vmem:[%s24917_s11 + $0x18] sm:$0xff] }
 0xbdc   : > { %v15574_v17 = vor.u32 %v17035_v1, %v15571_v62  ;;  %v17055_v1 = vld [vmem:[%s24917_s11 + $0x10] sm:$0xff]  ;;  %v17053_v62 = vld [vmem:[%s24917_s11] sm:$0xff] }
 0xbde   : > { %9559 = vmatpush.bf16.msrb.mxu3 %v15438_v32  ;;  %v15617_v32 = vld [vmem:[%s24914_s8 + $0x1e0] sm:$0xf] }
 0xbdf   : > { %9761 = vmatpush.bf16.msrb.mxu1 %v15610_v20  ;;  %v15553_v20 = vld [vmem:[%s24914_s8 + $0x160] sm:$0xf] }
 0xbe0   : > { %v15554_v49 = vor.u32 %v17032_v47, %v15553_v20 }
 0xbe2   : > { %9789 = vmatpush.bf16.msra.mxu3 %v15614_v10  ;;  %v17031_v10 = vld [vmem:[%s24914_s8 + $0x164] sm:$0xf] }
 0xbe3   : > { %9762 = vmatpush.bf16.msrb.mxu1 %v15602_v36  ;;  %v15558_v36 = vor.u32 %v17031_v10, %v15555_v56 }
 0xbe6   : > { %9790 = vmatpush.bf16.msra.mxu3 %v15606_v53  ;;  %v9095_v53 = vld [vmem:[%s24915_s9] sm:$0x3] }
 0xbe7   : > { %9763 = vmatpush.bf16.msrb.mxu1 %v15594_v18  ;;  %v9339_v19 = vperm.slane %v9095_v53, 0 }
 0xbea   : > { %9791 = vmatpush.bf16.msra.mxu3 %v15598_v9 }
 0xbeb   : > { %9764 = vmatpush.bf16.msrb.mxu1 %v15586_v25  ;;  %v9340_v25 = vperm.slane %v9095_v53, 1 }
 0xbee   : > { %9792 = vmatpush.bf16.msra.mxu3 %v15590_v46 }
 0xbef   : > { %9765 = vmatpush.bf16.msrb.mxu1 %v15578_v41 }
 0xbf2   : > { %9793 = vmatpush.bf16.msra.mxu3 %v15582_v0 }
 0xbf3   : > { %9766 = vmatpush.bf16.msrb.mxu1 %v15570_v58  ;;  %v17054_v58 = vld [vmem:[%s24917_s11 + $0x8] sm:$0xff] }
 0xbf6   : > { %9794 = vmatpush.bf16.msra.mxu3 %v15574_v17 }
 0xbfa   : > { %9795 = vmatpush.bf16.msra.mxu3 %v15566_v55 }
 0xbfe   : > { %9796 = vmatpush.bf16.msra.mxu3 %v15558_v36  ;;  %v9843_v36 = vsel %vm6559_vm6, %v9842_v29, 0  ;;  %vm9950_vm6 = vcmask 130048   ;;  %v17106_v29 = vld [vmem:[%s24919_s13 + $0xd0] sm:$0xff] }
 0xc24   : > { %v9291_v60 = vpop.f32.mrf.mxu1 }
 0xc2c   : > { %v24422_v44 = vpop.f32.mrf.mxu0  ;;  %v9293_v30 = vpop.f32.mrf.mxu1 }
 0xc32   : > { %v24424_v51 = vpop.f32.mrf.mxu2 }
 0xc33   : > { %v9306_v33 = vadd.f32 %v24424_v51, %v9291_v60 }
 0xc34   : > { %v24426_v7 = vpop.f32.mrf.mxu0 }
 0xc35   : > { %v9343_v9 = vadd.f32 %v9339_v19, %v9306_v33 }
 0xc3a   : > { %v24428_v23 = vpop.f32.mrf.mxu2 }
 0xc3b   : > { %v9308_v46 = vadd.f32 %v24428_v23, %v9293_v30 }
 0xc3c   : > { %v9381_v38 = vpop.f32.mrf.mxu0 }
 0xc42   : > { %v9367_v45 = vpop.f32.mrf.mxu2 }
 0xc44   : > { %v9383_v54 = vpop.f32.mrf.mxu0 }
 0xc45   : > { %v9387_v5 = vpack.c.bf16 %v9383_v54, %v9381_v38  ;;  %v17048_v38 = vld [vmem:[%s24914_s8 + $0x1e4] sm:$0xf0] }
 0xc46   : > { %v15618_v54 = vor.u32 %v17048_v38, %v15617_v32 }
 0xc47   : > { %15519 = vmatmul.msk.bf16.vlgmr.msrb.gmra.mxu2 %vm9278_vm13, %v9387_v5  ;;  %15520 = vmatmul.msk.bf16.vlgmr.msra.gmra.mxu0 %vm9278_vm13, %v9387_v5  ;;  %v15619_v5 = vld [vmem:[%s24914_s8 + $0x1e8] sm:$0xf0] }
 0xc48   : > { %9780 = vmatpush.bf16.msrb.mxu2 %v15634_v39  ;;  %9808 = vmatpush.bf16.msra.mxu0 %v15638_v27  ;;  %v9345_v27 = vadd.f32 %v9339_v19, %v9308_v46  ;;  %v17061_v19 = vld [vmem:[%s24917_s11 + $0x40] sm:$0xff]  ;;  %v17067_v46 = vld [vmem:[%s24917_s11 + $0x70] sm:$0xff] }
 0xc4a   : > { %v9369_v3 = vpop.f32.mrf.mxu2 }
 0xc4b   : > { %v9386_v12 = vpack.c.bf16 %v9369_v3, %v9367_v45  ;;  %v17047_v45 = vld [vmem:[%s24914_s8 + $0x1e4] sm:$0xf] }
 0xc4c   : > { %9781 = vmatpush.bf16.msrb.mxu2 %v15626_v50  ;;  %9809 = vmatpush.bf16.msra.mxu0 %v15630_v59  ;;  %v15622_v3 = vor.u32 %v17047_v45, %v15619_v5  ;;  %v17058_v59 = vld [vmem:[%s24917_s11 + $0x28] sm:$0xff] }
 0xc4d   : > { %9532 = vmatmul.bf16.vlgmr.msra.gmra.mxu1 %v9386_v12  ;;  %9560 = vmatmul.bf16.vlgmr.msrb.gmra.mxu3 %v9386_v12  ;;  %v15561_v12 = vld [vmem:[%s24914_s8 + $0x170] sm:$0xf] }
 0xc4e   : > { %v15562_v43 = vor.u32 %v17034_v26, %v15561_v12 }
 0xc50   : > { %9782 = vmatpush.bf16.msrb.mxu2 %v15618_v54  ;;  %9810 = vmatpush.bf16.msra.mxu0 %v15622_v3 }
 0xc51   : > { %9767 = vmatpush.bf16.msrb.mxu1 %v15562_v43 }
 0xc55   : > { %9768 = vmatpush.bf16.msrb.mxu1 %v15554_v49 }
 0xc57   : > { %15527 = vmatmul.msk.bf16.vlgmr.msra.gmra.mxu2 %vm9103_vm10, %v15526_v6  ;;  %15528 = vmatmul.msk.bf16.vlgmr.msrb.gmra.mxu0 %vm9103_vm10, %v15526_v6  ;;  %v9319_v6 = vpop.f32.mrf.mxu3 }
 0xc58   : > { %v9334_v48 = vadd.f32 %v24422_v44, %v9319_v6 }
 0xc5a   : > { %v9344_v40 = vadd.f32 %v9340_v25, %v9334_v48 }
 0xc5f   : > { %v9321_v31 = vpop.f32.mrf.mxu3 }
 0xc60   : > { %v9336_v11 = vadd.f32 %v24426_v7, %v9321_v31  ;;  %v17060_v7 = vld [vmem:[%s24917_s11 + $0x38] sm:$0xff] }
 0xc61   : > { %9954 = vmatpush.bf16.msra.mxu1 %v17060_v7 }
 0xc62   : > { %v9346_v0 = vadd.f32 %v9340_v25, %v9336_v11  ;;  %v17076_v11 = vld [vmem:[%s24917_s11 + $0xb8] sm:$0xff] }
 0xc65   : > { %9955 = vmatpush.bf16.msra.mxu1 %v17059_v35 }
 0xc69   : > { %9956 = vmatpush.bf16.msra.mxu1 %v17058_v59 }
 0xc6d   : > { %9957 = vmatpush.bf16.msra.mxu1 %v17057_v21 }
 0xc71   : > { %9958 = vmatpush.bf16.msra.mxu1 %v17056_v8  ;;  %v17073_v8 = vld [vmem:[%s24917_s11 + $0xa0] sm:$0xff] }
 0xc75   : > { %9959 = vmatpush.bf16.msra.mxu1 %v17055_v1  ;;  %v17072_v1 = vld [vmem:[%s24917_s11 + $0x98] sm:$0xff] }
 0xc79   : > { %9960 = vmatpush.bf16.msra.mxu1 %v17054_v58  ;;  %v17071_v58 = vld [vmem:[%s24917_s11 + $0x90] sm:$0xff] }
 0xc7d   : > { %9961 = vmatpush.bf16.msra.mxu1 %v17053_v62 }
 0xcc4   : > { %v9575_v16 = vpop.f32.mrf.mxu0 }
 0xcca   : > { %v9533_v18 = vpop.f32.mrf.mxu1  ;;  %v9547_v2 = vpop.f32.mrf.mxu2 }
 0xccb   : > { %v9548_v15 = vadd.f32 %v9547_v2, %v9533_v18  ;;  %v9836_v18 = vld [vmem:[%s24916_s10] sm:$0xf]  ;;  %v15680_v2 = vld [vmem:[%s24916_s10 + $0x4] sm:$0xf] }
 0xccc   : > { %v9577_v52 = vpop.f32.mrf.mxu0 }
 0xccd   : > { %v9580_v28 = vadd.f32 %v9548_v15, %v9343_v9  ;;  %v17069_v9 = vld [vmem:[%s24917_s11 + $0x80] sm:$0xff] }
 0xcd0   : > { %v9561_v37 = vpop.f32.mrf.mxu3 }
 0xcd1   : > { %v9576_v42 = vadd.f32 %v9575_v16, %v9561_v37  ;;  %v17066_v37 = vld [vmem:[%s24917_s11 + $0x68] sm:$0xff] }
 0xcd2   : > { %v9535_v39 = vpop.f32.mrf.mxu1  ;;  %v9549_v57 = vpop.f32.mrf.mxu2 }
 0xcd3   : > { %v9581_v51 = vadd.f32 %v9576_v42, %v9344_v40  ;;  %v9550_v61 = vadd.f32 %v9549_v57, %v9535_v39  ;;  %v17065_v40 = vld [vmem:[%s24917_s11 + $0x60] sm:$0xff]  ;;  %v15738_v42 = vld [vmem:[%s24916_s10 + $0x8] sm:$0xf]  ;;  %v17064_v39 = vld [vmem:[%s24917_s11 + $0x58] sm:$0xff] }
 0xcd4   : > { %v9618_v14 = vpop.f32.mrf.mxu0  ;;  %v17063_v57 = vld [vmem:[%s24917_s11 + $0x50] sm:$0xff] }
 0xcd5   : > { %v9582_v41 = vadd.f32 %v9550_v61, %v9345_v27  ;;  %v17062_v27 = vld [vmem:[%s24917_s11 + $0x48] sm:$0xff] }
 0xcd6   : > { %v17078_v61 = vld [vmem:[%s24917_s11 + $0xc8] sm:$0xff] }
 0xcd8   : > { %v9563_v34 = vpop.f32.mrf.mxu3 }
 0xcd9   : > { %v9578_v13 = vadd.f32 %v9577_v52, %v9563_v34 }
 0xcda   : > { %v9604_v44 = vpop.f32.mrf.mxu2 }
 0xcdb   : > { %v9583_v63 = vadd.f32 %v9578_v13, %v9346_v0 }
 0xcdc   : > { %v9620_v4 = vpop.f32.mrf.mxu0 }
 0xcdd   : > { %v9624_v60 = vpack.c.bf16 %v9620_v4, %v9618_v14  ;;  %v17077_v14 = vld [vmem:[%s24917_s11 + $0xc0] sm:$0xff]  ;;  %v17074_v4 = vld [vmem:[%s24917_s11 + $0xa8] sm:$0xff] }
 0xcdf   : > { %15639 = vmatmul.msk.bf16.vlgmr.msrb.gmra.mxu2 %vm9278_vm13, %v9624_v60  ;;  %15640 = vmatmul.msk.bf16.vlgmr.msra.gmra.mxu0 %vm9278_vm13, %v9624_v60 }
 0xce2   : > { %v9606_v23 = vpop.f32.mrf.mxu2 }
 0xce3   : > { %v9623_v50 = vpack.c.bf16 %v9606_v23, %v9604_v44 }
 0xce5   : > { %9769 = vmatmul.bf16.vlgmr.msrb.gmra.mxu1 %v9623_v50  ;;  %9797 = vmatmul.bf16.vlgmr.msra.gmra.mxu3 %v9623_v50 }
 0xd5c   : > { %v9812_v45 = vpop.f32.mrf.mxu0 }
 0xd62   : > { %v9770_v17 = vpop.f32.mrf.mxu1  ;;  %v9784_v32 = vpop.f32.mrf.mxu2 }
 0xd63   : > { %v9785_v38 = vadd.f32 %v9784_v32, %v9770_v17 }
 0xd64   : > { %v9814_v47 = vpop.f32.mrf.mxu0 }
 0xd65   : > { %v9817_v5 = vadd.f32 %v9785_v38, %v9580_v28  ;;  %v17068_v28 = vld [vmem:[%s24917_s11 + $0x78] sm:$0xff]  ;;  %v17079_v38 = vld [vmem:[%s24917_s11 + $0xd0] sm:$0xff] }
 0xd67   : > { %v9825_v6 = vmul.f32 0.01, %v9817_v5  ;;  %vm9821_vm15 = vcmp.gt.f32.partialorder %v9817_v5, 0.0 }
 0xd68   : > { %v9798_v54 = vpop.f32.mrf.mxu3 }
 0xd69   : > { %v9813_v26 = vadd.f32 %v9812_v45, %v9798_v54  ;;  %v9829_v30 = vsel %vm9821_vm15, %v9817_v5, %v9825_v6  ;;  %v17086_v45 = vld [vmem:[%s24919_s13 + $0x30] sm:$0xff]  ;;  %v17093_v54 = vld [vmem:[%s24919_s13 + $0x68] sm:$0xff]  ;;  %v17100_v5 = vld [vmem:[%s24919_s13 + $0xa0] sm:$0xff] }
 0xd6a   : > { %v9772_v3 = vpop.f32.mrf.mxu1  ;;  %v9786_v12 = vpop.f32.mrf.mxu2  ;;  %v17084_v6 = vld [vmem:[%s24919_s13 + $0x20] sm:$0xff] }
 0xd6b   : > { %v9787_v22 = vadd.f32 %v9786_v12, %v9772_v3  ;;  %v9818_v55 = vadd.f32 %v9813_v26, %v9581_v51  ;;  %v17070_v51 = vld [vmem:[%s24917_s11 + $0x88] sm:$0xff]  ;;  %v17092_v12 = vld [vmem:[%s24919_s13 + $0x60] sm:$0xff]  ;;  %v17099_v26 = vld [vmem:[%s24919_s13 + $0x98] sm:$0xff] }
 0xd6c   : > { %v17085_v3 = vld [vmem:[%s24919_s13 + $0x28] sm:$0xff] }
 0xd6d   : > { %v9819_v43 = vadd.f32 %v9787_v22, %v9582_v41  ;;  %v9826_v53 = vmul.f32 0.01, %v9818_v55  ;;  %vm9822_vm1 = vcmp.gt.f32.partialorder %v9818_v55, 0.0  ;;  %v17075_v41 = vld [vmem:[%s24917_s11 + $0xb0] sm:$0xff]  ;;  %v17107_v22 = vld [vmem:[%s24919_s13 + $0xd8] sm:$0xff] }
 0xd6f   : > { %vm9823_vm0 = vcmp.gt.f32.partialorder %v9819_v43, 0.0  ;;  %v9827_v20 = vmul.f32 0.01, %v9819_v43  ;;  %v9830_v15 = vsel %vm9822_vm1, %v9818_v55, %v9826_v53  ;;  %v17089_v53 = vld [vmem:[%s24919_s13 + $0x48] sm:$0xff] }
 0xd70   : > { %v9800_v10 = vpop.f32.mrf.mxu3 }
 0xd71   : > { %v9831_v49 = vsel %vm9823_vm0, %v9819_v43, %v9827_v20  ;;  %v9815_v56 = vadd.f32 %v9814_v47, %v9800_v10  ;;  %v17091_v43 = vld [vmem:[%s24919_s13 + $0x58] sm:$0xff]  ;;  %v17098_v20 = vld [vmem:[%s24919_s13 + $0x90] sm:$0xff]  ;;  %v17105_v47 = vld [vmem:[%s24919_s13 + $0xc8] sm:$0xff] }
 0xd72   : > { %v9833_v16 = vpack.c.bf16 %v9831_v49, %v9829_v30  ;;  %v17083_v10 = vld [vmem:[%s24919_s13 + $0x18] sm:$0xff]  ;;  %v17090_v30 = vld [vmem:[%s24919_s13 + $0x50] sm:$0xff]  ;;  %v17097_v49 = vld [vmem:[%s24919_s13 + $0x88] sm:$0xff] }
 0xd73   : > { %v9820_v33 = vadd.f32 %v9815_v56, %v9583_v63 }
 0xd74   : > { %v9845_v31 = vand.u32 %v9843_v36, %v9833_v16  ;;  %v17082_v16 = vld [vmem:[%s24919_s13 + $0x10] sm:$0xff] }
 0xd75   : > { %vm9824_vm2 = vcmp.gt.f32.partialorder %v9820_v33, 0.0  ;;  %v9828_v24 = vmul.f32 0.01, %v9820_v33 }
 0xd76   : > { %9857 = vmatpush.bf16.msra.mxu2 %v9845_v31  ;;  %9996 = vmatpush.bf16.msrb.mxu3 %v9845_v31 }
 0xd77   : > { %v9832_v52 = vsel %vm9824_vm2, %v9820_v33, %v9828_v24 }
 0xd78   : > { %v9834_v48 = vpack.c.bf16 %v9832_v52, %v9830_v15  ;;  %v17189_v52 = vld [vmem:[%s24918_s12] ss:$0 sm:$0xff] }
 0xd79   : > { %15641 = vmatmul.msk.bf16.vlgmr.msra.gmra.mxu2 %vm9837_vm3, %v9836_v18  ;;  %15681 = vmatmul.msk.bf16.vlgmr.msrb.gmra.mxu3 %vm9837_vm3, %v15680_v2 }
 0xd7a   : > { %9974 = vmatpush.bf16.msrb.mxu2 %v17061_v19  ;;  %v9848_v25 = vand.u32 %v9843_v36, %v9834_v48  ;;  %10113 = vmatpush.bf16.msra.mxu3 %v17070_v51  ;;  %v17096_v19 = vld [vmem:[%s24919_s13 + $0x80] sm:$0xff]  ;;  %v17095_v51 = vld [vmem:[%s24919_s13 + $0x78] sm:$0xff] }
 0xd7c   : > { %9870 = vmatpush.bf16.msrb.mxu0 %v9848_v25  ;;  %10145 = vmatpush.bf16.msrb.mxu1 %v9848_v25 }
 0xd7e   : > { %10093 = vmatpush.bf16.msra.mxu2 %v17069_v9  ;;  %10229 = vmatpush.bf16.msrb.mxu3 %v17078_v61 }
 0xd7f   : > { %15642 = vmatmul.msk.bf16.vlgmr.msrb.gmra.mxu0 %vm9837_vm3, %v9836_v18  ;;  %v17080_v18 = vld [vmem:[%s24919_s13] sm:$0xff] }
 0xd80   : > { %10009 = vmatpush.bf16.msra.mxu0 %v9848_v25 }
 0xd82   : > { %10094 = vmatpush.bf16.msra.mxu2 %v17068_v28  ;;  %10230 = vmatpush.bf16.msrb.mxu3 %v17077_v14  ;;  %v17104_v14 = vld [vmem:[%s24919_s13 + $0xc0] sm:$0xff] }
 0xd84   : > { %10132 = vmatpush.bf16.msrb.mxu0 %v9845_v31  ;;  %v17081_v31 = vld [vmem:[%s24919_s13 + $0x8] sm:$0xff] }
 0xd86   : > { %10095 = vmatpush.bf16.msra.mxu2 %v17067_v46  ;;  %10231 = vmatpush.bf16.msrb.mxu3 %v17076_v11  ;;  %v17113_v11 = vld [vmem:[%s24919_s13 + $0x108] sm:$0xff] }
 0xd8a   : > { %10096 = vmatpush.bf16.msra.mxu2 %v17066_v37  ;;  %10232 = vmatpush.bf16.msrb.mxu3 %v17075_v41  ;;  %v17087_v41 = vld [vmem:[%s24919_s13 + $0x38] sm:$0xff] }
 0xd8e   : > { %10097 = vmatpush.bf16.msra.mxu2 %v17065_v40  ;;  %10233 = vmatpush.bf16.msrb.mxu3 %v17074_v4  ;;  %v17120_v4 = vld [vmem:[%s24919_s13 + $0x140] sm:$0xff] }
 0xd8f   : > { %15682 = vmatmul.msk.bf16.vlgmr.msra.gmra.mxu0 %vm9837_vm3, %v15680_v2  ;;  %v17114_v2 = vld [vmem:[%s24919_s13 + $0x110] sm:$0xff] }
 0xd90   : > { %10249 = vmatpush.bf16.msra.mxu0 %v17079_v38  ;;  %v17116_v38 = vld [vmem:[%s24919_s13 + $0x120] sm:$0xff] }
 0xd92   : > { %10098 = vmatpush.bf16.msra.mxu2 %v17064_v39  ;;  %10234 = vmatpush.bf16.msrb.mxu3 %v17073_v8  ;;  %v17118_v8 = vld [vmem:[%s24919_s13 + $0x130] sm:$0xff] }
 0xd96   : > { %10099 = vmatpush.bf16.msra.mxu2 %v17063_v57  ;;  %10235 = vmatpush.bf16.msrb.mxu3 %v17072_v1  ;;  %v17125_v1 = vld [vmem:[%s24919_s13 + $0x168] sm:$0xff] }
 0xd9a   : > { %10100 = vmatpush.bf16.msra.mxu2 %v17062_v27  ;;  %10236 = vmatpush.bf16.msrb.mxu3 %v17071_v58  ;;  %v17088_v27 = vld [vmem:[%s24919_s13 + $0x40] sm:$0xff]  ;;  %v17109_v58 = vld [vmem:[%s24919_s13 + $0xe8] sm:$0xff] }
 0xd9f   : > { %15739 = vmatmul.msk.bf16.vlgmr.msrb.gmra.mxu0 %vm9837_vm3, %v15738_v42 }
 0xda0   : > { %10477 = vmatpush.bf16.msrb.mxu0 %v17100_v5  ;;  %v17122_v5 = vld [vmem:[%s24919_s13 + $0x150] sm:$0xff] }
 0xda4   : > { %10478 = vmatpush.bf16.msrb.mxu0 %v17099_v26 }
 0xda8   : > { %10479 = vmatpush.bf16.msrb.mxu0 %v17098_v20 }
 0xdac   : > { %10480 = vmatpush.bf16.msrb.mxu0 %v17097_v49 }
 0xdb0   : > { %10481 = vmatpush.bf16.msrb.mxu0 %v17096_v19  ;;  %v17133_v19 = vld [vmem:[%s24921_s15 + $0x20] sm:$0xff] }
 0xdb4   : > { %10482 = vmatpush.bf16.msrb.mxu0 %v17095_v51 }
 0xdfc   : > { %v9859_v34 = vpop.f32.mrf.mxu2  ;;  %v9872_v0 = vpop.f32.mrf.mxu0 }
 0xdfd   : > { %v9876_v13 = vpack.c.bf16 %v9859_v34, %v9859_v34  ;;  %v9877_v44 = vpack.c.bf16 %v9872_v0, %v9872_v0  ;;  %v9998_v63 = vpop.f32.mrf.mxu3  ;;  %v17094_v34 = vld [vmem:[%s24919_s13 + $0x70] sm:$0xff]  ;;  %v17121_v0 = vld [vmem:[%s24919_s13 + $0x148] sm:$0xff] }
 0xdfe   : > { %v10015_v7 = vpack.c.bf16 %v9998_v63, %v9998_v63  ;;  %10483 = vmatpush.bf16.msrb.mxu0 %v17094_v34  ;;  %v17112_v63 = vld [vmem:[%s24919_s13 + $0x100] sm:$0xff] }
 0xdff   : > { %9962 = vmatmul.bf16.vlgmr.msra.gmra.mxu1 %v9876_v13  ;;  %15679 = vmatmul.msk.bf16.vlgmr.msrb.gmra.mxu2 %vm9950_vm6, %v9877_v44  ;;  %v17128_v13 = vld [vmem:[%s24919_s13 + $0x180] sm:$0xff]  ;;  %v17103_v44 = vld [vmem:[%s24919_s13 + $0xb8] sm:$0xff] }
 0xe00   : > { %10322 = vmatpush.bf16.msra.mxu1 %v17086_v45  ;;  %10402 = vmatpush.bf16.msrb.mxu2 %v17093_v54  ;;  %v17123_v45 = vld [vmem:[%s24919_s13 + $0x158] sm:$0xff] }
 0xe01   : > { %v17115_v54 = vld [vmem:[%s24919_s13 + $0x118] sm:$0xff] }
 0xe04   : > { %v9874_v60 = vpop.f32.mrf.mxu0  ;;  %v9861_v23 = vpop.f32.mrf.mxu2  ;;  %10323 = vmatpush.bf16.msra.mxu1 %v17085_v3  ;;  %10403 = vmatpush.bf16.msrb.mxu2 %v17092_v12 }
 0xe05   : > { %v10000_v50 = vpop.f32.mrf.mxu3  ;;  %v17127_v60 = vld [vmem:[%s24919_s13 + $0x178] sm:$0xff]  ;;  %v17102_v23 = vld [vmem:[%s24919_s13 + $0xb0] sm:$0xff] }
 0xe06   : > { %v17111_v50 = vld [vmem:[%s24919_s13 + $0xf8] sm:$0xff] }
 0xe08   : > { %10324 = vmatpush.bf16.msra.mxu1 %v17084_v6  ;;  %10404 = vmatpush.bf16.msrb.mxu2 %v17091_v43 }
 0xe0c   : > { %v10011_v35 = vpop.f32.mrf.mxu0  ;;  %10325 = vmatpush.bf16.msra.mxu1 %v17083_v10  ;;  %10405 = vmatpush.bf16.msrb.mxu2 %v17090_v30 }
 0xe0d   : > { %v10016_v59 = vpack.c.bf16 %v10011_v35, %v10011_v35  ;;  %v17126_v35 = vld [vmem:[%s24919_s13 + $0x170] sm:$0xff] }
 0xe0f   : > { %10101 = vmatmul.bf16.vlgmr.msra.gmra.mxu2 %v10015_v7  ;;  %15737 = vmatmul.msk.bf16.vlgmr.msra.gmra.mxu3 %vm9950_vm6, %v10016_v59  ;;  %v17119_v7 = vld [vmem:[%s24919_s13 + $0x138] sm:$0xff]  ;;  %v17101_v59 = vld [vmem:[%s24919_s13 + $0xa8] sm:$0xff] }
 0xe10   : > { %15740 = vmatmul.msk.bf16.vlgmr.msrb.gmra.mxu1 %vm9837_vm3, %v15738_v42  ;;  %10552 = vmatpush.bf16.msra.mxu3 %v17107_v22 }
 0xe11   : > { %10326 = vmatpush.bf16.msra.mxu1 %v17082_v16  ;;  %10406 = vmatpush.bf16.msrb.mxu2 %v17089_v53  ;;  %v17136_v16 = vld [vmem:[%s24921_s15 + $0x38] sm:$0xff]  ;;  %v17135_v53 = vld [vmem:[%s24921_s15 + $0x30] sm:$0xff] }
 0xe14   : > { %v10013_v21 = vpop.f32.mrf.mxu0  ;;  %10553 = vmatpush.bf16.msra.mxu3 %v17106_v29 }
 0xe15   : > { %10327 = vmatpush.bf16.msra.mxu1 %v17081_v31  ;;  %10407 = vmatpush.bf16.msrb.mxu2 %v17088_v27  ;;  %v17110_v21 = vld [vmem:[%s24919_s13 + $0xf0] sm:$0xff]  ;;  %v17132_v31 = vld [vmem:[%s24921_s15 + $0x18] sm:$0xff] }
 0xe18   : > { %10554 = vmatpush.bf16.msra.mxu3 %v17105_v47 }
 0xe19   : > { %10328 = vmatpush.bf16.msra.mxu1 %v17080_v18  ;;  %10408 = vmatpush.bf16.msrb.mxu2 %v17087_v41  ;;  %v17130_v18 = vld [vmem:[%s24921_s15 + $0x8] sm:$0xff] }
 0xe1c   : > { %v10134_v62 = vpop.f32.mrf.mxu0  ;;  %10555 = vmatpush.bf16.msra.mxu3 %v17104_v14 }
 0xe1d   : > { %v10151_v17 = vpack.c.bf16 %v10134_v62, %v10134_v62  ;;  %10627 = vmatpush.bf16.msrb.mxu1 %v17114_v2  ;;  %10702 = vmatpush.bf16.msra.mxu2 %v17121_v0  ;;  %v17117_v62 = vld [vmem:[%s24919_s13 + $0x128] sm:$0xff] }
 0xe1f   : > { %10237 = vmatmul.bf16.vlgmr.msrb.gmra.mxu3 %v10151_v17  ;;  %v17124_v17 = vld [vmem:[%s24919_s13 + $0x160] sm:$0xff] }
 0xe20   : > { %10556 = vmatpush.bf16.msra.mxu3 %v17103_v44 }
 0xe21   : > { %10628 = vmatpush.bf16.msrb.mxu1 %v17113_v11  ;;  %10703 = vmatpush.bf16.msra.mxu2 %v17120_v4 }
 0xe24   : > { %v10136_v32 = vpop.f32.mrf.mxu0  ;;  %10557 = vmatpush.bf16.msra.mxu3 %v17102_v23  ;;  %v17257_v23 = vmov 6  }
 0xe25   : > { %10629 = vmatpush.bf16.msrb.mxu1 %v17112_v63  ;;  %10704 = vmatpush.bf16.msra.mxu2 %v17119_v7  ;;  %v17108_v32 = vld [vmem:[%s24919_s13 + $0xe0] sm:$0xff] }
 0xe26   : > { %17188 = vset.pattern.permute.xlu0 %v17257_v23 }
 0xe28   : > { %10558 = vmatpush.bf16.msra.mxu3 %v17101_v59 }
 0xe29   : > { %10630 = vmatpush.bf16.msrb.mxu1 %v17111_v50  ;;  %10705 = vmatpush.bf16.msra.mxu2 %v17118_v8  ;;  %v10810_v50 = vld [vmem:[%s24922_s16] sm:$0x1]  ;;  %v17258_v8 = vmov 6.0  }
 0xe2a   : > { %17190 = vrcp.f32 %v17258_v8 }
 0xe2c   : > { %10859 = vmatpush.bf16.msrb.mxu3 %v17136_v16 }
 0xe2d   : > { %10631 = vmatpush.bf16.msrb.mxu1 %v17110_v21  ;;  %10706 = vmatpush.bf16.msra.mxu2 %v17117_v62 }
 0xe30   : > { %10860 = vmatpush.bf16.msrb.mxu3 %v17135_v53 }
 0xe31   : > { %10632 = vmatpush.bf16.msrb.mxu1 %v17109_v58  ;;  %10707 = vmatpush.bf16.msra.mxu2 %v17116_v38 }
 0xe35   : > { %10633 = vmatpush.bf16.msrb.mxu1 %v17108_v32  ;;  %10708 = vmatpush.bf16.msra.mxu2 %v17115_v54 }
 0xe7c   : > { %v9963_v55 = vpop.f32.mrf.mxu1 }
 0xe82   : > { %v9976_v56 = vpop.f32.mrf.mxu2 }
 0xe83   : > { %v9977_v36 = vadd.f32 %v9976_v56, %v9963_v55 }
 0xe84   : > { %v9965_v33 = vpop.f32.mrf.mxu1 }
 0xe85   : > { %v9983_v28 = vadd.f32 %v17189_v52, %v9977_v36  ;;  %v17134_v33 = vld [vmem:[%s24921_s15 + $0x28] sm:$0xff] }
 0xe86   : > { %10861 = vmatpush.bf16.msrb.mxu3 %v17134_v33 }
 0xe8a   : > { %v9978_v24 = vpop.f32.mrf.mxu2  ;;  %10862 = vmatpush.bf16.msrb.mxu3 %v17133_v19 }
 0xe8b   : > { %v17131_v24 = vld [vmem:[%s24921_s15 + $0x10] sm:$0xff] }
 0xe8d   : > { %v10147_v9 = vpop.f32.mrf.mxu1 }
 0xe8e   : > { %v10152_v15 = vpack.c.bf16 %v10147_v9, %v10147_v9  ;;  %10863 = vmatpush.bf16.msrb.mxu3 %v17132_v31  ;;  %v17129_v9 = vld [vmem:[%s24921_s15] sm:$0xff] }
 0xe90   : > { %15795 = vmatmul.msk.bf16.vlgmr.msra.gmra.mxu0 %vm9950_vm6, %v10152_v15 }
 0xe91   : > { %10777 = vmatpush.bf16.msra.mxu0 %v17128_v13 }
 0xe92   : > { %v10102_v48 = vpop.f32.mrf.mxu2  ;;  %v10115_v25 = vpop.f32.mrf.mxu3  ;;  %10864 = vmatpush.bf16.msrb.mxu3 %v17131_v24 }
 0xe93   : > { %v10116_v46 = vadd.f32 %v10115_v25, %v10102_v48  ;;  %v10260_v48 = vld [vmem:[%s24920_s14] sm:$0x1] }
 0xe95   : > { %v24748_v37 = vadd.f32 %v10116_v46, %v9983_v28  ;;  %v10149_v40 = vpop.f32.mrf.mxu1  ;;  %10778 = vmatpush.bf16.msra.mxu0 %v17127_v60 }
 0xe96   : > { %10865 = vmatpush.bf16.msrb.mxu3 %v17130_v18 }
 0xe99   : > { %10779 = vmatpush.bf16.msra.mxu0 %v17126_v35 }
 0xe9a   : > { %v10117_v42 = vpop.f32.mrf.mxu3  ;;  %v10104_v39 = vpop.f32.mrf.mxu2  ;;  %10866 = vmatpush.bf16.msrb.mxu3 %v17129_v9 }
 0xe9d   : > { %10780 = vmatpush.bf16.msra.mxu0 %v17125_v1  ;;  %v17191_v1 = vpop.eup %17190 }
 0xe9e   : > { %v10877_v58 = vmul.f32 6.0, %v17191_v1  ;;  %vm10881_vm9 = vweird.f32 %v17191_v1 }
 0xea0   : > { %v10878_v62 = vsub.f32 1.0, %v10877_v58 }
 0xea1   : > { %10781 = vmatpush.bf16.msra.mxu0 %v17124_v17 }
 0xea2   : > { %v10238_v57 = vpop.f32.mrf.mxu3  ;;  %v10879_v17 = vmul.f32 %v17191_v1, %v10878_v62 }
 0xea4   : > { %v10880_v32 = vadd.f32 %v17191_v1, %v10879_v17 }
 0xea5   : > { %10782 = vmatpush.bf16.msra.mxu0 %v17123_v45 }
 0xea6   : > { %v10882_v38 = vsel %vm10881_vm9, %v17191_v1, %v10880_v32 }
 0xea9   : > { %10783 = vmatpush.bf16.msra.mxu0 %v17122_v5 }
 0xeaa   : > { %v10240_v61 = vpop.f32.mrf.mxu3 }
 0xf0d   : > { %v10251_v3 = vpop.f32.mrf.mxu0 }
 0xf0e   : > { %v10252_v12 = vadd.f32 %v10251_v3, %v10238_v57 }
 0xf10   : > { %v10255_v26 = vadd.f32 %v10252_v12, %v24748_v37 }
 0xf12   : > { %vm10256_vm4 = vcmp.gt.f32.partialorder %v10255_v26, 0.0  ;;  %v10257_v22 = vmul.f32 0.01, %v10255_v26 }
 0xf14   : > { %v10258_v6 = vsel %vm10256_vm4, %v10255_v26, %v10257_v22 }
 0xf15   : > { %v10259_v43 = vpack.c.bf16 %v10258_v6, %v10258_v6  ;;  %v10253_v29 = vpop.f32.mrf.mxu0 }
 0xf17   : > { %v10351_v55 = vunpack.c.l.b16 %v10259_v43  ;;  %15824 = vmatmul.msk.bf16.vlgmr.msra.gmra.mxu1 %vm10317_vm5, %v10259_v43 }
 0xf19   : > { %v10352_v20 = vpack.c.b16 %v10351_v55, %v10351_v55 }
 0xf1b   : > { %v10354_v47 = vshrl.u32 %v10352_v20, 16  ;;  %v10430_v10 = vrot.slane %v10352_v20, 1  ;;  %v10580_v49 = vrot.slane %v10352_v20, 2  ;;  %v10730_v36 = vrot.slane %v10352_v20, 3 }
 0xf1d   : > { %15867 = vmatmul.msk.bf16.vlgmr.msrb.gmra.mxu2 %vm10317_vm5, %v10354_v47  ;;  %15910 = vmatmul.msk.bf16.vlgmr.msrb.gmra.mxu0 %vm10317_vm5, %v10430_v10  ;;  %v10505_v30 = vrot.slane %v10354_v47, 1  ;;  %v10655_v56 = vrot.slane %v10354_v47, 2 }
 0xf1f   : > { %15953 = vmatmul.msk.bf16.vlgmr.msra.gmra.mxu3 %vm10317_vm5, %v10505_v30 }
 0xf27   : > { %15996 = vmatmul.msk.bf16.vlgmr.msrb.gmra.mxu1 %vm10317_vm5, %v10580_v49 }
 0xf2d   : > { %16039 = vmatmul.msk.bf16.vlgmr.msra.gmra.mxu2 %vm10317_vm5, %v10655_v56  ;;  %16082 = vmatmul.msk.bf16.vlgmr.msra.gmra.mxu0 %vm10317_vm5, %v10730_v36 }
 0xf94   : > { %v10330_v2 = vpop.f32.mrf.mxu1 }
 0xf95   : > { %v10334_v28 = vadd.f32 %v10330_v2, %v10260_v48 }
 0xf9a   : > { %v10485_v15 = vpop.f32.mrf.mxu0 }
 0xf9c   : > { %v10332_v52 = vpop.f32.mrf.mxu1 }
 0xfa0   : > { %v10410_v25 = vpop.f32.mrf.mxu2 }
 0xfa1   : > { %v10414_v40 = vadd.f32 %v10410_v25, %v10334_v28 }
 0xfa2   : > { %v10487_v46 = vpop.f32.mrf.mxu0  ;;  %v10560_v37 = vpop.f32.mrf.mxu3 }
 0xfa3   : > { %v10489_v39 = vadd.f32 %v10485_v15, %v10414_v40 }
 0xfa4   : > { %v10635_v42 = vpop.f32.mrf.mxu1 }
 0xfa5   : > { %v10564_v61 = vadd.f32 %v10560_v37, %v10489_v39 }
 0xfa7   : > { %v10639_v11 = vadd.f32 %v10635_v42, %v10564_v61 }
 0xfa8   : > { %v10412_v57 = vpop.f32.mrf.mxu2 }
 0xfaa   : > { %v10562_v27 = vpop.f32.mrf.mxu3  ;;  %v10785_v51 = vpop.f32.mrf.mxu0 }
 0xfac   : > { %v10637_v14 = vpop.f32.mrf.mxu1 }
 0xfb0   : > { %v10710_v41 = vpop.f32.mrf.mxu2 }
 0xfb1   : > { %v10714_v34 = vadd.f32 %v10710_v41, %v10639_v11 }
 0xfb2   : > { %v10787_v0 = vpop.f32.mrf.mxu0 }
 0xfb3   : > { %v10789_v13 = vadd.f32 %v10785_v51, %v10714_v34 }
 0xfb5   : > { %vm10790_vm7 = vcmp.gt.f32.partialorder %v10789_v13, 0.0  ;;  %v10791_v44 = vmul.f32 0.01, %v10789_v13 }
 0xfb7   : > { %v10792_v63 = vsel %vm10790_vm7, %v10789_v13, %v10791_v44 }
 0xfb8   : > { %v10793_v4 = vpack.c.bf16 %v10792_v63, %v10792_v63  ;;  %v10712_v60 = vpop.f32.mrf.mxu2 }
 0xfba   : > { %10867 = vmatmul.bf16.vlgmr.msrb.gmra.mxu3 %v10793_v4 }
0x103d   : > { %v10868_v7 = vpop.f32.mrf.mxu3 }
0x103e   : > { %v10869_v35 = vadd.f32 %v10868_v7, %v10810_v50 }
0x1040   : > { %v10873_v59 = vsel %vm10872_vm8, %v10869_v35, 0.0 }
0x1041   : > { %10874 = vadd.xlane.f32.xlu0 %v10873_v59 }
0x1045   : > { %v10870_v21 = vpop.f32.mrf.mxu3 }
0x1055   : > { %10887 = vperm.xlu0 %17188, %v10869_v35  }
0x10b4   : > { %v10875_v45 = vpop.xlane.xlu0 %10874 }
0x10b5   : > { %v10883_v54 = vmul.f32 %v10882_v38, %v10875_v45 }
0x10b7   : > { %v10884_v5 = vsub.f32 %v10869_v35, %v10883_v54 }
0x10c7   : > { %v10888_v3 = vpop.permute.xlu0 %10887 }
0x10c8   : > { %v10890_v12 = vadd.f32 %v10888_v3, %v10884_v5 }
0x10ca   : > { %10891 = vst.msk [vmem:[%s540_s26] sm:$0x1] %vm10872_vm8, %v10890_v12 }
0x10cb   : > { %17219 = shalt.err (!%p17216_p3)
}
0x10cc   : > { %17146 = dma.vmem_to_hbm [thread:$0]  (%p17387_p5), %s10904_s0, 16, %s10906_s18, %s10893_s22  }
0x10cd PF: > { %s25195_s27 = sld [smem:[#allocation7_spill]] }
0x10ce   : > { %s25196_s26 = sld [smem:[#allocation5_spill]] }
0x10d3   : > { %p17152_p4 = scmp.ge.s32.totalorder %s25195_s27, 2 }
0x10d4   : > { %s10917_s3 = sand.u32 1, %s25196_s26  }
0x10d5   : > { %p17149_p7 = pnand %p17152_p4, %p17391_p6  ;;  %s10918_s20 = scalar_lea.sflag [#allocation3], %s10917_s3 }
0x10d7   : > { %p17150_p8 = pneg %p17149_p7 }
0x10d9   : > { %17237 = dma.done.wait (%p17150_p8), %s10918_s20, 16  }
0x10da   : > { %17239 = vsyncadd (%p17150_p8), %s10918_s20, 4294967280  ;;  %s25198_s27 = sld [smem:[#allocation8_spill]]  ;;  %s25201_s24 = smov %s17246_s25 }
0x10db   : > { %s25199_s19 = sld [smem:[#allocation6_spill]] }
0x10dc   : > { %s25200_s26 = sld [smem:[#allocation9_spill]] }
0x10e0   : > { %p27_p9 = scmp.ge.s32.totalorder %s25198_s27, 4  }
0x10e1   : > { %s25202_s25 = smov %s25199_s19 }
0x10e2   :  { %29 = sbr.rel (!%p27_p9) target bundleno = 8 (0x8), region = 157 }
0x10e7   :  { %10923 = vsyncpa [#allocation3], 1 }
0x10e8   :  { %10925 = vsyncpa [#allocation3 + $0x1], 1 }

</bundles_post_ra>
